<compile_context>
chip_gen: v7x
topology: tpu7x:2x2x1
jax: 0.10.0
libtpu: 0.0.40
codegen_flags: <defaults>
</compile_context>

<pallas_src>
import jax
import jax.numpy as jnp
from jax.experimental import pallas as pl
from jax.experimental.pallas import tpu as pltpu

IN_DIM = 175 * 150                       # 26250 (nn.Flatten output)
DIMS = [IN_DIM, 64, 32, 16, 16, 2]


def _mlp_kernel(x_ref,
                w1_ref, b1_ref,
                w2_ref, b2_ref,
                w3_ref, b3_ref,
                w4_ref, b4_ref,
                w5_ref, b5_ref,
                out_ref):
    # Layer 1: stream f32 x, cast to bf16 just before the MXU dot (f32 accum).
    x = x_ref[...].astype(jnp.bfloat16)
    h = jnp.dot(x, w1_ref[...], preferred_element_type=jnp.float32)
    h = jnp.maximum(h + b1_ref[...], 0.0)
    # Layers 2-4: tiny f32 matmuls, fully fused in VMEM.
    h = jnp.maximum(
        jnp.dot(h, w2_ref[...], preferred_element_type=jnp.float32) + b2_ref[...], 0.0)
    h = jnp.maximum(
        jnp.dot(h, w3_ref[...], preferred_element_type=jnp.float32) + b3_ref[...], 0.0)
    h = jnp.maximum(
        jnp.dot(h, w4_ref[...], preferred_element_type=jnp.float32) + b4_ref[...], 0.0)
    # Layer 5 + sigmoid epilogue (exp -> EUP; explicit reciprocal).
    h = jnp.dot(h, w5_ref[...], preferred_element_type=jnp.float32) + b5_ref[...]
    out_ref[...] = pl.reciprocal(1.0 + jnp.exp(-h), approx=False)


def _chip_config():
    """(max batch tile, vmem limit) per TPU generation.

    Conservative default fits v7x's 64 MiB VMEM; chips with 128 MiB VMEM
    (v5e / v6e) get a larger tile and limit.  The explicit limit also avoids
    falling back to v5e's 16 MiB scoped-VMEM default."""
    max_tm, vmem_limit = 128, 56 << 20
    try:
        info = pltpu.get_tpu_info()
        if getattr(info, "vmem_capacity_bytes", 0) >= (100 << 20):
            max_tm, vmem_limit = 256, 96 << 20
    except Exception:
        pass
    return max_tm, vmem_limit


def _choose_tile(rows, max_tm):
    """Batch tile: multiple of 8 sublanes, <= max_tm, <= rows; prefer an even
    number of grid steps so ("parallel",) splits work across both v7x TCs."""
    tm = max(8, min(max_tm, (rows // 8) * 8))
    n = pl.cdiv(rows, tm)
    if n > 1 and n % 2 == 1 and tm > 8:
        tm_alt = max(8, ((pl.cdiv(rows, n + 1) + 7) // 8) * 8)
        if pl.cdiv(rows, tm_alt) % 2 == 0:
            tm = tm_alt
    return tm


def prepare_params(params):
    """One-time parameter prep (hoisted out of the per-call path).

    W1 -> bf16 (the only big HBM weight stream), everything else f32, biases
    reshaped to (1, out).  Reuse the returned list across forward calls so the
    per-call graph only streams x."""
    flat = []
    for idx, (w, b) in enumerate(params):
        flat.append(w.astype(jnp.bfloat16 if idx == 0 else jnp.float32))
        flat.append(b.reshape(1, -1).astype(jnp.float32))
    return flat


def neural_network_forward(x, prepared_params, *, max_tile_m=None, vmem_limit_bytes=None):
    """x: (B, 175, 150) float32.  prepared_params: flat list from prepare_params()."""
    if max_tile_m is None or vmem_limit_bytes is None:
        auto_tm, auto_vmem = _chip_config()
        max_tile_m = max_tile_m or auto_tm
        vmem_limit_bytes = vmem_limit_bytes or auto_vmem

    B = x.shape[0]
    x_flat = x.reshape(B, -1)                          # nn.Flatten()
    assert x_flat.shape[1] == IN_DIM
    if x_flat.dtype != jnp.float32:
        x_flat = x_flat.astype(jnp.float32)

    # Only a sub-sublane batch (< 8 rows) needs a tiny row pad; otherwise x is
    # streamed as-is and the last partial batch tile is masked by Pallas.
    if B < 8:
        x_rows = jnp.pad(x_flat, ((0, 8 - B), (0, 0)))
    else:
        x_rows = x_flat
    R = x_rows.shape[0]

    tm = _choose_tile(R, max_tile_m)
    grid = (pl.cdiv(R, tm),)

    def const_spec(shape):
        # Constant block index across the grid -> DMA'd once, stays resident.
        return pl.BlockSpec(shape, lambda i, n=len(shape): (0,) * n)

    in_specs = [pl.BlockSpec((tm, IN_DIM), lambda i: (i, 0))]
    for p in prepared_params:
        in_specs.append(const_spec(p.shape))

    out = pl.pallas_call(
        _mlp_kernel,
        out_shape=jax.ShapeDtypeStruct((R, DIMS[-1]), jnp.float32),
        grid=grid,
        in_specs=in_specs,
        out_specs=pl.BlockSpec((tm, DIMS[-1]), lambda i: (i, 0)),
        compiler_params=pltpu.CompilerParams(
            dimension_semantics=("parallel",),   # megacore sharding on v7x
            vmem_limit_bytes=vmem_limit_bytes,
        ),
    )(x_rows, *prepared_params)

    return out[:B]


def init_params(key):
    """Deterministic init mimicking nn.Linear default (uniform +/- 1/sqrt(fan_in))."""
    params = []
    for i in range(len(DIMS) - 1):
        fan_in, fan_out = DIMS[i], DIMS[i + 1]
        key, kw, kb = jax.random.split(key, 3)
        bound = 1.0 / jnp.sqrt(jnp.float32(fan_in))
        w = jax.random.uniform(kw, (fan_in, fan_out), jnp.float32, -bound, bound)
        b = jax.random.uniform(kb, (1, fan_out), jnp.float32, -bound, bound)
        params.append((w, b))
    return params


def reference_forward(x, params):
    """Pure-JAX reference mirroring the kernel's numerics (bf16 inputs to layer 1,
    f32 accumulation; f32 everywhere else)."""
    h = x.reshape(x.shape[0], -1).astype(jnp.float32)
    w1, b1 = params[0]
    h = jnp.dot(h.astype(jnp.bfloat16), w1.astype(jnp.bfloat16),
                preferred_element_type=jnp.float32) + b1
    h = jnp.maximum(h, 0.0)
    tail = params[1:]
    for i, (w, b) in enumerate(tail):
        h = jnp.dot(h, w, preferred_element_type=jnp.float32) + b
        if i < len(tail) - 1:
            h = jnp.maximum(h, 0.0)
        else:
            h = jax.nn.sigmoid(h)
    return h


if __name__ == "__main__":
    key = jax.random.PRNGKey(0)
    key, kx = jax.random.split(key)
    # Small, module-consistent input: batch=2 images of 175x150 (flattened dim fixed by Linear).
    x = jax.random.normal(kx, (2, 175, 150), dtype=jnp.float32)

    params = init_params(key)
    prepared = prepare_params(params)    # one-time prep, reused across calls

    out = neural_network_forward(x, prepared)
    out = jax.block_until_ready(out)

    ref = reference_forward(x, params)
    assert out.shape == (2, 2), out.shape
    assert jnp.allclose(out, ref, atol=2e-3, rtol=2e-3), (out, ref)

    print("KERNEL_OK")
</pallas_src>

<mosaic_0001>
module attributes {stable_mosaic.version = 11 : i64} {
  func.func @_mlp_kernel(%arg0: i32, %arg1: memref<8x26250xf32, #tpu.memory_space<vmem>>, %arg2: memref<26250x64xbf16, #tpu.memory_space<vmem>>, %arg3: memref<1x64xf32, #tpu.memory_space<vmem>>, %arg4: memref<64x32xf32, #tpu.memory_space<vmem>>, %arg5: memref<1x32xf32, #tpu.memory_space<vmem>>, %arg6: memref<32x16xf32, #tpu.memory_space<vmem>>, %arg7: memref<1x16xf32, #tpu.memory_space<vmem>>, %arg8: memref<16x16xf32, #tpu.memory_space<vmem>>, %arg9: memref<1x16xf32, #tpu.memory_space<vmem>>, %arg10: memref<16x2xf32, #tpu.memory_space<vmem>>, %arg11: memref<1x2xf32, #tpu.memory_space<vmem>>, %arg12: memref<8x2xf32, #tpu.memory_space<vmem>>) attributes {dimension_semantics = [#tpu.dimension_semantics<parallel>], iteration_bounds = array<i64: 1>, scalar_prefetch = 0 : i64, scratch_operands = 0 : i64, tpu.core_type = #tpu.core_type<tc>, window_params = [{transform_indices = @transform_0, window_bounds = array<i64: 8, 26250>}, {pipeline_mode = #tpu.pipeline_mode<synchronous>, transform_indices = @transform_1, window_bounds = array<i64: 26250, 64>}, {pipeline_mode = #tpu.pipeline_mode<synchronous>, transform_indices = @transform_2, window_bounds = array<i64: 1, 64>}, {pipeline_mode = #tpu.pipeline_mode<synchronous>, transform_indices = @transform_3, window_bounds = array<i64: 64, 32>}, {pipeline_mode = #tpu.pipeline_mode<synchronous>, transform_indices = @transform_4, window_bounds = array<i64: 1, 32>}, {pipeline_mode = #tpu.pipeline_mode<synchronous>, transform_indices = @transform_5, window_bounds = array<i64: 32, 16>}, {pipeline_mode = #tpu.pipeline_mode<synchronous>, transform_indices = @transform_6, window_bounds = array<i64: 1, 16>}, {pipeline_mode = #tpu.pipeline_mode<synchronous>, transform_indices = @transform_7, window_bounds = array<i64: 16, 16>}, {pipeline_mode = #tpu.pipeline_mode<synchronous>, transform_indices = @transform_8, window_bounds = array<i64: 1, 16>}, {pipeline_mode = #tpu.pipeline_mode<synchronous>, transform_indices = @transform_9, window_bounds = array<i64: 16, 2>}, {pipeline_mode = #tpu.pipeline_mode<synchronous>, transform_indices = @transform_10, window_bounds = array<i64: 1, 2>}, {transform_indices = @transform_11, window_bounds = array<i64: 8, 2>}]} {
    %c0 = arith.constant 0 : index
    %c0_0 = arith.constant 0 : index
    %0 = vector.load %arg1[%c0, %c0_0] : memref<8x26250xf32, #tpu.memory_space<vmem>>, vector<8x26250xf32>
    %1 = arith.truncf %0 : vector<8x26250xf32> to vector<8x26250xbf16>
    %c0_1 = arith.constant 0 : index
    %c0_2 = arith.constant 0 : index
    %2 = vector.load %arg2[%c0_1, %c0_2] : memref<26250x64xbf16, #tpu.memory_space<vmem>>, vector<26250x64xbf16>
    %cst = arith.constant dense<0.000000e+00> : vector<8x64xf32>
    %3 = tpu.matmul %1, %2, %cst {dimension_numbers = #tpu.dot_dimension_numbers<[1], [0], [0], [1], [0, 0, 1, 1], [], []>} : vector<8x26250xbf16>, vector<26250x64xbf16>, vector<8x64xf32> -> vector<8x64xf32>
    %c0_3 = arith.constant 0 : index
    %c0_4 = arith.constant 0 : index
    %4 = vector.load %arg3[%c0_3, %c0_4] : memref<1x64xf32, #tpu.memory_space<vmem>>, vector<1x64xf32>
    %5 = vector.broadcast %4 : vector<1x64xf32> to vector<8x64xf32>
    %6 = arith.addf %3, %5 : vector<8x64xf32>
    %cst_5 = arith.constant 0.000000e+00 : f32
    %7 = vector.broadcast %cst_5 : f32 to vector<8x64xf32>
    %8 = arith.maximumf %6, %7 : vector<8x64xf32>
    %c0_6 = arith.constant 0 : index
    %c0_7 = arith.constant 0 : index
    %9 = vector.load %arg4[%c0_6, %c0_7] : memref<64x32xf32, #tpu.memory_space<vmem>>, vector<64x32xf32>
    %cst_8 = arith.constant dense<0.000000e+00> : vector<8x32xf32>
    %10 = tpu.matmul %8, %9, %cst_8 {dimension_numbers = #tpu.dot_dimension_numbers<[1], [0], [0], [1], [0, 0, 1, 1], [], []>} : vector<8x64xf32>, vector<64x32xf32>, vector<8x32xf32> -> vector<8x32xf32>
    %c0_9 = arith.constant 0 : index
    %c0_10 = arith.constant 0 : index
    %11 = vector.load %arg5[%c0_9, %c0_10] : memref<1x32xf32, #tpu.memory_space<vmem>>, vector<1x32xf32>
    %12 = vector.broadcast %11 : vector<1x32xf32> to vector<8x32xf32>
    %13 = arith.addf %10, %12 : vector<8x32xf32>
    %cst_11 = arith.constant 0.000000e+00 : f32
    %14 = vector.broadcast %cst_11 : f32 to vector<8x32xf32>
    %15 = arith.maximumf %13, %14 : vector<8x32xf32>
    %c0_12 = arith.constant 0 : index
    %c0_13 = arith.constant 0 : index
    %16 = vector.load %arg6[%c0_12, %c0_13] : memref<32x16xf32, #tpu.memory_space<vmem>>, vector<32x16xf32>
    %cst_14 = arith.constant dense<0.000000e+00> : vector<8x16xf32>
    %17 = tpu.matmul %15, %16, %cst_14 {dimension_numbers = #tpu.dot_dimension_numbers<[1], [0], [0], [1], [0, 0, 1, 1], [], []>} : vector<8x32xf32>, vector<32x16xf32>, vector<8x16xf32> -> vector<8x16xf32>
    %c0_15 = arith.constant 0 : index
    %c0_16 = arith.constant 0 : index
    %18 = vector.load %arg7[%c0_15, %c0_16] : memref<1x16xf32, #tpu.memory_space<vmem>>, vector<1x16xf32>
    %19 = vector.broadcast %18 : vector<1x16xf32> to vector<8x16xf32>
    %20 = arith.addf %17, %19 : vector<8x16xf32>
    %cst_17 = arith.constant 0.000000e+00 : f32
    %21 = vector.broadcast %cst_17 : f32 to vector<8x16xf32>
    %22 = arith.maximumf %20, %21 : vector<8x16xf32>
    %c0_18 = arith.constant 0 : index
    %c0_19 = arith.constant 0 : index
    %23 = vector.load %arg8[%c0_18, %c0_19] : memref<16x16xf32, #tpu.memory_space<vmem>>, vector<16x16xf32>
    %cst_20 = arith.constant dense<0.000000e+00> : vector<8x16xf32>
    %24 = tpu.matmul %22, %23, %cst_20 {dimension_numbers = #tpu.dot_dimension_numbers<[1], [0], [0], [1], [0, 0, 1, 1], [], []>} : vector<8x16xf32>, vector<16x16xf32>, vector<8x16xf32> -> vector<8x16xf32>
    %c0_21 = arith.constant 0 : index
    %c0_22 = arith.constant 0 : index
    %25 = vector.load %arg9[%c0_21, %c0_22] : memref<1x16xf32, #tpu.memory_space<vmem>>, vector<1x16xf32>
    %26 = vector.broadcast %25 : vector<1x16xf32> to vector<8x16xf32>
    %27 = arith.addf %24, %26 : vector<8x16xf32>
    %cst_23 = arith.constant 0.000000e+00 : f32
    %28 = vector.broadcast %cst_23 : f32 to vector<8x16xf32>
    %29 = arith.maximumf %27, %28 : vector<8x16xf32>
    %c0_24 = arith.constant 0 : index
    %c0_25 = arith.constant 0 : index
    %30 = vector.load %arg10[%c0_24, %c0_25] : memref<16x2xf32, #tpu.memory_space<vmem>>, vector<16x2xf32>
    %cst_26 = arith.constant dense<0.000000e+00> : vector<8x2xf32>
    %31 = tpu.matmul %29, %30, %cst_26 {dimension_numbers = #tpu.dot_dimension_numbers<[1], [0], [0], [1], [0, 0, 1, 1], [], []>} : vector<8x16xf32>, vector<16x2xf32>, vector<8x2xf32> -> vector<8x2xf32>
    %c0_27 = arith.constant 0 : index
    %c0_28 = arith.constant 0 : index
    %32 = vector.load %arg11[%c0_27, %c0_28] : memref<1x2xf32, #tpu.memory_space<vmem>>, vector<1x2xf32>
    %33 = vector.broadcast %32 : vector<1x2xf32> to vector<8x2xf32>
    %34 = arith.addf %31, %33 : vector<8x2xf32>
    %cst_29 = arith.constant 0.000000e+00 : f32
    %35 = vector.broadcast %cst_29 : f32 to vector<8x2xf32>
    %36 = arith.subf %35, %34 : vector<8x2xf32>
    %37 = math.exp %36 : vector<8x2xf32>
    %cst_30 = arith.constant 1.000000e+00 : f32
    %38 = vector.broadcast %cst_30 : f32 to vector<8x2xf32>
    %39 = arith.addf %38, %37 : vector<8x2xf32>
    %40 = tpu.reciprocal %39 : vector<8x2xf32> -> vector<8x2xf32>
    %c0_31 = arith.constant 0 : index
    %c0_32 = arith.constant 0 : index
    %41 = vector.load %arg12[%c0_31, %c0_32] : memref<8x2xf32, #tpu.memory_space<vmem>>, vector<8x2xf32>
    tpu.vector_store %arg12[%c0_31, %c0_32], %40 {strides = array<i32>} : memref<8x2xf32, #tpu.memory_space<vmem>>, vector<8x2xf32>,
    return
  }
  func.func @transform_0(%arg0: i32) -> (i32, i32) {
    %c0_i32 = arith.constant 0 : i32
    %c0_i32_0 = arith.constant 0 : i32
    return %arg0, %c0_i32 : i32, i32
  }
  func.func @transform_1(%arg0: i32) -> (i32, i32) {
    %c0_i32 = arith.constant 0 : i32
    %c0_i32_0 = arith.constant 0 : i32
    %c0_i32_1 = arith.constant 0 : i32
    return %c0_i32, %c0_i32_0 : i32, i32
  }
  func.func @transform_2(%arg0: i32) -> (i32, i32) {
    %c0_i32 = arith.constant 0 : i32
    %c0_i32_0 = arith.constant 0 : i32
    %c0_i32_1 = arith.constant 0 : i32
    return %c0_i32, %c0_i32_0 : i32, i32
  }
  func.func @transform_3(%arg0: i32) -> (i32, i32) {
    %c0_i32 = arith.constant 0 : i32
    %c0_i32_0 = arith.constant 0 : i32
    %c0_i32_1 = arith.constant 0 : i32
    return %c0_i32, %c0_i32_0 : i32, i32
  }
  func.func @transform_4(%arg0: i32) -> (i32, i32) {
    %c0_i32 = arith.constant 0 : i32
    %c0_i32_0 = arith.constant 0 : i32
    %c0_i32_1 = arith.constant 0 : i32
    return %c0_i32, %c0_i32_0 : i32, i32
  }
  func.func @transform_5(%arg0: i32) -> (i32, i32) {
    %c0_i32 = arith.constant 0 : i32
    %c0_i32_0 = arith.constant 0 : i32
    %c0_i32_1 = arith.constant 0 : i32
    return %c0_i32, %c0_i32_0 : i32, i32
  }
  func.func @transform_6(%arg0: i32) -> (i32, i32) {
    %c0_i32 = arith.constant 0 : i32
    %c0_i32_0 = arith.constant 0 : i32
    %c0_i32_1 = arith.constant 0 : i32
    return %c0_i32, %c0_i32_0 : i32, i32
  }
  func.func @transform_7(%arg0: i32) -> (i32, i32) {
    %c0_i32 = arith.constant 0 : i32
    %c0_i32_0 = arith.constant 0 : i32
    %c0_i32_1 = arith.constant 0 : i32
    return %c0_i32, %c0_i32_0 : i32, i32
  }
  func.func @transform_8(%arg0: i32) -> (i32, i32) {
    %c0_i32 = arith.constant 0 : i32
    %c0_i32_0 = arith.constant 0 : i32
    %c0_i32_1 = arith.constant 0 : i32
    return %c0_i32, %c0_i32_0 : i32, i32
  }
  func.func @transform_9(%arg0: i32) -> (i32, i32) {
    %c0_i32 = arith.constant 0 : i32
    %c0_i32_0 = arith.constant 0 : i32
    %c0_i32_1 = arith.constant 0 : i32
    return %c0_i32, %c0_i32_0 : i32, i32
  }
  func.func @transform_10(%arg0: i32) -> (i32, i32) {
    %c0_i32 = arith.constant 0 : i32
    %c0_i32_0 = arith.constant 0 : i32
    %c0_i32_1 = arith.constant 0 : i32
    return %c0_i32, %c0_i32_0 : i32, i32
  }
  func.func @transform_11(%arg0: i32) -> (i32, i32) {
    %c0_i32 = arith.constant 0 : i32
    %c0_i32_0 = arith.constant 0 : i32
    return %arg0, %c0_i32 : i32, i32
  }
}

</mosaic_0001>

<bundles_post_ra>
// kernel: tpu_custom_call.1
= control target key start
LH: loop header
LB: loop body
LE: loop exit
PB: predicated region body
PF: predicated region fallthrough
CT: control target
= control target key end

     0   :  { %vm13585_vm0 = vcmask 80896   ;;  %vm13589_vm1 = vcmask 1044480   ;;  %vm23701_vm2 = vmmov 0   ;;  %vm17729_vm3 = vcmask 523264   ;;  %s29515_s1 = inlined_call_operand.vmem [shape: bf16[26250,64], index: 1, kind: input, shape index: {}]   ;;  %s29516_s0 = inlined_call_operand.vmem [shape: f32[8,26250], index: 0, kind: input, shape index: {}]   ;;  %s29517_s2 = inlined_call_operand.vmem [shape: f32[1,64], index: 2, kind: input, shape index: {}]   ;;  %s29518_s3 = inlined_call_operand.vmem [shape: f32[64,32], index: 3, kind: input, shape index: {}]   ;;  %s29519_s5 = inlined_call_operand.vmem [shape: f32[32,16], index: 5, kind: input, shape index: {}]   ;;  %s29520_s4 = inlined_call_operand.vmem [shape: f32[1,32], index: 4, kind: input, shape index: {}]   ;;  %s29521_s7 = inlined_call_operand.vmem [shape: f32[16,16], index: 7, kind: input, shape index: {}]   ;;  %s29522_s6 = inlined_call_operand.vmem [shape: f32[1,16], index: 6, kind: input, shape index: {}]   ;;  %s29523_s9 = inlined_call_operand.vmem [shape: f32[16,2], index: 9, kind: input, shape index: {}]   ;;  %s29524_s8 = inlined_call_operand.vmem [shape: f32[1,16], index: 8, kind: input, shape index: {}]   ;;  %s29525_s10 = inlined_call_operand.vmem [shape: f32[1,2], index: 10, kind: input, shape index: {}]   ;;  %s29526_s11 = inlined_call_operand.vmem [shape: f32[8,2], index: 11, kind: output, shape index: {}]  }
   0x1   :  { %v22054_v0 = vld [vmem:[%s29515_s1 + $0x40] sm:$0xff]   ;;  %v22058_v4 = vld [vmem:[%s29515_s1 + $0x48] sm:$0xff]   ;;  %v22062_v8 = vld [vmem:[%s29515_s1 + $0x50] sm:$0xff]   ;;  %vm17815_vm4 = vcmask 261120   ;;  %vm17899_vm5 = vcmask 130048   ;;  %vm18061_vm6 = vcmask 15360  }
   0x2   :  { %v22055_v1 = vld [vmem:[%s29515_s1] sm:$0xff]   ;;  %19718 = vmatprep.subr.bf16.mxu0 %v22054_v0  ;;  %v22059_v5 = vld [vmem:[%s29515_s1 + $0x8] sm:$0xff]   ;;  %v22063_v9 = vld [vmem:[%s29515_s1 + $0x10] sm:$0xff]  }
   0x3   :  { %v22056_v2 = vld [vmem:[%s29515_s1 + $0xc0] sm:$0xff]   ;;  %19719 = vmatpush3.bf16.msra.mxu0 %v22055_v1  ;;  %v22060_v6 = vld [vmem:[%s29515_s1 + $0xc8] sm:$0xff]   ;;  %v22064_v10 = vld [vmem:[%s29515_s1 + $0xd0] sm:$0xff]  }
   0x4   :  { %v22057_v3 = vld [vmem:[%s29515_s1 + $0x80] sm:$0xff]   ;;  %19740 = vmatprep.subr.bf16.mxu1 %v22056_v2  ;;  %19720 = vmatprep.subr.bf16.mxu0 %v22058_v4  ;;  %v22061_v7 = vld [vmem:[%s29515_s1 + $0x88] sm:$0xff]   ;;  %v22065_v11 = vld [vmem:[%s29515_s1 + $0x90] sm:$0xff]  }
   0x5   :  { %19741 = vmatpush3.bf16.msra.mxu1 %v22057_v3  ;;  %v22066_v12 = vld [vmem:[%s29515_s1 + $0x58] sm:$0xff]   ;;  %v22070_v16 = vld [vmem:[%s29515_s1 + $0x60] sm:$0xff]   ;;  %v22074_v20 = vld [vmem:[%s29515_s1 + $0x68] sm:$0xff]  }
   0x6   :  { %19742 = vmatprep.subr.bf16.mxu1 %v22060_v6  ;;  %v22067_v13 = vld [vmem:[%s29515_s1 + $0x18] sm:$0xff]   ;;  %v22071_v17 = vld [vmem:[%s29515_s1 + $0x20] sm:$0xff]   ;;  %v22075_v21 = vld [vmem:[%s29515_s1 + $0x28] sm:$0xff]  }
   0x7   :  { %19721 = vmatpush3.bf16.msra.mxu0 %v22059_v5  ;;  %v22068_v14 = vld [vmem:[%s29515_s1 + $0xd8] sm:$0xff]   ;;  %v22072_v18 = vld [vmem:[%s29515_s1 + $0xe0] sm:$0xff]   ;;  %v22076_v22 = vld [vmem:[%s29515_s1 + $0xe8] sm:$0xff]  }
   0x8   :  { %19722 = vmatprep.subr.bf16.mxu0 %v22062_v8  ;;  %v22069_v15 = vld [vmem:[%s29515_s1 + $0x98] sm:$0xff]   ;;  %v22073_v19 = vld [vmem:[%s29515_s1 + $0xa0] sm:$0xff]   ;;  %v22077_v23 = vld [vmem:[%s29515_s1 + $0xa8] sm:$0xff]  }
   0x9   :  { %19743 = vmatpush3.bf16.msra.mxu1 %v22061_v7  ;;  %v22078_v24 = vld [vmem:[%s29515_s1 + $0x70] sm:$0xff]   ;;  %v22082_v28 = vld [vmem:[%s29515_s1 + $0x78] sm:$0xff]   ;;  %v40_v31 = vld [vmem:[%s29516_s0 + $0x8] sm:$0xff] }
   0xa   :  { %19744 = vmatprep.subr.bf16.mxu1 %v22064_v10  ;;  %v22079_v25 = vld [vmem:[%s29515_s1 + $0x30] sm:$0xff]   ;;  %v22083_v29 = vld [vmem:[%s29515_s1 + $0x38] sm:$0xff]   ;;  %v246_v32 = vpack.c.bf16 %v40_v31, %v40_v31  ;;  %v39_v34 = vld [vmem:[%s29516_s0] sm:$0xff] }
   0xb   :  { %19723 = vmatpush3.bf16.msra.mxu0 %v22063_v9  ;;  %v22080_v26 = vld [vmem:[%s29515_s1 + $0xf0] sm:$0xff]   ;;  %v22084_v30 = vld [vmem:[%s29515_s1 + $0xf8] sm:$0xff]   ;;  %v245_v35 = vpack.c.bf16 %v39_v34, %v39_v34  ;;  %v22086_v36 = vld [vmem:[%s29515_s1 + $0x140] sm:$0xff]  }
   0xc   :  { %19724 = vmatprep.subr.bf16.mxu0 %v22066_v12  ;;  %v22081_v27 = vld [vmem:[%s29515_s1 + $0xb0] sm:$0xff]   ;;  %v22085_v33 = vld [vmem:[%s29515_s1 + $0xb8] sm:$0xff]   ;;  %13625 = vmatprep.mubr.bf16.mxu0 %v246_v32  ;;  %v22087_v39 = vld [vmem:[%s29515_s1 + $0x100] sm:$0xff]  }
   0xd   :  { %19745 = vmatpush3.bf16.msra.mxu1 %v22065_v11  ;;  %v42_v37 = vld [vmem:[%s29516_s0 + $0x18] sm:$0xff]  ;;  %v41_v40 = vld [vmem:[%s29516_s0 + $0x10] sm:$0xff]  ;;  %v22088_v42 = vld [vmem:[%s29515_s1 + $0x1c0] sm:$0xff]  }
   0xe   :  { %19746 = vmatprep.subr.bf16.mxu1 %v22068_v14  ;;  %v248_v38 = vpack.c.bf16 %v42_v37, %v42_v37  ;;  %v247_v41 = vpack.c.bf16 %v41_v40, %v41_v40  ;;  %v22089_v43 = vld [vmem:[%s29515_s1 + $0x180] sm:$0xff]   ;;  %v22090_v44 = vld [vmem:[%s29515_s1 + $0x148] sm:$0xff]   ;;  %v22094_v48 = vld [vmem:[%s29515_s1 + $0x150] sm:$0xff]  }
   0xf   :  { %19725 = vmatpush3.bf16.msra.mxu0 %v22067_v13  ;;  %v22091_v45 = vld [vmem:[%s29515_s1 + $0x108] sm:$0xff]   ;;  %v22095_v49 = vld [vmem:[%s29515_s1 + $0x110] sm:$0xff]   ;;  %v22098_v52 = vld [vmem:[%s29515_s1 + $0x158] sm:$0xff]  }
  0x10   :  { %19726 = vmatprep.subr.bf16.mxu0 %v22070_v16  ;;  %13665 = vmatprep.mubr.bf16.mxu1 %v248_v38  ;;  %v22092_v46 = vld [vmem:[%s29515_s1 + $0x1c8] sm:$0xff]   ;;  %v22096_v50 = vld [vmem:[%s29515_s1 + $0x1d0] sm:$0xff]   ;;  %v22099_v53 = vld [vmem:[%s29515_s1 + $0x118] sm:$0xff]  }
  0x11   :  { %19747 = vmatpush3.bf16.msra.mxu1 %v22069_v15  ;;  %v22093_v47 = vld [vmem:[%s29515_s1 + $0x188] sm:$0xff]   ;;  %v22097_v51 = vld [vmem:[%s29515_s1 + $0x190] sm:$0xff]   ;;  %v22100_v54 = vld [vmem:[%s29515_s1 + $0x1d8] sm:$0xff]  }
  0x12   :  { %19748 = vmatprep.subr.bf16.mxu1 %v22072_v18  ;;  %v22101_v55 = vld [vmem:[%s29515_s1 + $0x198] sm:$0xff]   ;;  %v22102_v56 = vld [vmem:[%s29515_s1 + $0x160] sm:$0xff]   ;;  %v22106_v60 = vld [vmem:[%s29515_s1 + $0x168] sm:$0xff]  }
  0x13   :  { %19727 = vmatpush3.bf16.msra.mxu0 %v22071_v17  ;;  %v22103_v57 = vld [vmem:[%s29515_s1 + $0x120] sm:$0xff]   ;;  %v22107_v61 = vld [vmem:[%s29515_s1 + $0x128] sm:$0xff]   ;;  %v22110_v0 = vld [vmem:[%s29515_s1 + $0x170] sm:$0xff]  }
  0x14   :  { %19728 = vmatprep.subr.bf16.mxu0 %v22074_v20  ;;  %v22104_v58 = vld [vmem:[%s29515_s1 + $0x1e0] sm:$0xff]   ;;  %v22108_v62 = vld [vmem:[%s29515_s1 + $0x1e8] sm:$0xff]   ;;  %v22111_v1 = vld [vmem:[%s29515_s1 + $0x130] sm:$0xff]  }
  0x15   :  { %19749 = vmatpush3.bf16.msra.mxu1 %v22073_v19  ;;  %v22105_v59 = vld [vmem:[%s29515_s1 + $0x1a0] sm:$0xff]   ;;  %v22109_v63 = vld [vmem:[%s29515_s1 + $0x1a8] sm:$0xff]   ;;  %v22112_v2 = vld [vmem:[%s29515_s1 + $0x1f0] sm:$0xff]  }
  0x16   :  { %19750 = vmatprep.subr.bf16.mxu1 %v22076_v22  ;;  %v22113_v3 = vld [vmem:[%s29515_s1 + $0x1b0] sm:$0xff]   ;;  %v22114_v4 = vld [vmem:[%s29515_s1 + $0x178] sm:$0xff]   ;;  %v44_v7 = vld [vmem:[%s29516_s0 + $0x28] sm:$0xff] }
  0x17   :  { %19729 = vmatpush3.bf16.msra.mxu0 %v22075_v21  ;;  %v22115_v5 = vld [vmem:[%s29515_s1 + $0x138] sm:$0xff]   ;;  %v250_v8 = vpack.c.bf16 %v44_v7, %v44_v7  ;;  %v43_v10 = vld [vmem:[%s29516_s0 + $0x20] sm:$0xff]  ;;  %v45_v16 = vld [vmem:[%s29516_s0 + $0x30] sm:$0xff] }
  0x18   :  { %19730 = vmatprep.subr.bf16.mxu0 %v22078_v24  ;;  %v22116_v6 = vld [vmem:[%s29515_s1 + $0x1f8] sm:$0xff]   ;;  %v249_v11 = vpack.c.bf16 %v43_v10, %v43_v10  ;;  %v22118_v12 = vld [vmem:[%s29515_s1 + $0x240] sm:$0xff]   ;;  %v251_v17 = vpack.c.bf16 %v45_v16, %v45_v16  ;;  %v22122_v20 = vld [vmem:[%s29515_s1 + $0x248] sm:$0xff]  }
  0x19   :  { %19751 = vmatpush3.bf16.msra.mxu1 %v22077_v23  ;;  %v22117_v9 = vld [vmem:[%s29515_s1 + $0x1b8] sm:$0xff]   ;;  %v22119_v15 = vld [vmem:[%s29515_s1 + $0x200] sm:$0xff]   ;;  %v22123_v21 = vld [vmem:[%s29515_s1 + $0x208] sm:$0xff]  }
  0x1a   :  { %19752 = vmatprep.subr.bf16.mxu1 %v22080_v26  ;;  %v46_v13 = vld [vmem:[%s29516_s0 + $0x38] sm:$0xff]  ;;  %v22120_v18 = vld [vmem:[%s29515_s1 + $0x2c0] sm:$0xff]   ;;  %v22124_v22 = vld [vmem:[%s29515_s1 + $0x2c8] sm:$0xff]  }
  0x1b   :  { %19731 = vmatpush3.bf16.msra.mxu0 %v22079_v25  ;;  %v252_v14 = vpack.c.bf16 %v46_v13, %v46_v13  ;;  %v22121_v19 = vld [vmem:[%s29515_s1 + $0x280] sm:$0xff]   ;;  %v22125_v23 = vld [vmem:[%s29515_s1 + $0x288] sm:$0xff]   ;;  %v22126_v24 = vld [vmem:[%s29515_s1 + $0x250] sm:$0xff]  }
  0x1c   :  { %19732 = vmatprep.subr.bf16.mxu0 %v22082_v28  ;;  %v22127_v25 = vld [vmem:[%s29515_s1 + $0x210] sm:$0xff]   ;;  %v22130_v28 = vld [vmem:[%s29515_s1 + $0x258] sm:$0xff]   ;;  %v22134_v32 = vld [vmem:[%s29515_s1 + $0x260] sm:$0xff]  }
  0x1d   :  { %19753 = vmatpush3.bf16.msra.mxu1 %v22081_v27  ;;  %v22128_v26 = vld [vmem:[%s29515_s1 + $0x2d0] sm:$0xff]   ;;  %v22133_v31 = vld [vmem:[%s29515_s1 + $0x298] sm:$0xff]   ;;  %v22136_v34 = vld [vmem:[%s29515_s1 + $0x2e0] sm:$0xff]  }
  0x1e   :  { %19754 = vmatprep.subr.bf16.mxu1 %v22084_v30  ;;  %v22129_v27 = vld [vmem:[%s29515_s1 + $0x290] sm:$0xff]   ;;  %v22132_v30 = vld [vmem:[%s29515_s1 + $0x2d8] sm:$0xff]   ;;  %v22139_v37 = vld [vmem:[%s29515_s1 + $0x228] sm:$0xff]  }
  0x1f   :  { %19733 = vmatpush3.bf16.msra.mxu0 %v22083_v29  ;;  %v22131_v29 = vld [vmem:[%s29515_s1 + $0x218] sm:$0xff]   ;;  %v22140_v38 = vld [vmem:[%s29515_s1 + $0x2e8] sm:$0xff]   ;;  %v22142_v40 = vld [vmem:[%s29515_s1 + $0x270] sm:$0xff]  }
  0x20   :  { %19762 = vmatprep.subr.bf16.mxu0 %v22086_v36  ;;  %v22138_v36 = vld [vmem:[%s29515_s1 + $0x268] sm:$0xff]   ;;  %v22165_v7 = vld [vmem:[%s29515_s1 + $0x398] sm:$0xff]   ;;  %v22168_v10 = vld [vmem:[%s29515_s1 + $0x3e0] sm:$0xff]  }
  0x21   :  { %19755 = vmatpush3.bf16.msra.mxu1 %v22085_v33  ;;  %v22135_v33 = vld [vmem:[%s29515_s1 + $0x220] sm:$0xff]   ;;  %v22171_v13 = vld [vmem:[%s29515_s1 + $0x328] sm:$0xff]   ;;  %v22174_v16 = vld [vmem:[%s29515_s1 + $0x370] sm:$0xff]  }
  0x22   :  { %13626 = vmatmul.mubr.bf16.vlgmr.msra.gmra.mrb[0].mxu0 %v245_v35  ;;  %19784 = vmatprep.subr.bf16.mxu1 %v22088_v42  ;;  %v22137_v35 = vld [vmem:[%s29515_s1 + $0x2a0] sm:$0xff]   ;;  %v22144_v42 = vld [vmem:[%s29515_s1 + $0x2f0] sm:$0xff]  }
  0x23   :  { %19763 = vmatpush3.bf16.msra.mxu0 %v22087_v39  ;;  %13705 = vmatprep.mubr.bf16.mxu0 %v250_v8  ;;  %v22141_v39 = vld [vmem:[%s29515_s1 + $0x2a8] sm:$0xff]   ;;  %v22166_v8 = vld [vmem:[%s29515_s1 + $0x360] sm:$0xff]  }
  0x24   :  { %13666 = vmatmul.mubr.bf16.vlgmr.msra.gmra.mrb[0].mxu1 %v247_v41  ;;  %19764 = vmatprep.subr.bf16.mxu0 %v22090_v44  ;;  %v22143_v41 = vld [vmem:[%s29515_s1 + $0x230] sm:$0xff]   ;;  %v22146_v44 = vld [vmem:[%s29515_s1 + $0x278] sm:$0xff]  }
  0x25   :  { %19785 = vmatpush3.bf16.msra.mxu1 %v22089_v43  ;;  %13745 = vmatprep.mubr.bf16.mxu1 %v252_v14  ;;  %v22145_v43 = vld [vmem:[%s29515_s1 + $0x2b0] sm:$0xff]   ;;  %v22172_v14 = vld [vmem:[%s29515_s1 + $0x3e8] sm:$0xff]  }
  0x26   :  { %19786 = vmatprep.subr.bf16.mxu1 %v22092_v46  ;;  %v22148_v46 = vld [vmem:[%s29515_s1 + $0x2f8] sm:$0xff]  }
  0x27   :  { %19765 = vmatpush3.bf16.msra.mxu0 %v22091_v45  ;;  %v22147_v45 = vld [vmem:[%s29515_s1 + $0x238] sm:$0xff]  }
  0x28   :  { %19766 = vmatprep.subr.bf16.mxu0 %v22094_v48 }
  0x29   :  { %19787 = vmatpush3.bf16.msra.mxu1 %v22093_v47  ;;  %v48_v47 = vld [vmem:[%s29516_s0 + $0x48] sm:$0xff] }
  0x2a   :  { %19788 = vmatprep.subr.bf16.mxu1 %v22096_v50  ;;  %v254_v48 = vpack.c.bf16 %v48_v47, %v48_v47  ;;  %v47_v50 = vld [vmem:[%s29516_s0 + $0x40] sm:$0xff]  ;;  %v22197_v47 = vld [vmem:[%s29515_s1 + $0x498] sm:$0xff]  }
  0x2b   :  { %19767 = vmatpush3.bf16.msra.mxu0 %v22095_v49  ;;  %v22149_v49 = vld [vmem:[%s29515_s1 + $0x2b8] sm:$0xff]  }
  0x2c   :  { %19768 = vmatprep.subr.bf16.mxu0 %v22098_v52  ;;  %v22150_v52 = vld [vmem:[%s29515_s1 + $0x340] sm:$0xff]  }
  0x2d   :  { %19789 = vmatpush3.bf16.msra.mxu1 %v22097_v51  ;;  %v253_v51 = vpack.c.bf16 %v47_v50, %v47_v50  ;;  %v22200_v50 = vld [vmem:[%s29515_s1 + $0x4e0] sm:$0xff]  }
  0x2e   :  { %19790 = vmatprep.subr.bf16.mxu1 %v22100_v54 }
  0x2f   :  { %19769 = vmatpush3.bf16.msra.mxu0 %v22099_v53  ;;  %v50_v53 = vld [vmem:[%s29516_s0 + $0x58] sm:$0xff] }
  0x30   :  { %19770 = vmatprep.subr.bf16.mxu0 %v22102_v56  ;;  %v256_v54 = vpack.c.bf16 %v50_v53, %v50_v53  ;;  %v49_v56 = vld [vmem:[%s29516_s0 + $0x50] sm:$0xff]  ;;  %v22203_v53 = vld [vmem:[%s29515_s1 + $0x428] sm:$0xff]  }
  0x31   :  { %19791 = vmatpush3.bf16.msra.mxu1 %v22101_v55  ;;  %v22151_v55 = vld [vmem:[%s29515_s1 + $0x300] sm:$0xff]  }
  0x32   :  { %19792 = vmatprep.subr.bf16.mxu1 %v22104_v58  ;;  %v22152_v58 = vld [vmem:[%s29515_s1 + $0x3c0] sm:$0xff]  }
  0x33   :  { %19771 = vmatpush3.bf16.msra.mxu0 %v22103_v57  ;;  %v255_v57 = vpack.c.bf16 %v49_v56, %v49_v56  ;;  %v22206_v56 = vld [vmem:[%s29515_s1 + $0x470] sm:$0xff]  }
  0x34   :  { %19772 = vmatprep.subr.bf16.mxu0 %v22106_v60  ;;  %v22154_v60 = vld [vmem:[%s29515_s1 + $0x348] sm:$0xff]  }
  0x35   :  { %19793 = vmatpush3.bf16.msra.mxu1 %v22105_v59  ;;  %v22153_v59 = vld [vmem:[%s29515_s1 + $0x380] sm:$0xff]  }
  0x36   :  { %19794 = vmatprep.subr.bf16.mxu1 %v22108_v62  ;;  %v22156_v62 = vld [vmem:[%s29515_s1 + $0x3c8] sm:$0xff]  }
  0x37   :  { %19773 = vmatpush3.bf16.msra.mxu0 %v22107_v61  ;;  %v22155_v61 = vld [vmem:[%s29515_s1 + $0x308] sm:$0xff]  }
  0x38   :  { %19774 = vmatprep.subr.bf16.mxu0 %v22110_v0  ;;  %v22158_v0 = vld [vmem:[%s29515_s1 + $0x350] sm:$0xff]  }
  0x39   :  { %19795 = vmatpush3.bf16.msra.mxu1 %v22109_v63  ;;  %v22157_v63 = vld [vmem:[%s29515_s1 + $0x388] sm:$0xff]  }
  0x3a   :  { %19796 = vmatprep.subr.bf16.mxu1 %v22112_v2  ;;  %v22160_v2 = vld [vmem:[%s29515_s1 + $0x3d0] sm:$0xff]  }
  0x3b   :  { %19775 = vmatpush3.bf16.msra.mxu0 %v22111_v1  ;;  %v22159_v1 = vld [vmem:[%s29515_s1 + $0x310] sm:$0xff]  }
  0x3c   :  { %19776 = vmatprep.subr.bf16.mxu0 %v22114_v4  ;;  %v22162_v4 = vld [vmem:[%s29515_s1 + $0x358] sm:$0xff]  }
  0x3d   :  { %19797 = vmatpush3.bf16.msra.mxu1 %v22113_v3  ;;  %v22161_v3 = vld [vmem:[%s29515_s1 + $0x390] sm:$0xff]  }
  0x3e   :  { %19798 = vmatprep.subr.bf16.mxu1 %v22116_v6  ;;  %v22164_v6 = vld [vmem:[%s29515_s1 + $0x3d8] sm:$0xff]  }
  0x3f   :  { %19777 = vmatpush3.bf16.msra.mxu0 %v22115_v5  ;;  %v22163_v5 = vld [vmem:[%s29515_s1 + $0x318] sm:$0xff]  }
  0x40   :  { %19806 = vmatprep.subr.bf16.mxu0 %v22118_v12  ;;  %v22170_v12 = vld [vmem:[%s29515_s1 + $0x368] sm:$0xff]  }
  0x41   :  { %19799 = vmatpush3.bf16.msra.mxu1 %v22117_v9  ;;  %v22167_v9 = vld [vmem:[%s29515_s1 + $0x320] sm:$0xff]  }
  0x42   :  { %13706 = vmatmul.mubr.bf16.vlgmr.msra.gmra.mrb[4].mxu0 %v249_v11  ;;  %19828 = vmatprep.subr.bf16.mxu1 %v22120_v18  ;;  %v22169_v11 = vld [vmem:[%s29515_s1 + $0x3a0] sm:$0xff]   ;;  %v22176_v18 = vld [vmem:[%s29515_s1 + $0x3f0] sm:$0xff]  }
  0x43   :  { %19807 = vmatpush3.bf16.msra.mxu0 %v22119_v15  ;;  %13785 = vmatprep.mubr.bf16.mxu0 %v254_v48  ;;  %v22173_v15 = vld [vmem:[%s29515_s1 + $0x3a8] sm:$0xff]   ;;  %v22198_v48 = vld [vmem:[%s29515_s1 + $0x460] sm:$0xff]  }
  0x44   :  { %13746 = vmatmul.mubr.bf16.vlgmr.msra.gmra.mrb[4].mxu1 %v251_v17  ;;  %19808 = vmatprep.subr.bf16.mxu0 %v22122_v20  ;;  %v22175_v17 = vld [vmem:[%s29515_s1 + $0x330] sm:$0xff]   ;;  %v22178_v20 = vld [vmem:[%s29515_s1 + $0x378] sm:$0xff]  }
  0x45   :  { %19829 = vmatpush3.bf16.msra.mxu1 %v22121_v19  ;;  %13825 = vmatprep.mubr.bf16.mxu1 %v256_v54  ;;  %v22177_v19 = vld [vmem:[%s29515_s1 + $0x3b0] sm:$0xff]   ;;  %v22204_v54 = vld [vmem:[%s29515_s1 + $0x4e8] sm:$0xff]  }
  0x46   :  { %19830 = vmatprep.subr.bf16.mxu1 %v22124_v22  ;;  %v22180_v22 = vld [vmem:[%s29515_s1 + $0x3f8] sm:$0xff]  }
  0x47   :  { %19809 = vmatpush3.bf16.msra.mxu0 %v22123_v21  ;;  %v22179_v21 = vld [vmem:[%s29515_s1 + $0x338] sm:$0xff]  }
  0x48   :  { %19810 = vmatprep.subr.bf16.mxu0 %v22126_v24 }
  0x49   :  { %19831 = vmatpush3.bf16.msra.mxu1 %v22125_v23  ;;  %v52_v23 = vld [vmem:[%s29516_s0 + $0x68] sm:$0xff] }
  0x4a   :  { %19832 = vmatprep.subr.bf16.mxu1 %v22128_v26  ;;  %v258_v24 = vpack.c.bf16 %v52_v23, %v52_v23  ;;  %v51_v26 = vld [vmem:[%s29516_s0 + $0x60] sm:$0xff]  ;;  %v22229_v23 = vld [vmem:[%s29515_s1 + $0x598] sm:$0xff]  }
  0x4b   :  { %19811 = vmatpush3.bf16.msra.mxu0 %v22127_v25  ;;  %v22181_v25 = vld [vmem:[%s29515_s1 + $0x3b8] sm:$0xff]  }
  0x4c   :  { %19812 = vmatprep.subr.bf16.mxu0 %v22130_v28  ;;  %v22182_v28 = vld [vmem:[%s29515_s1 + $0x440] sm:$0xff]  }
  0x4d   :  { %19833 = vmatpush3.bf16.msra.mxu1 %v22129_v27  ;;  %v257_v27 = vpack.c.bf16 %v51_v26, %v51_v26  ;;  %v22232_v26 = vld [vmem:[%s29515_s1 + $0x5e0] sm:$0xff]  }
  0x4e   :  { %19834 = vmatprep.subr.bf16.mxu1 %v22132_v30 }
  0x4f   :  { %19813 = vmatpush3.bf16.msra.mxu0 %v22131_v29  ;;  %v54_v29 = vld [vmem:[%s29516_s0 + $0x78] sm:$0xff] }
  0x50   :  { %19814 = vmatprep.subr.bf16.mxu0 %v22134_v32  ;;  %v260_v30 = vpack.c.bf16 %v54_v29, %v54_v29  ;;  %v53_v32 = vld [vmem:[%s29516_s0 + $0x70] sm:$0xff]  ;;  %v22235_v29 = vld [vmem:[%s29515_s1 + $0x528] sm:$0xff]  }
  0x51   :  { %19835 = vmatpush3.bf16.msra.mxu1 %v22133_v31  ;;  %v22183_v31 = vld [vmem:[%s29515_s1 + $0x400] sm:$0xff]  }
  0x52   :  { %19836 = vmatprep.subr.bf16.mxu1 %v22136_v34  ;;  %v22184_v34 = vld [vmem:[%s29515_s1 + $0x4c0] sm:$0xff]  }
  0x53   :  { %19815 = vmatpush3.bf16.msra.mxu0 %v22135_v33  ;;  %v259_v33 = vpack.c.bf16 %v53_v32, %v53_v32  ;;  %v22238_v32 = vld [vmem:[%s29515_s1 + $0x570] sm:$0xff]  }
  0x54   :  { %19816 = vmatprep.subr.bf16.mxu0 %v22138_v36  ;;  %v22186_v36 = vld [vmem:[%s29515_s1 + $0x448] sm:$0xff]  }
  0x55   :  { %19837 = vmatpush3.bf16.msra.mxu1 %v22137_v35  ;;  %v22185_v35 = vld [vmem:[%s29515_s1 + $0x480] sm:$0xff]  }
  0x56   :  { %19838 = vmatprep.subr.bf16.mxu1 %v22140_v38  ;;  %v22188_v38 = vld [vmem:[%s29515_s1 + $0x4c8] sm:$0xff]  }
  0x57   :  { %19817 = vmatpush3.bf16.msra.mxu0 %v22139_v37  ;;  %v22187_v37 = vld [vmem:[%s29515_s1 + $0x408] sm:$0xff]  }
  0x58   :  { %19818 = vmatprep.subr.bf16.mxu0 %v22142_v40  ;;  %v22190_v40 = vld [vmem:[%s29515_s1 + $0x450] sm:$0xff]  }
  0x59   :  { %19839 = vmatpush3.bf16.msra.mxu1 %v22141_v39  ;;  %v22189_v39 = vld [vmem:[%s29515_s1 + $0x488] sm:$0xff]  }
  0x5a   :  { %19840 = vmatprep.subr.bf16.mxu1 %v22144_v42  ;;  %v22192_v42 = vld [vmem:[%s29515_s1 + $0x4d0] sm:$0xff]  }
  0x5b   :  { %19819 = vmatpush3.bf16.msra.mxu0 %v22143_v41  ;;  %v22191_v41 = vld [vmem:[%s29515_s1 + $0x410] sm:$0xff]  }
  0x5c   :  { %19820 = vmatprep.subr.bf16.mxu0 %v22146_v44  ;;  %v22194_v44 = vld [vmem:[%s29515_s1 + $0x458] sm:$0xff]  }
  0x5d   :  { %19841 = vmatpush3.bf16.msra.mxu1 %v22145_v43  ;;  %v22193_v43 = vld [vmem:[%s29515_s1 + $0x490] sm:$0xff]  }
  0x5e   :  { %19842 = vmatprep.subr.bf16.mxu1 %v22148_v46  ;;  %v22196_v46 = vld [vmem:[%s29515_s1 + $0x4d8] sm:$0xff]  }
  0x5f   :  { %19821 = vmatpush3.bf16.msra.mxu0 %v22147_v45  ;;  %v22195_v45 = vld [vmem:[%s29515_s1 + $0x418] sm:$0xff]  }
  0x60   :  { %19850 = vmatprep.subr.bf16.mxu0 %v22150_v52  ;;  %v22202_v52 = vld [vmem:[%s29515_s1 + $0x468] sm:$0xff]  }
  0x61   :  { %19843 = vmatpush3.bf16.msra.mxu1 %v22149_v49  ;;  %v22199_v49 = vld [vmem:[%s29515_s1 + $0x420] sm:$0xff]  }
  0x62   :  { %13786 = vmatmul.mubr.bf16.vlgmr.msra.gmra.mrb[8].mxu0 %v253_v51  ;;  %19872 = vmatprep.subr.bf16.mxu1 %v22152_v58  ;;  %v22201_v51 = vld [vmem:[%s29515_s1 + $0x4a0] sm:$0xff]   ;;  %v22208_v58 = vld [vmem:[%s29515_s1 + $0x4f0] sm:$0xff]  }
  0x63   :  { %19851 = vmatpush3.bf16.msra.mxu0 %v22151_v55  ;;  %13865 = vmatprep.mubr.bf16.mxu0 %v258_v24  ;;  %v22205_v55 = vld [vmem:[%s29515_s1 + $0x4a8] sm:$0xff]   ;;  %v22230_v24 = vld [vmem:[%s29515_s1 + $0x560] sm:$0xff]  }
  0x64   :  { %13826 = vmatmul.mubr.bf16.vlgmr.msra.gmra.mrb[8].mxu1 %v255_v57  ;;  %19852 = vmatprep.subr.bf16.mxu0 %v22154_v60  ;;  %v22207_v57 = vld [vmem:[%s29515_s1 + $0x430] sm:$0xff]   ;;  %v22210_v60 = vld [vmem:[%s29515_s1 + $0x478] sm:$0xff]  }
  0x65   :  { %19873 = vmatpush3.bf16.msra.mxu1 %v22153_v59  ;;  %13905 = vmatprep.mubr.bf16.mxu1 %v260_v30  ;;  %v22209_v59 = vld [vmem:[%s29515_s1 + $0x4b0] sm:$0xff]   ;;  %v22236_v30 = vld [vmem:[%s29515_s1 + $0x5e8] sm:$0xff]  }
  0x66   :  { %19874 = vmatprep.subr.bf16.mxu1 %v22156_v62  ;;  %v22212_v62 = vld [vmem:[%s29515_s1 + $0x4f8] sm:$0xff]  }
  0x67   :  { %19853 = vmatpush3.bf16.msra.mxu0 %v22155_v61  ;;  %v22211_v61 = vld [vmem:[%s29515_s1 + $0x438] sm:$0xff]  }
  0x68   :  { %19854 = vmatprep.subr.bf16.mxu0 %v22158_v0 }
  0x69   :  { %19875 = vmatpush3.bf16.msra.mxu1 %v22157_v63  ;;  %v56_v63 = vld [vmem:[%s29516_s0 + $0x88] sm:$0xff] }
  0x6a   :  { %19876 = vmatprep.subr.bf16.mxu1 %v22160_v2  ;;  %v262_v0 = vpack.c.bf16 %v56_v63, %v56_v63  ;;  %v55_v2 = vld [vmem:[%s29516_s0 + $0x80] sm:$0xff]  ;;  %v22261_v63 = vld [vmem:[%s29515_s1 + $0x698] sm:$0xff]  }
  0x6b   :  { %19855 = vmatpush3.bf16.msra.mxu0 %v22159_v1  ;;  %v22213_v1 = vld [vmem:[%s29515_s1 + $0x4b8] sm:$0xff]  }
  0x6c   :  { %19856 = vmatprep.subr.bf16.mxu0 %v22162_v4  ;;  %v22214_v4 = vld [vmem:[%s29515_s1 + $0x540] sm:$0xff]  }
  0x6d   :  { %19877 = vmatpush3.bf16.msra.mxu1 %v22161_v3  ;;  %v261_v3 = vpack.c.bf16 %v55_v2, %v55_v2  ;;  %v22264_v2 = vld [vmem:[%s29515_s1 + $0x6e0] sm:$0xff]  }
  0x6e   :  { %19878 = vmatprep.subr.bf16.mxu1 %v22164_v6 }
  0x6f   :  { %19857 = vmatpush3.bf16.msra.mxu0 %v22163_v5  ;;  %v58_v5 = vld [vmem:[%s29516_s0 + $0x98] sm:$0xff] }
  0x70   :  { %19858 = vmatprep.subr.bf16.mxu0 %v22166_v8  ;;  %v264_v6 = vpack.c.bf16 %v58_v5, %v58_v5  ;;  %v57_v8 = vld [vmem:[%s29516_s0 + $0x90] sm:$0xff]  ;;  %v22267_v5 = vld [vmem:[%s29515_s1 + $0x628] sm:$0xff]  }
  0x71   :  { %19879 = vmatpush3.bf16.msra.mxu1 %v22165_v7  ;;  %v22215_v7 = vld [vmem:[%s29515_s1 + $0x500] sm:$0xff]  }
  0x72   :  { %19880 = vmatprep.subr.bf16.mxu1 %v22168_v10  ;;  %v22216_v10 = vld [vmem:[%s29515_s1 + $0x5c0] sm:$0xff]  }
  0x73   :  { %19859 = vmatpush3.bf16.msra.mxu0 %v22167_v9  ;;  %v263_v9 = vpack.c.bf16 %v57_v8, %v57_v8  ;;  %v22270_v8 = vld [vmem:[%s29515_s1 + $0x670] sm:$0xff]  }
  0x74   :  { %19860 = vmatprep.subr.bf16.mxu0 %v22170_v12  ;;  %v22218_v12 = vld [vmem:[%s29515_s1 + $0x548] sm:$0xff]  }
  0x75   :  { %19881 = vmatpush3.bf16.msra.mxu1 %v22169_v11  ;;  %v22217_v11 = vld [vmem:[%s29515_s1 + $0x580] sm:$0xff]  }
  0x76   :  { %19882 = vmatprep.subr.bf16.mxu1 %v22172_v14  ;;  %v22220_v14 = vld [vmem:[%s29515_s1 + $0x5c8] sm:$0xff]  }
  0x77   :  { %19861 = vmatpush3.bf16.msra.mxu0 %v22171_v13  ;;  %v22219_v13 = vld [vmem:[%s29515_s1 + $0x508] sm:$0xff]  }
  0x78   :  { %19862 = vmatprep.subr.bf16.mxu0 %v22174_v16  ;;  %v22222_v16 = vld [vmem:[%s29515_s1 + $0x550] sm:$0xff]  }
  0x79   :  { %19883 = vmatpush3.bf16.msra.mxu1 %v22173_v15  ;;  %v22221_v15 = vld [vmem:[%s29515_s1 + $0x588] sm:$0xff]  }
  0x7a   :  { %19884 = vmatprep.subr.bf16.mxu1 %v22176_v18  ;;  %v22224_v18 = vld [vmem:[%s29515_s1 + $0x5d0] sm:$0xff]  }
  0x7b   :  { %19863 = vmatpush3.bf16.msra.mxu0 %v22175_v17  ;;  %v22223_v17 = vld [vmem:[%s29515_s1 + $0x510] sm:$0xff]  }
  0x7c   :  { %19864 = vmatprep.subr.bf16.mxu0 %v22178_v20  ;;  %v22226_v20 = vld [vmem:[%s29515_s1 + $0x558] sm:$0xff]  }
  0x7d   :  { %19885 = vmatpush3.bf16.msra.mxu1 %v22177_v19  ;;  %v22225_v19 = vld [vmem:[%s29515_s1 + $0x590] sm:$0xff]  }
  0x7e   :  { %19886 = vmatprep.subr.bf16.mxu1 %v22180_v22  ;;  %v22228_v22 = vld [vmem:[%s29515_s1 + $0x5d8] sm:$0xff]  }
  0x7f   :  { %19865 = vmatpush3.bf16.msra.mxu0 %v22179_v21  ;;  %v22227_v21 = vld [vmem:[%s29515_s1 + $0x518] sm:$0xff]  }
  0x80   :  { %19894 = vmatprep.subr.bf16.mxu0 %v22182_v28  ;;  %v22234_v28 = vld [vmem:[%s29515_s1 + $0x568] sm:$0xff]  }
  0x81   :  { %19887 = vmatpush3.bf16.msra.mxu1 %v22181_v25  ;;  %v22231_v25 = vld [vmem:[%s29515_s1 + $0x520] sm:$0xff]  }
  0x82   :  { %13866 = vmatmul.mubr.bf16.vlgmr.msra.gmra.mrb[12].mxu0 %v257_v27  ;;  %19916 = vmatprep.subr.bf16.mxu1 %v22184_v34  ;;  %v22233_v27 = vld [vmem:[%s29515_s1 + $0x5a0] sm:$0xff]   ;;  %v22240_v34 = vld [vmem:[%s29515_s1 + $0x5f0] sm:$0xff]  }
  0x83   :  { %19895 = vmatpush3.bf16.msra.mxu0 %v22183_v31  ;;  %13945 = vmatprep.mubr.bf16.mxu0 %v262_v0  ;;  %v22237_v31 = vld [vmem:[%s29515_s1 + $0x5a8] sm:$0xff]   ;;  %v22262_v0 = vld [vmem:[%s29515_s1 + $0x660] sm:$0xff]  }
  0x84   :  { %13906 = vmatmul.mubr.bf16.vlgmr.msra.gmra.mrb[12].mxu1 %v259_v33  ;;  %19896 = vmatprep.subr.bf16.mxu0 %v22186_v36  ;;  %v22239_v33 = vld [vmem:[%s29515_s1 + $0x530] sm:$0xff]   ;;  %v22242_v36 = vld [vmem:[%s29515_s1 + $0x578] sm:$0xff]  }
  0x85   :  { %19917 = vmatpush3.bf16.msra.mxu1 %v22185_v35  ;;  %13985 = vmatprep.mubr.bf16.mxu1 %v264_v6  ;;  %v22241_v35 = vld [vmem:[%s29515_s1 + $0x5b0] sm:$0xff]   ;;  %v22268_v6 = vld [vmem:[%s29515_s1 + $0x6e8] sm:$0xff]  }
  0x86   :  { %19918 = vmatprep.subr.bf16.mxu1 %v22188_v38  ;;  %v22244_v38 = vld [vmem:[%s29515_s1 + $0x5f8] sm:$0xff]  }
  0x87   :  { %19897 = vmatpush3.bf16.msra.mxu0 %v22187_v37  ;;  %v22243_v37 = vld [vmem:[%s29515_s1 + $0x538] sm:$0xff]  }
  0x88   :  { %19898 = vmatprep.subr.bf16.mxu0 %v22190_v40 }
  0x89   :  { %19919 = vmatpush3.bf16.msra.mxu1 %v22189_v39  ;;  %v60_v39 = vld [vmem:[%s29516_s0 + $0xa8] sm:$0xff] }
  0x8a   :  { %19920 = vmatprep.subr.bf16.mxu1 %v22192_v42  ;;  %v266_v40 = vpack.c.bf16 %v60_v39, %v60_v39  ;;  %v59_v42 = vld [vmem:[%s29516_s0 + $0xa0] sm:$0xff] }
  0x8b   :  { %19899 = vmatpush3.bf16.msra.mxu0 %v22191_v41  ;;  %v22245_v41 = vld [vmem:[%s29515_s1 + $0x5b8] sm:$0xff]  }
  0x8c   :  { %19900 = vmatprep.subr.bf16.mxu0 %v22194_v44  ;;  %v22246_v44 = vld [vmem:[%s29515_s1 + $0x640] sm:$0xff]  }
  0x8d   :  { %19921 = vmatpush3.bf16.msra.mxu1 %v22193_v43  ;;  %v265_v43 = vpack.c.bf16 %v59_v42, %v59_v42 }
  0x8e   :  { %19922 = vmatprep.subr.bf16.mxu1 %v22196_v46 }
  0x8f   :  { %19901 = vmatpush3.bf16.msra.mxu0 %v22195_v45  ;;  %v62_v45 = vld [vmem:[%s29516_s0 + $0xb8] sm:$0xff] }
  0x90   :  { %19902 = vmatprep.subr.bf16.mxu0 %v22198_v48  ;;  %v268_v46 = vpack.c.bf16 %v62_v45, %v62_v45  ;;  %v61_v48 = vld [vmem:[%s29516_s0 + $0xb0] sm:$0xff]  ;;  %v22294_v45 = vld [vmem:[%s29515_s1 + $0x760] sm:$0xff]  }
  0x91   :  { %19923 = vmatpush3.bf16.msra.mxu1 %v22197_v47  ;;  %v22247_v47 = vld [vmem:[%s29515_s1 + $0x600] sm:$0xff]  }
  0x92   :  { %19924 = vmatprep.subr.bf16.mxu1 %v22200_v50  ;;  %v22248_v50 = vld [vmem:[%s29515_s1 + $0x6c0] sm:$0xff]  }
  0x93   :  { %19903 = vmatpush3.bf16.msra.mxu0 %v22199_v49  ;;  %v267_v49 = vpack.c.bf16 %v61_v48, %v61_v48 }
  0x94   :  { %19904 = vmatprep.subr.bf16.mxu0 %v22202_v52  ;;  %v22250_v52 = vld [vmem:[%s29515_s1 + $0x648] sm:$0xff]  }
  0x95   :  { %19925 = vmatpush3.bf16.msra.mxu1 %v22201_v51  ;;  %v22249_v51 = vld [vmem:[%s29515_s1 + $0x680] sm:$0xff]  }
  0x96   :  { %19926 = vmatprep.subr.bf16.mxu1 %v22204_v54  ;;  %v22252_v54 = vld [vmem:[%s29515_s1 + $0x6c8] sm:$0xff]  }
  0x97   :  { %19905 = vmatpush3.bf16.msra.mxu0 %v22203_v53  ;;  %v22251_v53 = vld [vmem:[%s29515_s1 + $0x608] sm:$0xff]  }
  0x98   :  { %19906 = vmatprep.subr.bf16.mxu0 %v22206_v56  ;;  %v22254_v56 = vld [vmem:[%s29515_s1 + $0x650] sm:$0xff]  }
  0x99   :  { %19927 = vmatpush3.bf16.msra.mxu1 %v22205_v55  ;;  %v22253_v55 = vld [vmem:[%s29515_s1 + $0x688] sm:$0xff]  }
  0x9a   :  { %19928 = vmatprep.subr.bf16.mxu1 %v22208_v58  ;;  %v22256_v58 = vld [vmem:[%s29515_s1 + $0x6d0] sm:$0xff]  }
  0x9b   :  { %19907 = vmatpush3.bf16.msra.mxu0 %v22207_v57  ;;  %v22255_v57 = vld [vmem:[%s29515_s1 + $0x610] sm:$0xff]  }
  0x9c   :  { %19908 = vmatprep.subr.bf16.mxu0 %v22210_v60  ;;  %v22258_v60 = vld [vmem:[%s29515_s1 + $0x658] sm:$0xff]  }
  0x9d   :  { %19929 = vmatpush3.bf16.msra.mxu1 %v22209_v59  ;;  %v22257_v59 = vld [vmem:[%s29515_s1 + $0x690] sm:$0xff]  }
  0x9e   :  { %19930 = vmatprep.subr.bf16.mxu1 %v22212_v62  ;;  %v22260_v62 = vld [vmem:[%s29515_s1 + $0x6d8] sm:$0xff]  }
  0x9f   :  { %19909 = vmatpush3.bf16.msra.mxu0 %v22211_v61  ;;  %v22259_v61 = vld [vmem:[%s29515_s1 + $0x618] sm:$0xff]  }
  0xa0   :  { %19938 = vmatprep.subr.bf16.mxu0 %v22214_v4  ;;  %v22266_v4 = vld [vmem:[%s29515_s1 + $0x668] sm:$0xff]  }
  0xa1   :  { %19931 = vmatpush3.bf16.msra.mxu1 %v22213_v1  ;;  %v22263_v1 = vld [vmem:[%s29515_s1 + $0x620] sm:$0xff]  }
  0xa2   :  { %13946 = vmatmul.mubr.bf16.vlgmr.msra.gmra.mrb[16].mxu0 %v261_v3  ;;  %19960 = vmatprep.subr.bf16.mxu1 %v22216_v10  ;;  %v22265_v3 = vld [vmem:[%s29515_s1 + $0x6a0] sm:$0xff]   ;;  %v22272_v10 = vld [vmem:[%s29515_s1 + $0x6f0] sm:$0xff]  }
  0xa3   :  { %19939 = vmatpush3.bf16.msra.mxu0 %v22215_v7  ;;  %14025 = vmatprep.mubr.bf16.mxu0 %v266_v40  ;;  %v22269_v7 = vld [vmem:[%s29515_s1 + $0x6a8] sm:$0xff]   ;;  %v22292_v40 = vld [vmem:[%s29515_s1 + $0x7d8] sm:$0xff]  }
  0xa4   :  { %13986 = vmatmul.mubr.bf16.vlgmr.msra.gmra.mrb[16].mxu1 %v263_v9  ;;  %19940 = vmatprep.subr.bf16.mxu0 %v22218_v12  ;;  %v22271_v9 = vld [vmem:[%s29515_s1 + $0x630] sm:$0xff]   ;;  %v22274_v12 = vld [vmem:[%s29515_s1 + $0x678] sm:$0xff]  }
  0xa5   :  { %19961 = vmatpush3.bf16.msra.mxu1 %v22217_v11  ;;  %14065 = vmatprep.mubr.bf16.mxu1 %v268_v46  ;;  %v22273_v11 = vld [vmem:[%s29515_s1 + $0x6b0] sm:$0xff]  }
  0xa6   :  { %19962 = vmatprep.subr.bf16.mxu1 %v22220_v14  ;;  %v22276_v14 = vld [vmem:[%s29515_s1 + $0x6f8] sm:$0xff]  }
  0xa7   :  { %19941 = vmatpush3.bf16.msra.mxu0 %v22219_v13  ;;  %v22275_v13 = vld [vmem:[%s29515_s1 + $0x638] sm:$0xff]  }
  0xa8   :  { %19942 = vmatprep.subr.bf16.mxu0 %v22222_v16 }
  0xa9   :  { %19963 = vmatpush3.bf16.msra.mxu1 %v22221_v15  ;;  %v64_v15 = vld [vmem:[%s29516_s0 + $0xc8] sm:$0xff] }
  0xaa   :  { %19964 = vmatprep.subr.bf16.mxu1 %v22224_v18  ;;  %v270_v16 = vpack.c.bf16 %v64_v15, %v64_v15  ;;  %v63_v18 = vld [vmem:[%s29516_s0 + $0xc0] sm:$0xff] }
  0xab   :  { %19943 = vmatpush3.bf16.msra.mxu0 %v22223_v17  ;;  %v22277_v17 = vld [vmem:[%s29515_s1 + $0x6b8] sm:$0xff]   ;;  %v22312_v15 = vld [vmem:[%s29515_s1 + $0x8c0] sm:$0xff]  }
  0xac   :  { %19944 = vmatprep.subr.bf16.mxu0 %v22226_v20  ;;  %v22278_v20 = vld [vmem:[%s29515_s1 + $0x740] sm:$0xff]  }
  0xad   :  { %19965 = vmatpush3.bf16.msra.mxu1 %v22225_v19  ;;  %v269_v19 = vpack.c.bf16 %v63_v18, %v63_v18  ;;  %v22315_v18 = vld [vmem:[%s29515_s1 + $0x808] sm:$0xff]  }
  0xae   :  { %19966 = vmatprep.subr.bf16.mxu1 %v22228_v22 }
  0xaf   :  { %19945 = vmatpush3.bf16.msra.mxu0 %v22227_v21  ;;  %v66_v21 = vld [vmem:[%s29516_s0 + $0xd8] sm:$0xff] }
  0xb0   :  { %19946 = vmatprep.subr.bf16.mxu0 %v22230_v24  ;;  %v272_v22 = vpack.c.bf16 %v66_v21, %v66_v21  ;;  %v65_v24 = vld [vmem:[%s29516_s0 + $0xd0] sm:$0xff] }
  0xb1   :  { %19967 = vmatpush3.bf16.msra.mxu1 %v22229_v23  ;;  %v22279_v23 = vld [vmem:[%s29515_s1 + $0x700] sm:$0xff]   ;;  %v22318_v21 = vld [vmem:[%s29515_s1 + $0x850] sm:$0xff]  }
  0xb2   :  { %19968 = vmatprep.subr.bf16.mxu1 %v22232_v26  ;;  %v22280_v26 = vld [vmem:[%s29515_s1 + $0x7c0] sm:$0xff]  }
  0xb3   :  { %19947 = vmatpush3.bf16.msra.mxu0 %v22231_v25  ;;  %v271_v25 = vpack.c.bf16 %v65_v24, %v65_v24  ;;  %v22321_v24 = vld [vmem:[%s29515_s1 + $0x890] sm:$0xff]  }
  0xb4   :  { %19948 = vmatprep.subr.bf16.mxu0 %v22234_v28  ;;  %v22282_v28 = vld [vmem:[%s29515_s1 + $0x748] sm:$0xff]  }
  0xb5   :  { %19969 = vmatpush3.bf16.msra.mxu1 %v22233_v27  ;;  %v22281_v27 = vld [vmem:[%s29515_s1 + $0x780] sm:$0xff]  }
  0xb6   :  { %19970 = vmatprep.subr.bf16.mxu1 %v22236_v30  ;;  %v22284_v30 = vld [vmem:[%s29515_s1 + $0x7c8] sm:$0xff]  }
  0xb7   :  { %19949 = vmatpush3.bf16.msra.mxu0 %v22235_v29  ;;  %v22283_v29 = vld [vmem:[%s29515_s1 + $0x708] sm:$0xff]  }
  0xb8   :  { %19950 = vmatprep.subr.bf16.mxu0 %v22238_v32  ;;  %v22286_v32 = vld [vmem:[%s29515_s1 + $0x750] sm:$0xff]  }
  0xb9   :  { %19971 = vmatpush3.bf16.msra.mxu1 %v22237_v31  ;;  %v22285_v31 = vld [vmem:[%s29515_s1 + $0x788] sm:$0xff]  }
  0xba   :  { %19972 = vmatprep.subr.bf16.mxu1 %v22240_v34  ;;  %v22288_v34 = vld [vmem:[%s29515_s1 + $0x7d0] sm:$0xff]  }
  0xbb   :  { %19951 = vmatpush3.bf16.msra.mxu0 %v22239_v33  ;;  %v22287_v33 = vld [vmem:[%s29515_s1 + $0x710] sm:$0xff]  }
  0xbc   :  { %19952 = vmatprep.subr.bf16.mxu0 %v22242_v36  ;;  %v22290_v36 = vld [vmem:[%s29515_s1 + $0x758] sm:$0xff]  }
  0xbd   :  { %19973 = vmatpush3.bf16.msra.mxu1 %v22241_v35  ;;  %v22289_v35 = vld [vmem:[%s29515_s1 + $0x790] sm:$0xff]  }
  0xbe   :  { %19974 = vmatprep.subr.bf16.mxu1 %v22244_v38  ;;  %v22291_v38 = vld [vmem:[%s29515_s1 + $0x718] sm:$0xff]  }
  0xbf   :  { %19953 = vmatpush3.bf16.msra.mxu0 %v22243_v37 }
  0xc0   :  { %19982 = vmatprep.subr.bf16.mxu0 %v22246_v44 }
  0xc1   :  { %19975 = vmatpush3.bf16.msra.mxu1 %v22245_v41 }
  0xc2   :  { %14026 = vmatmul.mubr.bf16.vlgmr.msra.gmra.mrb[20].mxu0 %v265_v43  ;;  %20004 = vmatprep.subr.bf16.mxu1 %v22248_v50  ;;  %v22293_v43 = vld [vmem:[%s29515_s1 + $0x798] sm:$0xff]  }
  0xc3   :  { %19983 = vmatpush3.bf16.msra.mxu0 %v22247_v47  ;;  %14105 = vmatprep.mubr.bf16.mxu0 %v270_v16  ;;  %v22295_v47 = vld [vmem:[%s29515_s1 + $0x720] sm:$0xff]  }
  0xc4   :  { %14066 = vmatmul.mubr.bf16.vlgmr.msra.gmra.mrb[20].mxu1 %v267_v49  ;;  %19984 = vmatprep.subr.bf16.mxu0 %v22250_v52  ;;  %v22296_v49 = vld [vmem:[%s29515_s1 + $0x7e0] sm:$0xff]  }
  0xc5   :  { %20005 = vmatpush3.bf16.msra.mxu1 %v22249_v51  ;;  %14145 = vmatprep.mubr.bf16.mxu1 %v272_v22  ;;  %v22297_v52 = vld [vmem:[%s29515_s1 + $0x7a0] sm:$0xff]   ;;  %v22319_v22 = vld [vmem:[%s29515_s1 + $0x810] sm:$0xff]  }
  0xc6   :  { %20006 = vmatprep.subr.bf16.mxu1 %v22252_v54  ;;  %v22313_v16 = vld [vmem:[%s29515_s1 + $0x880] sm:$0xff]  }
  0xc7   :  { %19985 = vmatpush3.bf16.msra.mxu0 %v22251_v53  ;;  %v18067_v53 = vld [vmem:[%s29517_s2] ss:$0 sm:$0xff] }
  0xc8   :  { %19986 = vmatprep.subr.bf16.mxu0 %v22254_v56  ;;  %v22298_v56 = vld [vmem:[%s29515_s1 + $0x768] sm:$0xff]  }
  0xc9   :  { %20007 = vmatpush3.bf16.msra.mxu1 %v22253_v55 }
  0xca   :  { %20008 = vmatprep.subr.bf16.mxu1 %v22256_v58 }
  0xcb   :  { %19987 = vmatpush3.bf16.msra.mxu0 %v22255_v57  ;;  %v22299_v57 = vld [vmem:[%s29515_s1 + $0x728] sm:$0xff]  }
  0xcc   :  { %19988 = vmatprep.subr.bf16.mxu0 %v22258_v60  ;;  %v22301_v60 = vld [vmem:[%s29515_s1 + $0x7a8] sm:$0xff]  }
  0xcd   :  { %20009 = vmatpush3.bf16.msra.mxu1 %v22257_v59  ;;  %v22300_v59 = vld [vmem:[%s29515_s1 + $0x7e8] sm:$0xff]  }
  0xce   :  { %20010 = vmatprep.subr.bf16.mxu1 %v22260_v62  ;;  %v22303_v62 = vld [vmem:[%s29515_s1 + $0x730] sm:$0xff]  }
  0xcf   :  { %19989 = vmatpush3.bf16.msra.mxu0 %v22259_v61  ;;  %v22302_v61 = vld [vmem:[%s29515_s1 + $0x770] sm:$0xff]  }
  0xd0   :  { %19990 = vmatprep.subr.bf16.mxu0 %v22262_v0  ;;  %v22305_v0 = vld [vmem:[%s29515_s1 + $0x7b0] sm:$0xff]  }
  0xd1   :  { %20011 = vmatpush3.bf16.msra.mxu1 %v22261_v63  ;;  %v22304_v63 = vld [vmem:[%s29515_s1 + $0x7f0] sm:$0xff]  }
  0xd2   :  { %20012 = vmatprep.subr.bf16.mxu1 %v22264_v2  ;;  %v22307_v2 = vld [vmem:[%s29515_s1 + $0x738] sm:$0xff]  }
  0xd3   :  { %19991 = vmatpush3.bf16.msra.mxu0 %v22263_v1  ;;  %v22306_v1 = vld [vmem:[%s29515_s1 + $0x778] sm:$0xff]  }
  0xd4   :  { %19992 = vmatprep.subr.bf16.mxu0 %v22266_v4  ;;  %v68_v4 = vld [vmem:[%s29516_s0 + $0xe8] sm:$0xff] }
  0xd5   :  { %20013 = vmatpush3.bf16.msra.mxu1 %v22265_v3  ;;  %v22308_v3 = vld [vmem:[%s29515_s1 + $0x7f8] sm:$0xff]  }
  0xd6   :  { %20014 = vmatprep.subr.bf16.mxu1 %v22268_v6  ;;  %v22309_v6 = vld [vmem:[%s29515_s1 + $0x7b8] sm:$0xff]  }
  0xd7   :  { %19993 = vmatpush3.bf16.msra.mxu0 %v22267_v5  ;;  %v274_v5 = vpack.c.bf16 %v68_v4, %v68_v4  ;;  %v22345_v4 = vld [vmem:[%s29515_s1 + $0x980] sm:$0xff]  }
  0xd8   :  { %19994 = vmatprep.subr.bf16.mxu0 %v22270_v8 }
  0xd9   :  { %20015 = vmatpush3.bf16.msra.mxu1 %v22269_v7  ;;  %v67_v7 = vld [vmem:[%s29516_s0 + $0xe0] sm:$0xff] }
  0xda   :  { %20016 = vmatprep.subr.bf16.mxu1 %v22272_v10  ;;  %v273_v8 = vpack.c.bf16 %v67_v7, %v67_v7  ;;  %v70_v10 = vld [vmem:[%s29516_s0 + $0xf8] sm:$0xff]  ;;  %v22348_v7 = vld [vmem:[%s29515_s1 + $0x9c8] sm:$0xff]  }
  0xdb   :  { %19995 = vmatpush3.bf16.msra.mxu0 %v22271_v9  ;;  %v22310_v9 = vld [vmem:[%s29515_s1 + $0x840] sm:$0xff]  }
  0xdc   :  { %19996 = vmatprep.subr.bf16.mxu0 %v22274_v12  ;;  %v22311_v12 = vld [vmem:[%s29515_s1 + $0x800] sm:$0xff]  }
  0xdd   :  { %20017 = vmatpush3.bf16.msra.mxu1 %v22273_v11  ;;  %v276_v11 = vpack.c.bf16 %v70_v10, %v70_v10  ;;  %v22351_v10 = vld [vmem:[%s29515_s1 + $0x910] sm:$0xff]  }
  0xde   :  { %20018 = vmatprep.subr.bf16.mxu1 %v22276_v14 }
  0xdf   :  { %19997 = vmatpush3.bf16.msra.mxu0 %v22275_v13  ;;  %v69_v13 = vld [vmem:[%s29516_s0 + $0xf0] sm:$0xff] }
  0xe0   :  { %20026 = vmatprep.subr.bf16.mxu0 %v22278_v20  ;;  %v275_v14 = vpack.c.bf16 %v69_v13, %v69_v13  ;;  %v22317_v20 = vld [vmem:[%s29515_s1 + $0x888] sm:$0xff]   ;;  %v22354_v13 = vld [vmem:[%s29515_s1 + $0x958] sm:$0xff]  }
  0xe1   :  { %20019 = vmatpush3.bf16.msra.mxu1 %v22277_v17  ;;  %v22314_v17 = vld [vmem:[%s29515_s1 + $0x848] sm:$0xff]  }
  0xe2   :  { %14106 = vmatmul.mubr.bf16.vlgmr.msra.gmra.mrb[24].mxu0 %v269_v19  ;;  %20048 = vmatprep.subr.bf16.mxu1 %v22280_v26  ;;  %v22316_v19 = vld [vmem:[%s29515_s1 + $0x8c8] sm:$0xff]  }
  0xe3   :  { %20027 = vmatpush3.bf16.msra.mxu0 %v22279_v23  ;;  %14185 = vmatprep.mubr.bf16.mxu0 %v274_v5  ;;  %v22320_v23 = vld [vmem:[%s29515_s1 + $0x8d0] sm:$0xff]   ;;  %v22346_v5 = vld [vmem:[%s29515_s1 + $0x948] sm:$0xff]  }
  0xe4   :  { %14146 = vmatmul.mubr.bf16.vlgmr.msra.gmra.mrb[24].mxu1 %v271_v25  ;;  %20028 = vmatprep.subr.bf16.mxu0 %v22282_v28  ;;  %v22322_v25 = vld [vmem:[%s29515_s1 + $0x858] sm:$0xff]  }
  0xe5   :  { %20049 = vmatpush3.bf16.msra.mxu1 %v22281_v27  ;;  %14225 = vmatprep.mubr.bf16.mxu1 %v276_v11  ;;  %v22323_v27 = vld [vmem:[%s29515_s1 + $0x818] sm:$0xff]   ;;  %v22352_v11 = vld [vmem:[%s29515_s1 + $0x9d0] sm:$0xff]  }
  0xe6   :  { %20050 = vmatprep.subr.bf16.mxu1 %v22284_v30 }
  0xe7   :  { %20029 = vmatpush3.bf16.msra.mxu0 %v22283_v29  ;;  %v22324_v29 = vld [vmem:[%s29515_s1 + $0x8d8] sm:$0xff]  }
  0xe8   :  { %20030 = vmatprep.subr.bf16.mxu0 %v22286_v32  ;;  %v22325_v32 = vld [vmem:[%s29515_s1 + $0x898] sm:$0xff]  }
  0xe9   :  { %20051 = vmatpush3.bf16.msra.mxu1 %v22285_v31 }
  0xea   :  { %20052 = vmatprep.subr.bf16.mxu1 %v22288_v34  ;;  %v22326_v34 = vld [vmem:[%s29515_s1 + $0x860] sm:$0xff]  }
  0xeb   :  { %20031 = vmatpush3.bf16.msra.mxu0 %v22287_v33 }
  0xec   :  { %20032 = vmatprep.subr.bf16.mxu0 %v22290_v36 }
  0xed   :  { %20053 = vmatpush3.bf16.msra.mxu1 %v22289_v35 }
  0xee   :  { %20054 = vmatprep.subr.bf16.mxu1 %v22292_v40 }
  0xef   :  { %20033 = vmatpush3.bf16.msra.mxu0 %v22291_v38 }
  0xf0   :  { %20034 = vmatprep.subr.bf16.mxu0 %v22294_v45 }
  0xf1   :  { %20055 = vmatpush3.bf16.msra.mxu1 %v22293_v43 }
  0xf2   :  { %20056 = vmatprep.subr.bf16.mxu1 %v22296_v49  ;;  %v22334_v49 = vld [vmem:[%s29515_s1 + $0x870] sm:$0xff]  }
  0xf3   :  { %20035 = vmatpush3.bf16.msra.mxu0 %v22295_v47  ;;  %v22332_v47 = vld [vmem:[%s29515_s1 + $0x8e8] sm:$0xff]  }
  0xf4   :  { %20036 = vmatprep.subr.bf16.mxu0 %v22298_v56  ;;  %v72_v56 = vld [vmem:[%s29516_s0 + $0x108] sm:$0xff] }
  0xf5   :  { %v19734_v37 = vpop.f32.mrb[0].mxu0  ;;  %20057 = vmatpush3.bf16.msra.mxu1 %v22297_v52  ;;  %v22337_v52 = vld [vmem:[%s29515_s1 + $0x8b0] sm:$0xff]  }
  0xf6   :  { %v19735_v39 = vpop.f32.mrb[1].mxu0  ;;  %20058 = vmatprep.subr.bf16.mxu1 %v22300_v59  ;;  %v71_v59 = vld [vmem:[%s29516_s0 + $0x100] sm:$0xff] }
  0xf7   :  { %v19736_v41 = vadd.f32 %v19735_v39, %v19734_v37  ;;  %v19737_v42 = vpop.f32.mrb[2].mxu0  ;;  %v19756_v44 = vpop.f32.mrb[0].mxu1  ;;  %20037 = vmatpush3.bf16.msra.mxu0 %v22299_v57  ;;  %v22327_v37 = vld [vmem:[%s29515_s1 + $0x820] sm:$0xff]   ;;  %v278_v57 = vpack.c.bf16 %v72_v56, %v72_v56 }
  0xf8   :  { %v19738_v46 = vpop.f32.mrb[3].mxu0  ;;  %v19757_v48 = vpop.f32.mrb[1].mxu1  ;;  %20038 = vmatprep.subr.bf16.mxu0 %v22302_v61  ;;  %v22328_v39 = vld [vmem:[%s29515_s1 + $0x8e0] sm:$0xff]  }
  0xf9   :  { %v19758_v50 = vadd.f32 %v19757_v48, %v19756_v44  ;;  %v19759_v51 = vpop.f32.mrb[2].mxu1  ;;  %v13628_v55 = vadd.f32 %v19736_v41, %v18067_v53  ;;  %20059 = vmatpush3.bf16.msra.mxu1 %v22301_v60  ;;  %v22329_v42 = vld [vmem:[%s29515_s1 + $0x8a0] sm:$0xff]   ;;  %v22330_v44 = vld [vmem:[%s29515_s1 + $0x868] sm:$0xff]   ;;  %v22338_v53 = vld [vmem:[%s29515_s1 + $0x878] sm:$0xff]   ;;  %v277_v60 = vpack.c.bf16 %v71_v59, %v71_v59 }
  0xfa   :  { %v19760_v54 = vpop.f32.mrb[3].mxu1  ;;  %20060 = vmatprep.subr.bf16.mxu1 %v22304_v63  ;;  %v22331_v46 = vld [vmem:[%s29515_s1 + $0x828] sm:$0xff]   ;;  %v22336_v51 = vld [vmem:[%s29515_s1 + $0x8f0] sm:$0xff]   ;;  %v22342_v61 = vld [vmem:[%s29515_s1 + $0x940] sm:$0xff]  }
  0xfb   :  { %v24588_v58 = vadd.f32 %v19758_v50, %v13628_v55  ;;  %20039 = vmatpush3.bf16.msra.mxu0 %v22303_v62  ;;  %v22333_v48 = vld [vmem:[%s29515_s1 + $0x8a8] sm:$0xff]   ;;  %v22335_v50 = vld [vmem:[%s29515_s1 + $0x830] sm:$0xff]   ;;  %v22339_v54 = vld [vmem:[%s29515_s1 + $0x838] sm:$0xff]  }
  0xfc   :  { %20040 = vmatprep.subr.bf16.mxu0 %v22306_v1  ;;  %v22340_v55 = vld [vmem:[%s29515_s1 + $0x8f8] sm:$0xff]   ;;  %v73_v1 = vld [vmem:[%s29516_s0 + $0x110] sm:$0xff]  ;;  %v22377_v56 = vld [vmem:[%s29515_s1 + $0xa80] sm:$0xff]  }
  0xfd   :  { %20061 = vmatpush3.bf16.msra.mxu1 %v22305_v0  ;;  %v74_v62 = vld [vmem:[%s29516_s0 + $0x118] sm:$0xff]  ;;  %v22343_v0 = vld [vmem:[%s29515_s1 + $0x900] sm:$0xff]   ;;  %v22380_v59 = vld [vmem:[%s29515_s1 + $0xac8] sm:$0xff]  }
  0xfe   :  { %20062 = vmatprep.subr.bf16.mxu1 %v22308_v3  ;;  %v280_v63 = vpack.c.bf16 %v74_v62, %v74_v62  ;;  %v22344_v3 = vld [vmem:[%s29515_s1 + $0x9c0] sm:$0xff]   ;;  %v22383_v62 = vld [vmem:[%s29515_s1 + $0xa10] sm:$0xff]  }
  0xff   :  { %20041 = vmatpush3.bf16.msra.mxu0 %v22307_v2  ;;  %v279_v2 = vpack.c.bf16 %v73_v1, %v73_v1  ;;  %v22386_v1 = vld [vmem:[%s29515_s1 + $0xa58] sm:$0xff]  }
 0x100   :  { %20070 = vmatprep.subr.bf16.mxu0 %v22310_v9  ;;  %v22350_v9 = vld [vmem:[%s29515_s1 + $0x950] sm:$0xff]  }
 0x101   :  { %20063 = vmatpush3.bf16.msra.mxu1 %v22309_v6  ;;  %v22347_v6 = vld [vmem:[%s29515_s1 + $0x908] sm:$0xff]  }
 0x102   :  { %14186 = vmatmul.mubr.bf16.vlgmr.msra.gmra.mrb[28].mxu0 %v273_v8  ;;  %20092 = vmatprep.subr.bf16.mxu1 %v22312_v15  ;;  %v22349_v8 = vld [vmem:[%s29515_s1 + $0x988] sm:$0xff]   ;;  %v22355_v15 = vld [vmem:[%s29515_s1 + $0x918] sm:$0xff]  }
 0x103   :  { %20071 = vmatpush3.bf16.msra.mxu0 %v22311_v12  ;;  %14265 = vmatprep.mubr.bf16.mxu0 %v278_v57  ;;  %v22353_v12 = vld [vmem:[%s29515_s1 + $0x990] sm:$0xff]   ;;  %v22378_v57 = vld [vmem:[%s29515_s1 + $0xa48] sm:$0xff]  }
 0x104   :  { %14226 = vmatmul.mubr.bf16.vlgmr.msra.gmra.mrb[28].mxu1 %v275_v14  ;;  %20072 = vmatprep.subr.bf16.mxu0 %v22314_v17  ;;  %v22356_v17 = vld [vmem:[%s29515_s1 + $0x9d8] sm:$0xff]  }
 0x105   :  { %20093 = vmatpush3.bf16.msra.mxu1 %v22313_v16  ;;  %14305 = vmatprep.mubr.bf16.mxu1 %v280_v63  ;;  %v22384_v63 = vld [vmem:[%s29515_s1 + $0xad0] sm:$0xff]  }
 0x106   :  { %20094 = vmatprep.subr.bf16.mxu1 %v22316_v19 }
 0x107   :  { %20073 = vmatpush3.bf16.msra.mxu0 %v22315_v18 }
 0x108   :  { %20074 = vmatprep.subr.bf16.mxu0 %v22318_v21 }
 0x109   :  { %20095 = vmatpush3.bf16.msra.mxu1 %v22317_v20  ;;  %v22357_v20 = vld [vmem:[%s29515_s1 + $0x998] sm:$0xff]  }
 0x10a   :  { %20096 = vmatprep.subr.bf16.mxu1 %v22320_v23 }
 0x10b   :  { %20075 = vmatpush3.bf16.msra.mxu0 %v22319_v22  ;;  %v22358_v22 = vld [vmem:[%s29515_s1 + $0x960] sm:$0xff]  }
 0x10c   :  { %20076 = vmatprep.subr.bf16.mxu0 %v22322_v25  ;;  %v22359_v25 = vld [vmem:[%s29515_s1 + $0x920] sm:$0xff]  }
 0x10d   :  { %20097 = vmatpush3.bf16.msra.mxu1 %v22321_v24 }
 0x10e   :  { %20098 = vmatprep.subr.bf16.mxu1 %v22324_v29 }
 0x10f   :  { %20077 = vmatpush3.bf16.msra.mxu0 %v22323_v27  ;;  %v22360_v27 = vld [vmem:[%s29515_s1 + $0x9e0] sm:$0xff]  }
 0x110   :  { %20078 = vmatprep.subr.bf16.mxu0 %v22326_v34  ;;  %v22363_v34 = vld [vmem:[%s29515_s1 + $0x928] sm:$0xff]  }
 0x111   :  { %20099 = vmatpush3.bf16.msra.mxu1 %v22325_v32  ;;  %v22362_v32 = vld [vmem:[%s29515_s1 + $0x968] sm:$0xff]  }
 0x112   :  { %20100 = vmatprep.subr.bf16.mxu1 %v22328_v39  ;;  %v22368_v39 = vld [vmem:[%s29515_s1 + $0x9f0] sm:$0xff]  }
 0x113   :  { %20079 = vmatpush3.bf16.msra.mxu0 %v22327_v37  ;;  %v22366_v37 = vld [vmem:[%s29515_s1 + $0x970] sm:$0xff]  }
 0x114   :  { %20080 = vmatprep.subr.bf16.mxu0 %v22330_v44  ;;  %v76_v44 = vld [vmem:[%s29516_s0 + $0x128] sm:$0xff] }
 0x115   :  { %v19778_v26 = vpop.f32.mrb[4].mxu0  ;;  %20101 = vmatpush3.bf16.msra.mxu1 %v22329_v42  ;;  %v22371_v42 = vld [vmem:[%s29515_s1 + $0x938] sm:$0xff]  }
 0x116   :  { %v19779_v28 = vpop.f32.mrb[5].mxu0  ;;  %20102 = vmatprep.subr.bf16.mxu1 %v22332_v47  ;;  %v75_v47 = vld [vmem:[%s29516_s0 + $0x120] sm:$0xff] }
 0x117   :  { %v19780_v30 = vadd.f32 %v19779_v28, %v19778_v26  ;;  %v19781_v31 = vpop.f32.mrb[6].mxu0  ;;  %v19800_v33 = vpop.f32.mrb[4].mxu1  ;;  %20081 = vmatpush3.bf16.msra.mxu0 %v22331_v46  ;;  %v22373_v46 = vld [vmem:[%s29515_s1 + $0x9b8] sm:$0xff]  }
 0x118   :  { %v19782_v36 = vpop.f32.mrb[7].mxu0  ;;  %v19801_v38 = vpop.f32.mrb[5].mxu1  ;;  %20082 = vmatprep.subr.bf16.mxu0 %v22334_v49  ;;  %v22374_v49 = vld [vmem:[%s29515_s1 + $0xa40] sm:$0xff]  }
 0x119   :  { %v13708_v35 = vadd.f32 %v19780_v30, %v24588_v58  ;;  %v19802_v40 = vadd.f32 %v19801_v38, %v19800_v33  ;;  %v19803_v41 = vpop.f32.mrb[6].mxu1  ;;  %20103 = vmatpush3.bf16.msra.mxu1 %v22333_v48  ;;  %v22341_v58 = vld [vmem:[%s29515_s1 + $0x8b8] sm:$0xff]   ;;  %v22361_v30 = vld [vmem:[%s29515_s1 + $0x9a0] sm:$0xff]   ;;  %v22365_v36 = vld [vmem:[%s29515_s1 + $0x9a8] sm:$0xff]   ;;  %v281_v48 = vpack.c.bf16 %v75_v47, %v75_v47 }
 0x11a   :  { %v19804_v43 = vpop.f32.mrb[7].mxu1  ;;  %20104 = vmatprep.subr.bf16.mxu1 %v22336_v51  ;;  %v22367_v38 = vld [vmem:[%s29515_s1 + $0x930] sm:$0xff]   ;;  %v22370_v41 = vld [vmem:[%s29515_s1 + $0x978] sm:$0xff]   ;;  %v22412_v47 = vld [vmem:[%s29515_s1 + $0xbc8] sm:$0xff]  }
 0x11b   :  { %v24696_v45 = vadd.f32 %v19802_v40, %v13708_v35  ;;  %20083 = vmatpush3.bf16.msra.mxu0 %v22335_v50  ;;  %v22364_v35 = vld [vmem:[%s29515_s1 + $0x9e8] sm:$0xff]   ;;  %v22369_v40 = vld [vmem:[%s29515_s1 + $0x9b0] sm:$0xff]   ;;  %v22372_v43 = vld [vmem:[%s29515_s1 + $0x9f8] sm:$0xff]  }
 0x11c   :  { %20084 = vmatprep.subr.bf16.mxu0 %v22338_v53  ;;  %v78_v50 = vld [vmem:[%s29516_s0 + $0x138] sm:$0xff]  ;;  %v77_v53 = vld [vmem:[%s29516_s0 + $0x130] sm:$0xff] }
 0x11d   :  { %20105 = vmatpush3.bf16.msra.mxu1 %v22337_v52  ;;  %v284_v51 = vpack.c.bf16 %v78_v50, %v78_v50  ;;  %v22375_v52 = vld [vmem:[%s29515_s1 + $0xa00] sm:$0xff]   ;;  %v22415_v50 = vld [vmem:[%s29515_s1 + $0xb10] sm:$0xff]  }
 0x11e   :  { %20106 = vmatprep.subr.bf16.mxu1 %v22340_v55  ;;  %v22376_v55 = vld [vmem:[%s29515_s1 + $0xac0] sm:$0xff]  }
 0x11f   :  { %20085 = vmatpush3.bf16.msra.mxu0 %v22339_v54  ;;  %v283_v54 = vpack.c.bf16 %v77_v53, %v77_v53  ;;  %v22418_v53 = vld [vmem:[%s29515_s1 + $0xb58] sm:$0xff]  }
 0x120   :  { %20114 = vmatprep.subr.bf16.mxu0 %v22342_v61  ;;  %v22382_v61 = vld [vmem:[%s29515_s1 + $0xa50] sm:$0xff]  }
 0x121   :  { %20107 = vmatpush3.bf16.msra.mxu1 %v22341_v58  ;;  %v22379_v58 = vld [vmem:[%s29515_s1 + $0xa08] sm:$0xff]  }
 0x122   :  { %14266 = vmatmul.mubr.bf16.vlgmr.msra.gmra.mrb[32].mxu0 %v277_v60  ;;  %20136 = vmatprep.subr.bf16.mxu1 %v22344_v3  ;;  %v22381_v60 = vld [vmem:[%s29515_s1 + $0xa88] sm:$0xff]   ;;  %v22387_v3 = vld [vmem:[%s29515_s1 + $0xa18] sm:$0xff]  }
 0x123   :  { %20115 = vmatpush3.bf16.msra.mxu0 %v22343_v0  ;;  %v22385_v0 = vld [vmem:[%s29515_s1 + $0xa90] sm:$0xff]  }
 0x124   :  { %14306 = vmatmul.mubr.bf16.vlgmr.msra.gmra.mrb[32].mxu1 %v279_v2  ;;  %20116 = vmatprep.subr.bf16.mxu0 %v22346_v5  ;;  %v22388_v5 = vld [vmem:[%s29515_s1 + $0xad8] sm:$0xff]  }
 0x125   :  { %20137 = vmatpush3.bf16.msra.mxu1 %v22345_v4  ;;  %14385 = vmatprep.mubr.bf16.mxu1 %v284_v51  ;;  %v22416_v51 = vld [vmem:[%s29515_s1 + $0xbd0] sm:$0xff]  }
 0x126   :  { %20138 = vmatprep.subr.bf16.mxu1 %v22348_v7 }
 0x127   :  { %20117 = vmatpush3.bf16.msra.mxu0 %v22347_v6 }
 0x128   :  { %20118 = vmatprep.subr.bf16.mxu0 %v22350_v9 }
 0x129   :  { %20139 = vmatpush3.bf16.msra.mxu1 %v22349_v8  ;;  %v22389_v8 = vld [vmem:[%s29515_s1 + $0xa98] sm:$0xff]  }
 0x12a   :  { %20140 = vmatprep.subr.bf16.mxu1 %v22352_v11 }
 0x12b   :  { %20119 = vmatpush3.bf16.msra.mxu0 %v22351_v10  ;;  %v22390_v10 = vld [vmem:[%s29515_s1 + $0xa60] sm:$0xff]  }
 0x12c   :  { %20120 = vmatprep.subr.bf16.mxu0 %v22354_v13  ;;  %v22391_v13 = vld [vmem:[%s29515_s1 + $0xa20] sm:$0xff]  }
 0x12d   :  { %20141 = vmatpush3.bf16.msra.mxu1 %v22353_v12 }
 0x12e   :  { %20142 = vmatprep.subr.bf16.mxu1 %v22356_v17 }
 0x12f   :  { %20121 = vmatpush3.bf16.msra.mxu0 %v22355_v15  ;;  %v22392_v15 = vld [vmem:[%s29515_s1 + $0xae0] sm:$0xff]  }
 0x130   :  { %20122 = vmatprep.subr.bf16.mxu0 %v22358_v22  ;;  %v22395_v22 = vld [vmem:[%s29515_s1 + $0xa28] sm:$0xff]  }
 0x131   :  { %20143 = vmatpush3.bf16.msra.mxu1 %v22357_v20  ;;  %v22394_v20 = vld [vmem:[%s29515_s1 + $0xa68] sm:$0xff]  }
 0x132   :  { %20144 = vmatprep.subr.bf16.mxu1 %v22360_v27  ;;  %v22400_v27 = vld [vmem:[%s29515_s1 + $0xaf0] sm:$0xff]  }
 0x133   :  { %20123 = vmatpush3.bf16.msra.mxu0 %v22359_v25  ;;  %v22398_v25 = vld [vmem:[%s29515_s1 + $0xa70] sm:$0xff]  }
 0x134   :  { %20124 = vmatprep.subr.bf16.mxu0 %v22362_v32  ;;  %v80_v32 = vld [vmem:[%s29516_s0 + $0x148] sm:$0xff] }
 0x135   :  { %v19822_v14 = vpop.f32.mrb[8].mxu0  ;;  %20145 = vmatpush3.bf16.msra.mxu1 %v22361_v30  ;;  %v22403_v30 = vld [vmem:[%s29515_s1 + $0xa38] sm:$0xff]  }
 0x136   :  { %v19823_v16 = vpop.f32.mrb[9].mxu0  ;;  %20146 = vmatprep.subr.bf16.mxu1 %v22364_v35  ;;  %v79_v35 = vld [vmem:[%s29516_s0 + $0x140] sm:$0xff] }
 0x137   :  { %v19824_v18 = vadd.f32 %v19823_v16, %v19822_v14  ;;  %v19825_v19 = vpop.f32.mrb[10].mxu0  ;;  %v19844_v21 = vpop.f32.mrb[8].mxu1  ;;  %20125 = vmatpush3.bf16.msra.mxu0 %v22363_v34  ;;  %v22405_v34 = vld [vmem:[%s29515_s1 + $0xab8] sm:$0xff]  }
 0x138   :  { %v19826_v24 = vpop.f32.mrb[11].mxu0  ;;  %v19845_v26 = vpop.f32.mrb[9].mxu1  ;;  %20126 = vmatprep.subr.bf16.mxu0 %v22366_v37  ;;  %v22406_v37 = vld [vmem:[%s29515_s1 + $0xb40] sm:$0xff]  }
 0x139   :  { %v13788_v23 = vadd.f32 %v19824_v18, %v24696_v45  ;;  %v19846_v28 = vadd.f32 %v19845_v26, %v19844_v21  ;;  %v19847_v29 = vpop.f32.mrb[10].mxu1  ;;  %20147 = vmatpush3.bf16.msra.mxu1 %v22365_v36  ;;  %v282_v45 = vpack.c.bf16 %v76_v44, %v76_v44  ;;  %v22393_v18 = vld [vmem:[%s29515_s1 + $0xaa0] sm:$0xff]   ;;  %v22397_v24 = vld [vmem:[%s29515_s1 + $0xaa8] sm:$0xff]   ;;  %v22399_v26 = vld [vmem:[%s29515_s1 + $0xa30] sm:$0xff]   ;;  %v285_v36 = vpack.c.bf16 %v79_v35, %v79_v35 }
 0x13a   :  { %v19848_v31 = vpop.f32.mrb[11].mxu1  ;;  %20148 = vmatprep.subr.bf16.mxu1 %v22368_v39  ;;  %v22402_v29 = vld [vmem:[%s29515_s1 + $0xa78] sm:$0xff]   ;;  %v22409_v44 = vld [vmem:[%s29515_s1 + $0xb80] sm:$0xff]   ;;  %v22444_v35 = vld [vmem:[%s29515_s1 + $0xcc8] sm:$0xff]  }
 0x13b   :  { %v24807_v33 = vadd.f32 %v19846_v28, %v13788_v23  ;;  %20127 = vmatpush3.bf16.msra.mxu0 %v22367_v38  ;;  %14345 = vmatprep.mubr.bf16.mxu0 %v282_v45  ;;  %v22396_v23 = vld [vmem:[%s29515_s1 + $0xae8] sm:$0xff]   ;;  %v22401_v28 = vld [vmem:[%s29515_s1 + $0xab0] sm:$0xff]   ;;  %v22404_v31 = vld [vmem:[%s29515_s1 + $0xaf8] sm:$0xff]  }
 0x13c   :  { %20128 = vmatprep.subr.bf16.mxu0 %v22370_v41  ;;  %v82_v38 = vld [vmem:[%s29516_s0 + $0x158] sm:$0xff]  ;;  %v81_v41 = vld [vmem:[%s29516_s0 + $0x150] sm:$0xff]  ;;  %v22410_v45 = vld [vmem:[%s29515_s1 + $0xb48] sm:$0xff]  }
 0x13d   :  { %20149 = vmatpush3.bf16.msra.mxu1 %v22369_v40  ;;  %v288_v39 = vpack.c.bf16 %v82_v38, %v82_v38  ;;  %v22407_v40 = vld [vmem:[%s29515_s1 + $0xb00] sm:$0xff]   ;;  %v22447_v38 = vld [vmem:[%s29515_s1 + $0xc10] sm:$0xff]  }
 0x13e   :  { %20150 = vmatprep.subr.bf16.mxu1 %v22372_v43  ;;  %v22408_v43 = vld [vmem:[%s29515_s1 + $0xbc0] sm:$0xff]  }
 0x13f   :  { %20129 = vmatpush3.bf16.msra.mxu0 %v22371_v42  ;;  %v287_v42 = vpack.c.bf16 %v81_v41, %v81_v41  ;;  %v22450_v41 = vld [vmem:[%s29515_s1 + $0xc58] sm:$0xff]  }
 0x140   :  { %20158 = vmatprep.subr.bf16.mxu0 %v22374_v49  ;;  %v22414_v49 = vld [vmem:[%s29515_s1 + $0xb50] sm:$0xff]  }
 0x141   :  { %20151 = vmatpush3.bf16.msra.mxu1 %v22373_v46  ;;  %v22411_v46 = vld [vmem:[%s29515_s1 + $0xb08] sm:$0xff]  }
 0x142   :  { %14346 = vmatmul.mubr.bf16.vlgmr.msra.gmra.mrb[36].mxu0 %v281_v48  ;;  %20180 = vmatprep.subr.bf16.mxu1 %v22376_v55  ;;  %v22413_v48 = vld [vmem:[%s29515_s1 + $0xb88] sm:$0xff]   ;;  %v22419_v55 = vld [vmem:[%s29515_s1 + $0xb18] sm:$0xff]  }
 0x143   :  { %20159 = vmatpush3.bf16.msra.mxu0 %v22375_v52  ;;  %v22417_v52 = vld [vmem:[%s29515_s1 + $0xb90] sm:$0xff]  }
 0x144   :  { %14386 = vmatmul.mubr.bf16.vlgmr.msra.gmra.mrb[36].mxu1 %v283_v54  ;;  %20160 = vmatprep.subr.bf16.mxu0 %v22378_v57  ;;  %v22420_v57 = vld [vmem:[%s29515_s1 + $0xbd8] sm:$0xff]  }
 0x145   :  { %20181 = vmatpush3.bf16.msra.mxu1 %v22377_v56  ;;  %14465 = vmatprep.mubr.bf16.mxu1 %v288_v39  ;;  %v22448_v39 = vld [vmem:[%s29515_s1 + $0xcd0] sm:$0xff]  }
 0x146   :  { %20182 = vmatprep.subr.bf16.mxu1 %v22380_v59 }
 0x147   :  { %20161 = vmatpush3.bf16.msra.mxu0 %v22379_v58 }
 0x148   :  { %20162 = vmatprep.subr.bf16.mxu0 %v22382_v61 }
 0x149   :  { %20183 = vmatpush3.bf16.msra.mxu1 %v22381_v60  ;;  %v22421_v60 = vld [vmem:[%s29515_s1 + $0xb98] sm:$0xff]  }
 0x14a   :  { %20184 = vmatprep.subr.bf16.mxu1 %v22384_v63 }
 0x14b   :  { %20163 = vmatpush3.bf16.msra.mxu0 %v22383_v62  ;;  %v22422_v62 = vld [vmem:[%s29515_s1 + $0xb60] sm:$0xff]  }
 0x14c   :  { %20164 = vmatprep.subr.bf16.mxu0 %v22386_v1  ;;  %v22423_v1 = vld [vmem:[%s29515_s1 + $0xb20] sm:$0xff]  }
 0x14d   :  { %20185 = vmatpush3.bf16.msra.mxu1 %v22385_v0 }
 0x14e   :  { %20186 = vmatprep.subr.bf16.mxu1 %v22388_v5 }
 0x14f   :  { %20165 = vmatpush3.bf16.msra.mxu0 %v22387_v3  ;;  %v22424_v3 = vld [vmem:[%s29515_s1 + $0xbe0] sm:$0xff]  }
 0x150   :  { %20166 = vmatprep.subr.bf16.mxu0 %v22390_v10  ;;  %v22427_v10 = vld [vmem:[%s29515_s1 + $0xb28] sm:$0xff]  }
 0x151   :  { %20187 = vmatpush3.bf16.msra.mxu1 %v22389_v8  ;;  %v22426_v8 = vld [vmem:[%s29515_s1 + $0xb68] sm:$0xff]  }
 0x152   :  { %20188 = vmatprep.subr.bf16.mxu1 %v22392_v15  ;;  %v22432_v15 = vld [vmem:[%s29515_s1 + $0xbf0] sm:$0xff]  }
 0x153   :  { %20167 = vmatpush3.bf16.msra.mxu0 %v22391_v13  ;;  %v22430_v13 = vld [vmem:[%s29515_s1 + $0xb70] sm:$0xff]  }
 0x154   :  { %20168 = vmatprep.subr.bf16.mxu0 %v22394_v20  ;;  %v84_v20 = vld [vmem:[%s29516_s0 + $0x168] sm:$0xff] }
 0x155   :  { %v19866_v2 = vpop.f32.mrb[12].mxu0  ;;  %20189 = vmatpush3.bf16.msra.mxu1 %v22393_v18  ;;  %v22435_v18 = vld [vmem:[%s29515_s1 + $0xb38] sm:$0xff]  }
 0x156   :  { %v19867_v4 = vpop.f32.mrb[13].mxu0  ;;  %20190 = vmatprep.subr.bf16.mxu1 %v22396_v23  ;;  %v83_v23 = vld [vmem:[%s29516_s0 + $0x160] sm:$0xff] }
 0x157   :  { %v19868_v6 = vadd.f32 %v19867_v4, %v19866_v2  ;;  %v19869_v7 = vpop.f32.mrb[14].mxu0  ;;  %v19888_v9 = vpop.f32.mrb[12].mxu1  ;;  %20169 = vmatpush3.bf16.msra.mxu0 %v22395_v22  ;;  %v22437_v22 = vld [vmem:[%s29515_s1 + $0xbb8] sm:$0xff]  }
 0x158   :  { %v19870_v12 = vpop.f32.mrb[15].mxu0  ;;  %v19889_v14 = vpop.f32.mrb[13].mxu1  ;;  %20170 = vmatprep.subr.bf16.mxu0 %v22398_v25  ;;  %v22438_v25 = vld [vmem:[%s29515_s1 + $0xc40] sm:$0xff]  }
 0x159   :  { %v13868_v11 = vadd.f32 %v19868_v6, %v24807_v33  ;;  %v19890_v16 = vadd.f32 %v19889_v14, %v19888_v9  ;;  %v19891_v17 = vpop.f32.mrb[14].mxu1  ;;  %20191 = vmatpush3.bf16.msra.mxu1 %v22397_v24  ;;  %v286_v33 = vpack.c.bf16 %v80_v32, %v80_v32  ;;  %v22425_v6 = vld [vmem:[%s29515_s1 + $0xba0] sm:$0xff]   ;;  %v22429_v12 = vld [vmem:[%s29515_s1 + $0xba8] sm:$0xff]   ;;  %v22431_v14 = vld [vmem:[%s29515_s1 + $0xb30] sm:$0xff]   ;;  %v289_v24 = vpack.c.bf16 %v83_v23, %v83_v23 }
 0x15a   :  { %v19892_v19 = vpop.f32.mrb[15].mxu1  ;;  %20192 = vmatprep.subr.bf16.mxu1 %v22400_v27  ;;  %v22434_v17 = vld [vmem:[%s29515_s1 + $0xb78] sm:$0xff]   ;;  %v22441_v32 = vld [vmem:[%s29515_s1 + $0xc80] sm:$0xff]   ;;  %v22476_v23 = vld [vmem:[%s29515_s1 + $0xdc8] sm:$0xff]  }
 0x15b   :  { %v24918_v21 = vadd.f32 %v19890_v16, %v13868_v11  ;;  %20171 = vmatpush3.bf16.msra.mxu0 %v22399_v26  ;;  %14425 = vmatprep.mubr.bf16.mxu0 %v286_v33  ;;  %v22428_v11 = vld [vmem:[%s29515_s1 + $0xbe8] sm:$0xff]   ;;  %v22433_v16 = vld [vmem:[%s29515_s1 + $0xbb0] sm:$0xff]   ;;  %v22436_v19 = vld [vmem:[%s29515_s1 + $0xbf8] sm:$0xff]  }
 0x15c   :  { %20172 = vmatprep.subr.bf16.mxu0 %v22402_v29  ;;  %v86_v26 = vld [vmem:[%s29516_s0 + $0x178] sm:$0xff]  ;;  %v85_v29 = vld [vmem:[%s29516_s0 + $0x170] sm:$0xff]  ;;  %v22442_v33 = vld [vmem:[%s29515_s1 + $0xc48] sm:$0xff]  }
 0x15d   :  { %20193 = vmatpush3.bf16.msra.mxu1 %v22401_v28  ;;  %v292_v27 = vpack.c.bf16 %v86_v26, %v86_v26  ;;  %v22439_v28 = vld [vmem:[%s29515_s1 + $0xc00] sm:$0xff]   ;;  %v22479_v26 = vld [vmem:[%s29515_s1 + $0xd10] sm:$0xff]  }
 0x15e   :  { %20194 = vmatprep.subr.bf16.mxu1 %v22404_v31  ;;  %v22440_v31 = vld [vmem:[%s29515_s1 + $0xcc0] sm:$0xff]  }
 0x15f   :  { %20173 = vmatpush3.bf16.msra.mxu0 %v22403_v30  ;;  %v291_v30 = vpack.c.bf16 %v85_v29, %v85_v29  ;;  %v22482_v29 = vld [vmem:[%s29515_s1 + $0xd58] sm:$0xff]  }
 0x160   :  { %20202 = vmatprep.subr.bf16.mxu0 %v22406_v37  ;;  %v22446_v37 = vld [vmem:[%s29515_s1 + $0xc50] sm:$0xff]  }
 0x161   :  { %20195 = vmatpush3.bf16.msra.mxu1 %v22405_v34  ;;  %v22443_v34 = vld [vmem:[%s29515_s1 + $0xc08] sm:$0xff]  }
 0x162   :  { %14426 = vmatmul.mubr.bf16.vlgmr.msra.gmra.mrb[40].mxu0 %v285_v36  ;;  %20224 = vmatprep.subr.bf16.mxu1 %v22408_v43  ;;  %v22445_v36 = vld [vmem:[%s29515_s1 + $0xc88] sm:$0xff]   ;;  %v22451_v43 = vld [vmem:[%s29515_s1 + $0xc18] sm:$0xff]  }
 0x163   :  { %20203 = vmatpush3.bf16.msra.mxu0 %v22407_v40  ;;  %v22449_v40 = vld [vmem:[%s29515_s1 + $0xc90] sm:$0xff]  }
 0x164   :  { %14466 = vmatmul.mubr.bf16.vlgmr.msra.gmra.mrb[40].mxu1 %v287_v42  ;;  %20204 = vmatprep.subr.bf16.mxu0 %v22410_v45  ;;  %v22452_v45 = vld [vmem:[%s29515_s1 + $0xcd8] sm:$0xff]  }
 0x165   :  { %20225 = vmatpush3.bf16.msra.mxu1 %v22409_v44  ;;  %14545 = vmatprep.mubr.bf16.mxu1 %v292_v27  ;;  %v22480_v27 = vld [vmem:[%s29515_s1 + $0xdd0] sm:$0xff]  }
 0x166   :  { %20226 = vmatprep.subr.bf16.mxu1 %v22412_v47 }
 0x167   :  { %20205 = vmatpush3.bf16.msra.mxu0 %v22411_v46 }
 0x168   :  { %20206 = vmatprep.subr.bf16.mxu0 %v22414_v49 }
 0x169   :  { %20227 = vmatpush3.bf16.msra.mxu1 %v22413_v48  ;;  %v22453_v48 = vld [vmem:[%s29515_s1 + $0xc98] sm:$0xff]  }
 0x16a   :  { %20228 = vmatprep.subr.bf16.mxu1 %v22416_v51 }
 0x16b   :  { %20207 = vmatpush3.bf16.msra.mxu0 %v22415_v50  ;;  %v22454_v50 = vld [vmem:[%s29515_s1 + $0xc60] sm:$0xff]  }
 0x16c   :  { %20208 = vmatprep.subr.bf16.mxu0 %v22418_v53  ;;  %v22455_v53 = vld [vmem:[%s29515_s1 + $0xc20] sm:$0xff]  }
 0x16d   :  { %20229 = vmatpush3.bf16.msra.mxu1 %v22417_v52 }
 0x16e   :  { %20230 = vmatprep.subr.bf16.mxu1 %v22420_v57 }
 0x16f   :  { %20209 = vmatpush3.bf16.msra.mxu0 %v22419_v55  ;;  %v22456_v55 = vld [vmem:[%s29515_s1 + $0xce0] sm:$0xff]  }
 0x170   :  { %20210 = vmatprep.subr.bf16.mxu0 %v22422_v62  ;;  %v22459_v62 = vld [vmem:[%s29515_s1 + $0xc28] sm:$0xff]  }
 0x171   :  { %20231 = vmatpush3.bf16.msra.mxu1 %v22421_v60  ;;  %v22458_v60 = vld [vmem:[%s29515_s1 + $0xc68] sm:$0xff]  }
 0x172   :  { %20232 = vmatprep.subr.bf16.mxu1 %v22424_v3  ;;  %v22464_v3 = vld [vmem:[%s29515_s1 + $0xcf0] sm:$0xff]  }
 0x173   :  { %20211 = vmatpush3.bf16.msra.mxu0 %v22423_v1  ;;  %v22462_v1 = vld [vmem:[%s29515_s1 + $0xc70] sm:$0xff]  }
 0x174   :  { %20212 = vmatprep.subr.bf16.mxu0 %v22426_v8  ;;  %v88_v8 = vld [vmem:[%s29516_s0 + $0x188] sm:$0xff] }
 0x175   :  { %v19910_v54 = vpop.f32.mrb[16].mxu0  ;;  %20233 = vmatpush3.bf16.msra.mxu1 %v22425_v6  ;;  %v22467_v6 = vld [vmem:[%s29515_s1 + $0xc38] sm:$0xff]  }
 0x176   :  { %v19911_v56 = vpop.f32.mrb[17].mxu0  ;;  %20234 = vmatprep.subr.bf16.mxu1 %v22428_v11  ;;  %v87_v11 = vld [vmem:[%s29516_s0 + $0x180] sm:$0xff] }
 0x177   :  { %v19912_v58 = vadd.f32 %v19911_v56, %v19910_v54  ;;  %v19913_v59 = vpop.f32.mrb[18].mxu0  ;;  %v19932_v61 = vpop.f32.mrb[16].mxu1  ;;  %20213 = vmatpush3.bf16.msra.mxu0 %v22427_v10  ;;  %v22469_v10 = vld [vmem:[%s29515_s1 + $0xcb8] sm:$0xff]  }
 0x178   :  { %v19914_v0 = vpop.f32.mrb[19].mxu0  ;;  %v19933_v2 = vpop.f32.mrb[17].mxu1  ;;  %20214 = vmatprep.subr.bf16.mxu0 %v22430_v13  ;;  %v22470_v13 = vld [vmem:[%s29515_s1 + $0xd40] sm:$0xff]  }
 0x179   :  { %v13948_v63 = vadd.f32 %v19912_v58, %v24918_v21  ;;  %v19934_v4 = vadd.f32 %v19933_v2, %v19932_v61  ;;  %v19935_v5 = vpop.f32.mrb[18].mxu1  ;;  %20235 = vmatpush3.bf16.msra.mxu1 %v22429_v12  ;;  %v290_v21 = vpack.c.bf16 %v84_v20, %v84_v20  ;;  %v22457_v58 = vld [vmem:[%s29515_s1 + $0xca0] sm:$0xff]   ;;  %v22461_v0 = vld [vmem:[%s29515_s1 + $0xca8] sm:$0xff]   ;;  %v22463_v2 = vld [vmem:[%s29515_s1 + $0xc30] sm:$0xff]   ;;  %v293_v12 = vpack.c.bf16 %v87_v11, %v87_v11 }
 0x17a   :  { %v19936_v7 = vpop.f32.mrb[19].mxu1  ;;  %20236 = vmatprep.subr.bf16.mxu1 %v22432_v15  ;;  %v22466_v5 = vld [vmem:[%s29515_s1 + $0xc78] sm:$0xff]   ;;  %v22473_v20 = vld [vmem:[%s29515_s1 + $0xd80] sm:$0xff]   ;;  %v22508_v11 = vld [vmem:[%s29515_s1 + $0xec8] sm:$0xff]  }
 0x17b   :  { %v25029_v9 = vadd.f32 %v19934_v4, %v13948_v63  ;;  %20215 = vmatpush3.bf16.msra.mxu0 %v22431_v14  ;;  %14505 = vmatprep.mubr.bf16.mxu0 %v290_v21  ;;  %v22460_v63 = vld [vmem:[%s29515_s1 + $0xce8] sm:$0xff]   ;;  %v22465_v4 = vld [vmem:[%s29515_s1 + $0xcb0] sm:$0xff]   ;;  %v22468_v7 = vld [vmem:[%s29515_s1 + $0xcf8] sm:$0xff]  }
 0x17c   :  { %20216 = vmatprep.subr.bf16.mxu0 %v22434_v17  ;;  %v90_v14 = vld [vmem:[%s29516_s0 + $0x198] sm:$0xff]  ;;  %v89_v17 = vld [vmem:[%s29516_s0 + $0x190] sm:$0xff]  ;;  %v22474_v21 = vld [vmem:[%s29515_s1 + $0xd48] sm:$0xff]  }
 0x17d   :  { %20237 = vmatpush3.bf16.msra.mxu1 %v22433_v16  ;;  %v296_v15 = vpack.c.bf16 %v90_v14, %v90_v14  ;;  %v22471_v16 = vld [vmem:[%s29515_s1 + $0xd00] sm:$0xff]   ;;  %v22511_v14 = vld [vmem:[%s29515_s1 + $0xe10] sm:$0xff]  }
 0x17e   :  { %20238 = vmatprep.subr.bf16.mxu1 %v22436_v19  ;;  %v22472_v19 = vld [vmem:[%s29515_s1 + $0xdc0] sm:$0xff]  }
 0x17f   :  { %20217 = vmatpush3.bf16.msra.mxu0 %v22435_v18  ;;  %v295_v18 = vpack.c.bf16 %v89_v17, %v89_v17  ;;  %v22514_v17 = vld [vmem:[%s29515_s1 + $0xe58] sm:$0xff]  }
 0x180   :  { %20246 = vmatprep.subr.bf16.mxu0 %v22438_v25  ;;  %v22478_v25 = vld [vmem:[%s29515_s1 + $0xd50] sm:$0xff]  }
 0x181   :  { %20239 = vmatpush3.bf16.msra.mxu1 %v22437_v22  ;;  %v22475_v22 = vld [vmem:[%s29515_s1 + $0xd08] sm:$0xff]  }
 0x182   :  { %14506 = vmatmul.mubr.bf16.vlgmr.msra.gmra.mrb[44].mxu0 %v289_v24  ;;  %20268 = vmatprep.subr.bf16.mxu1 %v22440_v31  ;;  %v22477_v24 = vld [vmem:[%s29515_s1 + $0xd88] sm:$0xff]   ;;  %v22483_v31 = vld [vmem:[%s29515_s1 + $0xd18] sm:$0xff]  }
 0x183   :  { %20247 = vmatpush3.bf16.msra.mxu0 %v22439_v28  ;;  %v22481_v28 = vld [vmem:[%s29515_s1 + $0xd90] sm:$0xff]  }
 0x184   :  { %14546 = vmatmul.mubr.bf16.vlgmr.msra.gmra.mrb[44].mxu1 %v291_v30  ;;  %20248 = vmatprep.subr.bf16.mxu0 %v22442_v33  ;;  %v22484_v33 = vld [vmem:[%s29515_s1 + $0xdd8] sm:$0xff]  }
 0x185   :  { %20269 = vmatpush3.bf16.msra.mxu1 %v22441_v32  ;;  %14625 = vmatprep.mubr.bf16.mxu1 %v296_v15  ;;  %v22512_v15 = vld [vmem:[%s29515_s1 + $0xed0] sm:$0xff]  }
 0x186   :  { %20270 = vmatprep.subr.bf16.mxu1 %v22444_v35 }
 0x187   :  { %20249 = vmatpush3.bf16.msra.mxu0 %v22443_v34 }
 0x188   :  { %20250 = vmatprep.subr.bf16.mxu0 %v22446_v37 }
 0x189   :  { %20271 = vmatpush3.bf16.msra.mxu1 %v22445_v36  ;;  %v22485_v36 = vld [vmem:[%s29515_s1 + $0xd98] sm:$0xff]  }
 0x18a   :  { %20272 = vmatprep.subr.bf16.mxu1 %v22448_v39 }
 0x18b   :  { %20251 = vmatpush3.bf16.msra.mxu0 %v22447_v38  ;;  %v22486_v38 = vld [vmem:[%s29515_s1 + $0xd60] sm:$0xff]  }
 0x18c   :  { %20252 = vmatprep.subr.bf16.mxu0 %v22450_v41  ;;  %v22487_v41 = vld [vmem:[%s29515_s1 + $0xd20] sm:$0xff]  }
 0x18d   :  { %20273 = vmatpush3.bf16.msra.mxu1 %v22449_v40 }
 0x18e   :  { %20274 = vmatprep.subr.bf16.mxu1 %v22452_v45 }
 0x18f   :  { %20253 = vmatpush3.bf16.msra.mxu0 %v22451_v43  ;;  %v22488_v43 = vld [vmem:[%s29515_s1 + $0xde0] sm:$0xff]  }
 0x190   :  { %20254 = vmatprep.subr.bf16.mxu0 %v22454_v50  ;;  %v22491_v50 = vld [vmem:[%s29515_s1 + $0xd28] sm:$0xff]  }
 0x191   :  { %20275 = vmatpush3.bf16.msra.mxu1 %v22453_v48  ;;  %v22490_v48 = vld [vmem:[%s29515_s1 + $0xd68] sm:$0xff]  }
 0x192   :  { %20276 = vmatprep.subr.bf16.mxu1 %v22456_v55  ;;  %v22496_v55 = vld [vmem:[%s29515_s1 + $0xdf0] sm:$0xff]  }
 0x193   :  { %20255 = vmatpush3.bf16.msra.mxu0 %v22455_v53  ;;  %v22494_v53 = vld [vmem:[%s29515_s1 + $0xd70] sm:$0xff]  }
 0x194   :  { %20256 = vmatprep.subr.bf16.mxu0 %v22458_v60  ;;  %v92_v60 = vld [vmem:[%s29516_s0 + $0x1a8] sm:$0xff] }
 0x195   :  { %v19954_v42 = vpop.f32.mrb[20].mxu0  ;;  %20277 = vmatpush3.bf16.msra.mxu1 %v22457_v58  ;;  %v22499_v58 = vld [vmem:[%s29515_s1 + $0xd38] sm:$0xff]  }
 0x196   :  { %v19955_v44 = vpop.f32.mrb[21].mxu0  ;;  %20278 = vmatprep.subr.bf16.mxu1 %v22460_v63  ;;  %v91_v63 = vld [vmem:[%s29516_s0 + $0x1a0] sm:$0xff] }
 0x197   :  { %v19956_v46 = vadd.f32 %v19955_v44, %v19954_v42  ;;  %v19957_v47 = vpop.f32.mrb[22].mxu0  ;;  %v19976_v49 = vpop.f32.mrb[20].mxu1  ;;  %20257 = vmatpush3.bf16.msra.mxu0 %v22459_v62  ;;  %v22501_v62 = vld [vmem:[%s29515_s1 + $0xdb8] sm:$0xff]  }
 0x198   :  { %v19958_v52 = vpop.f32.mrb[23].mxu0  ;;  %v19977_v54 = vpop.f32.mrb[21].mxu1  ;;  %20258 = vmatprep.subr.bf16.mxu0 %v22462_v1  ;;  %v22502_v1 = vld [vmem:[%s29515_s1 + $0xe40] sm:$0xff]  }
 0x199   :  { %v14028_v51 = vadd.f32 %v19956_v46, %v25029_v9  ;;  %v19978_v56 = vadd.f32 %v19977_v54, %v19976_v49  ;;  %v19979_v57 = vpop.f32.mrb[22].mxu1  ;;  %20279 = vmatpush3.bf16.msra.mxu1 %v22461_v0  ;;  %v294_v9 = vpack.c.bf16 %v88_v8, %v88_v8  ;;  %v22489_v46 = vld [vmem:[%s29515_s1 + $0xda0] sm:$0xff]   ;;  %v22493_v52 = vld [vmem:[%s29515_s1 + $0xda8] sm:$0xff]   ;;  %v22495_v54 = vld [vmem:[%s29515_s1 + $0xd30] sm:$0xff]   ;;  %v297_v0 = vpack.c.bf16 %v91_v63, %v91_v63 }
 0x19a   :  { %v19980_v59 = vpop.f32.mrb[23].mxu1  ;;  %20280 = vmatprep.subr.bf16.mxu1 %v22464_v3  ;;  %v22498_v57 = vld [vmem:[%s29515_s1 + $0xd78] sm:$0xff]   ;;  %v22505_v8 = vld [vmem:[%s29515_s1 + $0xe80] sm:$0xff]   ;;  %v22540_v63 = vld [vmem:[%s29515_s1 + $0xfc8] sm:$0xff]  }
 0x19b   :  { %v25140_v61 = vadd.f32 %v19978_v56, %v14028_v51  ;;  %20259 = vmatpush3.bf16.msra.mxu0 %v22463_v2  ;;  %14585 = vmatprep.mubr.bf16.mxu0 %v294_v9  ;;  %v22492_v51 = vld [vmem:[%s29515_s1 + $0xde8] sm:$0xff]   ;;  %v22497_v56 = vld [vmem:[%s29515_s1 + $0xdb0] sm:$0xff]   ;;  %v22500_v59 = vld [vmem:[%s29515_s1 + $0xdf8] sm:$0xff]  }
 0x19c   :  { %20260 = vmatprep.subr.bf16.mxu0 %v22466_v5  ;;  %v94_v2 = vld [vmem:[%s29516_s0 + $0x1b8] sm:$0xff]  ;;  %v93_v5 = vld [vmem:[%s29516_s0 + $0x1b0] sm:$0xff]  ;;  %v22506_v9 = vld [vmem:[%s29515_s1 + $0xe48] sm:$0xff]  }
 0x19d   :  { %20281 = vmatpush3.bf16.msra.mxu1 %v22465_v4  ;;  %v300_v3 = vpack.c.bf16 %v94_v2, %v94_v2  ;;  %v22503_v4 = vld [vmem:[%s29515_s1 + $0xe00] sm:$0xff]   ;;  %v22543_v2 = vld [vmem:[%s29515_s1 + $0xf10] sm:$0xff]  }
 0x19e   :  { %20282 = vmatprep.subr.bf16.mxu1 %v22468_v7  ;;  %v22504_v7 = vld [vmem:[%s29515_s1 + $0xec0] sm:$0xff]  }
 0x19f   :  { %20261 = vmatpush3.bf16.msra.mxu0 %v22467_v6  ;;  %v299_v6 = vpack.c.bf16 %v93_v5, %v93_v5  ;;  %v22546_v5 = vld [vmem:[%s29515_s1 + $0xf58] sm:$0xff]  }
 0x1a0   :  { %20290 = vmatprep.subr.bf16.mxu0 %v22470_v13  ;;  %v22510_v13 = vld [vmem:[%s29515_s1 + $0xe50] sm:$0xff]  }
 0x1a1   :  { %20283 = vmatpush3.bf16.msra.mxu1 %v22469_v10  ;;  %v22507_v10 = vld [vmem:[%s29515_s1 + $0xe08] sm:$0xff]  }
 0x1a2   :  { %14586 = vmatmul.mubr.bf16.vlgmr.msra.gmra.mrb[48].mxu0 %v293_v12  ;;  %20312 = vmatprep.subr.bf16.mxu1 %v22472_v19  ;;  %v22509_v12 = vld [vmem:[%s29515_s1 + $0xe88] sm:$0xff]  }
 0x1a3   :  { %20291 = vmatpush3.bf16.msra.mxu0 %v22471_v16  ;;  %v22513_v16 = vld [vmem:[%s29515_s1 + $0xe90] sm:$0xff]  }
 0x1a4   :  { %14626 = vmatmul.mubr.bf16.vlgmr.msra.gmra.mrb[48].mxu1 %v295_v18  ;;  %20292 = vmatprep.subr.bf16.mxu0 %v22474_v21  ;;  %v22515_v18 = vld [vmem:[%s29515_s1 + $0xe18] sm:$0xff]  }
 0x1a5   :  { %20313 = vmatpush3.bf16.msra.mxu1 %v22473_v20  ;;  %14705 = vmatprep.mubr.bf16.mxu1 %v300_v3  ;;  %v22516_v20 = vld [vmem:[%s29515_s1 + $0xed8] sm:$0xff]   ;;  %v22544_v3 = vld [vmem:[%s29515_s1 + $0xfd0] sm:$0xff]  }
 0x1a6   :  { %20314 = vmatprep.subr.bf16.mxu1 %v22476_v23 }
 0x1a7   :  { %20293 = vmatpush3.bf16.msra.mxu0 %v22475_v22  ;;  %v22517_v22 = vld [vmem:[%s29515_s1 + $0xe98] sm:$0xff]  }
 0x1a8   :  { %20294 = vmatprep.subr.bf16.mxu0 %v22478_v25  ;;  %v22518_v25 = vld [vmem:[%s29515_s1 + $0xe60] sm:$0xff]  }
 0x1a9   :  { %20315 = vmatpush3.bf16.msra.mxu1 %v22477_v24 }
 0x1aa   :  { %20316 = vmatprep.subr.bf16.mxu1 %v22480_v27  ;;  %v22519_v27 = vld [vmem:[%s29515_s1 + $0xe20] sm:$0xff]  }
 0x1ab   :  { %20295 = vmatpush3.bf16.msra.mxu0 %v22479_v26 }
 0x1ac   :  { %20296 = vmatprep.subr.bf16.mxu0 %v22482_v29 }
 0x1ad   :  { %20317 = vmatpush3.bf16.msra.mxu1 %v22481_v28 }
 0x1ae   :  { %20318 = vmatprep.subr.bf16.mxu1 %v22484_v33 }
 0x1af   :  { %20297 = vmatpush3.bf16.msra.mxu0 %v22483_v31 }
 0x1b0   :  { %20298 = vmatprep.subr.bf16.mxu0 %v22486_v38 }
 0x1b1   :  { %20319 = vmatpush3.bf16.msra.mxu1 %v22485_v36 }
 0x1b2   :  { %20320 = vmatprep.subr.bf16.mxu1 %v22488_v43  ;;  %v22528_v43 = vld [vmem:[%s29515_s1 + $0xef0] sm:$0xff]  }
 0x1b3   :  { %20299 = vmatpush3.bf16.msra.mxu0 %v22487_v41  ;;  %v22526_v41 = vld [vmem:[%s29515_s1 + $0xe70] sm:$0xff]  }
 0x1b4   :  { %20300 = vmatprep.subr.bf16.mxu0 %v22490_v48  ;;  %v96_v48 = vld [vmem:[%s29516_s0 + $0x1c8] sm:$0xff] }
 0x1b5   :  { %v19998_v30 = vpop.f32.mrb[24].mxu0  ;;  %20321 = vmatpush3.bf16.msra.mxu1 %v22489_v46  ;;  %v22531_v46 = vld [vmem:[%s29515_s1 + $0xe38] sm:$0xff]  }
 0x1b6   :  { %v19999_v32 = vpop.f32.mrb[25].mxu0  ;;  %20322 = vmatprep.subr.bf16.mxu1 %v22492_v51  ;;  %v95_v51 = vld [vmem:[%s29516_s0 + $0x1c0] sm:$0xff] }
 0x1b7   :  { %v20000_v34 = vadd.f32 %v19999_v32, %v19998_v30  ;;  %v20001_v35 = vpop.f32.mrb[26].mxu0  ;;  %v20020_v37 = vpop.f32.mrb[24].mxu1  ;;  %20301 = vmatpush3.bf16.msra.mxu0 %v22491_v50  ;;  %v22520_v30 = vld [vmem:[%s29515_s1 + $0xee0] sm:$0xff]   ;;  %v22533_v50 = vld [vmem:[%s29515_s1 + $0xeb8] sm:$0xff]  }
 0x1b8   :  { %v20002_v40 = vpop.f32.mrb[27].mxu0  ;;  %v20021_v42 = vpop.f32.mrb[25].mxu1  ;;  %20302 = vmatprep.subr.bf16.mxu0 %v22494_v53  ;;  %v22521_v32 = vld [vmem:[%s29515_s1 + $0xea0] sm:$0xff]   ;;  %v22522_v35 = vld [vmem:[%s29515_s1 + $0xe68] sm:$0xff]  }
 0x1b9   :  { %v14108_v39 = vadd.f32 %v20000_v34, %v25140_v61  ;;  %v20022_v44 = vadd.f32 %v20021_v42, %v20020_v37  ;;  %v20023_v45 = vpop.f32.mrb[26].mxu1  ;;  %20323 = vmatpush3.bf16.msra.mxu1 %v22493_v52  ;;  %v298_v61 = vpack.c.bf16 %v92_v60, %v92_v60  ;;  %v22523_v37 = vld [vmem:[%s29515_s1 + $0xe28] sm:$0xff]   ;;  %v22527_v42 = vld [vmem:[%s29515_s1 + $0xe30] sm:$0xff]   ;;  %v301_v52 = vpack.c.bf16 %v95_v51, %v95_v51  ;;  %v22534_v53 = vld [vmem:[%s29515_s1 + $0xf40] sm:$0xff]  }
 0x1ba   :  { %v20024_v47 = vpop.f32.mrb[27].mxu1  ;;  %20324 = vmatprep.subr.bf16.mxu1 %v22496_v55  ;;  %v22525_v40 = vld [vmem:[%s29515_s1 + $0xea8] sm:$0xff]   ;;  %v22530_v45 = vld [vmem:[%s29515_s1 + $0xe78] sm:$0xff]   ;;  %v22537_v60 = vld [vmem:[%s29515_s1 + $0xf80] sm:$0xff]  }
 0x1bb   :  { %v25251_v49 = vadd.f32 %v20022_v44, %v14108_v39  ;;  %20303 = vmatpush3.bf16.msra.mxu0 %v22495_v54  ;;  %14665 = vmatprep.mubr.bf16.mxu0 %v298_v61  ;;  %v22524_v39 = vld [vmem:[%s29515_s1 + $0xee8] sm:$0xff]   ;;  %v22529_v44 = vld [vmem:[%s29515_s1 + $0xeb0] sm:$0xff]   ;;  %v22532_v47 = vld [vmem:[%s29515_s1 + $0xef8] sm:$0xff]  }
 0x1bc   :  { %20304 = vmatprep.subr.bf16.mxu0 %v22498_v57  ;;  %v98_v54 = vld [vmem:[%s29516_s0 + $0x1d8] sm:$0xff]  ;;  %v97_v57 = vld [vmem:[%s29516_s0 + $0x1d0] sm:$0xff]  ;;  %v22538_v61 = vld [vmem:[%s29515_s1 + $0xf48] sm:$0xff]  }
 0x1bd   :  { %20325 = vmatpush3.bf16.msra.mxu1 %v22497_v56  ;;  %v304_v55 = vpack.c.bf16 %v98_v54, %v98_v54  ;;  %v22535_v56 = vld [vmem:[%s29515_s1 + $0xf00] sm:$0xff]   ;;  %v22572_v51 = vld [vmem:[%s29515_s1 + $0x10c8] sm:$0xff]   ;;  %v22575_v54 = vld [vmem:[%s29515_s1 + $0x1010] sm:$0xff]  }
 0x1be   :  { %20326 = vmatprep.subr.bf16.mxu1 %v22500_v59  ;;  %v22536_v59 = vld [vmem:[%s29515_s1 + $0xfc0] sm:$0xff]  }
 0x1bf   :  { %20305 = vmatpush3.bf16.msra.mxu0 %v22499_v58  ;;  %v303_v58 = vpack.c.bf16 %v97_v57, %v97_v57  ;;  %v22578_v57 = vld [vmem:[%s29515_s1 + $0x1058] sm:$0xff]  }
 0x1c0   :  { %20334 = vmatprep.subr.bf16.mxu0 %v22502_v1  ;;  %v22542_v1 = vld [vmem:[%s29515_s1 + $0xf50] sm:$0xff]  }
 0x1c1   :  { %20327 = vmatpush3.bf16.msra.mxu1 %v22501_v62  ;;  %v22539_v62 = vld [vmem:[%s29515_s1 + $0xf08] sm:$0xff]  }
 0x1c2   :  { %14666 = vmatmul.mubr.bf16.vlgmr.msra.gmra.mrb[52].mxu0 %v297_v0  ;;  %20356 = vmatprep.subr.bf16.mxu1 %v22504_v7  ;;  %v22541_v0 = vld [vmem:[%s29515_s1 + $0xf88] sm:$0xff]   ;;  %v22547_v7 = vld [vmem:[%s29515_s1 + $0xf18] sm:$0xff]  }
 0x1c3   :  { %20335 = vmatpush3.bf16.msra.mxu0 %v22503_v4  ;;  %v22545_v4 = vld [vmem:[%s29515_s1 + $0xf90] sm:$0xff]  }
 0x1c4   :  { %14706 = vmatmul.mubr.bf16.vlgmr.msra.gmra.mrb[52].mxu1 %v299_v6  ;;  %20336 = vmatprep.subr.bf16.mxu0 %v22506_v9  ;;  %v22548_v9 = vld [vmem:[%s29515_s1 + $0xfd8] sm:$0xff]  }
 0x1c5   :  { %20357 = vmatpush3.bf16.msra.mxu1 %v22505_v8  ;;  %14785 = vmatprep.mubr.bf16.mxu1 %v304_v55  ;;  %v22576_v55 = vld [vmem:[%s29515_s1 + $0x10d0] sm:$0xff]  }
 0x1c6   :  { %20358 = vmatprep.subr.bf16.mxu1 %v22508_v11 }
 0x1c7   :  { %20337 = vmatpush3.bf16.msra.mxu0 %v22507_v10 }
 0x1c8   :  { %20338 = vmatprep.subr.bf16.mxu0 %v22510_v13 }
 0x1c9   :  { %20359 = vmatpush3.bf16.msra.mxu1 %v22509_v12  ;;  %v22549_v12 = vld [vmem:[%s29515_s1 + $0xf98] sm:$0xff]  }
 0x1ca   :  { %20360 = vmatprep.subr.bf16.mxu1 %v22512_v15 }
 0x1cb   :  { %20339 = vmatpush3.bf16.msra.mxu0 %v22511_v14  ;;  %v22550_v14 = vld [vmem:[%s29515_s1 + $0xf60] sm:$0xff]  }
 0x1cc   :  { %20340 = vmatprep.subr.bf16.mxu0 %v22514_v17  ;;  %v22551_v17 = vld [vmem:[%s29515_s1 + $0xf20] sm:$0xff]  }
 0x1cd   :  { %20361 = vmatpush3.bf16.msra.mxu1 %v22513_v16 }
 0x1ce   :  { %20362 = vmatprep.subr.bf16.mxu1 %v22516_v20 }
 0x1cf   :  { %20341 = vmatpush3.bf16.msra.mxu0 %v22515_v18 }
 0x1d0   :  { %20342 = vmatprep.subr.bf16.mxu0 %v22518_v25 }
 0x1d1   :  { %20363 = vmatpush3.bf16.msra.mxu1 %v22517_v22  ;;  %v22553_v22 = vld [vmem:[%s29515_s1 + $0xfa0] sm:$0xff]  }
 0x1d2   :  { %20364 = vmatprep.subr.bf16.mxu1 %v22520_v30  ;;  %v22559_v30 = vld [vmem:[%s29515_s1 + $0xf30] sm:$0xff]  }
 0x1d3   :  { %20343 = vmatpush3.bf16.msra.mxu0 %v22519_v27  ;;  %v22556_v27 = vld [vmem:[%s29515_s1 + $0xfe8] sm:$0xff]  }
 0x1d4   :  { %20344 = vmatprep.subr.bf16.mxu0 %v22522_v35  ;;  %v22564_v35 = vld [vmem:[%s29515_s1 + $0xff8] sm:$0xff]  }
 0x1d5   :  { %v20042_v19 = vpop.f32.mrb[28].mxu0  ;;  %20365 = vmatpush3.bf16.msra.mxu1 %v22521_v32  ;;  %v22561_v32 = vld [vmem:[%s29515_s1 + $0xfb0] sm:$0xff]  }
 0x1d6   :  { %v20043_v21 = vpop.f32.mrb[29].mxu0  ;;  %20366 = vmatprep.subr.bf16.mxu1 %v22524_v39  ;;  %v99_v39 = vld [vmem:[%s29516_s0 + $0x1e0] sm:$0xff] }
 0x1d7   :  { %v20044_v23 = vadd.f32 %v20043_v21, %v20042_v19  ;;  %v20045_v24 = vpop.f32.mrb[30].mxu0  ;;  %v20064_v26 = vpop.f32.mrb[28].mxu1  ;;  %20345 = vmatpush3.bf16.msra.mxu0 %v22523_v37  ;;  %v22552_v19 = vld [vmem:[%s29515_s1 + $0xfe0] sm:$0xff]  }
 0x1d8   :  { %v20046_v29 = vpop.f32.mrb[31].mxu0  ;;  %v20065_v31 = vpop.f32.mrb[29].mxu1  ;;  %20346 = vmatprep.subr.bf16.mxu0 %v22526_v41  ;;  %v22554_v24 = vld [vmem:[%s29515_s1 + $0xf68] sm:$0xff]   ;;  %v22566_v41 = vld [vmem:[%s29515_s1 + $0x1040] sm:$0xff]  }
 0x1d9   :  { %v14188_v28 = vadd.f32 %v20044_v23, %v25251_v49  ;;  %v20066_v33 = vadd.f32 %v20065_v31, %v20064_v26  ;;  %v20067_v34 = vpop.f32.mrb[30].mxu1  ;;  %20367 = vmatpush3.bf16.msra.mxu1 %v22525_v40  ;;  %v302_v49 = vpack.c.bf16 %v96_v48, %v96_v48  ;;  %v22555_v26 = vld [vmem:[%s29515_s1 + $0xf28] sm:$0xff]   ;;  %v22558_v29 = vld [vmem:[%s29515_s1 + $0xf70] sm:$0xff]   ;;  %v305_v40 = vpack.c.bf16 %v99_v39, %v99_v39  ;;  %v22569_v48 = vld [vmem:[%s29515_s1 + $0x1080] sm:$0xff]  }
 0x1da   :  { %v20068_v36 = vpop.f32.mrb[31].mxu1  ;;  %20368 = vmatprep.subr.bf16.mxu1 %v22528_v43  ;;  %v22560_v31 = vld [vmem:[%s29515_s1 + $0xff0] sm:$0xff]   ;;  %v22563_v34 = vld [vmem:[%s29515_s1 + $0xf38] sm:$0xff]   ;;  %v22604_v39 = vld [vmem:[%s29515_s1 + $0x11c8] sm:$0xff]  }
 0x1db   :  { %v25365_v38 = vadd.f32 %v20066_v33, %v14188_v28  ;;  %20347 = vmatpush3.bf16.msra.mxu0 %v22527_v42  ;;  %14745 = vmatprep.mubr.bf16.mxu0 %v302_v49  ;;  %v22557_v28 = vld [vmem:[%s29515_s1 + $0xfa8] sm:$0xff]   ;;  %v22562_v33 = vld [vmem:[%s29515_s1 + $0xf78] sm:$0xff]  }
 0x1dc   :  { %20348 = vmatprep.subr.bf16.mxu0 %v22530_v45  ;;  %v100_v36 = vld [vmem:[%s29516_s0 + $0x1e8] sm:$0xff]  ;;  %v102_v42 = vld [vmem:[%s29516_s0 + $0x1f8] sm:$0xff]  ;;  %v101_v45 = vld [vmem:[%s29516_s0 + $0x1f0] sm:$0xff] }
 0x1dd   :  { %20369 = vmatpush3.bf16.msra.mxu1 %v22529_v44  ;;  %v306_v37 = vpack.c.bf16 %v100_v36, %v100_v36  ;;  %v308_v43 = vpack.c.bf16 %v102_v42, %v102_v42  ;;  %v22567_v44 = vld [vmem:[%s29515_s1 + $0x1000] sm:$0xff]   ;;  %v22570_v49 = vld [vmem:[%s29515_s1 + $0x1048] sm:$0xff]   ;;  %v22607_v42 = vld [vmem:[%s29515_s1 + $0x1110] sm:$0xff]  }
 0x1de   :  { %20370 = vmatprep.subr.bf16.mxu1 %v22532_v47  ;;  %v22568_v47 = vld [vmem:[%s29515_s1 + $0x10c0] sm:$0xff]  }
 0x1df   :  { %20349 = vmatpush3.bf16.msra.mxu0 %v22531_v46  ;;  %v307_v46 = vpack.c.bf16 %v101_v45, %v101_v45  ;;  %v22601_v36 = vld [vmem:[%s29515_s1 + $0x1180] sm:$0xff]   ;;  %v22610_v45 = vld [vmem:[%s29515_s1 + $0x1158] sm:$0xff]  }
 0x1e0   :  { %20378 = vmatprep.subr.bf16.mxu0 %v22534_v53  ;;  %v22574_v53 = vld [vmem:[%s29515_s1 + $0x1050] sm:$0xff]  }
 0x1e1   :  { %20371 = vmatpush3.bf16.msra.mxu1 %v22533_v50  ;;  %v22571_v50 = vld [vmem:[%s29515_s1 + $0x1008] sm:$0xff]  }
 0x1e2   :  { %14746 = vmatmul.mubr.bf16.vlgmr.msra.gmra.mrb[56].mxu0 %v301_v52  ;;  %20400 = vmatprep.subr.bf16.mxu1 %v22536_v59  ;;  %v22573_v52 = vld [vmem:[%s29515_s1 + $0x1088] sm:$0xff]   ;;  %v22579_v59 = vld [vmem:[%s29515_s1 + $0x1018] sm:$0xff]  }
 0x1e3   :  { %20379 = vmatpush3.bf16.msra.mxu0 %v22535_v56  ;;  %14825 = vmatprep.mubr.bf16.mxu0 %v306_v37  ;;  %v22577_v56 = vld [vmem:[%s29515_s1 + $0x1090] sm:$0xff]   ;;  %v22602_v37 = vld [vmem:[%s29515_s1 + $0x1148] sm:$0xff]  }
 0x1e4   :  { %14786 = vmatmul.mubr.bf16.vlgmr.msra.gmra.mrb[56].mxu1 %v303_v58  ;;  %20380 = vmatprep.subr.bf16.mxu0 %v22538_v61  ;;  %v22580_v61 = vld [vmem:[%s29515_s1 + $0x10d8] sm:$0xff]  }
 0x1e5   :  { %20401 = vmatpush3.bf16.msra.mxu1 %v22537_v60  ;;  %14865 = vmatprep.mubr.bf16.mxu1 %v308_v43  ;;  %v22608_v43 = vld [vmem:[%s29515_s1 + $0x11d0] sm:$0xff]  }
 0x1e6   :  { %20402 = vmatprep.subr.bf16.mxu1 %v22540_v63 }
 0x1e7   :  { %20381 = vmatpush3.bf16.msra.mxu0 %v22539_v62 }
 0x1e8   :  { %20382 = vmatprep.subr.bf16.mxu0 %v22542_v1 }
 0x1e9   :  { %20403 = vmatpush3.bf16.msra.mxu1 %v22541_v0  ;;  %v22581_v0 = vld [vmem:[%s29515_s1 + $0x1098] sm:$0xff]  }
 0x1ea   :  { %20404 = vmatprep.subr.bf16.mxu1 %v22544_v3 }
 0x1eb   :  { %20383 = vmatpush3.bf16.msra.mxu0 %v22543_v2  ;;  %v22582_v2 = vld [vmem:[%s29515_s1 + $0x1060] sm:$0xff]  }
 0x1ec   :  { %20384 = vmatprep.subr.bf16.mxu0 %v22546_v5  ;;  %v22583_v5 = vld [vmem:[%s29515_s1 + $0x1020] sm:$0xff]  }
 0x1ed   :  { %20405 = vmatpush3.bf16.msra.mxu1 %v22545_v4 }
 0x1ee   :  { %20406 = vmatprep.subr.bf16.mxu1 %v22548_v9 }
 0x1ef   :  { %20385 = vmatpush3.bf16.msra.mxu0 %v22547_v7  ;;  %v22584_v7 = vld [vmem:[%s29515_s1 + $0x10e0] sm:$0xff]  }
 0x1f0   :  { %20386 = vmatprep.subr.bf16.mxu0 %v22550_v14  ;;  %v22587_v14 = vld [vmem:[%s29515_s1 + $0x1028] sm:$0xff]  }
 0x1f1   :  { %20407 = vmatpush3.bf16.msra.mxu1 %v22549_v12  ;;  %v22586_v12 = vld [vmem:[%s29515_s1 + $0x1068] sm:$0xff]  }
 0x1f2   :  { %20408 = vmatprep.subr.bf16.mxu1 %v22552_v19  ;;  %v22592_v19 = vld [vmem:[%s29515_s1 + $0x10f0] sm:$0xff]  }
 0x1f3   :  { %20387 = vmatpush3.bf16.msra.mxu0 %v22551_v17  ;;  %v22590_v17 = vld [vmem:[%s29515_s1 + $0x1070] sm:$0xff]  }
 0x1f4   :  { %20388 = vmatprep.subr.bf16.mxu0 %v22554_v24  ;;  %v104_v24 = vld [vmem:[%s29516_s0 + $0x208] sm:$0xff] }
 0x1f5   :  { %v20086_v6 = vpop.f32.mrb[32].mxu0  ;;  %20409 = vmatpush3.bf16.msra.mxu1 %v22553_v22  ;;  %v22595_v22 = vld [vmem:[%s29515_s1 + $0x1038] sm:$0xff]  }
 0x1f6   :  { %v20087_v8 = vpop.f32.mrb[33].mxu0  ;;  %20410 = vmatprep.subr.bf16.mxu1 %v22556_v27  ;;  %v103_v27 = vld [vmem:[%s29516_s0 + $0x200] sm:$0xff] }
 0x1f7   :  { %v20088_v10 = vadd.f32 %v20087_v8, %v20086_v6  ;;  %v20089_v11 = vpop.f32.mrb[34].mxu0  ;;  %v20108_v13 = vpop.f32.mrb[32].mxu1  ;;  %20389 = vmatpush3.bf16.msra.mxu0 %v22555_v26  ;;  %v22597_v26 = vld [vmem:[%s29515_s1 + $0x10b8] sm:$0xff]  }
 0x1f8   :  { %v20090_v16 = vpop.f32.mrb[35].mxu0  ;;  %v20109_v18 = vpop.f32.mrb[33].mxu1  ;;  %20390 = vmatprep.subr.bf16.mxu0 %v22558_v29  ;;  %v22598_v29 = vld [vmem:[%s29515_s1 + $0x1140] sm:$0xff]  }
 0x1f9   :  { %v14268_v15 = vadd.f32 %v20088_v10, %v25365_v38  ;;  %v20110_v20 = vadd.f32 %v20109_v18, %v20108_v13  ;;  %v20111_v21 = vpop.f32.mrb[34].mxu1  ;;  %20411 = vmatpush3.bf16.msra.mxu1 %v22557_v28  ;;  %v22565_v38 = vld [vmem:[%s29515_s1 + $0xfb8] sm:$0xff]   ;;  %v22585_v10 = vld [vmem:[%s29515_s1 + $0x10a0] sm:$0xff]   ;;  %v22589_v16 = vld [vmem:[%s29515_s1 + $0x10a8] sm:$0xff]   ;;  %v309_v28 = vpack.c.bf16 %v103_v27, %v103_v27 }
 0x1fa   :  { %v20112_v23 = vpop.f32.mrb[35].mxu1  ;;  %20412 = vmatprep.subr.bf16.mxu1 %v22560_v31  ;;  %v22591_v18 = vld [vmem:[%s29515_s1 + $0x1030] sm:$0xff]   ;;  %v22594_v21 = vld [vmem:[%s29515_s1 + $0x1078] sm:$0xff]   ;;  %v22636_v27 = vld [vmem:[%s29515_s1 + $0x12c8] sm:$0xff]  }
 0x1fb   :  { %v25473_v25 = vadd.f32 %v20110_v20, %v14268_v15  ;;  %20391 = vmatpush3.bf16.msra.mxu0 %v22559_v30  ;;  %v22588_v15 = vld [vmem:[%s29515_s1 + $0x10e8] sm:$0xff]   ;;  %v22593_v20 = vld [vmem:[%s29515_s1 + $0x10b0] sm:$0xff]   ;;  %v22596_v23 = vld [vmem:[%s29515_s1 + $0x10f8] sm:$0xff]  }
 0x1fc   :  { %20392 = vmatprep.subr.bf16.mxu0 %v22562_v33  ;;  %v106_v30 = vld [vmem:[%s29516_s0 + $0x218] sm:$0xff]  ;;  %v105_v33 = vld [vmem:[%s29516_s0 + $0x210] sm:$0xff] }
 0x1fd   :  { %20413 = vmatpush3.bf16.msra.mxu1 %v22561_v32  ;;  %v312_v31 = vpack.c.bf16 %v106_v30, %v106_v30  ;;  %v22599_v32 = vld [vmem:[%s29515_s1 + $0x1100] sm:$0xff]   ;;  %v22639_v30 = vld [vmem:[%s29515_s1 + $0x1210] sm:$0xff]  }
 0x1fe   :  { %20414 = vmatprep.subr.bf16.mxu1 %v22564_v35  ;;  %v22600_v35 = vld [vmem:[%s29515_s1 + $0x11c0] sm:$0xff]  }
 0x1ff   :  { %20393 = vmatpush3.bf16.msra.mxu0 %v22563_v34  ;;  %v311_v34 = vpack.c.bf16 %v105_v33, %v105_v33  ;;  %v22642_v33 = vld [vmem:[%s29515_s1 + $0x1258] sm:$0xff]  }
 0x200   :  { %20422 = vmatprep.subr.bf16.mxu0 %v22566_v41  ;;  %v22606_v41 = vld [vmem:[%s29515_s1 + $0x1150] sm:$0xff]  }
 0x201   :  { %20415 = vmatpush3.bf16.msra.mxu1 %v22565_v38  ;;  %v22603_v38 = vld [vmem:[%s29515_s1 + $0x1108] sm:$0xff]  }
 0x202   :  { %14826 = vmatmul.mubr.bf16.vlgmr.msra.gmra.mrb[60].mxu0 %v305_v40  ;;  %20444 = vmatprep.subr.bf16.mxu1 %v22568_v47  ;;  %v22605_v40 = vld [vmem:[%s29515_s1 + $0x1188] sm:$0xff]  }
 0x203   :  { %20423 = vmatpush3.bf16.msra.mxu0 %v22567_v44  ;;  %v22609_v44 = vld [vmem:[%s29515_s1 + $0x1190] sm:$0xff]  }
 0x204   :  { %14866 = vmatmul.mubr.bf16.vlgmr.msra.gmra.mrb[60].mxu1 %v307_v46  ;;  %20424 = vmatprep.subr.bf16.mxu0 %v22570_v49  ;;  %v22611_v46 = vld [vmem:[%s29515_s1 + $0x1118] sm:$0xff]  }
 0x205   :  { %20445 = vmatpush3.bf16.msra.mxu1 %v22569_v48  ;;  %14945 = vmatprep.mubr.bf16.mxu1 %v312_v31  ;;  %v22612_v48 = vld [vmem:[%s29515_s1 + $0x11d8] sm:$0xff]   ;;  %v22640_v31 = vld [vmem:[%s29515_s1 + $0x12d0] sm:$0xff]  }
 0x206   :  { %20446 = vmatprep.subr.bf16.mxu1 %v22572_v51 }
 0x207   :  { %20425 = vmatpush3.bf16.msra.mxu0 %v22571_v50  ;;  %v22613_v50 = vld [vmem:[%s29515_s1 + $0x1198] sm:$0xff]  }
 0x208   :  { %20426 = vmatprep.subr.bf16.mxu0 %v22574_v53  ;;  %v22614_v53 = vld [vmem:[%s29515_s1 + $0x1160] sm:$0xff]  }
 0x209   :  { %20447 = vmatpush3.bf16.msra.mxu1 %v22573_v52 }
 0x20a   :  { %20448 = vmatprep.subr.bf16.mxu1 %v22576_v55  ;;  %v22615_v55 = vld [vmem:[%s29515_s1 + $0x1120] sm:$0xff]  }
 0x20b   :  { %20427 = vmatpush3.bf16.msra.mxu0 %v22575_v54 }
 0x20c   :  { %20428 = vmatprep.subr.bf16.mxu0 %v22578_v57 }
 0x20d   :  { %20449 = vmatpush3.bf16.msra.mxu1 %v22577_v56 }
 0x20e   :  { %20450 = vmatprep.subr.bf16.mxu1 %v22580_v61 }
 0x20f   :  { %20429 = vmatpush3.bf16.msra.mxu0 %v22579_v59 }
 0x210   :  { %20430 = vmatprep.subr.bf16.mxu0 %v22582_v2 }
 0x211   :  { %20451 = vmatpush3.bf16.msra.mxu1 %v22581_v0 }
 0x212   :  { %20452 = vmatprep.subr.bf16.mxu1 %v22584_v7  ;;  %v22624_v7 = vld [vmem:[%s29515_s1 + $0x11f0] sm:$0xff]  }
 0x213   :  { %20431 = vmatpush3.bf16.msra.mxu0 %v22583_v5  ;;  %v22622_v5 = vld [vmem:[%s29515_s1 + $0x1170] sm:$0xff]  }
 0x214   :  { %20432 = vmatprep.subr.bf16.mxu0 %v22586_v12  ;;  %v108_v12 = vld [vmem:[%s29516_s0 + $0x228] sm:$0xff] }
 0x215   :  { %v20130_v58 = vpop.f32.mrb[36].mxu0  ;;  %20453 = vmatpush3.bf16.msra.mxu1 %v22585_v10  ;;  %v22627_v10 = vld [vmem:[%s29515_s1 + $0x1138] sm:$0xff]  }
 0x216   :  { %v20131_v60 = vpop.f32.mrb[37].mxu0  ;;  %20454 = vmatprep.subr.bf16.mxu1 %v22588_v15  ;;  %v107_v15 = vld [vmem:[%s29516_s0 + $0x220] sm:$0xff] }
 0x217   :  { %v20132_v62 = vadd.f32 %v20131_v60, %v20130_v58  ;;  %v20133_v63 = vpop.f32.mrb[38].mxu0  ;;  %v20152_v1 = vpop.f32.mrb[36].mxu1  ;;  %20433 = vmatpush3.bf16.msra.mxu0 %v22587_v14  ;;  %v22616_v58 = vld [vmem:[%s29515_s1 + $0x11e0] sm:$0xff]   ;;  %v22629_v14 = vld [vmem:[%s29515_s1 + $0x11b8] sm:$0xff]  }
 0x218   :  { %v20134_v4 = vpop.f32.mrb[39].mxu0  ;;  %v20153_v6 = vpop.f32.mrb[37].mxu1  ;;  %20434 = vmatprep.subr.bf16.mxu0 %v22590_v17  ;;  %v22617_v60 = vld [vmem:[%s29515_s1 + $0x11a0] sm:$0xff]   ;;  %v22618_v63 = vld [vmem:[%s29515_s1 + $0x1168] sm:$0xff]  }
 0x219   :  { %v14348_v3 = vadd.f32 %v20132_v62, %v25473_v25  ;;  %v20154_v8 = vadd.f32 %v20153_v6, %v20152_v1  ;;  %v20155_v9 = vpop.f32.mrb[38].mxu1  ;;  %20455 = vmatpush3.bf16.msra.mxu1 %v22589_v16  ;;  %v310_v25 = vpack.c.bf16 %v104_v24, %v104_v24  ;;  %v22619_v1 = vld [vmem:[%s29515_s1 + $0x1128] sm:$0xff]   ;;  %v22623_v6 = vld [vmem:[%s29515_s1 + $0x1130] sm:$0xff]   ;;  %v313_v16 = vpack.c.bf16 %v107_v15, %v107_v15  ;;  %v22630_v17 = vld [vmem:[%s29515_s1 + $0x1240] sm:$0xff]  }
 0x21a   :  { %v20156_v11 = vpop.f32.mrb[39].mxu1  ;;  %20456 = vmatprep.subr.bf16.mxu1 %v22592_v19  ;;  %v22621_v4 = vld [vmem:[%s29515_s1 + $0x11a8] sm:$0xff]   ;;  %v22626_v9 = vld [vmem:[%s29515_s1 + $0x1178] sm:$0xff]   ;;  %v22633_v24 = vld [vmem:[%s29515_s1 + $0x1280] sm:$0xff]  }
 0x21b   :  { %v25584_v13 = vadd.f32 %v20154_v8, %v14348_v3  ;;  %20435 = vmatpush3.bf16.msra.mxu0 %v22591_v18  ;;  %14905 = vmatprep.mubr.bf16.mxu0 %v310_v25  ;;  %v22620_v3 = vld [vmem:[%s29515_s1 + $0x11e8] sm:$0xff]   ;;  %v22625_v8 = vld [vmem:[%s29515_s1 + $0x11b0] sm:$0xff]   ;;  %v22628_v11 = vld [vmem:[%s29515_s1 + $0x11f8] sm:$0xff]  }
 0x21c   :  { %20436 = vmatprep.subr.bf16.mxu0 %v22594_v21  ;;  %v110_v18 = vld [vmem:[%s29516_s0 + $0x238] sm:$0xff]  ;;  %v109_v21 = vld [vmem:[%s29516_s0 + $0x230] sm:$0xff]  ;;  %v22634_v25 = vld [vmem:[%s29515_s1 + $0x1248] sm:$0xff]  }
 0x21d   :  { %20457 = vmatpush3.bf16.msra.mxu1 %v22593_v20  ;;  %v316_v19 = vpack.c.bf16 %v110_v18, %v110_v18  ;;  %v22631_v20 = vld [vmem:[%s29515_s1 + $0x1200] sm:$0xff]   ;;  %v22668_v15 = vld [vmem:[%s29515_s1 + $0x13c8] sm:$0xff]   ;;  %v22671_v18 = vld [vmem:[%s29515_s1 + $0x1310] sm:$0xff]  }
 0x21e   :  { %20458 = vmatprep.subr.bf16.mxu1 %v22596_v23  ;;  %v22632_v23 = vld [vmem:[%s29515_s1 + $0x12c0] sm:$0xff]  }
 0x21f   :  { %20437 = vmatpush3.bf16.msra.mxu0 %v22595_v22  ;;  %v315_v22 = vpack.c.bf16 %v109_v21, %v109_v21  ;;  %v22674_v21 = vld [vmem:[%s29515_s1 + $0x1358] sm:$0xff]  }
 0x220   :  { %20466 = vmatprep.subr.bf16.mxu0 %v22598_v29  ;;  %v22638_v29 = vld [vmem:[%s29515_s1 + $0x1250] sm:$0xff]  }
 0x221   :  { %20459 = vmatpush3.bf16.msra.mxu1 %v22597_v26  ;;  %v22635_v26 = vld [vmem:[%s29515_s1 + $0x1208] sm:$0xff]  }
 0x222   :  { %14906 = vmatmul.mubr.bf16.vlgmr.msra.gmra.mrb[64].mxu0 %v309_v28  ;;  %20488 = vmatprep.subr.bf16.mxu1 %v22600_v35  ;;  %v22637_v28 = vld [vmem:[%s29515_s1 + $0x1288] sm:$0xff]   ;;  %v22643_v35 = vld [vmem:[%s29515_s1 + $0x1218] sm:$0xff]  }
 0x223   :  { %20467 = vmatpush3.bf16.msra.mxu0 %v22599_v32  ;;  %v22641_v32 = vld [vmem:[%s29515_s1 + $0x1290] sm:$0xff]  }
 0x224   :  { %14946 = vmatmul.mubr.bf16.vlgmr.msra.gmra.mrb[64].mxu1 %v311_v34  ;;  %20468 = vmatprep.subr.bf16.mxu0 %v22602_v37  ;;  %v22644_v37 = vld [vmem:[%s29515_s1 + $0x12d8] sm:$0xff]  }
 0x225   :  { %20489 = vmatpush3.bf16.msra.mxu1 %v22601_v36  ;;  %15025 = vmatprep.mubr.bf16.mxu1 %v316_v19  ;;  %v22672_v19 = vld [vmem:[%s29515_s1 + $0x13d0] sm:$0xff]  }
 0x226   :  { %20490 = vmatprep.subr.bf16.mxu1 %v22604_v39 }
 0x227   :  { %20469 = vmatpush3.bf16.msra.mxu0 %v22603_v38 }
 0x228   :  { %20470 = vmatprep.subr.bf16.mxu0 %v22606_v41 }
 0x229   :  { %20491 = vmatpush3.bf16.msra.mxu1 %v22605_v40  ;;  %v22645_v40 = vld [vmem:[%s29515_s1 + $0x1298] sm:$0xff]  }
 0x22a   :  { %20492 = vmatprep.subr.bf16.mxu1 %v22608_v43 }
 0x22b   :  { %20471 = vmatpush3.bf16.msra.mxu0 %v22607_v42  ;;  %v22646_v42 = vld [vmem:[%s29515_s1 + $0x1260] sm:$0xff]  }
 0x22c   :  { %20472 = vmatprep.subr.bf16.mxu0 %v22610_v45  ;;  %v22647_v45 = vld [vmem:[%s29515_s1 + $0x1220] sm:$0xff]  }
 0x22d   :  { %20493 = vmatpush3.bf16.msra.mxu1 %v22609_v44 }
 0x22e   :  { %20494 = vmatprep.subr.bf16.mxu1 %v22612_v48 }
 0x22f   :  { %20473 = vmatpush3.bf16.msra.mxu0 %v22611_v46 }
 0x230   :  { %20474 = vmatprep.subr.bf16.mxu0 %v22614_v53 }
 0x231   :  { %20495 = vmatpush3.bf16.msra.mxu1 %v22613_v50  ;;  %v22649_v50 = vld [vmem:[%s29515_s1 + $0x12a0] sm:$0xff]  }
 0x232   :  { %20496 = vmatprep.subr.bf16.mxu1 %v22616_v58  ;;  %v22655_v58 = vld [vmem:[%s29515_s1 + $0x1230] sm:$0xff]  }
 0x233   :  { %20475 = vmatpush3.bf16.msra.mxu0 %v22615_v55  ;;  %v22652_v55 = vld [vmem:[%s29515_s1 + $0x12e8] sm:$0xff]  }
 0x234   :  { %20476 = vmatprep.subr.bf16.mxu0 %v22618_v63  ;;  %v22660_v63 = vld [vmem:[%s29515_s1 + $0x12f8] sm:$0xff]  }
 0x235   :  { %v20174_v47 = vpop.f32.mrb[40].mxu0  ;;  %20497 = vmatpush3.bf16.msra.mxu1 %v22617_v60  ;;  %v22657_v60 = vld [vmem:[%s29515_s1 + $0x12b0] sm:$0xff]  }
 0x236   :  { %v20175_v49 = vpop.f32.mrb[41].mxu0  ;;  %20498 = vmatprep.subr.bf16.mxu1 %v22620_v3  ;;  %v111_v3 = vld [vmem:[%s29516_s0 + $0x240] sm:$0xff] }
 0x237   :  { %v20176_v51 = vadd.f32 %v20175_v49, %v20174_v47  ;;  %v20177_v52 = vpop.f32.mrb[42].mxu0  ;;  %v20196_v54 = vpop.f32.mrb[40].mxu1  ;;  %20477 = vmatpush3.bf16.msra.mxu0 %v22619_v1  ;;  %v22648_v47 = vld [vmem:[%s29515_s1 + $0x12e0] sm:$0xff]  }
 0x238   :  { %v20178_v57 = vpop.f32.mrb[43].mxu0  ;;  %v20197_v59 = vpop.f32.mrb[41].mxu1  ;;  %20478 = vmatprep.subr.bf16.mxu0 %v22622_v5  ;;  %v22650_v52 = vld [vmem:[%s29515_s1 + $0x1268] sm:$0xff]   ;;  %v22662_v5 = vld [vmem:[%s29515_s1 + $0x1340] sm:$0xff]  }
 0x239   :  { %v14428_v56 = vadd.f32 %v20176_v51, %v25584_v13  ;;  %v20198_v61 = vadd.f32 %v20197_v59, %v20196_v54  ;;  %v20199_v62 = vpop.f32.mrb[42].mxu1  ;;  %20499 = vmatpush3.bf16.msra.mxu1 %v22621_v4  ;;  %v314_v13 = vpack.c.bf16 %v108_v12, %v108_v12  ;;  %v22651_v54 = vld [vmem:[%s29515_s1 + $0x1228] sm:$0xff]   ;;  %v22654_v57 = vld [vmem:[%s29515_s1 + $0x1270] sm:$0xff]   ;;  %v317_v4 = vpack.c.bf16 %v111_v3, %v111_v3  ;;  %v22665_v12 = vld [vmem:[%s29515_s1 + $0x1380] sm:$0xff]  }
 0x23a   :  { %v20200_v0 = vpop.f32.mrb[43].mxu1  ;;  %20500 = vmatprep.subr.bf16.mxu1 %v22624_v7  ;;  %v22656_v59 = vld [vmem:[%s29515_s1 + $0x12f0] sm:$0xff]   ;;  %v22659_v62 = vld [vmem:[%s29515_s1 + $0x1238] sm:$0xff]   ;;  %v22700_v3 = vld [vmem:[%s29515_s1 + $0x14c8] sm:$0xff]  }
 0x23b   :  { %v25698_v2 = vadd.f32 %v20198_v61, %v14428_v56  ;;  %20479 = vmatpush3.bf16.msra.mxu0 %v22623_v6  ;;  %14985 = vmatprep.mubr.bf16.mxu0 %v314_v13  ;;  %v22653_v56 = vld [vmem:[%s29515_s1 + $0x12a8] sm:$0xff]   ;;  %v22658_v61 = vld [vmem:[%s29515_s1 + $0x1278] sm:$0xff]  }
 0x23c   :  { %20480 = vmatprep.subr.bf16.mxu0 %v22626_v9  ;;  %v112_v0 = vld [vmem:[%s29516_s0 + $0x248] sm:$0xff]  ;;  %v114_v6 = vld [vmem:[%s29516_s0 + $0x258] sm:$0xff]  ;;  %v113_v9 = vld [vmem:[%s29516_s0 + $0x250] sm:$0xff] }
 0x23d   :  { %20501 = vmatpush3.bf16.msra.mxu1 %v22625_v8  ;;  %v318_v1 = vpack.c.bf16 %v112_v0, %v112_v0  ;;  %v320_v7 = vpack.c.bf16 %v114_v6, %v114_v6  ;;  %v22663_v8 = vld [vmem:[%s29515_s1 + $0x1300] sm:$0xff]   ;;  %v22666_v13 = vld [vmem:[%s29515_s1 + $0x1348] sm:$0xff]   ;;  %v22703_v6 = vld [vmem:[%s29515_s1 + $0x1410] sm:$0xff]  }
 0x23e   :  { %20502 = vmatprep.subr.bf16.mxu1 %v22628_v11  ;;  %v22664_v11 = vld [vmem:[%s29515_s1 + $0x13c0] sm:$0xff]  }
 0x23f   :  { %20481 = vmatpush3.bf16.msra.mxu0 %v22627_v10  ;;  %v319_v10 = vpack.c.bf16 %v113_v9, %v113_v9  ;;  %v22697_v0 = vld [vmem:[%s29515_s1 + $0x1480] sm:$0xff]   ;;  %v22706_v9 = vld [vmem:[%s29515_s1 + $0x1458] sm:$0xff]  }
 0x240   :  { %20510 = vmatprep.subr.bf16.mxu0 %v22630_v17  ;;  %v22670_v17 = vld [vmem:[%s29515_s1 + $0x1350] sm:$0xff]  }
 0x241   :  { %20503 = vmatpush3.bf16.msra.mxu1 %v22629_v14  ;;  %v22667_v14 = vld [vmem:[%s29515_s1 + $0x1308] sm:$0xff]  }
 0x242   :  { %14986 = vmatmul.mubr.bf16.vlgmr.msra.gmra.mrb[68].mxu0 %v313_v16  ;;  %20532 = vmatprep.subr.bf16.mxu1 %v22632_v23  ;;  %v22669_v16 = vld [vmem:[%s29515_s1 + $0x1388] sm:$0xff]   ;;  %v22675_v23 = vld [vmem:[%s29515_s1 + $0x1318] sm:$0xff]  }
 0x243   :  { %20511 = vmatpush3.bf16.msra.mxu0 %v22631_v20  ;;  %15065 = vmatprep.mubr.bf16.mxu0 %v318_v1  ;;  %v22673_v20 = vld [vmem:[%s29515_s1 + $0x1390] sm:$0xff]   ;;  %v22698_v1 = vld [vmem:[%s29515_s1 + $0x1448] sm:$0xff]  }
 0x244   :  { %15026 = vmatmul.mubr.bf16.vlgmr.msra.gmra.mrb[68].mxu1 %v315_v22  ;;  %20512 = vmatprep.subr.bf16.mxu0 %v22634_v25  ;;  %v22676_v25 = vld [vmem:[%s29515_s1 + $0x13d8] sm:$0xff]  }
 0x245   :  { %20533 = vmatpush3.bf16.msra.mxu1 %v22633_v24  ;;  %15105 = vmatprep.mubr.bf16.mxu1 %v320_v7  ;;  %v22704_v7 = vld [vmem:[%s29515_s1 + $0x14d0] sm:$0xff]  }
 0x246   :  { %20534 = vmatprep.subr.bf16.mxu1 %v22636_v27 }
 0x247   :  { %20513 = vmatpush3.bf16.msra.mxu0 %v22635_v26 }
 0x248   :  { %20514 = vmatprep.subr.bf16.mxu0 %v22638_v29 }
 0x249   :  { %20535 = vmatpush3.bf16.msra.mxu1 %v22637_v28  ;;  %v22677_v28 = vld [vmem:[%s29515_s1 + $0x1398] sm:$0xff]  }
 0x24a   :  { %20536 = vmatprep.subr.bf16.mxu1 %v22640_v31 }
 0x24b   :  { %20515 = vmatpush3.bf16.msra.mxu0 %v22639_v30  ;;  %v22678_v30 = vld [vmem:[%s29515_s1 + $0x1360] sm:$0xff]  }
 0x24c   :  { %20516 = vmatprep.subr.bf16.mxu0 %v22642_v33  ;;  %v22679_v33 = vld [vmem:[%s29515_s1 + $0x1320] sm:$0xff]  }
 0x24d   :  { %20537 = vmatpush3.bf16.msra.mxu1 %v22641_v32 }
 0x24e   :  { %20538 = vmatprep.subr.bf16.mxu1 %v22644_v37 }
 0x24f   :  { %20517 = vmatpush3.bf16.msra.mxu0 %v22643_v35  ;;  %v22680_v35 = vld [vmem:[%s29515_s1 + $0x13e0] sm:$0xff]  }
 0x250   :  { %20518 = vmatprep.subr.bf16.mxu0 %v22646_v42  ;;  %v22683_v42 = vld [vmem:[%s29515_s1 + $0x1328] sm:$0xff]  }
 0x251   :  { %20539 = vmatpush3.bf16.msra.mxu1 %v22645_v40  ;;  %v22682_v40 = vld [vmem:[%s29515_s1 + $0x1368] sm:$0xff]  }
 0x252   :  { %20540 = vmatprep.subr.bf16.mxu1 %v22648_v47  ;;  %v22688_v47 = vld [vmem:[%s29515_s1 + $0x13f0] sm:$0xff]  }
 0x253   :  { %20519 = vmatpush3.bf16.msra.mxu0 %v22647_v45  ;;  %v22686_v45 = vld [vmem:[%s29515_s1 + $0x1370] sm:$0xff]  }
 0x254   :  { %20520 = vmatprep.subr.bf16.mxu0 %v22650_v52  ;;  %v116_v52 = vld [vmem:[%s29516_s0 + $0x268] sm:$0xff] }
 0x255   :  { %v20218_v34 = vpop.f32.mrb[44].mxu0  ;;  %20541 = vmatpush3.bf16.msra.mxu1 %v22649_v50  ;;  %v22691_v50 = vld [vmem:[%s29515_s1 + $0x1338] sm:$0xff]  }
 0x256   :  { %v20219_v36 = vpop.f32.mrb[45].mxu0  ;;  %20542 = vmatprep.subr.bf16.mxu1 %v22652_v55  ;;  %v115_v55 = vld [vmem:[%s29516_s0 + $0x260] sm:$0xff] }
 0x257   :  { %v20220_v38 = vadd.f32 %v20219_v36, %v20218_v34  ;;  %v20221_v39 = vpop.f32.mrb[46].mxu0  ;;  %v20240_v41 = vpop.f32.mrb[44].mxu1  ;;  %20521 = vmatpush3.bf16.msra.mxu0 %v22651_v54  ;;  %v22693_v54 = vld [vmem:[%s29515_s1 + $0x13b8] sm:$0xff]  }
 0x258   :  { %v20222_v44 = vpop.f32.mrb[47].mxu0  ;;  %v20241_v46 = vpop.f32.mrb[45].mxu1  ;;  %20522 = vmatprep.subr.bf16.mxu0 %v22654_v57  ;;  %v22694_v57 = vld [vmem:[%s29515_s1 + $0x1440] sm:$0xff]  }
 0x259   :  { %v14508_v43 = vadd.f32 %v20220_v38, %v25698_v2  ;;  %v20242_v48 = vadd.f32 %v20241_v46, %v20240_v41  ;;  %v20243_v49 = vpop.f32.mrb[46].mxu1  ;;  %20543 = vmatpush3.bf16.msra.mxu1 %v22653_v56  ;;  %v22661_v2 = vld [vmem:[%s29515_s1 + $0x12b8] sm:$0xff]   ;;  %v22681_v38 = vld [vmem:[%s29515_s1 + $0x13a0] sm:$0xff]   ;;  %v22685_v44 = vld [vmem:[%s29515_s1 + $0x13a8] sm:$0xff]   ;;  %v321_v56 = vpack.c.bf16 %v115_v55, %v115_v55 }
 0x25a   :  { %v20244_v51 = vpop.f32.mrb[47].mxu1  ;;  %20544 = vmatprep.subr.bf16.mxu1 %v22656_v59  ;;  %v22687_v46 = vld [vmem:[%s29515_s1 + $0x1330] sm:$0xff]   ;;  %v22690_v49 = vld [vmem:[%s29515_s1 + $0x1378] sm:$0xff]   ;;  %v22732_v55 = vld [vmem:[%s29515_s1 + $0x15c8] sm:$0xff]  }
 0x25b   :  { %v25806_v53 = vadd.f32 %v20242_v48, %v14508_v43  ;;  %20523 = vmatpush3.bf16.msra.mxu0 %v22655_v58  ;;  %v22684_v43 = vld [vmem:[%s29515_s1 + $0x13e8] sm:$0xff]   ;;  %v22689_v48 = vld [vmem:[%s29515_s1 + $0x13b0] sm:$0xff]   ;;  %v22692_v51 = vld [vmem:[%s29515_s1 + $0x13f8] sm:$0xff]  }
 0x25c   :  { %20524 = vmatprep.subr.bf16.mxu0 %v22658_v61  ;;  %v118_v58 = vld [vmem:[%s29516_s0 + $0x278] sm:$0xff]  ;;  %v117_v61 = vld [vmem:[%s29516_s0 + $0x270] sm:$0xff] }
 0x25d   :  { %20545 = vmatpush3.bf16.msra.mxu1 %v22657_v60  ;;  %v324_v59 = vpack.c.bf16 %v118_v58, %v118_v58  ;;  %v22695_v60 = vld [vmem:[%s29515_s1 + $0x1400] sm:$0xff]   ;;  %v22735_v58 = vld [vmem:[%s29515_s1 + $0x1510] sm:$0xff]  }
 0x25e   :  { %20546 = vmatprep.subr.bf16.mxu1 %v22660_v63  ;;  %v22696_v63 = vld [vmem:[%s29515_s1 + $0x14c0] sm:$0xff]  }
 0x25f   :  { %20525 = vmatpush3.bf16.msra.mxu0 %v22659_v62  ;;  %v323_v62 = vpack.c.bf16 %v117_v61, %v117_v61  ;;  %v22738_v61 = vld [vmem:[%s29515_s1 + $0x1558] sm:$0xff]  }
 0x260   :  { %20554 = vmatprep.subr.bf16.mxu0 %v22662_v5  ;;  %v22702_v5 = vld [vmem:[%s29515_s1 + $0x1450] sm:$0xff]  }
 0x261   :  { %20547 = vmatpush3.bf16.msra.mxu1 %v22661_v2  ;;  %v22699_v2 = vld [vmem:[%s29515_s1 + $0x1408] sm:$0xff]  }
 0x262   :  { %15066 = vmatmul.mubr.bf16.vlgmr.msra.gmra.mrb[72].mxu0 %v317_v4  ;;  %20576 = vmatprep.subr.bf16.mxu1 %v22664_v11  ;;  %v22701_v4 = vld [vmem:[%s29515_s1 + $0x1488] sm:$0xff]  }
 0x263   :  { %20555 = vmatpush3.bf16.msra.mxu0 %v22663_v8  ;;  %v22705_v8 = vld [vmem:[%s29515_s1 + $0x1490] sm:$0xff]  }
 0x264   :  { %15106 = vmatmul.mubr.bf16.vlgmr.msra.gmra.mrb[72].mxu1 %v319_v10  ;;  %20556 = vmatprep.subr.bf16.mxu0 %v22666_v13  ;;  %v22707_v10 = vld [vmem:[%s29515_s1 + $0x1418] sm:$0xff]  }
 0x265   :  { %20577 = vmatpush3.bf16.msra.mxu1 %v22665_v12  ;;  %15185 = vmatprep.mubr.bf16.mxu1 %v324_v59  ;;  %v22708_v12 = vld [vmem:[%s29515_s1 + $0x14d8] sm:$0xff]   ;;  %v22736_v59 = vld [vmem:[%s29515_s1 + $0x15d0] sm:$0xff]  }
 0x266   :  { %20578 = vmatprep.subr.bf16.mxu1 %v22668_v15 }
 0x267   :  { %20557 = vmatpush3.bf16.msra.mxu0 %v22667_v14  ;;  %v22709_v14 = vld [vmem:[%s29515_s1 + $0x1498] sm:$0xff]  }
 0x268   :  { %20558 = vmatprep.subr.bf16.mxu0 %v22670_v17  ;;  %v22710_v17 = vld [vmem:[%s29515_s1 + $0x1460] sm:$0xff]  }
 0x269   :  { %20579 = vmatpush3.bf16.msra.mxu1 %v22669_v16 }
 0x26a   :  { %20580 = vmatprep.subr.bf16.mxu1 %v22672_v19  ;;  %v22711_v19 = vld [vmem:[%s29515_s1 + $0x1420] sm:$0xff]  }
 0x26b   :  { %20559 = vmatpush3.bf16.msra.mxu0 %v22671_v18 }
 0x26c   :  { %20560 = vmatprep.subr.bf16.mxu0 %v22674_v21 }
 0x26d   :  { %20581 = vmatpush3.bf16.msra.mxu1 %v22673_v20 }
 0x26e   :  { %20582 = vmatprep.subr.bf16.mxu1 %v22676_v25 }
 0x26f   :  { %20561 = vmatpush3.bf16.msra.mxu0 %v22675_v23 }
 0x270   :  { %20562 = vmatprep.subr.bf16.mxu0 %v22678_v30 }
 0x271   :  { %20583 = vmatpush3.bf16.msra.mxu1 %v22677_v28 }
 0x272   :  { %20584 = vmatprep.subr.bf16.mxu1 %v22680_v35  ;;  %v22720_v35 = vld [vmem:[%s29515_s1 + $0x14f0] sm:$0xff]  }
 0x273   :  { %20563 = vmatpush3.bf16.msra.mxu0 %v22679_v33  ;;  %v22718_v33 = vld [vmem:[%s29515_s1 + $0x1470] sm:$0xff]  }
 0x274   :  { %20564 = vmatprep.subr.bf16.mxu0 %v22682_v40  ;;  %v120_v40 = vld [vmem:[%s29516_s0 + $0x288] sm:$0xff] }
 0x275   :  { %v20262_v22 = vpop.f32.mrb[48].mxu0  ;;  %20585 = vmatpush3.bf16.msra.mxu1 %v22681_v38  ;;  %v22723_v38 = vld [vmem:[%s29515_s1 + $0x1438] sm:$0xff]  }
 0x276   :  { %v20263_v24 = vpop.f32.mrb[49].mxu0  ;;  %20586 = vmatprep.subr.bf16.mxu1 %v22684_v43  ;;  %v119_v43 = vld [vmem:[%s29516_s0 + $0x280] sm:$0xff] }
 0x277   :  { %v20264_v26 = vadd.f32 %v20263_v24, %v20262_v22  ;;  %v20265_v27 = vpop.f32.mrb[50].mxu0  ;;  %v20284_v29 = vpop.f32.mrb[48].mxu1  ;;  %20565 = vmatpush3.bf16.msra.mxu0 %v22683_v42  ;;  %v22712_v22 = vld [vmem:[%s29515_s1 + $0x14e0] sm:$0xff]   ;;  %v22725_v42 = vld [vmem:[%s29515_s1 + $0x14b8] sm:$0xff]  }
 0x278   :  { %v20266_v32 = vpop.f32.mrb[51].mxu0  ;;  %v20285_v34 = vpop.f32.mrb[49].mxu1  ;;  %20566 = vmatprep.subr.bf16.mxu0 %v22686_v45  ;;  %v22713_v24 = vld [vmem:[%s29515_s1 + $0x14a0] sm:$0xff]   ;;  %v22714_v27 = vld [vmem:[%s29515_s1 + $0x1468] sm:$0xff]  }
 0x279   :  { %v14588_v31 = vadd.f32 %v20264_v26, %v25806_v53  ;;  %v20286_v36 = vadd.f32 %v20285_v34, %v20284_v29  ;;  %v20287_v37 = vpop.f32.mrb[50].mxu1  ;;  %20587 = vmatpush3.bf16.msra.mxu1 %v22685_v44  ;;  %v322_v53 = vpack.c.bf16 %v116_v52, %v116_v52  ;;  %v22715_v29 = vld [vmem:[%s29515_s1 + $0x1428] sm:$0xff]   ;;  %v22719_v34 = vld [vmem:[%s29515_s1 + $0x1430] sm:$0xff]   ;;  %v325_v44 = vpack.c.bf16 %v119_v43, %v119_v43  ;;  %v22726_v45 = vld [vmem:[%s29515_s1 + $0x1540] sm:$0xff]  }
 0x27a   :  { %v20288_v39 = vpop.f32.mrb[51].mxu1  ;;  %20588 = vmatprep.subr.bf16.mxu1 %v22688_v47  ;;  %v22717_v32 = vld [vmem:[%s29515_s1 + $0x14a8] sm:$0xff]   ;;  %v22722_v37 = vld [vmem:[%s29515_s1 + $0x1478] sm:$0xff]   ;;  %v22729_v52 = vld [vmem:[%s29515_s1 + $0x1580] sm:$0xff]  }
 0x27b   :  { %v25917_v41 = vadd.f32 %v20286_v36, %v14588_v31  ;;  %20567 = vmatpush3.bf16.msra.mxu0 %v22687_v46  ;;  %15145 = vmatprep.mubr.bf16.mxu0 %v322_v53  ;;  %v22716_v31 = vld [vmem:[%s29515_s1 + $0x14e8] sm:$0xff]   ;;  %v22721_v36 = vld [vmem:[%s29515_s1 + $0x14b0] sm:$0xff]   ;;  %v22724_v39 = vld [vmem:[%s29515_s1 + $0x14f8] sm:$0xff]  }
 0x27c   :  { %20568 = vmatprep.subr.bf16.mxu0 %v22690_v49  ;;  %v122_v46 = vld [vmem:[%s29516_s0 + $0x298] sm:$0xff]  ;;  %v121_v49 = vld [vmem:[%s29516_s0 + $0x290] sm:$0xff]  ;;  %v22730_v53 = vld [vmem:[%s29515_s1 + $0x1548] sm:$0xff]  }
 0x27d   :  { %20589 = vmatpush3.bf16.msra.mxu1 %v22689_v48  ;;  %v328_v47 = vpack.c.bf16 %v122_v46, %v122_v46  ;;  %v22727_v48 = vld [vmem:[%s29515_s1 + $0x1500] sm:$0xff]   ;;  %v22764_v43 = vld [vmem:[%s29515_s1 + $0x16c8] sm:$0xff]   ;;  %v22767_v46 = vld [vmem:[%s29515_s1 + $0x1610] sm:$0xff]  }
 0x27e   :  { %20590 = vmatprep.subr.bf16.mxu1 %v22692_v51  ;;  %v22728_v51 = vld [vmem:[%s29515_s1 + $0x15c0] sm:$0xff]  }
 0x27f   :  { %20569 = vmatpush3.bf16.msra.mxu0 %v22691_v50  ;;  %v327_v50 = vpack.c.bf16 %v121_v49, %v121_v49  ;;  %v22770_v49 = vld [vmem:[%s29515_s1 + $0x1658] sm:$0xff]  }
 0x280   :  { %20598 = vmatprep.subr.bf16.mxu0 %v22694_v57  ;;  %v22734_v57 = vld [vmem:[%s29515_s1 + $0x1550] sm:$0xff]  }
 0x281   :  { %20591 = vmatpush3.bf16.msra.mxu1 %v22693_v54  ;;  %v22731_v54 = vld [vmem:[%s29515_s1 + $0x1508] sm:$0xff]  }
 0x282   :  { %15146 = vmatmul.mubr.bf16.vlgmr.msra.gmra.mrb[76].mxu0 %v321_v56  ;;  %20620 = vmatprep.subr.bf16.mxu1 %v22696_v63  ;;  %v22733_v56 = vld [vmem:[%s29515_s1 + $0x1588] sm:$0xff]   ;;  %v22739_v63 = vld [vmem:[%s29515_s1 + $0x1518] sm:$0xff]  }
 0x283   :  { %20599 = vmatpush3.bf16.msra.mxu0 %v22695_v60  ;;  %v22737_v60 = vld [vmem:[%s29515_s1 + $0x1590] sm:$0xff]  }
 0x284   :  { %15186 = vmatmul.mubr.bf16.vlgmr.msra.gmra.mrb[76].mxu1 %v323_v62  ;;  %20600 = vmatprep.subr.bf16.mxu0 %v22698_v1  ;;  %v22740_v1 = vld [vmem:[%s29515_s1 + $0x15d8] sm:$0xff]  }
 0x285   :  { %20621 = vmatpush3.bf16.msra.mxu1 %v22697_v0  ;;  %15265 = vmatprep.mubr.bf16.mxu1 %v328_v47  ;;  %v22768_v47 = vld [vmem:[%s29515_s1 + $0x16d0] sm:$0xff]  }
 0x286   :  { %20622 = vmatprep.subr.bf16.mxu1 %v22700_v3 }
 0x287   :  { %20601 = vmatpush3.bf16.msra.mxu0 %v22699_v2 }
 0x288   :  { %20602 = vmatprep.subr.bf16.mxu0 %v22702_v5 }
 0x289   :  { %20623 = vmatpush3.bf16.msra.mxu1 %v22701_v4  ;;  %v22741_v4 = vld [vmem:[%s29515_s1 + $0x1598] sm:$0xff]  }
 0x28a   :  { %20624 = vmatprep.subr.bf16.mxu1 %v22704_v7 }
 0x28b   :  { %20603 = vmatpush3.bf16.msra.mxu0 %v22703_v6  ;;  %v22742_v6 = vld [vmem:[%s29515_s1 + $0x1560] sm:$0xff]  }
 0x28c   :  { %20604 = vmatprep.subr.bf16.mxu0 %v22706_v9  ;;  %v22743_v9 = vld [vmem:[%s29515_s1 + $0x1520] sm:$0xff]  }
 0x28d   :  { %20625 = vmatpush3.bf16.msra.mxu1 %v22705_v8 }
 0x28e   :  { %20626 = vmatprep.subr.bf16.mxu1 %v22708_v12 }
 0x28f   :  { %20605 = vmatpush3.bf16.msra.mxu0 %v22707_v10 }
 0x290   :  { %20606 = vmatprep.subr.bf16.mxu0 %v22710_v17 }
 0x291   :  { %20627 = vmatpush3.bf16.msra.mxu1 %v22709_v14  ;;  %v22745_v14 = vld [vmem:[%s29515_s1 + $0x15a0] sm:$0xff]  }
 0x292   :  { %20628 = vmatprep.subr.bf16.mxu1 %v22712_v22  ;;  %v22751_v22 = vld [vmem:[%s29515_s1 + $0x1530] sm:$0xff]  }
 0x293   :  { %20607 = vmatpush3.bf16.msra.mxu0 %v22711_v19  ;;  %v22748_v19 = vld [vmem:[%s29515_s1 + $0x15e8] sm:$0xff]  }
 0x294   :  { %20608 = vmatprep.subr.bf16.mxu0 %v22714_v27  ;;  %v22756_v27 = vld [vmem:[%s29515_s1 + $0x15f8] sm:$0xff]  }
 0x295   :  { %v20306_v11 = vpop.f32.mrb[52].mxu0  ;;  %20629 = vmatpush3.bf16.msra.mxu1 %v22713_v24  ;;  %v22753_v24 = vld [vmem:[%s29515_s1 + $0x15b0] sm:$0xff]  }
 0x296   :  { %v20307_v13 = vpop.f32.mrb[53].mxu0  ;;  %20630 = vmatprep.subr.bf16.mxu1 %v22716_v31  ;;  %v123_v31 = vld [vmem:[%s29516_s0 + $0x2a0] sm:$0xff] }
 0x297   :  { %v20308_v15 = vadd.f32 %v20307_v13, %v20306_v11  ;;  %v20309_v16 = vpop.f32.mrb[54].mxu0  ;;  %v20328_v18 = vpop.f32.mrb[52].mxu1  ;;  %20609 = vmatpush3.bf16.msra.mxu0 %v22715_v29  ;;  %v22744_v11 = vld [vmem:[%s29515_s1 + $0x15e0] sm:$0xff]  }
 0x298   :  { %v20310_v21 = vpop.f32.mrb[55].mxu0  ;;  %v20329_v23 = vpop.f32.mrb[53].mxu1  ;;  %20610 = vmatprep.subr.bf16.mxu0 %v22718_v33  ;;  %v22746_v16 = vld [vmem:[%s29515_s1 + $0x1568] sm:$0xff]   ;;  %v22758_v33 = vld [vmem:[%s29515_s1 + $0x1640] sm:$0xff]  }
 0x299   :  { %v14668_v20 = vadd.f32 %v20308_v15, %v25917_v41  ;;  %v20330_v25 = vadd.f32 %v20329_v23, %v20328_v18  ;;  %v20331_v26 = vpop.f32.mrb[54].mxu1  ;;  %20631 = vmatpush3.bf16.msra.mxu1 %v22717_v32  ;;  %v326_v41 = vpack.c.bf16 %v120_v40, %v120_v40  ;;  %v22747_v18 = vld [vmem:[%s29515_s1 + $0x1528] sm:$0xff]   ;;  %v22750_v21 = vld [vmem:[%s29515_s1 + $0x1570] sm:$0xff]   ;;  %v329_v32 = vpack.c.bf16 %v123_v31, %v123_v31  ;;  %v22761_v40 = vld [vmem:[%s29515_s1 + $0x1680] sm:$0xff]  }
 0x29a   :  { %v20332_v28 = vpop.f32.mrb[55].mxu1  ;;  %20632 = vmatprep.subr.bf16.mxu1 %v22720_v35  ;;  %v22752_v23 = vld [vmem:[%s29515_s1 + $0x15f0] sm:$0xff]   ;;  %v22755_v26 = vld [vmem:[%s29515_s1 + $0x1538] sm:$0xff]   ;;  %v22796_v31 = vld [vmem:[%s29515_s1 + $0x17c8] sm:$0xff]  }
 0x29b   :  { %v26031_v30 = vadd.f32 %v20330_v25, %v14668_v20  ;;  %20611 = vmatpush3.bf16.msra.mxu0 %v22719_v34  ;;  %15225 = vmatprep.mubr.bf16.mxu0 %v326_v41  ;;  %v22749_v20 = vld [vmem:[%s29515_s1 + $0x15a8] sm:$0xff]   ;;  %v22754_v25 = vld [vmem:[%s29515_s1 + $0x1578] sm:$0xff]  }
 0x29c   :  { %20612 = vmatprep.subr.bf16.mxu0 %v22722_v37  ;;  %v124_v28 = vld [vmem:[%s29516_s0 + $0x2a8] sm:$0xff]  ;;  %v126_v34 = vld [vmem:[%s29516_s0 + $0x2b8] sm:$0xff]  ;;  %v125_v37 = vld [vmem:[%s29516_s0 + $0x2b0] sm:$0xff] }
 0x29d   :  { %20633 = vmatpush3.bf16.msra.mxu1 %v22721_v36  ;;  %v330_v29 = vpack.c.bf16 %v124_v28, %v124_v28  ;;  %v332_v35 = vpack.c.bf16 %v126_v34, %v126_v34  ;;  %v22759_v36 = vld [vmem:[%s29515_s1 + $0x1600] sm:$0xff]   ;;  %v22762_v41 = vld [vmem:[%s29515_s1 + $0x1648] sm:$0xff]   ;;  %v22799_v34 = vld [vmem:[%s29515_s1 + $0x1710] sm:$0xff]  }
 0x29e   :  { %20634 = vmatprep.subr.bf16.mxu1 %v22724_v39  ;;  %v22760_v39 = vld [vmem:[%s29515_s1 + $0x16c0] sm:$0xff]  }
 0x29f   :  { %20613 = vmatpush3.bf16.msra.mxu0 %v22723_v38  ;;  %v331_v38 = vpack.c.bf16 %v125_v37, %v125_v37  ;;  %v22793_v28 = vld [vmem:[%s29515_s1 + $0x1780] sm:$0xff]   ;;  %v22802_v37 = vld [vmem:[%s29515_s1 + $0x1758] sm:$0xff]  }
 0x2a0   :  { %20642 = vmatprep.subr.bf16.mxu0 %v22726_v45  ;;  %v22766_v45 = vld [vmem:[%s29515_s1 + $0x1650] sm:$0xff]  }
 0x2a1   :  { %20635 = vmatpush3.bf16.msra.mxu1 %v22725_v42  ;;  %v22763_v42 = vld [vmem:[%s29515_s1 + $0x1608] sm:$0xff]  }
 0x2a2   :  { %15226 = vmatmul.mubr.bf16.vlgmr.msra.gmra.mrb[80].mxu0 %v325_v44  ;;  %20664 = vmatprep.subr.bf16.mxu1 %v22728_v51  ;;  %v22765_v44 = vld [vmem:[%s29515_s1 + $0x1688] sm:$0xff]   ;;  %v22771_v51 = vld [vmem:[%s29515_s1 + $0x1618] sm:$0xff]  }
 0x2a3   :  { %20643 = vmatpush3.bf16.msra.mxu0 %v22727_v48  ;;  %15305 = vmatprep.mubr.bf16.mxu0 %v330_v29  ;;  %v22769_v48 = vld [vmem:[%s29515_s1 + $0x1690] sm:$0xff]   ;;  %v22794_v29 = vld [vmem:[%s29515_s1 + $0x1748] sm:$0xff]  }
 0x2a4   :  { %15266 = vmatmul.mubr.bf16.vlgmr.msra.gmra.mrb[80].mxu1 %v327_v50  ;;  %20644 = vmatprep.subr.bf16.mxu0 %v22730_v53  ;;  %v22772_v53 = vld [vmem:[%s29515_s1 + $0x16d8] sm:$0xff]  }
 0x2a5   :  { %20665 = vmatpush3.bf16.msra.mxu1 %v22729_v52  ;;  %15345 = vmatprep.mubr.bf16.mxu1 %v332_v35  ;;  %v22800_v35 = vld [vmem:[%s29515_s1 + $0x17d0] sm:$0xff]  }
 0x2a6   :  { %20666 = vmatprep.subr.bf16.mxu1 %v22732_v55 }
 0x2a7   :  { %20645 = vmatpush3.bf16.msra.mxu0 %v22731_v54 }
 0x2a8   :  { %20646 = vmatprep.subr.bf16.mxu0 %v22734_v57 }
 0x2a9   :  { %20667 = vmatpush3.bf16.msra.mxu1 %v22733_v56  ;;  %v22773_v56 = vld [vmem:[%s29515_s1 + $0x1698] sm:$0xff]  }
 0x2aa   :  { %20668 = vmatprep.subr.bf16.mxu1 %v22736_v59 }
 0x2ab   :  { %20647 = vmatpush3.bf16.msra.mxu0 %v22735_v58  ;;  %v22774_v58 = vld [vmem:[%s29515_s1 + $0x1660] sm:$0xff]  }
 0x2ac   :  { %20648 = vmatprep.subr.bf16.mxu0 %v22738_v61  ;;  %v22775_v61 = vld [vmem:[%s29515_s1 + $0x1620] sm:$0xff]  }
 0x2ad   :  { %20669 = vmatpush3.bf16.msra.mxu1 %v22737_v60 }
 0x2ae   :  { %20670 = vmatprep.subr.bf16.mxu1 %v22740_v1 }
 0x2af   :  { %20649 = vmatpush3.bf16.msra.mxu0 %v22739_v63  ;;  %v22776_v63 = vld [vmem:[%s29515_s1 + $0x16e0] sm:$0xff]  }
 0x2b0   :  { %20650 = vmatprep.subr.bf16.mxu0 %v22742_v6  ;;  %v22779_v6 = vld [vmem:[%s29515_s1 + $0x1628] sm:$0xff]  }
 0x2b1   :  { %20671 = vmatpush3.bf16.msra.mxu1 %v22741_v4  ;;  %v22778_v4 = vld [vmem:[%s29515_s1 + $0x1668] sm:$0xff]  }
 0x2b2   :  { %20672 = vmatprep.subr.bf16.mxu1 %v22744_v11  ;;  %v22784_v11 = vld [vmem:[%s29515_s1 + $0x16f0] sm:$0xff]  }
 0x2b3   :  { %20651 = vmatpush3.bf16.msra.mxu0 %v22743_v9  ;;  %v22782_v9 = vld [vmem:[%s29515_s1 + $0x1670] sm:$0xff]  }
 0x2b4   :  { %20652 = vmatprep.subr.bf16.mxu0 %v22746_v16  ;;  %v128_v16 = vld [vmem:[%s29516_s0 + $0x2c8] sm:$0xff] }
 0x2b5   :  { %v20350_v62 = vpop.f32.mrb[56].mxu0  ;;  %20673 = vmatpush3.bf16.msra.mxu1 %v22745_v14  ;;  %v22787_v14 = vld [vmem:[%s29515_s1 + $0x1638] sm:$0xff]  }
 0x2b6   :  { %v20351_v0 = vpop.f32.mrb[57].mxu0  ;;  %20674 = vmatprep.subr.bf16.mxu1 %v22748_v19  ;;  %v127_v19 = vld [vmem:[%s29516_s0 + $0x2c0] sm:$0xff] }
 0x2b7   :  { %v20352_v2 = vadd.f32 %v20351_v0, %v20350_v62  ;;  %v20353_v3 = vpop.f32.mrb[58].mxu0  ;;  %v20372_v5 = vpop.f32.mrb[56].mxu1  ;;  %20653 = vmatpush3.bf16.msra.mxu0 %v22747_v18  ;;  %v22789_v18 = vld [vmem:[%s29515_s1 + $0x16b8] sm:$0xff]  }
 0x2b8   :  { %v20354_v8 = vpop.f32.mrb[59].mxu0  ;;  %v20373_v10 = vpop.f32.mrb[57].mxu1  ;;  %20654 = vmatprep.subr.bf16.mxu0 %v22750_v21  ;;  %v22790_v21 = vld [vmem:[%s29515_s1 + $0x1740] sm:$0xff]  }
 0x2b9   :  { %v14748_v7 = vadd.f32 %v20352_v2, %v26031_v30  ;;  %v20374_v12 = vadd.f32 %v20373_v10, %v20372_v5  ;;  %v20375_v13 = vpop.f32.mrb[58].mxu1  ;;  %20675 = vmatpush3.bf16.msra.mxu1 %v22749_v20  ;;  %v22757_v30 = vld [vmem:[%s29515_s1 + $0x15b8] sm:$0xff]   ;;  %v22777_v2 = vld [vmem:[%s29515_s1 + $0x16a0] sm:$0xff]   ;;  %v22781_v8 = vld [vmem:[%s29515_s1 + $0x16a8] sm:$0xff]   ;;  %v333_v20 = vpack.c.bf16 %v127_v19, %v127_v19 }
 0x2ba   :  { %v20376_v15 = vpop.f32.mrb[59].mxu1  ;;  %20676 = vmatprep.subr.bf16.mxu1 %v22752_v23  ;;  %v22783_v10 = vld [vmem:[%s29515_s1 + $0x1630] sm:$0xff]   ;;  %v22786_v13 = vld [vmem:[%s29515_s1 + $0x1678] sm:$0xff]   ;;  %v22828_v19 = vld [vmem:[%s29515_s1 + $0x18c8] sm:$0xff]  }
 0x2bb   :  { %v26139_v17 = vadd.f32 %v20374_v12, %v14748_v7  ;;  %20655 = vmatpush3.bf16.msra.mxu0 %v22751_v22  ;;  %v22780_v7 = vld [vmem:[%s29515_s1 + $0x16e8] sm:$0xff]   ;;  %v22785_v12 = vld [vmem:[%s29515_s1 + $0x16b0] sm:$0xff]   ;;  %v22788_v15 = vld [vmem:[%s29515_s1 + $0x16f8] sm:$0xff]  }
 0x2bc   :  { %20656 = vmatprep.subr.bf16.mxu0 %v22754_v25  ;;  %v130_v22 = vld [vmem:[%s29516_s0 + $0x2d8] sm:$0xff]  ;;  %v129_v25 = vld [vmem:[%s29516_s0 + $0x2d0] sm:$0xff] }
 0x2bd   :  { %20677 = vmatpush3.bf16.msra.mxu1 %v22753_v24  ;;  %v336_v23 = vpack.c.bf16 %v130_v22, %v130_v22  ;;  %v22791_v24 = vld [vmem:[%s29515_s1 + $0x1700] sm:$0xff]   ;;  %v22831_v22 = vld [vmem:[%s29515_s1 + $0x1810] sm:$0xff]  }
 0x2be   :  { %20678 = vmatprep.subr.bf16.mxu1 %v22756_v27  ;;  %v22792_v27 = vld [vmem:[%s29515_s1 + $0x17c0] sm:$0xff]  }
 0x2bf   :  { %20657 = vmatpush3.bf16.msra.mxu0 %v22755_v26  ;;  %v335_v26 = vpack.c.bf16 %v129_v25, %v129_v25  ;;  %v22834_v25 = vld [vmem:[%s29515_s1 + $0x1858] sm:$0xff]  }
 0x2c0   :  { %20686 = vmatprep.subr.bf16.mxu0 %v22758_v33  ;;  %v22798_v33 = vld [vmem:[%s29515_s1 + $0x1750] sm:$0xff]  }
 0x2c1   :  { %20679 = vmatpush3.bf16.msra.mxu1 %v22757_v30  ;;  %v22795_v30 = vld [vmem:[%s29515_s1 + $0x1708] sm:$0xff]  }
 0x2c2   :  { %15306 = vmatmul.mubr.bf16.vlgmr.msra.gmra.mrb[84].mxu0 %v329_v32  ;;  %20708 = vmatprep.subr.bf16.mxu1 %v22760_v39  ;;  %v22797_v32 = vld [vmem:[%s29515_s1 + $0x1788] sm:$0xff]  }
 0x2c3   :  { %20687 = vmatpush3.bf16.msra.mxu0 %v22759_v36  ;;  %v22801_v36 = vld [vmem:[%s29515_s1 + $0x1790] sm:$0xff]  }
 0x2c4   :  { %15346 = vmatmul.mubr.bf16.vlgmr.msra.gmra.mrb[84].mxu1 %v331_v38  ;;  %20688 = vmatprep.subr.bf16.mxu0 %v22762_v41  ;;  %v22803_v38 = vld [vmem:[%s29515_s1 + $0x1718] sm:$0xff]  }
 0x2c5   :  { %20709 = vmatpush3.bf16.msra.mxu1 %v22761_v40  ;;  %15425 = vmatprep.mubr.bf16.mxu1 %v336_v23  ;;  %v22804_v40 = vld [vmem:[%s29515_s1 + $0x17d8] sm:$0xff]   ;;  %v22832_v23 = vld [vmem:[%s29515_s1 + $0x18d0] sm:$0xff]  }
 0x2c6   :  { %20710 = vmatprep.subr.bf16.mxu1 %v22764_v43 }
 0x2c7   :  { %20689 = vmatpush3.bf16.msra.mxu0 %v22763_v42  ;;  %v22805_v42 = vld [vmem:[%s29515_s1 + $0x1798] sm:$0xff]  }
 0x2c8   :  { %20690 = vmatprep.subr.bf16.mxu0 %v22766_v45  ;;  %v22806_v45 = vld [vmem:[%s29515_s1 + $0x1760] sm:$0xff]  }
 0x2c9   :  { %20711 = vmatpush3.bf16.msra.mxu1 %v22765_v44 }
 0x2ca   :  { %20712 = vmatprep.subr.bf16.mxu1 %v22768_v47  ;;  %v22807_v47 = vld [vmem:[%s29515_s1 + $0x1720] sm:$0xff]  }
 0x2cb   :  { %20691 = vmatpush3.bf16.msra.mxu0 %v22767_v46 }
 0x2cc   :  { %20692 = vmatprep.subr.bf16.mxu0 %v22770_v49 }
 0x2cd   :  { %20713 = vmatpush3.bf16.msra.mxu1 %v22769_v48 }
 0x2ce   :  { %20714 = vmatprep.subr.bf16.mxu1 %v22772_v53 }
 0x2cf   :  { %20693 = vmatpush3.bf16.msra.mxu0 %v22771_v51 }
 0x2d0   :  { %20694 = vmatprep.subr.bf16.mxu0 %v22774_v58 }
 0x2d1   :  { %20715 = vmatpush3.bf16.msra.mxu1 %v22773_v56 }
 0x2d2   :  { %20716 = vmatprep.subr.bf16.mxu1 %v22776_v63  ;;  %v22816_v63 = vld [vmem:[%s29515_s1 + $0x17f0] sm:$0xff]  }
 0x2d3   :  { %20695 = vmatpush3.bf16.msra.mxu0 %v22775_v61  ;;  %v22814_v61 = vld [vmem:[%s29515_s1 + $0x1770] sm:$0xff]  }
 0x2d4   :  { %20696 = vmatprep.subr.bf16.mxu0 %v22778_v4  ;;  %v132_v4 = vld [vmem:[%s29516_s0 + $0x2e8] sm:$0xff] }
 0x2d5   :  { %v20394_v50 = vpop.f32.mrb[60].mxu0  ;;  %20717 = vmatpush3.bf16.msra.mxu1 %v22777_v2  ;;  %v22819_v2 = vld [vmem:[%s29515_s1 + $0x1738] sm:$0xff]  }
 0x2d6   :  { %v20395_v52 = vpop.f32.mrb[61].mxu0  ;;  %20718 = vmatprep.subr.bf16.mxu1 %v22780_v7  ;;  %v131_v7 = vld [vmem:[%s29516_s0 + $0x2e0] sm:$0xff] }
 0x2d7   :  { %v20396_v54 = vadd.f32 %v20395_v52, %v20394_v50  ;;  %v20397_v55 = vpop.f32.mrb[62].mxu0  ;;  %v20416_v57 = vpop.f32.mrb[60].mxu1  ;;  %20697 = vmatpush3.bf16.msra.mxu0 %v22779_v6  ;;  %v22808_v50 = vld [vmem:[%s29515_s1 + $0x17e0] sm:$0xff]   ;;  %v22821_v6 = vld [vmem:[%s29515_s1 + $0x17b8] sm:$0xff]  }
 0x2d8   :  { %v20398_v60 = vpop.f32.mrb[63].mxu0  ;;  %v20417_v62 = vpop.f32.mrb[61].mxu1  ;;  %20698 = vmatprep.subr.bf16.mxu0 %v22782_v9  ;;  %v22809_v52 = vld [vmem:[%s29515_s1 + $0x17a0] sm:$0xff]   ;;  %v22810_v55 = vld [vmem:[%s29515_s1 + $0x1768] sm:$0xff]  }
 0x2d9   :  { %v14828_v59 = vadd.f32 %v20396_v54, %v26139_v17  ;;  %v20418_v0 = vadd.f32 %v20417_v62, %v20416_v57  ;;  %v20419_v1 = vpop.f32.mrb[62].mxu1  ;;  %20719 = vmatpush3.bf16.msra.mxu1 %v22781_v8  ;;  %v334_v17 = vpack.c.bf16 %v128_v16, %v128_v16  ;;  %v22811_v57 = vld [vmem:[%s29515_s1 + $0x1728] sm:$0xff]   ;;  %v22815_v62 = vld [vmem:[%s29515_s1 + $0x1730] sm:$0xff]   ;;  %v337_v8 = vpack.c.bf16 %v131_v7, %v131_v7  ;;  %v22822_v9 = vld [vmem:[%s29515_s1 + $0x1840] sm:$0xff]  }
 0x2da   :  { %v20420_v3 = vpop.f32.mrb[63].mxu1  ;;  %20720 = vmatprep.subr.bf16.mxu1 %v22784_v11  ;;  %v22813_v60 = vld [vmem:[%s29515_s1 + $0x17a8] sm:$0xff]   ;;  %v22818_v1 = vld [vmem:[%s29515_s1 + $0x1778] sm:$0xff]   ;;  %v22825_v16 = vld [vmem:[%s29515_s1 + $0x1880] sm:$0xff]  }
 0x2db   :  { %v26250_v5 = vadd.f32 %v20418_v0, %v14828_v59  ;;  %20699 = vmatpush3.bf16.msra.mxu0 %v22783_v10  ;;  %15385 = vmatprep.mubr.bf16.mxu0 %v334_v17  ;;  %v22812_v59 = vld [vmem:[%s29515_s1 + $0x17e8] sm:$0xff]   ;;  %v22817_v0 = vld [vmem:[%s29515_s1 + $0x17b0] sm:$0xff]   ;;  %v22820_v3 = vld [vmem:[%s29515_s1 + $0x17f8] sm:$0xff]  }
 0x2dc   :  { %20700 = vmatprep.subr.bf16.mxu0 %v22786_v13  ;;  %v134_v10 = vld [vmem:[%s29516_s0 + $0x2f8] sm:$0xff]  ;;  %v133_v13 = vld [vmem:[%s29516_s0 + $0x2f0] sm:$0xff]  ;;  %v22826_v17 = vld [vmem:[%s29515_s1 + $0x1848] sm:$0xff]  }
 0x2dd   :  { %20721 = vmatpush3.bf16.msra.mxu1 %v22785_v12  ;;  %v340_v11 = vpack.c.bf16 %v134_v10, %v134_v10  ;;  %v22823_v12 = vld [vmem:[%s29515_s1 + $0x1800] sm:$0xff]   ;;  %v22860_v7 = vld [vmem:[%s29515_s1 + $0x19c8] sm:$0xff]   ;;  %v22863_v10 = vld [vmem:[%s29515_s1 + $0x1910] sm:$0xff]  }
 0x2de   :  { %20722 = vmatprep.subr.bf16.mxu1 %v22788_v15  ;;  %v22824_v15 = vld [vmem:[%s29515_s1 + $0x18c0] sm:$0xff]  }
 0x2df   :  { %20701 = vmatpush3.bf16.msra.mxu0 %v22787_v14  ;;  %v339_v14 = vpack.c.bf16 %v133_v13, %v133_v13  ;;  %v22866_v13 = vld [vmem:[%s29515_s1 + $0x1958] sm:$0xff]  }
 0x2e0   :  { %20730 = vmatprep.subr.bf16.mxu0 %v22790_v21  ;;  %v22830_v21 = vld [vmem:[%s29515_s1 + $0x1850] sm:$0xff]  }
 0x2e1   :  { %20723 = vmatpush3.bf16.msra.mxu1 %v22789_v18  ;;  %v22827_v18 = vld [vmem:[%s29515_s1 + $0x1808] sm:$0xff]  }
 0x2e2   :  { %15386 = vmatmul.mubr.bf16.vlgmr.msra.gmra.mrb[88].mxu0 %v333_v20  ;;  %20752 = vmatprep.subr.bf16.mxu1 %v22792_v27  ;;  %v22829_v20 = vld [vmem:[%s29515_s1 + $0x1888] sm:$0xff]   ;;  %v22835_v27 = vld [vmem:[%s29515_s1 + $0x1818] sm:$0xff]  }
 0x2e3   :  { %20731 = vmatpush3.bf16.msra.mxu0 %v22791_v24  ;;  %v22833_v24 = vld [vmem:[%s29515_s1 + $0x1890] sm:$0xff]  }
 0x2e4   :  { %15426 = vmatmul.mubr.bf16.vlgmr.msra.gmra.mrb[88].mxu1 %v335_v26  ;;  %20732 = vmatprep.subr.bf16.mxu0 %v22794_v29  ;;  %v22836_v29 = vld [vmem:[%s29515_s1 + $0x18d8] sm:$0xff]  }
 0x2e5   :  { %20753 = vmatpush3.bf16.msra.mxu1 %v22793_v28  ;;  %15505 = vmatprep.mubr.bf16.mxu1 %v340_v11  ;;  %v22864_v11 = vld [vmem:[%s29515_s1 + $0x19d0] sm:$0xff]  }
 0x2e6   :  { %20754 = vmatprep.subr.bf16.mxu1 %v22796_v31 }
 0x2e7   :  { %20733 = vmatpush3.bf16.msra.mxu0 %v22795_v30 }
 0x2e8   :  { %20734 = vmatprep.subr.bf16.mxu0 %v22798_v33 }
 0x2e9   :  { %20755 = vmatpush3.bf16.msra.mxu1 %v22797_v32  ;;  %v22837_v32 = vld [vmem:[%s29515_s1 + $0x1898] sm:$0xff]  }
 0x2ea   :  { %20756 = vmatprep.subr.bf16.mxu1 %v22800_v35 }
 0x2eb   :  { %20735 = vmatpush3.bf16.msra.mxu0 %v22799_v34  ;;  %v22838_v34 = vld [vmem:[%s29515_s1 + $0x1860] sm:$0xff]  }
 0x2ec   :  { %20736 = vmatprep.subr.bf16.mxu0 %v22802_v37  ;;  %v22839_v37 = vld [vmem:[%s29515_s1 + $0x1820] sm:$0xff]  }
 0x2ed   :  { %20757 = vmatpush3.bf16.msra.mxu1 %v22801_v36 }
 0x2ee   :  { %20758 = vmatprep.subr.bf16.mxu1 %v22804_v40 }
 0x2ef   :  { %20737 = vmatpush3.bf16.msra.mxu0 %v22803_v38 }
 0x2f0   :  { %20738 = vmatprep.subr.bf16.mxu0 %v22806_v45 }
 0x2f1   :  { %20759 = vmatpush3.bf16.msra.mxu1 %v22805_v42  ;;  %v22841_v42 = vld [vmem:[%s29515_s1 + $0x18a0] sm:$0xff]  }
 0x2f2   :  { %20760 = vmatprep.subr.bf16.mxu1 %v22808_v50  ;;  %v22847_v50 = vld [vmem:[%s29515_s1 + $0x1830] sm:$0xff]  }
 0x2f3   :  { %20739 = vmatpush3.bf16.msra.mxu0 %v22807_v47  ;;  %v22844_v47 = vld [vmem:[%s29515_s1 + $0x18e8] sm:$0xff]  }
 0x2f4   :  { %20740 = vmatprep.subr.bf16.mxu0 %v22810_v55  ;;  %v22852_v55 = vld [vmem:[%s29515_s1 + $0x18f8] sm:$0xff]  }
 0x2f5   :  { %v20438_v39 = vpop.f32.mrb[64].mxu0  ;;  %20761 = vmatpush3.bf16.msra.mxu1 %v22809_v52  ;;  %v22849_v52 = vld [vmem:[%s29515_s1 + $0x18b0] sm:$0xff]  }
 0x2f6   :  { %v20439_v41 = vpop.f32.mrb[65].mxu0  ;;  %20762 = vmatprep.subr.bf16.mxu1 %v22812_v59  ;;  %v135_v59 = vld [vmem:[%s29516_s0 + $0x300] sm:$0xff] }
 0x2f7   :  { %v20440_v43 = vadd.f32 %v20439_v41, %v20438_v39  ;;  %v20441_v44 = vpop.f32.mrb[66].mxu0  ;;  %v20460_v46 = vpop.f32.mrb[64].mxu1  ;;  %20741 = vmatpush3.bf16.msra.mxu0 %v22811_v57  ;;  %v22840_v39 = vld [vmem:[%s29515_s1 + $0x18e0] sm:$0xff]  }
 0x2f8   :  { %v20442_v49 = vpop.f32.mrb[67].mxu0  ;;  %v20461_v51 = vpop.f32.mrb[65].mxu1  ;;  %20742 = vmatprep.subr.bf16.mxu0 %v22814_v61  ;;  %v22842_v44 = vld [vmem:[%s29515_s1 + $0x1868] sm:$0xff]   ;;  %v22854_v61 = vld [vmem:[%s29515_s1 + $0x1940] sm:$0xff]  }
 0x2f9   :  { %v14908_v48 = vadd.f32 %v20440_v43, %v26250_v5  ;;  %v20462_v53 = vadd.f32 %v20461_v51, %v20460_v46  ;;  %v20463_v54 = vpop.f32.mrb[66].mxu1  ;;  %20763 = vmatpush3.bf16.msra.mxu1 %v22813_v60  ;;  %v338_v5 = vpack.c.bf16 %v132_v4, %v132_v4  ;;  %v22843_v46 = vld [vmem:[%s29515_s1 + $0x1828] sm:$0xff]   ;;  %v22846_v49 = vld [vmem:[%s29515_s1 + $0x1870] sm:$0xff]   ;;  %v341_v60 = vpack.c.bf16 %v135_v59, %v135_v59  ;;  %v22857_v4 = vld [vmem:[%s29515_s1 + $0x1980] sm:$0xff]  }
 0x2fa   :  { %v20464_v56 = vpop.f32.mrb[67].mxu1  ;;  %20764 = vmatprep.subr.bf16.mxu1 %v22816_v63  ;;  %v22848_v51 = vld [vmem:[%s29515_s1 + $0x18f0] sm:$0xff]   ;;  %v22851_v54 = vld [vmem:[%s29515_s1 + $0x1838] sm:$0xff]   ;;  %v22892_v59 = vld [vmem:[%s29515_s1 + $0x1ac8] sm:$0xff]  }
 0x2fb   :  { %v26364_v58 = vadd.f32 %v20462_v53, %v14908_v48  ;;  %20743 = vmatpush3.bf16.msra.mxu0 %v22815_v62  ;;  %15465 = vmatprep.mubr.bf16.mxu0 %v338_v5  ;;  %v22845_v48 = vld [vmem:[%s29515_s1 + $0x18a8] sm:$0xff]   ;;  %v22850_v53 = vld [vmem:[%s29515_s1 + $0x1878] sm:$0xff]  }
 0x2fc   :  { %20744 = vmatprep.subr.bf16.mxu0 %v22818_v1  ;;  %v136_v56 = vld [vmem:[%s29516_s0 + $0x308] sm:$0xff]  ;;  %v138_v62 = vld [vmem:[%s29516_s0 + $0x318] sm:$0xff]  ;;  %v137_v1 = vld [vmem:[%s29516_s0 + $0x310] sm:$0xff] }
 0x2fd   :  { %20765 = vmatpush3.bf16.msra.mxu1 %v22817_v0  ;;  %v342_v57 = vpack.c.bf16 %v136_v56, %v136_v56  ;;  %v344_v63 = vpack.c.bf16 %v138_v62, %v138_v62  ;;  %v22855_v0 = vld [vmem:[%s29515_s1 + $0x1900] sm:$0xff]   ;;  %v22858_v5 = vld [vmem:[%s29515_s1 + $0x1948] sm:$0xff]   ;;  %v22895_v62 = vld [vmem:[%s29515_s1 + $0x1a10] sm:$0xff]  }
 0x2fe   :  { %20766 = vmatprep.subr.bf16.mxu1 %v22820_v3  ;;  %v22856_v3 = vld [vmem:[%s29515_s1 + $0x19c0] sm:$0xff]  }
 0x2ff   :  { %20745 = vmatpush3.bf16.msra.mxu0 %v22819_v2  ;;  %v343_v2 = vpack.c.bf16 %v137_v1, %v137_v1  ;;  %v22889_v56 = vld [vmem:[%s29515_s1 + $0x1a80] sm:$0xff]   ;;  %v22898_v1 = vld [vmem:[%s29515_s1 + $0x1a58] sm:$0xff]  }
 0x300   :  { %20774 = vmatprep.subr.bf16.mxu0 %v22822_v9  ;;  %v22862_v9 = vld [vmem:[%s29515_s1 + $0x1950] sm:$0xff]  }
 0x301   :  { %20767 = vmatpush3.bf16.msra.mxu1 %v22821_v6  ;;  %v22859_v6 = vld [vmem:[%s29515_s1 + $0x1908] sm:$0xff]  }
 0x302   :  { %15466 = vmatmul.mubr.bf16.vlgmr.msra.gmra.mrb[92].mxu0 %v337_v8  ;;  %20796 = vmatprep.subr.bf16.mxu1 %v22824_v15  ;;  %v22861_v8 = vld [vmem:[%s29515_s1 + $0x1988] sm:$0xff]   ;;  %v22867_v15 = vld [vmem:[%s29515_s1 + $0x1918] sm:$0xff]  }
 0x303   :  { %20775 = vmatpush3.bf16.msra.mxu0 %v22823_v12  ;;  %15545 = vmatprep.mubr.bf16.mxu0 %v342_v57  ;;  %v22865_v12 = vld [vmem:[%s29515_s1 + $0x1990] sm:$0xff]   ;;  %v22890_v57 = vld [vmem:[%s29515_s1 + $0x1a48] sm:$0xff]  }
 0x304   :  { %15506 = vmatmul.mubr.bf16.vlgmr.msra.gmra.mrb[92].mxu1 %v339_v14  ;;  %20776 = vmatprep.subr.bf16.mxu0 %v22826_v17  ;;  %v22868_v17 = vld [vmem:[%s29515_s1 + $0x19d8] sm:$0xff]  }
 0x305   :  { %20797 = vmatpush3.bf16.msra.mxu1 %v22825_v16  ;;  %15585 = vmatprep.mubr.bf16.mxu1 %v344_v63  ;;  %v22896_v63 = vld [vmem:[%s29515_s1 + $0x1ad0] sm:$0xff]  }
 0x306   :  { %20798 = vmatprep.subr.bf16.mxu1 %v22828_v19 }
 0x307   :  { %20777 = vmatpush3.bf16.msra.mxu0 %v22827_v18 }
 0x308   :  { %20778 = vmatprep.subr.bf16.mxu0 %v22830_v21 }
 0x309   :  { %20799 = vmatpush3.bf16.msra.mxu1 %v22829_v20  ;;  %v22869_v20 = vld [vmem:[%s29515_s1 + $0x1998] sm:$0xff]  }
 0x30a   :  { %20800 = vmatprep.subr.bf16.mxu1 %v22832_v23 }
 0x30b   :  { %20779 = vmatpush3.bf16.msra.mxu0 %v22831_v22  ;;  %v22870_v22 = vld [vmem:[%s29515_s1 + $0x1960] sm:$0xff]  }
 0x30c   :  { %20780 = vmatprep.subr.bf16.mxu0 %v22834_v25  ;;  %v22871_v25 = vld [vmem:[%s29515_s1 + $0x1920] sm:$0xff]  }
 0x30d   :  { %20801 = vmatpush3.bf16.msra.mxu1 %v22833_v24 }
 0x30e   :  { %20802 = vmatprep.subr.bf16.mxu1 %v22836_v29 }
 0x30f   :  { %20781 = vmatpush3.bf16.msra.mxu0 %v22835_v27  ;;  %v22872_v27 = vld [vmem:[%s29515_s1 + $0x19e0] sm:$0xff]  }
 0x310   :  { %20782 = vmatprep.subr.bf16.mxu0 %v22838_v34  ;;  %v22875_v34 = vld [vmem:[%s29515_s1 + $0x1928] sm:$0xff]  }
 0x311   :  { %20803 = vmatpush3.bf16.msra.mxu1 %v22837_v32  ;;  %v22874_v32 = vld [vmem:[%s29515_s1 + $0x1968] sm:$0xff]  }
 0x312   :  { %20804 = vmatprep.subr.bf16.mxu1 %v22840_v39  ;;  %v22880_v39 = vld [vmem:[%s29515_s1 + $0x19f0] sm:$0xff]  }
 0x313   :  { %20783 = vmatpush3.bf16.msra.mxu0 %v22839_v37  ;;  %v22878_v37 = vld [vmem:[%s29515_s1 + $0x1970] sm:$0xff]  }
 0x314   :  { %20784 = vmatprep.subr.bf16.mxu0 %v22842_v44  ;;  %v140_v44 = vld [vmem:[%s29516_s0 + $0x328] sm:$0xff] }
 0x315   :  { %v20482_v26 = vpop.f32.mrb[68].mxu0  ;;  %20805 = vmatpush3.bf16.msra.mxu1 %v22841_v42  ;;  %v22883_v42 = vld [vmem:[%s29515_s1 + $0x1938] sm:$0xff]  }
 0x316   :  { %v20483_v28 = vpop.f32.mrb[69].mxu0  ;;  %20806 = vmatprep.subr.bf16.mxu1 %v22844_v47  ;;  %v139_v47 = vld [vmem:[%s29516_s0 + $0x320] sm:$0xff] }
 0x317   :  { %v20484_v30 = vadd.f32 %v20483_v28, %v20482_v26  ;;  %v20485_v31 = vpop.f32.mrb[70].mxu0  ;;  %v20504_v33 = vpop.f32.mrb[68].mxu1  ;;  %20785 = vmatpush3.bf16.msra.mxu0 %v22843_v46  ;;  %v22885_v46 = vld [vmem:[%s29515_s1 + $0x19b8] sm:$0xff]  }
 0x318   :  { %v20486_v36 = vpop.f32.mrb[71].mxu0  ;;  %v20505_v38 = vpop.f32.mrb[69].mxu1  ;;  %20786 = vmatprep.subr.bf16.mxu0 %v22846_v49  ;;  %v22886_v49 = vld [vmem:[%s29515_s1 + $0x1a40] sm:$0xff]  }
 0x319   :  { %v14988_v35 = vadd.f32 %v20484_v30, %v26364_v58  ;;  %v20506_v40 = vadd.f32 %v20505_v38, %v20504_v33  ;;  %v20507_v41 = vpop.f32.mrb[70].mxu1  ;;  %20807 = vmatpush3.bf16.msra.mxu1 %v22845_v48  ;;  %v22853_v58 = vld [vmem:[%s29515_s1 + $0x18b8] sm:$0xff]   ;;  %v22873_v30 = vld [vmem:[%s29515_s1 + $0x19a0] sm:$0xff]   ;;  %v22877_v36 = vld [vmem:[%s29515_s1 + $0x19a8] sm:$0xff]   ;;  %v345_v48 = vpack.c.bf16 %v139_v47, %v139_v47 }
 0x31a   :  { %v20508_v43 = vpop.f32.mrb[71].mxu1  ;;  %20808 = vmatprep.subr.bf16.mxu1 %v22848_v51  ;;  %v22879_v38 = vld [vmem:[%s29515_s1 + $0x1930] sm:$0xff]   ;;  %v22882_v41 = vld [vmem:[%s29515_s1 + $0x1978] sm:$0xff]   ;;  %v22924_v47 = vld [vmem:[%s29515_s1 + $0x1bc8] sm:$0xff]  }
 0x31b   :  { %v26472_v45 = vadd.f32 %v20506_v40, %v14988_v35  ;;  %20787 = vmatpush3.bf16.msra.mxu0 %v22847_v50  ;;  %v22876_v35 = vld [vmem:[%s29515_s1 + $0x19e8] sm:$0xff]   ;;  %v22881_v40 = vld [vmem:[%s29515_s1 + $0x19b0] sm:$0xff]   ;;  %v22884_v43 = vld [vmem:[%s29515_s1 + $0x19f8] sm:$0xff]  }
 0x31c   :  { %20788 = vmatprep.subr.bf16.mxu0 %v22850_v53  ;;  %v142_v50 = vld [vmem:[%s29516_s0 + $0x338] sm:$0xff]  ;;  %v141_v53 = vld [vmem:[%s29516_s0 + $0x330] sm:$0xff] }
 0x31d   :  { %20809 = vmatpush3.bf16.msra.mxu1 %v22849_v52  ;;  %v348_v51 = vpack.c.bf16 %v142_v50, %v142_v50  ;;  %v22887_v52 = vld [vmem:[%s29515_s1 + $0x1a00] sm:$0xff]   ;;  %v22927_v50 = vld [vmem:[%s29515_s1 + $0x1b10] sm:$0xff]  }
 0x31e   :  { %20810 = vmatprep.subr.bf16.mxu1 %v22852_v55  ;;  %v22888_v55 = vld [vmem:[%s29515_s1 + $0x1ac0] sm:$0xff]  }
 0x31f   :  { %20789 = vmatpush3.bf16.msra.mxu0 %v22851_v54  ;;  %v347_v54 = vpack.c.bf16 %v141_v53, %v141_v53  ;;  %v22930_v53 = vld [vmem:[%s29515_s1 + $0x1b58] sm:$0xff]  }
 0x320   :  { %20818 = vmatprep.subr.bf16.mxu0 %v22854_v61  ;;  %v22894_v61 = vld [vmem:[%s29515_s1 + $0x1a50] sm:$0xff]  }
 0x321   :  { %20811 = vmatpush3.bf16.msra.mxu1 %v22853_v58  ;;  %v22891_v58 = vld [vmem:[%s29515_s1 + $0x1a08] sm:$0xff]  }
 0x322   :  { %15546 = vmatmul.mubr.bf16.vlgmr.msra.gmra.mrb[96].mxu0 %v341_v60  ;;  %20840 = vmatprep.subr.bf16.mxu1 %v22856_v3  ;;  %v22893_v60 = vld [vmem:[%s29515_s1 + $0x1a88] sm:$0xff]  }
 0x323   :  { %20819 = vmatpush3.bf16.msra.mxu0 %v22855_v0  ;;  %v22897_v0 = vld [vmem:[%s29515_s1 + $0x1a90] sm:$0xff]  }
 0x324   :  { %15586 = vmatmul.mubr.bf16.vlgmr.msra.gmra.mrb[96].mxu1 %v343_v2  ;;  %20820 = vmatprep.subr.bf16.mxu0 %v22858_v5  ;;  %v22899_v2 = vld [vmem:[%s29515_s1 + $0x1a18] sm:$0xff]  }
 0x325   :  { %20841 = vmatpush3.bf16.msra.mxu1 %v22857_v4  ;;  %15665 = vmatprep.mubr.bf16.mxu1 %v348_v51  ;;  %v22900_v4 = vld [vmem:[%s29515_s1 + $0x1ad8] sm:$0xff]   ;;  %v22928_v51 = vld [vmem:[%s29515_s1 + $0x1bd0] sm:$0xff]  }
 0x326   :  { %20842 = vmatprep.subr.bf16.mxu1 %v22860_v7 }
 0x327   :  { %20821 = vmatpush3.bf16.msra.mxu0 %v22859_v6  ;;  %v22901_v6 = vld [vmem:[%s29515_s1 + $0x1a98] sm:$0xff]  }
 0x328   :  { %20822 = vmatprep.subr.bf16.mxu0 %v22862_v9  ;;  %v22902_v9 = vld [vmem:[%s29515_s1 + $0x1a60] sm:$0xff]  }
 0x329   :  { %20843 = vmatpush3.bf16.msra.mxu1 %v22861_v8 }
 0x32a   :  { %20844 = vmatprep.subr.bf16.mxu1 %v22864_v11  ;;  %v22903_v11 = vld [vmem:[%s29515_s1 + $0x1a20] sm:$0xff]  }
 0x32b   :  { %20823 = vmatpush3.bf16.msra.mxu0 %v22863_v10 }
 0x32c   :  { %20824 = vmatprep.subr.bf16.mxu0 %v22866_v13 }
 0x32d   :  { %20845 = vmatpush3.bf16.msra.mxu1 %v22865_v12 }
 0x32e   :  { %20846 = vmatprep.subr.bf16.mxu1 %v22868_v17 }
 0x32f   :  { %20825 = vmatpush3.bf16.msra.mxu0 %v22867_v15 }
 0x330   :  { %20826 = vmatprep.subr.bf16.mxu0 %v22870_v22 }
 0x331   :  { %20847 = vmatpush3.bf16.msra.mxu1 %v22869_v20 }
 0x332   :  { %20848 = vmatprep.subr.bf16.mxu1 %v22872_v27  ;;  %v22912_v27 = vld [vmem:[%s29515_s1 + $0x1af0] sm:$0xff]  }
 0x333   :  { %20827 = vmatpush3.bf16.msra.mxu0 %v22871_v25  ;;  %v22910_v25 = vld [vmem:[%s29515_s1 + $0x1a70] sm:$0xff]  }
 0x334   :  { %20828 = vmatprep.subr.bf16.mxu0 %v22874_v32  ;;  %v144_v32 = vld [vmem:[%s29516_s0 + $0x348] sm:$0xff] }
 0x335   :  { %v20526_v14 = vpop.f32.mrb[72].mxu0  ;;  %20849 = vmatpush3.bf16.msra.mxu1 %v22873_v30  ;;  %v22915_v30 = vld [vmem:[%s29515_s1 + $0x1a38] sm:$0xff]  }
 0x336   :  { %v20527_v16 = vpop.f32.mrb[73].mxu0  ;;  %20850 = vmatprep.subr.bf16.mxu1 %v22876_v35  ;;  %v143_v35 = vld [vmem:[%s29516_s0 + $0x340] sm:$0xff] }
 0x337   :  { %v20528_v18 = vadd.f32 %v20527_v16, %v20526_v14  ;;  %v20529_v19 = vpop.f32.mrb[74].mxu0  ;;  %v20548_v21 = vpop.f32.mrb[72].mxu1  ;;  %20829 = vmatpush3.bf16.msra.mxu0 %v22875_v34  ;;  %v22904_v14 = vld [vmem:[%s29515_s1 + $0x1ae0] sm:$0xff]   ;;  %v22917_v34 = vld [vmem:[%s29515_s1 + $0x1ab8] sm:$0xff]  }
 0x338   :  { %v20530_v24 = vpop.f32.mrb[75].mxu0  ;;  %v20549_v26 = vpop.f32.mrb[73].mxu1  ;;  %20830 = vmatprep.subr.bf16.mxu0 %v22878_v37  ;;  %v22905_v16 = vld [vmem:[%s29515_s1 + $0x1aa0] sm:$0xff]   ;;  %v22906_v19 = vld [vmem:[%s29515_s1 + $0x1a68] sm:$0xff]  }
 0x339   :  { %v15068_v23 = vadd.f32 %v20528_v18, %v26472_v45  ;;  %v20550_v28 = vadd.f32 %v20549_v26, %v20548_v21  ;;  %v20551_v29 = vpop.f32.mrb[74].mxu1  ;;  %20851 = vmatpush3.bf16.msra.mxu1 %v22877_v36  ;;  %v346_v45 = vpack.c.bf16 %v140_v44, %v140_v44  ;;  %v22907_v21 = vld [vmem:[%s29515_s1 + $0x1a28] sm:$0xff]   ;;  %v22911_v26 = vld [vmem:[%s29515_s1 + $0x1a30] sm:$0xff]   ;;  %v349_v36 = vpack.c.bf16 %v143_v35, %v143_v35  ;;  %v22918_v37 = vld [vmem:[%s29515_s1 + $0x1b40] sm:$0xff]  }
 0x33a   :  { %v20552_v31 = vpop.f32.mrb[75].mxu1  ;;  %20852 = vmatprep.subr.bf16.mxu1 %v22880_v39  ;;  %v22909_v24 = vld [vmem:[%s29515_s1 + $0x1aa8] sm:$0xff]   ;;  %v22914_v29 = vld [vmem:[%s29515_s1 + $0x1a78] sm:$0xff]   ;;  %v22921_v44 = vld [vmem:[%s29515_s1 + $0x1b80] sm:$0xff]  }
 0x33b   :  { %v26583_v33 = vadd.f32 %v20550_v28, %v15068_v23  ;;  %20831 = vmatpush3.bf16.msra.mxu0 %v22879_v38  ;;  %15625 = vmatprep.mubr.bf16.mxu0 %v346_v45  ;;  %v22908_v23 = vld [vmem:[%s29515_s1 + $0x1ae8] sm:$0xff]   ;;  %v22913_v28 = vld [vmem:[%s29515_s1 + $0x1ab0] sm:$0xff]   ;;  %v22916_v31 = vld [vmem:[%s29515_s1 + $0x1af8] sm:$0xff]  }
 0x33c   :  { %20832 = vmatprep.subr.bf16.mxu0 %v22882_v41  ;;  %v146_v38 = vld [vmem:[%s29516_s0 + $0x358] sm:$0xff]  ;;  %v145_v41 = vld [vmem:[%s29516_s0 + $0x350] sm:$0xff]  ;;  %v22922_v45 = vld [vmem:[%s29515_s1 + $0x1b48] sm:$0xff]  }
 0x33d   :  { %20853 = vmatpush3.bf16.msra.mxu1 %v22881_v40  ;;  %v352_v39 = vpack.c.bf16 %v146_v38, %v146_v38  ;;  %v22919_v40 = vld [vmem:[%s29515_s1 + $0x1b00] sm:$0xff]   ;;  %v22956_v35 = vld [vmem:[%s29515_s1 + $0x1cc8] sm:$0xff]   ;;  %v22959_v38 = vld [vmem:[%s29515_s1 + $0x1c10] sm:$0xff]  }
 0x33e   :  { %20854 = vmatprep.subr.bf16.mxu1 %v22884_v43  ;;  %v22920_v43 = vld [vmem:[%s29515_s1 + $0x1bc0] sm:$0xff]  }
 0x33f   :  { %20833 = vmatpush3.bf16.msra.mxu0 %v22883_v42  ;;  %v351_v42 = vpack.c.bf16 %v145_v41, %v145_v41  ;;  %v22962_v41 = vld [vmem:[%s29515_s1 + $0x1c58] sm:$0xff]  }
 0x340   :  { %20862 = vmatprep.subr.bf16.mxu0 %v22886_v49  ;;  %v22926_v49 = vld [vmem:[%s29515_s1 + $0x1b50] sm:$0xff]  }
 0x341   :  { %20855 = vmatpush3.bf16.msra.mxu1 %v22885_v46  ;;  %v22923_v46 = vld [vmem:[%s29515_s1 + $0x1b08] sm:$0xff]  }
 0x342   :  { %15626 = vmatmul.mubr.bf16.vlgmr.msra.gmra.mrb[100].mxu0 %v345_v48  ;;  %20884 = vmatprep.subr.bf16.mxu1 %v22888_v55  ;;  %v22925_v48 = vld [vmem:[%s29515_s1 + $0x1b88] sm:$0xff]   ;;  %v22931_v55 = vld [vmem:[%s29515_s1 + $0x1b18] sm:$0xff]  }
 0x343   :  { %20863 = vmatpush3.bf16.msra.mxu0 %v22887_v52  ;;  %v22929_v52 = vld [vmem:[%s29515_s1 + $0x1b90] sm:$0xff]  }
 0x344   :  { %15666 = vmatmul.mubr.bf16.vlgmr.msra.gmra.mrb[100].mxu1 %v347_v54  ;;  %20864 = vmatprep.subr.bf16.mxu0 %v22890_v57  ;;  %v22932_v57 = vld [vmem:[%s29515_s1 + $0x1bd8] sm:$0xff]  }
 0x345   :  { %20885 = vmatpush3.bf16.msra.mxu1 %v22889_v56  ;;  %15745 = vmatprep.mubr.bf16.mxu1 %v352_v39  ;;  %v22960_v39 = vld [vmem:[%s29515_s1 + $0x1cd0] sm:$0xff]  }
 0x346   :  { %20886 = vmatprep.subr.bf16.mxu1 %v22892_v59 }
 0x347   :  { %20865 = vmatpush3.bf16.msra.mxu0 %v22891_v58 }
 0x348   :  { %20866 = vmatprep.subr.bf16.mxu0 %v22894_v61 }
 0x349   :  { %20887 = vmatpush3.bf16.msra.mxu1 %v22893_v60  ;;  %v22933_v60 = vld [vmem:[%s29515_s1 + $0x1b98] sm:$0xff]  }
 0x34a   :  { %20888 = vmatprep.subr.bf16.mxu1 %v22896_v63 }
 0x34b   :  { %20867 = vmatpush3.bf16.msra.mxu0 %v22895_v62  ;;  %v22934_v62 = vld [vmem:[%s29515_s1 + $0x1b60] sm:$0xff]  }
 0x34c   :  { %20868 = vmatprep.subr.bf16.mxu0 %v22898_v1  ;;  %v22935_v1 = vld [vmem:[%s29515_s1 + $0x1b20] sm:$0xff]  }
 0x34d   :  { %20889 = vmatpush3.bf16.msra.mxu1 %v22897_v0 }
 0x34e   :  { %20890 = vmatprep.subr.bf16.mxu1 %v22900_v4 }
 0x34f   :  { %20869 = vmatpush3.bf16.msra.mxu0 %v22899_v2 }
 0x350   :  { %20870 = vmatprep.subr.bf16.mxu0 %v22902_v9 }
 0x351   :  { %20891 = vmatpush3.bf16.msra.mxu1 %v22901_v6  ;;  %v22937_v6 = vld [vmem:[%s29515_s1 + $0x1ba0] sm:$0xff]  }
 0x352   :  { %20892 = vmatprep.subr.bf16.mxu1 %v22904_v14  ;;  %v22943_v14 = vld [vmem:[%s29515_s1 + $0x1b30] sm:$0xff]  }
 0x353   :  { %20871 = vmatpush3.bf16.msra.mxu0 %v22903_v11  ;;  %v22940_v11 = vld [vmem:[%s29515_s1 + $0x1be8] sm:$0xff]  }
 0x354   :  { %20872 = vmatprep.subr.bf16.mxu0 %v22906_v19  ;;  %v22948_v19 = vld [vmem:[%s29515_s1 + $0x1bf8] sm:$0xff]  }
 0x355   :  { %v20570_v3 = vpop.f32.mrb[76].mxu0  ;;  %20893 = vmatpush3.bf16.msra.mxu1 %v22905_v16  ;;  %v22945_v16 = vld [vmem:[%s29515_s1 + $0x1bb0] sm:$0xff]  }
 0x356   :  { %v20571_v5 = vpop.f32.mrb[77].mxu0  ;;  %20894 = vmatprep.subr.bf16.mxu1 %v22908_v23  ;;  %v147_v23 = vld [vmem:[%s29516_s0 + $0x360] sm:$0xff] }
 0x357   :  { %v20572_v7 = vadd.f32 %v20571_v5, %v20570_v3  ;;  %v20573_v8 = vpop.f32.mrb[78].mxu0  ;;  %v20592_v10 = vpop.f32.mrb[76].mxu1  ;;  %20873 = vmatpush3.bf16.msra.mxu0 %v22907_v21  ;;  %v22936_v3 = vld [vmem:[%s29515_s1 + $0x1be0] sm:$0xff]  }
 0x358   :  { %v20574_v13 = vpop.f32.mrb[79].mxu0  ;;  %v20593_v15 = vpop.f32.mrb[77].mxu1  ;;  %20874 = vmatprep.subr.bf16.mxu0 %v22910_v25  ;;  %v22938_v8 = vld [vmem:[%s29515_s1 + $0x1b68] sm:$0xff]   ;;  %v22950_v25 = vld [vmem:[%s29515_s1 + $0x1c40] sm:$0xff]  }
 0x359   :  { %v15148_v12 = vadd.f32 %v20572_v7, %v26583_v33  ;;  %v20594_v17 = vadd.f32 %v20593_v15, %v20592_v10  ;;  %v20595_v18 = vpop.f32.mrb[78].mxu1  ;;  %20895 = vmatpush3.bf16.msra.mxu1 %v22909_v24  ;;  %v350_v33 = vpack.c.bf16 %v144_v32, %v144_v32  ;;  %v22939_v10 = vld [vmem:[%s29515_s1 + $0x1b28] sm:$0xff]   ;;  %v22942_v13 = vld [vmem:[%s29515_s1 + $0x1b70] sm:$0xff]   ;;  %v353_v24 = vpack.c.bf16 %v147_v23, %v147_v23  ;;  %v22953_v32 = vld [vmem:[%s29515_s1 + $0x1c80] sm:$0xff]  }
 0x35a   :  { %v20596_v20 = vpop.f32.mrb[79].mxu1  ;;  %20896 = vmatprep.subr.bf16.mxu1 %v22912_v27  ;;  %v22944_v15 = vld [vmem:[%s29515_s1 + $0x1bf0] sm:$0xff]   ;;  %v22947_v18 = vld [vmem:[%s29515_s1 + $0x1b38] sm:$0xff]   ;;  %v22988_v23 = vld [vmem:[%s29515_s1 + $0x1dc8] sm:$0xff]  }
 0x35b   :  { %v26697_v22 = vadd.f32 %v20594_v17, %v15148_v12  ;;  %20875 = vmatpush3.bf16.msra.mxu0 %v22911_v26  ;;  %15705 = vmatprep.mubr.bf16.mxu0 %v350_v33  ;;  %v22941_v12 = vld [vmem:[%s29515_s1 + $0x1ba8] sm:$0xff]   ;;  %v22946_v17 = vld [vmem:[%s29515_s1 + $0x1b78] sm:$0xff]  }
 0x35c   :  { %20876 = vmatprep.subr.bf16.mxu0 %v22914_v29  ;;  %v148_v20 = vld [vmem:[%s29516_s0 + $0x368] sm:$0xff]  ;;  %v150_v26 = vld [vmem:[%s29516_s0 + $0x378] sm:$0xff]  ;;  %v149_v29 = vld [vmem:[%s29516_s0 + $0x370] sm:$0xff] }
 0x35d   :  { %20897 = vmatpush3.bf16.msra.mxu1 %v22913_v28  ;;  %v354_v21 = vpack.c.bf16 %v148_v20, %v148_v20  ;;  %v356_v27 = vpack.c.bf16 %v150_v26, %v150_v26  ;;  %v22951_v28 = vld [vmem:[%s29515_s1 + $0x1c00] sm:$0xff]   ;;  %v22954_v33 = vld [vmem:[%s29515_s1 + $0x1c48] sm:$0xff]   ;;  %v22991_v26 = vld [vmem:[%s29515_s1 + $0x1d10] sm:$0xff]  }
 0x35e   :  { %20898 = vmatprep.subr.bf16.mxu1 %v22916_v31  ;;  %v22952_v31 = vld [vmem:[%s29515_s1 + $0x1cc0] sm:$0xff]  }
 0x35f   :  { %20877 = vmatpush3.bf16.msra.mxu0 %v22915_v30  ;;  %v355_v30 = vpack.c.bf16 %v149_v29, %v149_v29  ;;  %v22985_v20 = vld [vmem:[%s29515_s1 + $0x1d80] sm:$0xff]   ;;  %v22994_v29 = vld [vmem:[%s29515_s1 + $0x1d58] sm:$0xff]  }
 0x360   :  { %20906 = vmatprep.subr.bf16.mxu0 %v22918_v37  ;;  %v22958_v37 = vld [vmem:[%s29515_s1 + $0x1c50] sm:$0xff]  }
 0x361   :  { %20899 = vmatpush3.bf16.msra.mxu1 %v22917_v34  ;;  %v22955_v34 = vld [vmem:[%s29515_s1 + $0x1c08] sm:$0xff]  }
 0x362   :  { %15706 = vmatmul.mubr.bf16.vlgmr.msra.gmra.mrb[104].mxu0 %v349_v36  ;;  %20928 = vmatprep.subr.bf16.mxu1 %v22920_v43  ;;  %v22957_v36 = vld [vmem:[%s29515_s1 + $0x1c88] sm:$0xff]   ;;  %v22963_v43 = vld [vmem:[%s29515_s1 + $0x1c18] sm:$0xff]  }
 0x363   :  { %20907 = vmatpush3.bf16.msra.mxu0 %v22919_v40  ;;  %15785 = vmatprep.mubr.bf16.mxu0 %v354_v21  ;;  %v22961_v40 = vld [vmem:[%s29515_s1 + $0x1c90] sm:$0xff]   ;;  %v22986_v21 = vld [vmem:[%s29515_s1 + $0x1d48] sm:$0xff]  }
 0x364   :  { %15746 = vmatmul.mubr.bf16.vlgmr.msra.gmra.mrb[104].mxu1 %v351_v42  ;;  %20908 = vmatprep.subr.bf16.mxu0 %v22922_v45  ;;  %v22964_v45 = vld [vmem:[%s29515_s1 + $0x1cd8] sm:$0xff]  }
 0x365   :  { %20929 = vmatpush3.bf16.msra.mxu1 %v22921_v44  ;;  %15825 = vmatprep.mubr.bf16.mxu1 %v356_v27  ;;  %v22992_v27 = vld [vmem:[%s29515_s1 + $0x1dd0] sm:$0xff]  }
 0x366   :  { %20930 = vmatprep.subr.bf16.mxu1 %v22924_v47 }
 0x367   :  { %20909 = vmatpush3.bf16.msra.mxu0 %v22923_v46 }
 0x368   :  { %20910 = vmatprep.subr.bf16.mxu0 %v22926_v49 }
 0x369   :  { %20931 = vmatpush3.bf16.msra.mxu1 %v22925_v48  ;;  %v22965_v48 = vld [vmem:[%s29515_s1 + $0x1c98] sm:$0xff]  }
 0x36a   :  { %20932 = vmatprep.subr.bf16.mxu1 %v22928_v51 }
 0x36b   :  { %20911 = vmatpush3.bf16.msra.mxu0 %v22927_v50  ;;  %v22966_v50 = vld [vmem:[%s29515_s1 + $0x1c60] sm:$0xff]  }
 0x36c   :  { %20912 = vmatprep.subr.bf16.mxu0 %v22930_v53  ;;  %v22967_v53 = vld [vmem:[%s29515_s1 + $0x1c20] sm:$0xff]  }
 0x36d   :  { %20933 = vmatpush3.bf16.msra.mxu1 %v22929_v52 }
 0x36e   :  { %20934 = vmatprep.subr.bf16.mxu1 %v22932_v57 }
 0x36f   :  { %20913 = vmatpush3.bf16.msra.mxu0 %v22931_v55  ;;  %v22968_v55 = vld [vmem:[%s29515_s1 + $0x1ce0] sm:$0xff]  }
 0x370   :  { %20914 = vmatprep.subr.bf16.mxu0 %v22934_v62  ;;  %v22971_v62 = vld [vmem:[%s29515_s1 + $0x1c28] sm:$0xff]  }
 0x371   :  { %20935 = vmatpush3.bf16.msra.mxu1 %v22933_v60  ;;  %v22970_v60 = vld [vmem:[%s29515_s1 + $0x1c68] sm:$0xff]  }
 0x372   :  { %20936 = vmatprep.subr.bf16.mxu1 %v22936_v3  ;;  %v22976_v3 = vld [vmem:[%s29515_s1 + $0x1cf0] sm:$0xff]  }
 0x373   :  { %20915 = vmatpush3.bf16.msra.mxu0 %v22935_v1  ;;  %v22974_v1 = vld [vmem:[%s29515_s1 + $0x1c70] sm:$0xff]  }
 0x374   :  { %20916 = vmatprep.subr.bf16.mxu0 %v22938_v8  ;;  %v152_v8 = vld [vmem:[%s29516_s0 + $0x388] sm:$0xff] }
 0x375   :  { %v20614_v54 = vpop.f32.mrb[80].mxu0  ;;  %20937 = vmatpush3.bf16.msra.mxu1 %v22937_v6  ;;  %v22979_v6 = vld [vmem:[%s29515_s1 + $0x1c38] sm:$0xff]  }
 0x376   :  { %v20615_v56 = vpop.f32.mrb[81].mxu0  ;;  %20938 = vmatprep.subr.bf16.mxu1 %v22940_v11  ;;  %v151_v11 = vld [vmem:[%s29516_s0 + $0x380] sm:$0xff] }
 0x377   :  { %v20616_v58 = vadd.f32 %v20615_v56, %v20614_v54  ;;  %v20617_v59 = vpop.f32.mrb[82].mxu0  ;;  %v20636_v61 = vpop.f32.mrb[80].mxu1  ;;  %20917 = vmatpush3.bf16.msra.mxu0 %v22939_v10  ;;  %v22981_v10 = vld [vmem:[%s29515_s1 + $0x1cb8] sm:$0xff]  }
 0x378   :  { %v20618_v0 = vpop.f32.mrb[83].mxu0  ;;  %v20637_v2 = vpop.f32.mrb[81].mxu1  ;;  %20918 = vmatprep.subr.bf16.mxu0 %v22942_v13  ;;  %v22982_v13 = vld [vmem:[%s29515_s1 + $0x1d40] sm:$0xff]  }
 0x379   :  { %v15228_v63 = vadd.f32 %v20616_v58, %v26697_v22  ;;  %v20638_v4 = vadd.f32 %v20637_v2, %v20636_v61  ;;  %v20639_v5 = vpop.f32.mrb[82].mxu1  ;;  %20939 = vmatpush3.bf16.msra.mxu1 %v22941_v12  ;;  %v22949_v22 = vld [vmem:[%s29515_s1 + $0x1bb8] sm:$0xff]   ;;  %v22969_v58 = vld [vmem:[%s29515_s1 + $0x1ca0] sm:$0xff]   ;;  %v22973_v0 = vld [vmem:[%s29515_s1 + $0x1ca8] sm:$0xff]   ;;  %v357_v12 = vpack.c.bf16 %v151_v11, %v151_v11 }
 0x37a   :  { %v20640_v7 = vpop.f32.mrb[83].mxu1  ;;  %20940 = vmatprep.subr.bf16.mxu1 %v22944_v15  ;;  %v22975_v2 = vld [vmem:[%s29515_s1 + $0x1c30] sm:$0xff]   ;;  %v22978_v5 = vld [vmem:[%s29515_s1 + $0x1c78] sm:$0xff]   ;;  %v23020_v11 = vld [vmem:[%s29515_s1 + $0x1ec8] sm:$0xff]  }
 0x37b   :  { %v26805_v9 = vadd.f32 %v20638_v4, %v15228_v63  ;;  %20919 = vmatpush3.bf16.msra.mxu0 %v22943_v14  ;;  %v22972_v63 = vld [vmem:[%s29515_s1 + $0x1ce8] sm:$0xff]   ;;  %v22977_v4 = vld [vmem:[%s29515_s1 + $0x1cb0] sm:$0xff]   ;;  %v22980_v7 = vld [vmem:[%s29515_s1 + $0x1cf8] sm:$0xff]  }
 0x37c   :  { %20920 = vmatprep.subr.bf16.mxu0 %v22946_v17  ;;  %v154_v14 = vld [vmem:[%s29516_s0 + $0x398] sm:$0xff]  ;;  %v153_v17 = vld [vmem:[%s29516_s0 + $0x390] sm:$0xff] }
 0x37d   :  { %20941 = vmatpush3.bf16.msra.mxu1 %v22945_v16  ;;  %v360_v15 = vpack.c.bf16 %v154_v14, %v154_v14  ;;  %v22983_v16 = vld [vmem:[%s29515_s1 + $0x1d00] sm:$0xff]   ;;  %v23023_v14 = vld [vmem:[%s29515_s1 + $0x1e10] sm:$0xff]  }
 0x37e   :  { %20942 = vmatprep.subr.bf16.mxu1 %v22948_v19  ;;  %v22984_v19 = vld [vmem:[%s29515_s1 + $0x1dc0] sm:$0xff]  }
 0x37f   :  { %20921 = vmatpush3.bf16.msra.mxu0 %v22947_v18  ;;  %v359_v18 = vpack.c.bf16 %v153_v17, %v153_v17  ;;  %v23026_v17 = vld [vmem:[%s29515_s1 + $0x1e58] sm:$0xff]  }
 0x380   :  { %20950 = vmatprep.subr.bf16.mxu0 %v22950_v25  ;;  %v22990_v25 = vld [vmem:[%s29515_s1 + $0x1d50] sm:$0xff]  }
 0x381   :  { %20943 = vmatpush3.bf16.msra.mxu1 %v22949_v22  ;;  %v22987_v22 = vld [vmem:[%s29515_s1 + $0x1d08] sm:$0xff]  }
 0x382   :  { %15786 = vmatmul.mubr.bf16.vlgmr.msra.gmra.mrb[108].mxu0 %v353_v24  ;;  %20972 = vmatprep.subr.bf16.mxu1 %v22952_v31  ;;  %v22989_v24 = vld [vmem:[%s29515_s1 + $0x1d88] sm:$0xff]  }
 0x383   :  { %20951 = vmatpush3.bf16.msra.mxu0 %v22951_v28  ;;  %v22993_v28 = vld [vmem:[%s29515_s1 + $0x1d90] sm:$0xff]  }
 0x384   :  { %15826 = vmatmul.mubr.bf16.vlgmr.msra.gmra.mrb[108].mxu1 %v355_v30  ;;  %20952 = vmatprep.subr.bf16.mxu0 %v22954_v33  ;;  %v22995_v30 = vld [vmem:[%s29515_s1 + $0x1d18] sm:$0xff]  }
 0x385   :  { %20973 = vmatpush3.bf16.msra.mxu1 %v22953_v32  ;;  %15905 = vmatprep.mubr.bf16.mxu1 %v360_v15  ;;  %v22996_v32 = vld [vmem:[%s29515_s1 + $0x1dd8] sm:$0xff]   ;;  %v23024_v15 = vld [vmem:[%s29515_s1 + $0x1ed0] sm:$0xff]  }
 0x386   :  { %20974 = vmatprep.subr.bf16.mxu1 %v22956_v35 }
 0x387   :  { %20953 = vmatpush3.bf16.msra.mxu0 %v22955_v34  ;;  %v22997_v34 = vld [vmem:[%s29515_s1 + $0x1d98] sm:$0xff]  }
 0x388   :  { %20954 = vmatprep.subr.bf16.mxu0 %v22958_v37  ;;  %v22998_v37 = vld [vmem:[%s29515_s1 + $0x1d60] sm:$0xff]  }
 0x389   :  { %20975 = vmatpush3.bf16.msra.mxu1 %v22957_v36 }
 0x38a   :  { %20976 = vmatprep.subr.bf16.mxu1 %v22960_v39  ;;  %v22999_v39 = vld [vmem:[%s29515_s1 + $0x1d20] sm:$0xff]  }
 0x38b   :  { %20955 = vmatpush3.bf16.msra.mxu0 %v22959_v38 }
 0x38c   :  { %20956 = vmatprep.subr.bf16.mxu0 %v22962_v41 }
 0x38d   :  { %20977 = vmatpush3.bf16.msra.mxu1 %v22961_v40 }
 0x38e   :  { %20978 = vmatprep.subr.bf16.mxu1 %v22964_v45 }
 0x38f   :  { %20957 = vmatpush3.bf16.msra.mxu0 %v22963_v43 }
 0x390   :  { %20958 = vmatprep.subr.bf16.mxu0 %v22966_v50 }
 0x391   :  { %20979 = vmatpush3.bf16.msra.mxu1 %v22965_v48 }
 0x392   :  { %20980 = vmatprep.subr.bf16.mxu1 %v22968_v55  ;;  %v23008_v55 = vld [vmem:[%s29515_s1 + $0x1df0] sm:$0xff]  }
 0x393   :  { %20959 = vmatpush3.bf16.msra.mxu0 %v22967_v53  ;;  %v23006_v53 = vld [vmem:[%s29515_s1 + $0x1d70] sm:$0xff]  }
 0x394   :  { %20960 = vmatprep.subr.bf16.mxu0 %v22970_v60  ;;  %v156_v60 = vld [vmem:[%s29516_s0 + $0x3a8] sm:$0xff] }
 0x395   :  { %v20658_v42 = vpop.f32.mrb[84].mxu0  ;;  %20981 = vmatpush3.bf16.msra.mxu1 %v22969_v58  ;;  %v23011_v58 = vld [vmem:[%s29515_s1 + $0x1d38] sm:$0xff]  }
 0x396   :  { %v20659_v44 = vpop.f32.mrb[85].mxu0  ;;  %20982 = vmatprep.subr.bf16.mxu1 %v22972_v63  ;;  %v155_v63 = vld [vmem:[%s29516_s0 + $0x3a0] sm:$0xff] }
 0x397   :  { %v20660_v46 = vadd.f32 %v20659_v44, %v20658_v42  ;;  %v20661_v47 = vpop.f32.mrb[86].mxu0  ;;  %v20680_v49 = vpop.f32.mrb[84].mxu1  ;;  %20961 = vmatpush3.bf16.msra.mxu0 %v22971_v62  ;;  %v23000_v42 = vld [vmem:[%s29515_s1 + $0x1de0] sm:$0xff]   ;;  %v23013_v62 = vld [vmem:[%s29515_s1 + $0x1db8] sm:$0xff]  }
 0x398   :  { %v20662_v52 = vpop.f32.mrb[87].mxu0  ;;  %v20681_v54 = vpop.f32.mrb[85].mxu1  ;;  %20962 = vmatprep.subr.bf16.mxu0 %v22974_v1  ;;  %v23001_v44 = vld [vmem:[%s29515_s1 + $0x1da0] sm:$0xff]   ;;  %v23002_v47 = vld [vmem:[%s29515_s1 + $0x1d68] sm:$0xff]  }
 0x399   :  { %v15308_v51 = vadd.f32 %v20660_v46, %v26805_v9  ;;  %v20682_v56 = vadd.f32 %v20681_v54, %v20680_v49  ;;  %v20683_v57 = vpop.f32.mrb[86].mxu1  ;;  %20983 = vmatpush3.bf16.msra.mxu1 %v22973_v0  ;;  %v358_v9 = vpack.c.bf16 %v152_v8, %v152_v8  ;;  %v23003_v49 = vld [vmem:[%s29515_s1 + $0x1d28] sm:$0xff]   ;;  %v23007_v54 = vld [vmem:[%s29515_s1 + $0x1d30] sm:$0xff]   ;;  %v361_v0 = vpack.c.bf16 %v155_v63, %v155_v63  ;;  %v23014_v1 = vld [vmem:[%s29515_s1 + $0x1e40] sm:$0xff]  }
 0x39a   :  { %v20684_v59 = vpop.f32.mrb[87].mxu1  ;;  %20984 = vmatprep.subr.bf16.mxu1 %v22976_v3  ;;  %v23005_v52 = vld [vmem:[%s29515_s1 + $0x1da8] sm:$0xff]   ;;  %v23010_v57 = vld [vmem:[%s29515_s1 + $0x1d78] sm:$0xff]   ;;  %v23017_v8 = vld [vmem:[%s29515_s1 + $0x1e80] sm:$0xff]  }
 0x39b   :  { %v26916_v61 = vadd.f32 %v20682_v56, %v15308_v51  ;;  %20963 = vmatpush3.bf16.msra.mxu0 %v22975_v2  ;;  %15865 = vmatprep.mubr.bf16.mxu0 %v358_v9  ;;  %v23004_v51 = vld [vmem:[%s29515_s1 + $0x1de8] sm:$0xff]   ;;  %v23009_v56 = vld [vmem:[%s29515_s1 + $0x1db0] sm:$0xff]   ;;  %v23012_v59 = vld [vmem:[%s29515_s1 + $0x1df8] sm:$0xff]  }
 0x39c   :  { %20964 = vmatprep.subr.bf16.mxu0 %v22978_v5  ;;  %v158_v2 = vld [vmem:[%s29516_s0 + $0x3b8] sm:$0xff]  ;;  %v157_v5 = vld [vmem:[%s29516_s0 + $0x3b0] sm:$0xff]  ;;  %v23018_v9 = vld [vmem:[%s29515_s1 + $0x1e48] sm:$0xff]  }
 0x39d   :  { %20985 = vmatpush3.bf16.msra.mxu1 %v22977_v4  ;;  %v364_v3 = vpack.c.bf16 %v158_v2, %v158_v2  ;;  %v23015_v4 = vld [vmem:[%s29515_s1 + $0x1e00] sm:$0xff]   ;;  %v23052_v63 = vld [vmem:[%s29515_s1 + $0x1fc8] sm:$0xff]   ;;  %v23055_v2 = vld [vmem:[%s29515_s1 + $0x1f10] sm:$0xff]  }
 0x39e   :  { %20986 = vmatprep.subr.bf16.mxu1 %v22980_v7  ;;  %v23016_v7 = vld [vmem:[%s29515_s1 + $0x1ec0] sm:$0xff]  }
 0x39f   :  { %20965 = vmatpush3.bf16.msra.mxu0 %v22979_v6  ;;  %v363_v6 = vpack.c.bf16 %v157_v5, %v157_v5  ;;  %v23058_v5 = vld [vmem:[%s29515_s1 + $0x1f58] sm:$0xff]  }
 0x3a0   :  { %20994 = vmatprep.subr.bf16.mxu0 %v22982_v13  ;;  %v23022_v13 = vld [vmem:[%s29515_s1 + $0x1e50] sm:$0xff]  }
 0x3a1   :  { %20987 = vmatpush3.bf16.msra.mxu1 %v22981_v10  ;;  %v23019_v10 = vld [vmem:[%s29515_s1 + $0x1e08] sm:$0xff]  }
 0x3a2   :  { %15866 = vmatmul.mubr.bf16.vlgmr.msra.gmra.mrb[112].mxu0 %v357_v12  ;;  %21016 = vmatprep.subr.bf16.mxu1 %v22984_v19  ;;  %v23021_v12 = vld [vmem:[%s29515_s1 + $0x1e88] sm:$0xff]   ;;  %v23027_v19 = vld [vmem:[%s29515_s1 + $0x1e18] sm:$0xff]  }
 0x3a3   :  { %20995 = vmatpush3.bf16.msra.mxu0 %v22983_v16  ;;  %v23025_v16 = vld [vmem:[%s29515_s1 + $0x1e90] sm:$0xff]  }
 0x3a4   :  { %15906 = vmatmul.mubr.bf16.vlgmr.msra.gmra.mrb[112].mxu1 %v359_v18  ;;  %20996 = vmatprep.subr.bf16.mxu0 %v22986_v21  ;;  %v23028_v21 = vld [vmem:[%s29515_s1 + $0x1ed8] sm:$0xff]  }
 0x3a5   :  { %21017 = vmatpush3.bf16.msra.mxu1 %v22985_v20  ;;  %15985 = vmatprep.mubr.bf16.mxu1 %v364_v3  ;;  %v23056_v3 = vld [vmem:[%s29515_s1 + $0x1fd0] sm:$0xff]  }
 0x3a6   :  { %21018 = vmatprep.subr.bf16.mxu1 %v22988_v23 }
 0x3a7   :  { %20997 = vmatpush3.bf16.msra.mxu0 %v22987_v22 }
 0x3a8   :  { %20998 = vmatprep.subr.bf16.mxu0 %v22990_v25 }
 0x3a9   :  { %21019 = vmatpush3.bf16.msra.mxu1 %v22989_v24  ;;  %v23029_v24 = vld [vmem:[%s29515_s1 + $0x1e98] sm:$0xff]  }
 0x3aa   :  { %21020 = vmatprep.subr.bf16.mxu1 %v22992_v27 }
 0x3ab   :  { %20999 = vmatpush3.bf16.msra.mxu0 %v22991_v26  ;;  %v23030_v26 = vld [vmem:[%s29515_s1 + $0x1e60] sm:$0xff]  }
 0x3ac   :  { %21000 = vmatprep.subr.bf16.mxu0 %v22994_v29  ;;  %v23031_v29 = vld [vmem:[%s29515_s1 + $0x1e20] sm:$0xff]  }
 0x3ad   :  { %21021 = vmatpush3.bf16.msra.mxu1 %v22993_v28 }
 0x3ae   :  { %21022 = vmatprep.subr.bf16.mxu1 %v22996_v32 }
 0x3af   :  { %21001 = vmatpush3.bf16.msra.mxu0 %v22995_v30 }
 0x3b0   :  { %21002 = vmatprep.subr.bf16.mxu0 %v22998_v37 }
 0x3b1   :  { %21023 = vmatpush3.bf16.msra.mxu1 %v22997_v34  ;;  %v23033_v34 = vld [vmem:[%s29515_s1 + $0x1ea0] sm:$0xff]  }
 0x3b2   :  { %21024 = vmatprep.subr.bf16.mxu1 %v23000_v42  ;;  %v23039_v42 = vld [vmem:[%s29515_s1 + $0x1e30] sm:$0xff]  }
 0x3b3   :  { %21003 = vmatpush3.bf16.msra.mxu0 %v22999_v39  ;;  %v23036_v39 = vld [vmem:[%s29515_s1 + $0x1ee8] sm:$0xff]  }
 0x3b4   :  { %21004 = vmatprep.subr.bf16.mxu0 %v23002_v47  ;;  %v23044_v47 = vld [vmem:[%s29515_s1 + $0x1ef8] sm:$0xff]  }
 0x3b5   :  { %v20702_v31 = vpop.f32.mrb[88].mxu0  ;;  %21025 = vmatpush3.bf16.msra.mxu1 %v23001_v44  ;;  %v23041_v44 = vld [vmem:[%s29515_s1 + $0x1eb0] sm:$0xff]  }
 0x3b6   :  { %v20703_v33 = vpop.f32.mrb[89].mxu0  ;;  %21026 = vmatprep.subr.bf16.mxu1 %v23004_v51  ;;  %v159_v51 = vld [vmem:[%s29516_s0 + $0x3c0] sm:$0xff] }
 0x3b7   :  { %v20704_v35 = vadd.f32 %v20703_v33, %v20702_v31  ;;  %v20705_v36 = vpop.f32.mrb[90].mxu0  ;;  %v20724_v38 = vpop.f32.mrb[88].mxu1  ;;  %21005 = vmatpush3.bf16.msra.mxu0 %v23003_v49  ;;  %v23032_v31 = vld [vmem:[%s29515_s1 + $0x1ee0] sm:$0xff]  }
 0x3b8   :  { %v20706_v41 = vpop.f32.mrb[91].mxu0  ;;  %v20725_v43 = vpop.f32.mrb[89].mxu1  ;;  %21006 = vmatprep.subr.bf16.mxu0 %v23006_v53  ;;  %v23034_v36 = vld [vmem:[%s29515_s1 + $0x1e68] sm:$0xff]   ;;  %v23046_v53 = vld [vmem:[%s29515_s1 + $0x1f40] sm:$0xff]  }
 0x3b9   :  { %v15388_v40 = vadd.f32 %v20704_v35, %v26916_v61  ;;  %v20726_v45 = vadd.f32 %v20725_v43, %v20724_v38  ;;  %v20727_v46 = vpop.f32.mrb[90].mxu1  ;;  %21027 = vmatpush3.bf16.msra.mxu1 %v23005_v52  ;;  %v362_v61 = vpack.c.bf16 %v156_v60, %v156_v60  ;;  %v23035_v38 = vld [vmem:[%s29515_s1 + $0x1e28] sm:$0xff]   ;;  %v23038_v41 = vld [vmem:[%s29515_s1 + $0x1e70] sm:$0xff]   ;;  %v365_v52 = vpack.c.bf16 %v159_v51, %v159_v51  ;;  %v23049_v60 = vld [vmem:[%s29515_s1 + $0x1f80] sm:$0xff]  }
 0x3ba   :  { %v20728_v48 = vpop.f32.mrb[91].mxu1  ;;  %21028 = vmatprep.subr.bf16.mxu1 %v23008_v55  ;;  %v23040_v43 = vld [vmem:[%s29515_s1 + $0x1ef0] sm:$0xff]   ;;  %v23043_v46 = vld [vmem:[%s29515_s1 + $0x1e38] sm:$0xff]   ;;  %v23084_v51 = vld [vmem:[%s29515_s1 + $0x20c8] sm:$0xff]  }
 0x3bb   :  { %v27030_v50 = vadd.f32 %v20726_v45, %v15388_v40  ;;  %21007 = vmatpush3.bf16.msra.mxu0 %v23007_v54  ;;  %15945 = vmatprep.mubr.bf16.mxu0 %v362_v61  ;;  %v23037_v40 = vld [vmem:[%s29515_s1 + $0x1ea8] sm:$0xff]   ;;  %v23042_v45 = vld [vmem:[%s29515_s1 + $0x1e78] sm:$0xff]  }
 0x3bc   :  { %21008 = vmatprep.subr.bf16.mxu0 %v23010_v57  ;;  %v160_v48 = vld [vmem:[%s29516_s0 + $0x3c8] sm:$0xff]  ;;  %v162_v54 = vld [vmem:[%s29516_s0 + $0x3d8] sm:$0xff]  ;;  %v161_v57 = vld [vmem:[%s29516_s0 + $0x3d0] sm:$0xff] }
 0x3bd   :  { %21029 = vmatpush3.bf16.msra.mxu1 %v23009_v56  ;;  %v366_v49 = vpack.c.bf16 %v160_v48, %v160_v48  ;;  %v368_v55 = vpack.c.bf16 %v162_v54, %v162_v54  ;;  %v23047_v56 = vld [vmem:[%s29515_s1 + $0x1f00] sm:$0xff]   ;;  %v23050_v61 = vld [vmem:[%s29515_s1 + $0x1f48] sm:$0xff]   ;;  %v23087_v54 = vld [vmem:[%s29515_s1 + $0x2010] sm:$0xff]  }
 0x3be   :  { %21030 = vmatprep.subr.bf16.mxu1 %v23012_v59  ;;  %v23048_v59 = vld [vmem:[%s29515_s1 + $0x1fc0] sm:$0xff]  }
 0x3bf   :  { %21009 = vmatpush3.bf16.msra.mxu0 %v23011_v58  ;;  %v367_v58 = vpack.c.bf16 %v161_v57, %v161_v57  ;;  %v23081_v48 = vld [vmem:[%s29515_s1 + $0x2080] sm:$0xff]   ;;  %v23090_v57 = vld [vmem:[%s29515_s1 + $0x2058] sm:$0xff]  }
 0x3c0   :  { %21038 = vmatprep.subr.bf16.mxu0 %v23014_v1  ;;  %v23054_v1 = vld [vmem:[%s29515_s1 + $0x1f50] sm:$0xff]  }
 0x3c1   :  { %21031 = vmatpush3.bf16.msra.mxu1 %v23013_v62  ;;  %v23051_v62 = vld [vmem:[%s29515_s1 + $0x1f08] sm:$0xff]  }
 0x3c2   :  { %15946 = vmatmul.mubr.bf16.vlgmr.msra.gmra.mrb[116].mxu0 %v361_v0  ;;  %21060 = vmatprep.subr.bf16.mxu1 %v23016_v7  ;;  %v23053_v0 = vld [vmem:[%s29515_s1 + $0x1f88] sm:$0xff]   ;;  %v23059_v7 = vld [vmem:[%s29515_s1 + $0x1f18] sm:$0xff]  }
 0x3c3   :  { %21039 = vmatpush3.bf16.msra.mxu0 %v23015_v4  ;;  %16025 = vmatprep.mubr.bf16.mxu0 %v366_v49  ;;  %v23057_v4 = vld [vmem:[%s29515_s1 + $0x1f90] sm:$0xff]   ;;  %v23082_v49 = vld [vmem:[%s29515_s1 + $0x2048] sm:$0xff]  }
 0x3c4   :  { %15986 = vmatmul.mubr.bf16.vlgmr.msra.gmra.mrb[116].mxu1 %v363_v6  ;;  %21040 = vmatprep.subr.bf16.mxu0 %v23018_v9  ;;  %v23060_v9 = vld [vmem:[%s29515_s1 + $0x1fd8] sm:$0xff]  }
 0x3c5   :  { %21061 = vmatpush3.bf16.msra.mxu1 %v23017_v8  ;;  %16065 = vmatprep.mubr.bf16.mxu1 %v368_v55  ;;  %v23088_v55 = vld [vmem:[%s29515_s1 + $0x20d0] sm:$0xff]  }
 0x3c6   :  { %21062 = vmatprep.subr.bf16.mxu1 %v23020_v11 }
 0x3c7   :  { %21041 = vmatpush3.bf16.msra.mxu0 %v23019_v10 }
 0x3c8   :  { %21042 = vmatprep.subr.bf16.mxu0 %v23022_v13 }
 0x3c9   :  { %21063 = vmatpush3.bf16.msra.mxu1 %v23021_v12  ;;  %v23061_v12 = vld [vmem:[%s29515_s1 + $0x1f98] sm:$0xff]  }
 0x3ca   :  { %21064 = vmatprep.subr.bf16.mxu1 %v23024_v15 }
 0x3cb   :  { %21043 = vmatpush3.bf16.msra.mxu0 %v23023_v14  ;;  %v23062_v14 = vld [vmem:[%s29515_s1 + $0x1f60] sm:$0xff]  }
 0x3cc   :  { %21044 = vmatprep.subr.bf16.mxu0 %v23026_v17  ;;  %v23063_v17 = vld [vmem:[%s29515_s1 + $0x1f20] sm:$0xff]  }
 0x3cd   :  { %21065 = vmatpush3.bf16.msra.mxu1 %v23025_v16 }
 0x3ce   :  { %21066 = vmatprep.subr.bf16.mxu1 %v23028_v21 }
 0x3cf   :  { %21045 = vmatpush3.bf16.msra.mxu0 %v23027_v19  ;;  %v23064_v19 = vld [vmem:[%s29515_s1 + $0x1fe0] sm:$0xff]  }
 0x3d0   :  { %21046 = vmatprep.subr.bf16.mxu0 %v23030_v26  ;;  %v23067_v26 = vld [vmem:[%s29515_s1 + $0x1f28] sm:$0xff]  }
 0x3d1   :  { %21067 = vmatpush3.bf16.msra.mxu1 %v23029_v24  ;;  %v23066_v24 = vld [vmem:[%s29515_s1 + $0x1f68] sm:$0xff]  }
 0x3d2   :  { %21068 = vmatprep.subr.bf16.mxu1 %v23032_v31  ;;  %v23072_v31 = vld [vmem:[%s29515_s1 + $0x1ff0] sm:$0xff]  }
 0x3d3   :  { %21047 = vmatpush3.bf16.msra.mxu0 %v23031_v29  ;;  %v23070_v29 = vld [vmem:[%s29515_s1 + $0x1f70] sm:$0xff]  }
 0x3d4   :  { %21048 = vmatprep.subr.bf16.mxu0 %v23034_v36  ;;  %v164_v36 = vld [vmem:[%s29516_s0 + $0x3e8] sm:$0xff] }
 0x3d5   :  { %v20746_v18 = vpop.f32.mrb[92].mxu0  ;;  %21069 = vmatpush3.bf16.msra.mxu1 %v23033_v34  ;;  %v23075_v34 = vld [vmem:[%s29515_s1 + $0x1f38] sm:$0xff]  }
 0x3d6   :  { %v20747_v20 = vpop.f32.mrb[93].mxu0  ;;  %21070 = vmatprep.subr.bf16.mxu1 %v23036_v39  ;;  %v163_v39 = vld [vmem:[%s29516_s0 + $0x3e0] sm:$0xff] }
 0x3d7   :  { %v20748_v22 = vadd.f32 %v20747_v20, %v20746_v18  ;;  %v20749_v23 = vpop.f32.mrb[94].mxu0  ;;  %v20768_v25 = vpop.f32.mrb[92].mxu1  ;;  %21049 = vmatpush3.bf16.msra.mxu0 %v23035_v38  ;;  %v23077_v38 = vld [vmem:[%s29515_s1 + $0x1fb8] sm:$0xff]  }
 0x3d8   :  { %v20750_v28 = vpop.f32.mrb[95].mxu0  ;;  %v20769_v30 = vpop.f32.mrb[93].mxu1  ;;  %21050 = vmatprep.subr.bf16.mxu0 %v23038_v41  ;;  %v23078_v41 = vld [vmem:[%s29515_s1 + $0x2040] sm:$0xff]  }
 0x3d9   :  { %v15468_v27 = vadd.f32 %v20748_v22, %v27030_v50  ;;  %v20770_v32 = vadd.f32 %v20769_v30, %v20768_v25  ;;  %v20771_v33 = vpop.f32.mrb[94].mxu1  ;;  %21071 = vmatpush3.bf16.msra.mxu1 %v23037_v40  ;;  %v23045_v50 = vld [vmem:[%s29515_s1 + $0x1eb8] sm:$0xff]   ;;  %v23065_v22 = vld [vmem:[%s29515_s1 + $0x1fa0] sm:$0xff]   ;;  %v23069_v28 = vld [vmem:[%s29515_s1 + $0x1fa8] sm:$0xff]   ;;  %v369_v40 = vpack.c.bf16 %v163_v39, %v163_v39 }
 0x3da   :  { %v20772_v35 = vpop.f32.mrb[95].mxu1  ;;  %21072 = vmatprep.subr.bf16.mxu1 %v23040_v43  ;;  %v23071_v30 = vld [vmem:[%s29515_s1 + $0x1f30] sm:$0xff]   ;;  %v23074_v33 = vld [vmem:[%s29515_s1 + $0x1f78] sm:$0xff]   ;;  %v23116_v39 = vld [vmem:[%s29515_s1 + $0x21c8] sm:$0xff]  }
 0x3db   :  { %v27138_v37 = vadd.f32 %v20770_v32, %v15468_v27  ;;  %21051 = vmatpush3.bf16.msra.mxu0 %v23039_v42  ;;  %v23068_v27 = vld [vmem:[%s29515_s1 + $0x1fe8] sm:$0xff]   ;;  %v23073_v32 = vld [vmem:[%s29515_s1 + $0x1fb0] sm:$0xff]   ;;  %v23076_v35 = vld [vmem:[%s29515_s1 + $0x1ff8] sm:$0xff]  }
 0x3dc   :  { %21052 = vmatprep.subr.bf16.mxu0 %v23042_v45  ;;  %v166_v42 = vld [vmem:[%s29516_s0 + $0x3f8] sm:$0xff]  ;;  %v165_v45 = vld [vmem:[%s29516_s0 + $0x3f0] sm:$0xff] }
 0x3dd   :  { %21073 = vmatpush3.bf16.msra.mxu1 %v23041_v44  ;;  %v372_v43 = vpack.c.bf16 %v166_v42, %v166_v42  ;;  %v23079_v44 = vld [vmem:[%s29515_s1 + $0x2000] sm:$0xff]   ;;  %v23119_v42 = vld [vmem:[%s29515_s1 + $0x2110] sm:$0xff]  }
 0x3de   :  { %21074 = vmatprep.subr.bf16.mxu1 %v23044_v47  ;;  %v23080_v47 = vld [vmem:[%s29515_s1 + $0x20c0] sm:$0xff]  }
 0x3df   :  { %21053 = vmatpush3.bf16.msra.mxu0 %v23043_v46  ;;  %v371_v46 = vpack.c.bf16 %v165_v45, %v165_v45  ;;  %v23122_v45 = vld [vmem:[%s29515_s1 + $0x2158] sm:$0xff]  }
 0x3e0   :  { %21082 = vmatprep.subr.bf16.mxu0 %v23046_v53  ;;  %v23086_v53 = vld [vmem:[%s29515_s1 + $0x2050] sm:$0xff]  }
 0x3e1   :  { %21075 = vmatpush3.bf16.msra.mxu1 %v23045_v50  ;;  %v23083_v50 = vld [vmem:[%s29515_s1 + $0x2008] sm:$0xff]  }
 0x3e2   :  { %16026 = vmatmul.mubr.bf16.vlgmr.msra.gmra.mrb[120].mxu0 %v365_v52  ;;  %21104 = vmatprep.subr.bf16.mxu1 %v23048_v59  ;;  %v23085_v52 = vld [vmem:[%s29515_s1 + $0x2088] sm:$0xff]  }
 0x3e3   :  { %21083 = vmatpush3.bf16.msra.mxu0 %v23047_v56  ;;  %v23089_v56 = vld [vmem:[%s29515_s1 + $0x2090] sm:$0xff]  }
 0x3e4   :  { %16066 = vmatmul.mubr.bf16.vlgmr.msra.gmra.mrb[120].mxu1 %v367_v58  ;;  %21084 = vmatprep.subr.bf16.mxu0 %v23050_v61  ;;  %v23091_v58 = vld [vmem:[%s29515_s1 + $0x2018] sm:$0xff]  }
 0x3e5   :  { %21105 = vmatpush3.bf16.msra.mxu1 %v23049_v60  ;;  %16145 = vmatprep.mubr.bf16.mxu1 %v372_v43  ;;  %v23092_v60 = vld [vmem:[%s29515_s1 + $0x20d8] sm:$0xff]   ;;  %v23120_v43 = vld [vmem:[%s29515_s1 + $0x21d0] sm:$0xff]  }
 0x3e6   :  { %21106 = vmatprep.subr.bf16.mxu1 %v23052_v63 }
 0x3e7   :  { %21085 = vmatpush3.bf16.msra.mxu0 %v23051_v62  ;;  %v23093_v62 = vld [vmem:[%s29515_s1 + $0x2098] sm:$0xff]  }
 0x3e8   :  { %21086 = vmatprep.subr.bf16.mxu0 %v23054_v1  ;;  %v23094_v1 = vld [vmem:[%s29515_s1 + $0x2060] sm:$0xff]  }
 0x3e9   :  { %21107 = vmatpush3.bf16.msra.mxu1 %v23053_v0 }
 0x3ea   :  { %21108 = vmatprep.subr.bf16.mxu1 %v23056_v3  ;;  %v23095_v3 = vld [vmem:[%s29515_s1 + $0x2020] sm:$0xff]  }
 0x3eb   :  { %21087 = vmatpush3.bf16.msra.mxu0 %v23055_v2 }
 0x3ec   :  { %21088 = vmatprep.subr.bf16.mxu0 %v23058_v5 }
 0x3ed   :  { %21109 = vmatpush3.bf16.msra.mxu1 %v23057_v4 }
 0x3ee   :  { %21110 = vmatprep.subr.bf16.mxu1 %v23060_v9 }
 0x3ef   :  { %21089 = vmatpush3.bf16.msra.mxu0 %v23059_v7 }
 0x3f0   :  { %21090 = vmatprep.subr.bf16.mxu0 %v23062_v14 }
 0x3f1   :  { %21111 = vmatpush3.bf16.msra.mxu1 %v23061_v12 }
 0x3f2   :  { %21112 = vmatprep.subr.bf16.mxu1 %v23064_v19  ;;  %v23104_v19 = vld [vmem:[%s29515_s1 + $0x20f0] sm:$0xff]  }
 0x3f3   :  { %21091 = vmatpush3.bf16.msra.mxu0 %v23063_v17  ;;  %v23102_v17 = vld [vmem:[%s29515_s1 + $0x2070] sm:$0xff]  }
 0x3f4   :  { %21092 = vmatprep.subr.bf16.mxu0 %v23066_v24  ;;  %v168_v24 = vld [vmem:[%s29516_s0 + $0x408] sm:$0xff] }
 0x3f5   :  { %v20790_v6 = vpop.f32.mrb[96].mxu0  ;;  %21113 = vmatpush3.bf16.msra.mxu1 %v23065_v22  ;;  %v23107_v22 = vld [vmem:[%s29515_s1 + $0x2038] sm:$0xff]  }
 0x3f6   :  { %v20791_v8 = vpop.f32.mrb[97].mxu0  ;;  %21114 = vmatprep.subr.bf16.mxu1 %v23068_v27  ;;  %v167_v27 = vld [vmem:[%s29516_s0 + $0x400] sm:$0xff] }
 0x3f7   :  { %v20792_v10 = vadd.f32 %v20791_v8, %v20790_v6  ;;  %v20793_v11 = vpop.f32.mrb[98].mxu0  ;;  %v20812_v13 = vpop.f32.mrb[96].mxu1  ;;  %21093 = vmatpush3.bf16.msra.mxu0 %v23067_v26  ;;  %v23096_v6 = vld [vmem:[%s29515_s1 + $0x20e0] sm:$0xff]   ;;  %v23109_v26 = vld [vmem:[%s29515_s1 + $0x20b8] sm:$0xff]  }
 0x3f8   :  { %v20794_v16 = vpop.f32.mrb[99].mxu0  ;;  %v20813_v18 = vpop.f32.mrb[97].mxu1  ;;  %21094 = vmatprep.subr.bf16.mxu0 %v23070_v29  ;;  %v23097_v8 = vld [vmem:[%s29515_s1 + $0x20a0] sm:$0xff]   ;;  %v23098_v11 = vld [vmem:[%s29515_s1 + $0x2068] sm:$0xff]  }
 0x3f9   :  { %v15548_v15 = vadd.f32 %v20792_v10, %v27138_v37  ;;  %v20814_v20 = vadd.f32 %v20813_v18, %v20812_v13  ;;  %v20815_v21 = vpop.f32.mrb[98].mxu1  ;;  %21115 = vmatpush3.bf16.msra.mxu1 %v23069_v28  ;;  %v370_v37 = vpack.c.bf16 %v164_v36, %v164_v36  ;;  %v23099_v13 = vld [vmem:[%s29515_s1 + $0x2028] sm:$0xff]   ;;  %v23103_v18 = vld [vmem:[%s29515_s1 + $0x2030] sm:$0xff]   ;;  %v373_v28 = vpack.c.bf16 %v167_v27, %v167_v27  ;;  %v23110_v29 = vld [vmem:[%s29515_s1 + $0x2140] sm:$0xff]  }
 0x3fa   :  { %v20816_v23 = vpop.f32.mrb[99].mxu1  ;;  %21116 = vmatprep.subr.bf16.mxu1 %v23072_v31  ;;  %v23101_v16 = vld [vmem:[%s29515_s1 + $0x20a8] sm:$0xff]   ;;  %v23106_v21 = vld [vmem:[%s29515_s1 + $0x2078] sm:$0xff]   ;;  %v23113_v36 = vld [vmem:[%s29515_s1 + $0x2180] sm:$0xff]  }
 0x3fb   :  { %v27249_v25 = vadd.f32 %v20814_v20, %v15548_v15  ;;  %21095 = vmatpush3.bf16.msra.mxu0 %v23071_v30  ;;  %16105 = vmatprep.mubr.bf16.mxu0 %v370_v37  ;;  %v23100_v15 = vld [vmem:[%s29515_s1 + $0x20e8] sm:$0xff]   ;;  %v23105_v20 = vld [vmem:[%s29515_s1 + $0x20b0] sm:$0xff]   ;;  %v23108_v23 = vld [vmem:[%s29515_s1 + $0x20f8] sm:$0xff]  }
 0x3fc   :  { %21096 = vmatprep.subr.bf16.mxu0 %v23074_v33  ;;  %v170_v30 = vld [vmem:[%s29516_s0 + $0x418] sm:$0xff]  ;;  %v169_v33 = vld [vmem:[%s29516_s0 + $0x410] sm:$0xff]  ;;  %v23114_v37 = vld [vmem:[%s29515_s1 + $0x2148] sm:$0xff]  }
 0x3fd   :  { %21117 = vmatpush3.bf16.msra.mxu1 %v23073_v32  ;;  %v376_v31 = vpack.c.bf16 %v170_v30, %v170_v30  ;;  %v23111_v32 = vld [vmem:[%s29515_s1 + $0x2100] sm:$0xff]   ;;  %v23148_v27 = vld [vmem:[%s29515_s1 + $0x22c8] sm:$0xff]   ;;  %v23151_v30 = vld [vmem:[%s29515_s1 + $0x2210] sm:$0xff]  }
 0x3fe   :  { %21118 = vmatprep.subr.bf16.mxu1 %v23076_v35  ;;  %v23112_v35 = vld [vmem:[%s29515_s1 + $0x21c0] sm:$0xff]  }
 0x3ff   :  { %21097 = vmatpush3.bf16.msra.mxu0 %v23075_v34  ;;  %v375_v34 = vpack.c.bf16 %v169_v33, %v169_v33  ;;  %v23154_v33 = vld [vmem:[%s29515_s1 + $0x2258] sm:$0xff]  }
 0x400   :  { %21126 = vmatprep.subr.bf16.mxu0 %v23078_v41  ;;  %v23118_v41 = vld [vmem:[%s29515_s1 + $0x2150] sm:$0xff]  }
 0x401   :  { %21119 = vmatpush3.bf16.msra.mxu1 %v23077_v38  ;;  %v23115_v38 = vld [vmem:[%s29515_s1 + $0x2108] sm:$0xff]  }
 0x402   :  { %16106 = vmatmul.mubr.bf16.vlgmr.msra.gmra.mrb[124].mxu0 %v369_v40  ;;  %21148 = vmatprep.subr.bf16.mxu1 %v23080_v47  ;;  %v23117_v40 = vld [vmem:[%s29515_s1 + $0x2188] sm:$0xff]   ;;  %v23123_v47 = vld [vmem:[%s29515_s1 + $0x2118] sm:$0xff]  }
 0x403   :  { %21127 = vmatpush3.bf16.msra.mxu0 %v23079_v44  ;;  %v23121_v44 = vld [vmem:[%s29515_s1 + $0x2190] sm:$0xff]  }
 0x404   :  { %16146 = vmatmul.mubr.bf16.vlgmr.msra.gmra.mrb[124].mxu1 %v371_v46  ;;  %21128 = vmatprep.subr.bf16.mxu0 %v23082_v49  ;;  %v23124_v49 = vld [vmem:[%s29515_s1 + $0x21d8] sm:$0xff]  }
 0x405   :  { %21149 = vmatpush3.bf16.msra.mxu1 %v23081_v48  ;;  %16225 = vmatprep.mubr.bf16.mxu1 %v376_v31  ;;  %v23152_v31 = vld [vmem:[%s29515_s1 + $0x22d0] sm:$0xff]  }
 0x406   :  { %21150 = vmatprep.subr.bf16.mxu1 %v23084_v51 }
 0x407   :  { %21129 = vmatpush3.bf16.msra.mxu0 %v23083_v50 }
 0x408   :  { %21130 = vmatprep.subr.bf16.mxu0 %v23086_v53 }
 0x409   :  { %21151 = vmatpush3.bf16.msra.mxu1 %v23085_v52  ;;  %v23125_v52 = vld [vmem:[%s29515_s1 + $0x2198] sm:$0xff]  }
 0x40a   :  { %21152 = vmatprep.subr.bf16.mxu1 %v23088_v55 }
 0x40b   :  { %21131 = vmatpush3.bf16.msra.mxu0 %v23087_v54  ;;  %v23126_v54 = vld [vmem:[%s29515_s1 + $0x2160] sm:$0xff]  }
 0x40c   :  { %21132 = vmatprep.subr.bf16.mxu0 %v23090_v57  ;;  %v23127_v57 = vld [vmem:[%s29515_s1 + $0x2120] sm:$0xff]  }
 0x40d   :  { %21153 = vmatpush3.bf16.msra.mxu1 %v23089_v56 }
 0x40e   :  { %21154 = vmatprep.subr.bf16.mxu1 %v23092_v60 }
 0x40f   :  { %21133 = vmatpush3.bf16.msra.mxu0 %v23091_v58 }
 0x410   :  { %21134 = vmatprep.subr.bf16.mxu0 %v23094_v1 }
 0x411   :  { %21155 = vmatpush3.bf16.msra.mxu1 %v23093_v62  ;;  %v23129_v62 = vld [vmem:[%s29515_s1 + $0x21a0] sm:$0xff]  }
 0x412   :  { %21156 = vmatprep.subr.bf16.mxu1 %v23096_v6  ;;  %v23135_v6 = vld [vmem:[%s29515_s1 + $0x2130] sm:$0xff]  }
 0x413   :  { %21135 = vmatpush3.bf16.msra.mxu0 %v23095_v3  ;;  %v23132_v3 = vld [vmem:[%s29515_s1 + $0x21e8] sm:$0xff]  }
 0x414   :  { %21136 = vmatprep.subr.bf16.mxu0 %v23098_v11  ;;  %v23140_v11 = vld [vmem:[%s29515_s1 + $0x21f8] sm:$0xff]  }
 0x415   :  { %v20834_v59 = vpop.f32.mrb[100].mxu0  ;;  %21157 = vmatpush3.bf16.msra.mxu1 %v23097_v8  ;;  %v23137_v8 = vld [vmem:[%s29515_s1 + $0x21b0] sm:$0xff]  }
 0x416   :  { %v20835_v61 = vpop.f32.mrb[101].mxu0  ;;  %21158 = vmatprep.subr.bf16.mxu1 %v23100_v15  ;;  %v171_v15 = vld [vmem:[%s29516_s0 + $0x420] sm:$0xff] }
 0x417   :  { %v20836_v63 = vadd.f32 %v20835_v61, %v20834_v59  ;;  %v20837_v0 = vpop.f32.mrb[102].mxu0  ;;  %v20856_v2 = vpop.f32.mrb[100].mxu1  ;;  %21137 = vmatpush3.bf16.msra.mxu0 %v23099_v13  ;;  %v23128_v59 = vld [vmem:[%s29515_s1 + $0x21e0] sm:$0xff]  }
 0x418   :  { %v20838_v5 = vpop.f32.mrb[103].mxu0  ;;  %v20857_v7 = vpop.f32.mrb[101].mxu1  ;;  %21138 = vmatprep.subr.bf16.mxu0 %v23102_v17  ;;  %v23130_v0 = vld [vmem:[%s29515_s1 + $0x2168] sm:$0xff]   ;;  %v23142_v17 = vld [vmem:[%s29515_s1 + $0x2240] sm:$0xff]  }
 0x419   :  { %v15628_v4 = vadd.f32 %v20836_v63, %v27249_v25  ;;  %v20858_v9 = vadd.f32 %v20857_v7, %v20856_v2  ;;  %v20859_v10 = vpop.f32.mrb[102].mxu1  ;;  %21159 = vmatpush3.bf16.msra.mxu1 %v23101_v16  ;;  %v374_v25 = vpack.c.bf16 %v168_v24, %v168_v24  ;;  %v23131_v2 = vld [vmem:[%s29515_s1 + $0x2128] sm:$0xff]   ;;  %v23134_v5 = vld [vmem:[%s29515_s1 + $0x2170] sm:$0xff]   ;;  %v377_v16 = vpack.c.bf16 %v171_v15, %v171_v15  ;;  %v23145_v24 = vld [vmem:[%s29515_s1 + $0x2280] sm:$0xff]  }
 0x41a   :  { %v20860_v12 = vpop.f32.mrb[103].mxu1  ;;  %21160 = vmatprep.subr.bf16.mxu1 %v23104_v19  ;;  %v23136_v7 = vld [vmem:[%s29515_s1 + $0x21f0] sm:$0xff]   ;;  %v23139_v10 = vld [vmem:[%s29515_s1 + $0x2138] sm:$0xff]   ;;  %v23180_v15 = vld [vmem:[%s29515_s1 + $0x23c8] sm:$0xff]  }
 0x41b   :  { %v27363_v14 = vadd.f32 %v20858_v9, %v15628_v4  ;;  %21139 = vmatpush3.bf16.msra.mxu0 %v23103_v18  ;;  %16185 = vmatprep.mubr.bf16.mxu0 %v374_v25  ;;  %v23133_v4 = vld [vmem:[%s29515_s1 + $0x21a8] sm:$0xff]   ;;  %v23138_v9 = vld [vmem:[%s29515_s1 + $0x2178] sm:$0xff]  }
 0x41c   :  { %21140 = vmatprep.subr.bf16.mxu0 %v23106_v21  ;;  %v172_v12 = vld [vmem:[%s29516_s0 + $0x428] sm:$0xff]  ;;  %v174_v18 = vld [vmem:[%s29516_s0 + $0x438] sm:$0xff]  ;;  %v173_v21 = vld [vmem:[%s29516_s0 + $0x430] sm:$0xff] }
 0x41d   :  { %21161 = vmatpush3.bf16.msra.mxu1 %v23105_v20  ;;  %v378_v13 = vpack.c.bf16 %v172_v12, %v172_v12  ;;  %v380_v19 = vpack.c.bf16 %v174_v18, %v174_v18  ;;  %v23143_v20 = vld [vmem:[%s29515_s1 + $0x2200] sm:$0xff]   ;;  %v23146_v25 = vld [vmem:[%s29515_s1 + $0x2248] sm:$0xff]   ;;  %v23183_v18 = vld [vmem:[%s29515_s1 + $0x2310] sm:$0xff]  }
 0x41e   :  { %21162 = vmatprep.subr.bf16.mxu1 %v23108_v23  ;;  %v23144_v23 = vld [vmem:[%s29515_s1 + $0x22c0] sm:$0xff]  }
 0x41f   :  { %21141 = vmatpush3.bf16.msra.mxu0 %v23107_v22  ;;  %v379_v22 = vpack.c.bf16 %v173_v21, %v173_v21  ;;  %v23177_v12 = vld [vmem:[%s29515_s1 + $0x2380] sm:$0xff]   ;;  %v23186_v21 = vld [vmem:[%s29515_s1 + $0x2358] sm:$0xff]  }
 0x420   :  { %21170 = vmatprep.subr.bf16.mxu0 %v23110_v29  ;;  %v23150_v29 = vld [vmem:[%s29515_s1 + $0x2250] sm:$0xff]  }
 0x421   :  { %21163 = vmatpush3.bf16.msra.mxu1 %v23109_v26  ;;  %v23147_v26 = vld [vmem:[%s29515_s1 + $0x2208] sm:$0xff]  }
 0x422   :  { %16186 = vmatmul.mubr.bf16.vlgmr.msra.gmra.mrb[128].mxu0 %v373_v28  ;;  %21192 = vmatprep.subr.bf16.mxu1 %v23112_v35  ;;  %v23149_v28 = vld [vmem:[%s29515_s1 + $0x2288] sm:$0xff]   ;;  %v23155_v35 = vld [vmem:[%s29515_s1 + $0x2218] sm:$0xff]  }
 0x423   :  { %21171 = vmatpush3.bf16.msra.mxu0 %v23111_v32  ;;  %16265 = vmatprep.mubr.bf16.mxu0 %v378_v13  ;;  %v23153_v32 = vld [vmem:[%s29515_s1 + $0x2290] sm:$0xff]   ;;  %v23178_v13 = vld [vmem:[%s29515_s1 + $0x2348] sm:$0xff]  }
 0x424   :  { %16226 = vmatmul.mubr.bf16.vlgmr.msra.gmra.mrb[128].mxu1 %v375_v34  ;;  %21172 = vmatprep.subr.bf16.mxu0 %v23114_v37  ;;  %v23156_v37 = vld [vmem:[%s29515_s1 + $0x22d8] sm:$0xff]  }
 0x425   :  { %21193 = vmatpush3.bf16.msra.mxu1 %v23113_v36  ;;  %16305 = vmatprep.mubr.bf16.mxu1 %v380_v19  ;;  %v23184_v19 = vld [vmem:[%s29515_s1 + $0x23d0] sm:$0xff]  }
 0x426   :  { %21194 = vmatprep.subr.bf16.mxu1 %v23116_v39 }
 0x427   :  { %21173 = vmatpush3.bf16.msra.mxu0 %v23115_v38 }
 0x428   :  { %21174 = vmatprep.subr.bf16.mxu0 %v23118_v41 }
 0x429   :  { %21195 = vmatpush3.bf16.msra.mxu1 %v23117_v40  ;;  %v23157_v40 = vld [vmem:[%s29515_s1 + $0x2298] sm:$0xff]  }
 0x42a   :  { %21196 = vmatprep.subr.bf16.mxu1 %v23120_v43 }
 0x42b   :  { %21175 = vmatpush3.bf16.msra.mxu0 %v23119_v42  ;;  %v23158_v42 = vld [vmem:[%s29515_s1 + $0x2260] sm:$0xff]  }
 0x42c   :  { %21176 = vmatprep.subr.bf16.mxu0 %v23122_v45  ;;  %v23159_v45 = vld [vmem:[%s29515_s1 + $0x2220] sm:$0xff]  }
 0x42d   :  { %21197 = vmatpush3.bf16.msra.mxu1 %v23121_v44 }
 0x42e   :  { %21198 = vmatprep.subr.bf16.mxu1 %v23124_v49 }
 0x42f   :  { %21177 = vmatpush3.bf16.msra.mxu0 %v23123_v47  ;;  %v23160_v47 = vld [vmem:[%s29515_s1 + $0x22e0] sm:$0xff]  }
 0x430   :  { %21178 = vmatprep.subr.bf16.mxu0 %v23126_v54  ;;  %v23163_v54 = vld [vmem:[%s29515_s1 + $0x2228] sm:$0xff]  }
 0x431   :  { %21199 = vmatpush3.bf16.msra.mxu1 %v23125_v52  ;;  %v23162_v52 = vld [vmem:[%s29515_s1 + $0x2268] sm:$0xff]  }
 0x432   :  { %21200 = vmatprep.subr.bf16.mxu1 %v23128_v59  ;;  %v23168_v59 = vld [vmem:[%s29515_s1 + $0x22f0] sm:$0xff]  }
 0x433   :  { %21179 = vmatpush3.bf16.msra.mxu0 %v23127_v57  ;;  %v23166_v57 = vld [vmem:[%s29515_s1 + $0x2270] sm:$0xff]  }
 0x434   :  { %21180 = vmatprep.subr.bf16.mxu0 %v23130_v0  ;;  %v176_v0 = vld [vmem:[%s29516_s0 + $0x448] sm:$0xff] }
 0x435   :  { %v20878_v46 = vpop.f32.mrb[104].mxu0  ;;  %21201 = vmatpush3.bf16.msra.mxu1 %v23129_v62  ;;  %v23171_v62 = vld [vmem:[%s29515_s1 + $0x2238] sm:$0xff]  }
 0x436   :  { %v20879_v48 = vpop.f32.mrb[105].mxu0  ;;  %21202 = vmatprep.subr.bf16.mxu1 %v23132_v3  ;;  %v175_v3 = vld [vmem:[%s29516_s0 + $0x440] sm:$0xff] }
 0x437   :  { %v20880_v50 = vadd.f32 %v20879_v48, %v20878_v46  ;;  %v20881_v51 = vpop.f32.mrb[106].mxu0  ;;  %v20900_v53 = vpop.f32.mrb[104].mxu1  ;;  %21181 = vmatpush3.bf16.msra.mxu0 %v23131_v2  ;;  %v23173_v2 = vld [vmem:[%s29515_s1 + $0x22b8] sm:$0xff]  }
 0x438   :  { %v20882_v56 = vpop.f32.mrb[107].mxu0  ;;  %v20901_v58 = vpop.f32.mrb[105].mxu1  ;;  %21182 = vmatprep.subr.bf16.mxu0 %v23134_v5  ;;  %v23174_v5 = vld [vmem:[%s29515_s1 + $0x2340] sm:$0xff]  }
 0x439   :  { %v15708_v55 = vadd.f32 %v20880_v50, %v27363_v14  ;;  %v20902_v60 = vadd.f32 %v20901_v58, %v20900_v53  ;;  %v20903_v61 = vpop.f32.mrb[106].mxu1  ;;  %21203 = vmatpush3.bf16.msra.mxu1 %v23133_v4  ;;  %v23141_v14 = vld [vmem:[%s29515_s1 + $0x21b8] sm:$0xff]   ;;  %v23161_v50 = vld [vmem:[%s29515_s1 + $0x22a0] sm:$0xff]   ;;  %v23165_v56 = vld [vmem:[%s29515_s1 + $0x22a8] sm:$0xff]   ;;  %v381_v4 = vpack.c.bf16 %v175_v3, %v175_v3 }
 0x43a   :  { %v20904_v63 = vpop.f32.mrb[107].mxu1  ;;  %21204 = vmatprep.subr.bf16.mxu1 %v23136_v7  ;;  %v23167_v58 = vld [vmem:[%s29515_s1 + $0x2230] sm:$0xff]   ;;  %v23170_v61 = vld [vmem:[%s29515_s1 + $0x2278] sm:$0xff]   ;;  %v23212_v3 = vld [vmem:[%s29515_s1 + $0x24c8] sm:$0xff]  }
 0x43b   :  { %v27471_v1 = vadd.f32 %v20902_v60, %v15708_v55  ;;  %21183 = vmatpush3.bf16.msra.mxu0 %v23135_v6  ;;  %v23164_v55 = vld [vmem:[%s29515_s1 + $0x22e8] sm:$0xff]   ;;  %v23169_v60 = vld [vmem:[%s29515_s1 + $0x22b0] sm:$0xff]   ;;  %v23172_v63 = vld [vmem:[%s29515_s1 + $0x22f8] sm:$0xff]  }
 0x43c   :  { %21184 = vmatprep.subr.bf16.mxu0 %v23138_v9  ;;  %v178_v6 = vld [vmem:[%s29516_s0 + $0x458] sm:$0xff]  ;;  %v177_v9 = vld [vmem:[%s29516_s0 + $0x450] sm:$0xff] }
 0x43d   :  { %21205 = vmatpush3.bf16.msra.mxu1 %v23137_v8  ;;  %v384_v7 = vpack.c.bf16 %v178_v6, %v178_v6  ;;  %v23175_v8 = vld [vmem:[%s29515_s1 + $0x2300] sm:$0xff]   ;;  %v23215_v6 = vld [vmem:[%s29515_s1 + $0x2410] sm:$0xff]  }
 0x43e   :  { %21206 = vmatprep.subr.bf16.mxu1 %v23140_v11  ;;  %v23176_v11 = vld [vmem:[%s29515_s1 + $0x23c0] sm:$0xff]  }
 0x43f   :  { %21185 = vmatpush3.bf16.msra.mxu0 %v23139_v10  ;;  %v383_v10 = vpack.c.bf16 %v177_v9, %v177_v9  ;;  %v23218_v9 = vld [vmem:[%s29515_s1 + $0x2458] sm:$0xff]  }
 0x440   :  { %21214 = vmatprep.subr.bf16.mxu0 %v23142_v17  ;;  %v23182_v17 = vld [vmem:[%s29515_s1 + $0x2350] sm:$0xff]  }
 0x441   :  { %21207 = vmatpush3.bf16.msra.mxu1 %v23141_v14  ;;  %v23179_v14 = vld [vmem:[%s29515_s1 + $0x2308] sm:$0xff]  }
 0x442   :  { %16266 = vmatmul.mubr.bf16.vlgmr.msra.gmra.mrb[132].mxu0 %v377_v16  ;;  %21236 = vmatprep.subr.bf16.mxu1 %v23144_v23  ;;  %v23181_v16 = vld [vmem:[%s29515_s1 + $0x2388] sm:$0xff]  }
 0x443   :  { %21215 = vmatpush3.bf16.msra.mxu0 %v23143_v20  ;;  %v23185_v20 = vld [vmem:[%s29515_s1 + $0x2390] sm:$0xff]  }
 0x444   :  { %16306 = vmatmul.mubr.bf16.vlgmr.msra.gmra.mrb[132].mxu1 %v379_v22  ;;  %21216 = vmatprep.subr.bf16.mxu0 %v23146_v25  ;;  %v23187_v22 = vld [vmem:[%s29515_s1 + $0x2318] sm:$0xff]  }
 0x445   :  { %21237 = vmatpush3.bf16.msra.mxu1 %v23145_v24  ;;  %16385 = vmatprep.mubr.bf16.mxu1 %v384_v7  ;;  %v23188_v24 = vld [vmem:[%s29515_s1 + $0x23d8] sm:$0xff]   ;;  %v23216_v7 = vld [vmem:[%s29515_s1 + $0x24d0] sm:$0xff]  }
 0x446   :  { %21238 = vmatprep.subr.bf16.mxu1 %v23148_v27 }
 0x447   :  { %21217 = vmatpush3.bf16.msra.mxu0 %v23147_v26  ;;  %v23189_v26 = vld [vmem:[%s29515_s1 + $0x2398] sm:$0xff]  }
 0x448   :  { %21218 = vmatprep.subr.bf16.mxu0 %v23150_v29  ;;  %v23190_v29 = vld [vmem:[%s29515_s1 + $0x2360] sm:$0xff]  }
 0x449   :  { %21239 = vmatpush3.bf16.msra.mxu1 %v23149_v28 }
 0x44a   :  { %21240 = vmatprep.subr.bf16.mxu1 %v23152_v31  ;;  %v23191_v31 = vld [vmem:[%s29515_s1 + $0x2320] sm:$0xff]  }
 0x44b   :  { %21219 = vmatpush3.bf16.msra.mxu0 %v23151_v30 }
 0x44c   :  { %21220 = vmatprep.subr.bf16.mxu0 %v23154_v33 }
 0x44d   :  { %21241 = vmatpush3.bf16.msra.mxu1 %v23153_v32 }
 0x44e   :  { %21242 = vmatprep.subr.bf16.mxu1 %v23156_v37 }
 0x44f   :  { %21221 = vmatpush3.bf16.msra.mxu0 %v23155_v35 }
 0x450   :  { %21222 = vmatprep.subr.bf16.mxu0 %v23158_v42 }
 0x451   :  { %21243 = vmatpush3.bf16.msra.mxu1 %v23157_v40 }
 0x452   :  { %21244 = vmatprep.subr.bf16.mxu1 %v23160_v47  ;;  %v23200_v47 = vld [vmem:[%s29515_s1 + $0x23f0] sm:$0xff]  }
 0x453   :  { %21223 = vmatpush3.bf16.msra.mxu0 %v23159_v45  ;;  %v23198_v45 = vld [vmem:[%s29515_s1 + $0x2370] sm:$0xff]  }
 0x454   :  { %21224 = vmatprep.subr.bf16.mxu0 %v23162_v52  ;;  %v180_v52 = vld [vmem:[%s29516_s0 + $0x468] sm:$0xff] }
 0x455   :  { %v20922_v34 = vpop.f32.mrb[108].mxu0  ;;  %21245 = vmatpush3.bf16.msra.mxu1 %v23161_v50  ;;  %v23203_v50 = vld [vmem:[%s29515_s1 + $0x2338] sm:$0xff]  }
 0x456   :  { %v20923_v36 = vpop.f32.mrb[109].mxu0  ;;  %21246 = vmatprep.subr.bf16.mxu1 %v23164_v55  ;;  %v179_v55 = vld [vmem:[%s29516_s0 + $0x460] sm:$0xff] }
 0x457   :  { %v20924_v38 = vadd.f32 %v20923_v36, %v20922_v34  ;;  %v20925_v39 = vpop.f32.mrb[110].mxu0  ;;  %v20944_v41 = vpop.f32.mrb[108].mxu1  ;;  %21225 = vmatpush3.bf16.msra.mxu0 %v23163_v54  ;;  %v23192_v34 = vld [vmem:[%s29515_s1 + $0x23e0] sm:$0xff]   ;;  %v23205_v54 = vld [vmem:[%s29515_s1 + $0x23b8] sm:$0xff]  }
 0x458   :  { %v20926_v44 = vpop.f32.mrb[111].mxu0  ;;  %v20945_v46 = vpop.f32.mrb[109].mxu1  ;;  %21226 = vmatprep.subr.bf16.mxu0 %v23166_v57  ;;  %v23193_v36 = vld [vmem:[%s29515_s1 + $0x23a0] sm:$0xff]   ;;  %v23194_v39 = vld [vmem:[%s29515_s1 + $0x2368] sm:$0xff]  }
 0x459   :  { %v15788_v43 = vadd.f32 %v20924_v38, %v27471_v1  ;;  %v20946_v48 = vadd.f32 %v20945_v46, %v20944_v41  ;;  %v20947_v49 = vpop.f32.mrb[110].mxu1  ;;  %21247 = vmatpush3.bf16.msra.mxu1 %v23165_v56  ;;  %v382_v1 = vpack.c.bf16 %v176_v0, %v176_v0  ;;  %v23195_v41 = vld [vmem:[%s29515_s1 + $0x2328] sm:$0xff]   ;;  %v23199_v46 = vld [vmem:[%s29515_s1 + $0x2330] sm:$0xff]   ;;  %v385_v56 = vpack.c.bf16 %v179_v55, %v179_v55  ;;  %v23206_v57 = vld [vmem:[%s29515_s1 + $0x2440] sm:$0xff]  }
 0x45a   :  { %v20948_v51 = vpop.f32.mrb[111].mxu1  ;;  %21248 = vmatprep.subr.bf16.mxu1 %v23168_v59  ;;  %v23197_v44 = vld [vmem:[%s29515_s1 + $0x23a8] sm:$0xff]   ;;  %v23202_v49 = vld [vmem:[%s29515_s1 + $0x2378] sm:$0xff]   ;;  %v23209_v0 = vld [vmem:[%s29515_s1 + $0x2480] sm:$0xff]  }
 0x45b   :  { %v27582_v53 = vadd.f32 %v20946_v48, %v15788_v43  ;;  %21227 = vmatpush3.bf16.msra.mxu0 %v23167_v58  ;;  %16345 = vmatprep.mubr.bf16.mxu0 %v382_v1  ;;  %v23196_v43 = vld [vmem:[%s29515_s1 + $0x23e8] sm:$0xff]   ;;  %v23201_v48 = vld [vmem:[%s29515_s1 + $0x23b0] sm:$0xff]   ;;  %v23204_v51 = vld [vmem:[%s29515_s1 + $0x23f8] sm:$0xff]  }
 0x45c   :  { %21228 = vmatprep.subr.bf16.mxu0 %v23170_v61  ;;  %v182_v58 = vld [vmem:[%s29516_s0 + $0x478] sm:$0xff]  ;;  %v181_v61 = vld [vmem:[%s29516_s0 + $0x470] sm:$0xff]  ;;  %v23210_v1 = vld [vmem:[%s29515_s1 + $0x2448] sm:$0xff]  }
 0x45d   :  { %21249 = vmatpush3.bf16.msra.mxu1 %v23169_v60  ;;  %v388_v59 = vpack.c.bf16 %v182_v58, %v182_v58  ;;  %v23207_v60 = vld [vmem:[%s29515_s1 + $0x2400] sm:$0xff]   ;;  %v23244_v55 = vld [vmem:[%s29515_s1 + $0x25c8] sm:$0xff]   ;;  %v23247_v58 = vld [vmem:[%s29515_s1 + $0x2510] sm:$0xff]  }
 0x45e   :  { %21250 = vmatprep.subr.bf16.mxu1 %v23172_v63  ;;  %v23208_v63 = vld [vmem:[%s29515_s1 + $0x24c0] sm:$0xff]  }
 0x45f   :  { %21229 = vmatpush3.bf16.msra.mxu0 %v23171_v62  ;;  %v387_v62 = vpack.c.bf16 %v181_v61, %v181_v61  ;;  %v23250_v61 = vld [vmem:[%s29515_s1 + $0x2558] sm:$0xff]  }
 0x460   :  { %21258 = vmatprep.subr.bf16.mxu0 %v23174_v5  ;;  %v23214_v5 = vld [vmem:[%s29515_s1 + $0x2450] sm:$0xff]  }
 0x461   :  { %21251 = vmatpush3.bf16.msra.mxu1 %v23173_v2  ;;  %v23211_v2 = vld [vmem:[%s29515_s1 + $0x2408] sm:$0xff]  }
 0x462   :  { %16346 = vmatmul.mubr.bf16.vlgmr.msra.gmra.mrb[136].mxu0 %v381_v4  ;;  %21280 = vmatprep.subr.bf16.mxu1 %v23176_v11  ;;  %v23213_v4 = vld [vmem:[%s29515_s1 + $0x2488] sm:$0xff]   ;;  %v23219_v11 = vld [vmem:[%s29515_s1 + $0x2418] sm:$0xff]  }
 0x463   :  { %21259 = vmatpush3.bf16.msra.mxu0 %v23175_v8  ;;  %v23217_v8 = vld [vmem:[%s29515_s1 + $0x2490] sm:$0xff]  }
 0x464   :  { %16386 = vmatmul.mubr.bf16.vlgmr.msra.gmra.mrb[136].mxu1 %v383_v10  ;;  %21260 = vmatprep.subr.bf16.mxu0 %v23178_v13  ;;  %v23220_v13 = vld [vmem:[%s29515_s1 + $0x24d8] sm:$0xff]  }
 0x465   :  { %21281 = vmatpush3.bf16.msra.mxu1 %v23177_v12  ;;  %16465 = vmatprep.mubr.bf16.mxu1 %v388_v59  ;;  %v23248_v59 = vld [vmem:[%s29515_s1 + $0x25d0] sm:$0xff]  }
 0x466   :  { %21282 = vmatprep.subr.bf16.mxu1 %v23180_v15 }
 0x467   :  { %21261 = vmatpush3.bf16.msra.mxu0 %v23179_v14 }
 0x468   :  { %21262 = vmatprep.subr.bf16.mxu0 %v23182_v17 }
 0x469   :  { %21283 = vmatpush3.bf16.msra.mxu1 %v23181_v16  ;;  %v23221_v16 = vld [vmem:[%s29515_s1 + $0x2498] sm:$0xff]  }
 0x46a   :  { %21284 = vmatprep.subr.bf16.mxu1 %v23184_v19 }
 0x46b   :  { %21263 = vmatpush3.bf16.msra.mxu0 %v23183_v18  ;;  %v23222_v18 = vld [vmem:[%s29515_s1 + $0x2460] sm:$0xff]  }
 0x46c   :  { %21264 = vmatprep.subr.bf16.mxu0 %v23186_v21  ;;  %v23223_v21 = vld [vmem:[%s29515_s1 + $0x2420] sm:$0xff]  }
 0x46d   :  { %21285 = vmatpush3.bf16.msra.mxu1 %v23185_v20 }
 0x46e   :  { %21286 = vmatprep.subr.bf16.mxu1 %v23188_v24 }
 0x46f   :  { %21265 = vmatpush3.bf16.msra.mxu0 %v23187_v22 }
 0x470   :  { %21266 = vmatprep.subr.bf16.mxu0 %v23190_v29 }
 0x471   :  { %21287 = vmatpush3.bf16.msra.mxu1 %v23189_v26  ;;  %v23225_v26 = vld [vmem:[%s29515_s1 + $0x24a0] sm:$0xff]  }
 0x472   :  { %21288 = vmatprep.subr.bf16.mxu1 %v23192_v34  ;;  %v23231_v34 = vld [vmem:[%s29515_s1 + $0x2430] sm:$0xff]  }
 0x473   :  { %21267 = vmatpush3.bf16.msra.mxu0 %v23191_v31  ;;  %v23228_v31 = vld [vmem:[%s29515_s1 + $0x24e8] sm:$0xff]  }
 0x474   :  { %21268 = vmatprep.subr.bf16.mxu0 %v23194_v39  ;;  %v23236_v39 = vld [vmem:[%s29515_s1 + $0x24f8] sm:$0xff]  }
 0x475   :  { %v20966_v23 = vpop.f32.mrb[112].mxu0  ;;  %21289 = vmatpush3.bf16.msra.mxu1 %v23193_v36  ;;  %v23233_v36 = vld [vmem:[%s29515_s1 + $0x24b0] sm:$0xff]  }
 0x476   :  { %v20967_v25 = vpop.f32.mrb[113].mxu0  ;;  %21290 = vmatprep.subr.bf16.mxu1 %v23196_v43  ;;  %v183_v43 = vld [vmem:[%s29516_s0 + $0x480] sm:$0xff] }
 0x477   :  { %v20968_v27 = vadd.f32 %v20967_v25, %v20966_v23  ;;  %v20969_v28 = vpop.f32.mrb[114].mxu0  ;;  %v20988_v30 = vpop.f32.mrb[112].mxu1  ;;  %21269 = vmatpush3.bf16.msra.mxu0 %v23195_v41  ;;  %v23224_v23 = vld [vmem:[%s29515_s1 + $0x24e0] sm:$0xff]  }
 0x478   :  { %v20970_v33 = vpop.f32.mrb[115].mxu0  ;;  %v20989_v35 = vpop.f32.mrb[113].mxu1  ;;  %21270 = vmatprep.subr.bf16.mxu0 %v23198_v45  ;;  %v23226_v28 = vld [vmem:[%s29515_s1 + $0x2468] sm:$0xff]   ;;  %v23238_v45 = vld [vmem:[%s29515_s1 + $0x2540] sm:$0xff]  }
 0x479   :  { %v15868_v32 = vadd.f32 %v20968_v27, %v27582_v53  ;;  %v20990_v37 = vadd.f32 %v20989_v35, %v20988_v30  ;;  %v20991_v38 = vpop.f32.mrb[114].mxu1  ;;  %21291 = vmatpush3.bf16.msra.mxu1 %v23197_v44  ;;  %v386_v53 = vpack.c.bf16 %v180_v52, %v180_v52  ;;  %v23227_v30 = vld [vmem:[%s29515_s1 + $0x2428] sm:$0xff]   ;;  %v23230_v33 = vld [vmem:[%s29515_s1 + $0x2470] sm:$0xff]   ;;  %v389_v44 = vpack.c.bf16 %v183_v43, %v183_v43  ;;  %v23241_v52 = vld [vmem:[%s29515_s1 + $0x2580] sm:$0xff]  }
 0x47a   :  { %v20992_v40 = vpop.f32.mrb[115].mxu1  ;;  %21292 = vmatprep.subr.bf16.mxu1 %v23200_v47  ;;  %v23232_v35 = vld [vmem:[%s29515_s1 + $0x24f0] sm:$0xff]   ;;  %v23235_v38 = vld [vmem:[%s29515_s1 + $0x2438] sm:$0xff]   ;;  %v23276_v43 = vld [vmem:[%s29515_s1 + $0x26c8] sm:$0xff]  }
 0x47b   :  { %v27696_v42 = vadd.f32 %v20990_v37, %v15868_v32  ;;  %21271 = vmatpush3.bf16.msra.mxu0 %v23199_v46  ;;  %16425 = vmatprep.mubr.bf16.mxu0 %v386_v53  ;;  %v23229_v32 = vld [vmem:[%s29515_s1 + $0x24a8] sm:$0xff]   ;;  %v23234_v37 = vld [vmem:[%s29515_s1 + $0x2478] sm:$0xff]  }
 0x47c   :  { %21272 = vmatprep.subr.bf16.mxu0 %v23202_v49  ;;  %v184_v40 = vld [vmem:[%s29516_s0 + $0x488] sm:$0xff]  ;;  %v186_v46 = vld [vmem:[%s29516_s0 + $0x498] sm:$0xff]  ;;  %v185_v49 = vld [vmem:[%s29516_s0 + $0x490] sm:$0xff] }
 0x47d   :  { %21293 = vmatpush3.bf16.msra.mxu1 %v23201_v48  ;;  %v390_v41 = vpack.c.bf16 %v184_v40, %v184_v40  ;;  %v392_v47 = vpack.c.bf16 %v186_v46, %v186_v46  ;;  %v23239_v48 = vld [vmem:[%s29515_s1 + $0x2500] sm:$0xff]   ;;  %v23242_v53 = vld [vmem:[%s29515_s1 + $0x2548] sm:$0xff]   ;;  %v23279_v46 = vld [vmem:[%s29515_s1 + $0x2610] sm:$0xff]  }
 0x47e   :  { %21294 = vmatprep.subr.bf16.mxu1 %v23204_v51  ;;  %v23240_v51 = vld [vmem:[%s29515_s1 + $0x25c0] sm:$0xff]  }
 0x47f   :  { %21273 = vmatpush3.bf16.msra.mxu0 %v23203_v50  ;;  %v391_v50 = vpack.c.bf16 %v185_v49, %v185_v49  ;;  %v23273_v40 = vld [vmem:[%s29515_s1 + $0x2680] sm:$0xff]   ;;  %v23282_v49 = vld [vmem:[%s29515_s1 + $0x2658] sm:$0xff]  }
 0x480   :  { %21302 = vmatprep.subr.bf16.mxu0 %v23206_v57  ;;  %v23246_v57 = vld [vmem:[%s29515_s1 + $0x2550] sm:$0xff]  }
 0x481   :  { %21295 = vmatpush3.bf16.msra.mxu1 %v23205_v54  ;;  %v23243_v54 = vld [vmem:[%s29515_s1 + $0x2508] sm:$0xff]  }
 0x482   :  { %16426 = vmatmul.mubr.bf16.vlgmr.msra.gmra.mrb[140].mxu0 %v385_v56  ;;  %21324 = vmatprep.subr.bf16.mxu1 %v23208_v63  ;;  %v23245_v56 = vld [vmem:[%s29515_s1 + $0x2588] sm:$0xff]   ;;  %v23251_v63 = vld [vmem:[%s29515_s1 + $0x2518] sm:$0xff]  }
 0x483   :  { %21303 = vmatpush3.bf16.msra.mxu0 %v23207_v60  ;;  %16505 = vmatprep.mubr.bf16.mxu0 %v390_v41  ;;  %v23249_v60 = vld [vmem:[%s29515_s1 + $0x2590] sm:$0xff]   ;;  %v23274_v41 = vld [vmem:[%s29515_s1 + $0x2648] sm:$0xff]  }
 0x484   :  { %16466 = vmatmul.mubr.bf16.vlgmr.msra.gmra.mrb[140].mxu1 %v387_v62  ;;  %21304 = vmatprep.subr.bf16.mxu0 %v23210_v1  ;;  %v23252_v1 = vld [vmem:[%s29515_s1 + $0x25d8] sm:$0xff]  }
 0x485   :  { %21325 = vmatpush3.bf16.msra.mxu1 %v23209_v0  ;;  %16545 = vmatprep.mubr.bf16.mxu1 %v392_v47  ;;  %v23280_v47 = vld [vmem:[%s29515_s1 + $0x26d0] sm:$0xff]  }
 0x486   :  { %21326 = vmatprep.subr.bf16.mxu1 %v23212_v3 }
 0x487   :  { %21305 = vmatpush3.bf16.msra.mxu0 %v23211_v2 }
 0x488   :  { %21306 = vmatprep.subr.bf16.mxu0 %v23214_v5 }
 0x489   :  { %21327 = vmatpush3.bf16.msra.mxu1 %v23213_v4  ;;  %v23253_v4 = vld [vmem:[%s29515_s1 + $0x2598] sm:$0xff]  }
 0x48a   :  { %21328 = vmatprep.subr.bf16.mxu1 %v23216_v7 }
 0x48b   :  { %21307 = vmatpush3.bf16.msra.mxu0 %v23215_v6  ;;  %v23254_v6 = vld [vmem:[%s29515_s1 + $0x2560] sm:$0xff]  }
 0x48c   :  { %21308 = vmatprep.subr.bf16.mxu0 %v23218_v9  ;;  %v23255_v9 = vld [vmem:[%s29515_s1 + $0x2520] sm:$0xff]  }
 0x48d   :  { %21329 = vmatpush3.bf16.msra.mxu1 %v23217_v8 }
 0x48e   :  { %21330 = vmatprep.subr.bf16.mxu1 %v23220_v13 }
 0x48f   :  { %21309 = vmatpush3.bf16.msra.mxu0 %v23219_v11  ;;  %v23256_v11 = vld [vmem:[%s29515_s1 + $0x25e0] sm:$0xff]  }
 0x490   :  { %21310 = vmatprep.subr.bf16.mxu0 %v23222_v18  ;;  %v23259_v18 = vld [vmem:[%s29515_s1 + $0x2528] sm:$0xff]  }
 0x491   :  { %21331 = vmatpush3.bf16.msra.mxu1 %v23221_v16  ;;  %v23258_v16 = vld [vmem:[%s29515_s1 + $0x2568] sm:$0xff]  }
 0x492   :  { %21332 = vmatprep.subr.bf16.mxu1 %v23224_v23  ;;  %v23264_v23 = vld [vmem:[%s29515_s1 + $0x25f0] sm:$0xff]  }
 0x493   :  { %21311 = vmatpush3.bf16.msra.mxu0 %v23223_v21  ;;  %v23262_v21 = vld [vmem:[%s29515_s1 + $0x2570] sm:$0xff]  }
 0x494   :  { %21312 = vmatprep.subr.bf16.mxu0 %v23226_v28  ;;  %v188_v28 = vld [vmem:[%s29516_s0 + $0x4a8] sm:$0xff] }
 0x495   :  { %v21010_v10 = vpop.f32.mrb[116].mxu0  ;;  %21333 = vmatpush3.bf16.msra.mxu1 %v23225_v26  ;;  %v23267_v26 = vld [vmem:[%s29515_s1 + $0x2538] sm:$0xff]  }
 0x496   :  { %v21011_v12 = vpop.f32.mrb[117].mxu0  ;;  %21334 = vmatprep.subr.bf16.mxu1 %v23228_v31  ;;  %v187_v31 = vld [vmem:[%s29516_s0 + $0x4a0] sm:$0xff] }
 0x497   :  { %v21012_v14 = vadd.f32 %v21011_v12, %v21010_v10  ;;  %v21013_v15 = vpop.f32.mrb[118].mxu0  ;;  %v21032_v17 = vpop.f32.mrb[116].mxu1  ;;  %21313 = vmatpush3.bf16.msra.mxu0 %v23227_v30  ;;  %v23269_v30 = vld [vmem:[%s29515_s1 + $0x25b8] sm:$0xff]  }
 0x498   :  { %v21014_v20 = vpop.f32.mrb[119].mxu0  ;;  %v21033_v22 = vpop.f32.mrb[117].mxu1  ;;  %21314 = vmatprep.subr.bf16.mxu0 %v23230_v33  ;;  %v23270_v33 = vld [vmem:[%s29515_s1 + $0x2640] sm:$0xff]  }
 0x499   :  { %v15948_v19 = vadd.f32 %v21012_v14, %v27696_v42  ;;  %v21034_v24 = vadd.f32 %v21033_v22, %v21032_v17  ;;  %v21035_v25 = vpop.f32.mrb[118].mxu1  ;;  %21335 = vmatpush3.bf16.msra.mxu1 %v23229_v32  ;;  %v23237_v42 = vld [vmem:[%s29515_s1 + $0x24b8] sm:$0xff]   ;;  %v23257_v14 = vld [vmem:[%s29515_s1 + $0x25a0] sm:$0xff]   ;;  %v23261_v20 = vld [vmem:[%s29515_s1 + $0x25a8] sm:$0xff]   ;;  %v393_v32 = vpack.c.bf16 %v187_v31, %v187_v31 }
 0x49a   :  { %v21036_v27 = vpop.f32.mrb[119].mxu1  ;;  %21336 = vmatprep.subr.bf16.mxu1 %v23232_v35  ;;  %v23263_v22 = vld [vmem:[%s29515_s1 + $0x2530] sm:$0xff]   ;;  %v23266_v25 = vld [vmem:[%s29515_s1 + $0x2578] sm:$0xff]   ;;  %v23308_v31 = vld [vmem:[%s29515_s1 + $0x27c8] sm:$0xff]  }
 0x49b   :  { %v27804_v29 = vadd.f32 %v21034_v24, %v15948_v19  ;;  %21315 = vmatpush3.bf16.msra.mxu0 %v23231_v34  ;;  %v23260_v19 = vld [vmem:[%s29515_s1 + $0x25e8] sm:$0xff]   ;;  %v23265_v24 = vld [vmem:[%s29515_s1 + $0x25b0] sm:$0xff]   ;;  %v23268_v27 = vld [vmem:[%s29515_s1 + $0x25f8] sm:$0xff]  }
 0x49c   :  { %21316 = vmatprep.subr.bf16.mxu0 %v23234_v37  ;;  %v190_v34 = vld [vmem:[%s29516_s0 + $0x4b8] sm:$0xff]  ;;  %v189_v37 = vld [vmem:[%s29516_s0 + $0x4b0] sm:$0xff] }
 0x49d   :  { %21337 = vmatpush3.bf16.msra.mxu1 %v23233_v36  ;;  %v396_v35 = vpack.c.bf16 %v190_v34, %v190_v34  ;;  %v23271_v36 = vld [vmem:[%s29515_s1 + $0x2600] sm:$0xff]   ;;  %v23311_v34 = vld [vmem:[%s29515_s1 + $0x2710] sm:$0xff]  }
 0x49e   :  { %21338 = vmatprep.subr.bf16.mxu1 %v23236_v39  ;;  %v23272_v39 = vld [vmem:[%s29515_s1 + $0x26c0] sm:$0xff]  }
 0x49f   :  { %21317 = vmatpush3.bf16.msra.mxu0 %v23235_v38  ;;  %v395_v38 = vpack.c.bf16 %v189_v37, %v189_v37  ;;  %v23314_v37 = vld [vmem:[%s29515_s1 + $0x2758] sm:$0xff]  }
 0x4a0   :  { %21346 = vmatprep.subr.bf16.mxu0 %v23238_v45  ;;  %v23278_v45 = vld [vmem:[%s29515_s1 + $0x2650] sm:$0xff]  }
 0x4a1   :  { %21339 = vmatpush3.bf16.msra.mxu1 %v23237_v42  ;;  %v23275_v42 = vld [vmem:[%s29515_s1 + $0x2608] sm:$0xff]  }
 0x4a2   :  { %16506 = vmatmul.mubr.bf16.vlgmr.msra.gmra.mrb[144].mxu0 %v389_v44  ;;  %21368 = vmatprep.subr.bf16.mxu1 %v23240_v51  ;;  %v23277_v44 = vld [vmem:[%s29515_s1 + $0x2688] sm:$0xff]  }
 0x4a3   :  { %21347 = vmatpush3.bf16.msra.mxu0 %v23239_v48  ;;  %v23281_v48 = vld [vmem:[%s29515_s1 + $0x2690] sm:$0xff]  }
 0x4a4   :  { %16546 = vmatmul.mubr.bf16.vlgmr.msra.gmra.mrb[144].mxu1 %v391_v50  ;;  %21348 = vmatprep.subr.bf16.mxu0 %v23242_v53  ;;  %v23283_v50 = vld [vmem:[%s29515_s1 + $0x2618] sm:$0xff]  }
 0x4a5   :  { %21369 = vmatpush3.bf16.msra.mxu1 %v23241_v52  ;;  %16625 = vmatprep.mubr.bf16.mxu1 %v396_v35  ;;  %v23284_v52 = vld [vmem:[%s29515_s1 + $0x26d8] sm:$0xff]   ;;  %v23312_v35 = vld [vmem:[%s29515_s1 + $0x27d0] sm:$0xff]  }
 0x4a6   :  { %21370 = vmatprep.subr.bf16.mxu1 %v23244_v55 }
 0x4a7   :  { %21349 = vmatpush3.bf16.msra.mxu0 %v23243_v54  ;;  %v23285_v54 = vld [vmem:[%s29515_s1 + $0x2698] sm:$0xff]  }
 0x4a8   :  { %21350 = vmatprep.subr.bf16.mxu0 %v23246_v57  ;;  %v23286_v57 = vld [vmem:[%s29515_s1 + $0x2660] sm:$0xff]  }
 0x4a9   :  { %21371 = vmatpush3.bf16.msra.mxu1 %v23245_v56 }
 0x4aa   :  { %21372 = vmatprep.subr.bf16.mxu1 %v23248_v59  ;;  %v23287_v59 = vld [vmem:[%s29515_s1 + $0x2620] sm:$0xff]  }
 0x4ab   :  { %21351 = vmatpush3.bf16.msra.mxu0 %v23247_v58 }
 0x4ac   :  { %21352 = vmatprep.subr.bf16.mxu0 %v23250_v61 }
 0x4ad   :  { %21373 = vmatpush3.bf16.msra.mxu1 %v23249_v60 }
 0x4ae   :  { %21374 = vmatprep.subr.bf16.mxu1 %v23252_v1 }
 0x4af   :  { %21353 = vmatpush3.bf16.msra.mxu0 %v23251_v63 }
 0x4b0   :  { %21354 = vmatprep.subr.bf16.mxu0 %v23254_v6 }
 0x4b1   :  { %21375 = vmatpush3.bf16.msra.mxu1 %v23253_v4 }
 0x4b2   :  { %21376 = vmatprep.subr.bf16.mxu1 %v23256_v11  ;;  %v23296_v11 = vld [vmem:[%s29515_s1 + $0x26f0] sm:$0xff]  }
 0x4b3   :  { %21355 = vmatpush3.bf16.msra.mxu0 %v23255_v9  ;;  %v23294_v9 = vld [vmem:[%s29515_s1 + $0x2670] sm:$0xff]  }
 0x4b4   :  { %21356 = vmatprep.subr.bf16.mxu0 %v23258_v16  ;;  %v192_v16 = vld [vmem:[%s29516_s0 + $0x4c8] sm:$0xff] }
 0x4b5   :  { %v21054_v62 = vpop.f32.mrb[120].mxu0  ;;  %21377 = vmatpush3.bf16.msra.mxu1 %v23257_v14  ;;  %v23299_v14 = vld [vmem:[%s29515_s1 + $0x2638] sm:$0xff]  }
 0x4b6   :  { %v21055_v0 = vpop.f32.mrb[121].mxu0  ;;  %21378 = vmatprep.subr.bf16.mxu1 %v23260_v19  ;;  %v191_v19 = vld [vmem:[%s29516_s0 + $0x4c0] sm:$0xff] }
 0x4b7   :  { %v21056_v2 = vadd.f32 %v21055_v0, %v21054_v62  ;;  %v21057_v3 = vpop.f32.mrb[122].mxu0  ;;  %v21076_v5 = vpop.f32.mrb[120].mxu1  ;;  %21357 = vmatpush3.bf16.msra.mxu0 %v23259_v18  ;;  %v23288_v62 = vld [vmem:[%s29515_s1 + $0x26e0] sm:$0xff]   ;;  %v23301_v18 = vld [vmem:[%s29515_s1 + $0x26b8] sm:$0xff]  }
 0x4b8   :  { %v21058_v8 = vpop.f32.mrb[123].mxu0  ;;  %v21077_v10 = vpop.f32.mrb[121].mxu1  ;;  %21358 = vmatprep.subr.bf16.mxu0 %v23262_v21  ;;  %v23289_v0 = vld [vmem:[%s29515_s1 + $0x26a0] sm:$0xff]   ;;  %v23290_v3 = vld [vmem:[%s29515_s1 + $0x2668] sm:$0xff]  }
 0x4b9   :  { %v16028_v7 = vadd.f32 %v21056_v2, %v27804_v29  ;;  %v21078_v12 = vadd.f32 %v21077_v10, %v21076_v5  ;;  %v21079_v13 = vpop.f32.mrb[122].mxu1  ;;  %21379 = vmatpush3.bf16.msra.mxu1 %v23261_v20  ;;  %v394_v29 = vpack.c.bf16 %v188_v28, %v188_v28  ;;  %v23291_v5 = vld [vmem:[%s29515_s1 + $0x2628] sm:$0xff]   ;;  %v23295_v10 = vld [vmem:[%s29515_s1 + $0x2630] sm:$0xff]   ;;  %v397_v20 = vpack.c.bf16 %v191_v19, %v191_v19  ;;  %v23302_v21 = vld [vmem:[%s29515_s1 + $0x2740] sm:$0xff]  }
 0x4ba   :  { %v21080_v15 = vpop.f32.mrb[123].mxu1  ;;  %21380 = vmatprep.subr.bf16.mxu1 %v23264_v23  ;;  %v23293_v8 = vld [vmem:[%s29515_s1 + $0x26a8] sm:$0xff]   ;;  %v23298_v13 = vld [vmem:[%s29515_s1 + $0x2678] sm:$0xff]   ;;  %v23305_v28 = vld [vmem:[%s29515_s1 + $0x2780] sm:$0xff]  }
 0x4bb   :  { %v27915_v17 = vadd.f32 %v21078_v12, %v16028_v7  ;;  %21359 = vmatpush3.bf16.msra.mxu0 %v23263_v22  ;;  %16585 = vmatprep.mubr.bf16.mxu0 %v394_v29  ;;  %v23292_v7 = vld [vmem:[%s29515_s1 + $0x26e8] sm:$0xff]   ;;  %v23297_v12 = vld [vmem:[%s29515_s1 + $0x26b0] sm:$0xff]   ;;  %v23300_v15 = vld [vmem:[%s29515_s1 + $0x26f8] sm:$0xff]  }
 0x4bc   :  { %21360 = vmatprep.subr.bf16.mxu0 %v23266_v25  ;;  %v194_v22 = vld [vmem:[%s29516_s0 + $0x4d8] sm:$0xff]  ;;  %v193_v25 = vld [vmem:[%s29516_s0 + $0x4d0] sm:$0xff]  ;;  %v23306_v29 = vld [vmem:[%s29515_s1 + $0x2748] sm:$0xff]  }
 0x4bd   :  { %21381 = vmatpush3.bf16.msra.mxu1 %v23265_v24  ;;  %v400_v23 = vpack.c.bf16 %v194_v22, %v194_v22  ;;  %v23303_v24 = vld [vmem:[%s29515_s1 + $0x2700] sm:$0xff]   ;;  %v23340_v19 = vld [vmem:[%s29515_s1 + $0x28c8] sm:$0xff]   ;;  %v23343_v22 = vld [vmem:[%s29515_s1 + $0x2810] sm:$0xff]  }
 0x4be   :  { %21382 = vmatprep.subr.bf16.mxu1 %v23268_v27  ;;  %v23304_v27 = vld [vmem:[%s29515_s1 + $0x27c0] sm:$0xff]  }
 0x4bf   :  { %21361 = vmatpush3.bf16.msra.mxu0 %v23267_v26  ;;  %v399_v26 = vpack.c.bf16 %v193_v25, %v193_v25  ;;  %v23346_v25 = vld [vmem:[%s29515_s1 + $0x2858] sm:$0xff]  }
 0x4c0   :  { %21390 = vmatprep.subr.bf16.mxu0 %v23270_v33  ;;  %v23310_v33 = vld [vmem:[%s29515_s1 + $0x2750] sm:$0xff]  }
 0x4c1   :  { %21383 = vmatpush3.bf16.msra.mxu1 %v23269_v30  ;;  %v23307_v30 = vld [vmem:[%s29515_s1 + $0x2708] sm:$0xff]  }
 0x4c2   :  { %16586 = vmatmul.mubr.bf16.vlgmr.msra.gmra.mrb[148].mxu0 %v393_v32  ;;  %21412 = vmatprep.subr.bf16.mxu1 %v23272_v39  ;;  %v23309_v32 = vld [vmem:[%s29515_s1 + $0x2788] sm:$0xff]   ;;  %v23315_v39 = vld [vmem:[%s29515_s1 + $0x2718] sm:$0xff]  }
 0x4c3   :  { %21391 = vmatpush3.bf16.msra.mxu0 %v23271_v36  ;;  %v23313_v36 = vld [vmem:[%s29515_s1 + $0x2790] sm:$0xff]  }
 0x4c4   :  { %16626 = vmatmul.mubr.bf16.vlgmr.msra.gmra.mrb[148].mxu1 %v395_v38  ;;  %21392 = vmatprep.subr.bf16.mxu0 %v23274_v41  ;;  %v23316_v41 = vld [vmem:[%s29515_s1 + $0x27d8] sm:$0xff]  }
 0x4c5   :  { %21413 = vmatpush3.bf16.msra.mxu1 %v23273_v40  ;;  %16705 = vmatprep.mubr.bf16.mxu1 %v400_v23  ;;  %v23344_v23 = vld [vmem:[%s29515_s1 + $0x28d0] sm:$0xff]  }
 0x4c6   :  { %21414 = vmatprep.subr.bf16.mxu1 %v23276_v43 }
 0x4c7   :  { %21393 = vmatpush3.bf16.msra.mxu0 %v23275_v42 }
 0x4c8   :  { %21394 = vmatprep.subr.bf16.mxu0 %v23278_v45 }
 0x4c9   :  { %21415 = vmatpush3.bf16.msra.mxu1 %v23277_v44  ;;  %v23317_v44 = vld [vmem:[%s29515_s1 + $0x2798] sm:$0xff]  }
 0x4ca   :  { %21416 = vmatprep.subr.bf16.mxu1 %v23280_v47 }
 0x4cb   :  { %21395 = vmatpush3.bf16.msra.mxu0 %v23279_v46  ;;  %v23318_v46 = vld [vmem:[%s29515_s1 + $0x2760] sm:$0xff]  }
 0x4cc   :  { %21396 = vmatprep.subr.bf16.mxu0 %v23282_v49  ;;  %v23319_v49 = vld [vmem:[%s29515_s1 + $0x2720] sm:$0xff]  }
 0x4cd   :  { %21417 = vmatpush3.bf16.msra.mxu1 %v23281_v48 }
 0x4ce   :  { %21418 = vmatprep.subr.bf16.mxu1 %v23284_v52 }
 0x4cf   :  { %21397 = vmatpush3.bf16.msra.mxu0 %v23283_v50 }
 0x4d0   :  { %21398 = vmatprep.subr.bf16.mxu0 %v23286_v57 }
 0x4d1   :  { %21419 = vmatpush3.bf16.msra.mxu1 %v23285_v54  ;;  %v23321_v54 = vld [vmem:[%s29515_s1 + $0x27a0] sm:$0xff]  }
 0x4d2   :  { %21420 = vmatprep.subr.bf16.mxu1 %v23288_v62  ;;  %v23327_v62 = vld [vmem:[%s29515_s1 + $0x2730] sm:$0xff]  }
 0x4d3   :  { %21399 = vmatpush3.bf16.msra.mxu0 %v23287_v59  ;;  %v23324_v59 = vld [vmem:[%s29515_s1 + $0x27e8] sm:$0xff]  }
 0x4d4   :  { %21400 = vmatprep.subr.bf16.mxu0 %v23290_v3  ;;  %v23332_v3 = vld [vmem:[%s29515_s1 + $0x27f8] sm:$0xff]  }
 0x4d5   :  { %v21098_v51 = vpop.f32.mrb[124].mxu0  ;;  %21421 = vmatpush3.bf16.msra.mxu1 %v23289_v0  ;;  %v23329_v0 = vld [vmem:[%s29515_s1 + $0x27b0] sm:$0xff]  }
 0x4d6   :  { %v21099_v53 = vpop.f32.mrb[125].mxu0  ;;  %21422 = vmatprep.subr.bf16.mxu1 %v23292_v7  ;;  %v195_v7 = vld [vmem:[%s29516_s0 + $0x4e0] sm:$0xff] }
 0x4d7   :  { %v21100_v55 = vadd.f32 %v21099_v53, %v21098_v51  ;;  %v21101_v56 = vpop.f32.mrb[126].mxu0  ;;  %v21120_v58 = vpop.f32.mrb[124].mxu1  ;;  %21401 = vmatpush3.bf16.msra.mxu0 %v23291_v5  ;;  %v23320_v51 = vld [vmem:[%s29515_s1 + $0x27e0] sm:$0xff]  }
 0x4d8   :  { %v21102_v61 = vpop.f32.mrb[127].mxu0  ;;  %v21121_v63 = vpop.f32.mrb[125].mxu1  ;;  %21402 = vmatprep.subr.bf16.mxu0 %v23294_v9  ;;  %v23322_v56 = vld [vmem:[%s29515_s1 + $0x2768] sm:$0xff]   ;;  %v23334_v9 = vld [vmem:[%s29515_s1 + $0x2840] sm:$0xff]  }
 0x4d9   :  { %v16108_v60 = vadd.f32 %v21100_v55, %v27915_v17  ;;  %v21122_v1 = vadd.f32 %v21121_v63, %v21120_v58  ;;  %v21123_v2 = vpop.f32.mrb[126].mxu1  ;;  %21423 = vmatpush3.bf16.msra.mxu1 %v23293_v8  ;;  %v398_v17 = vpack.c.bf16 %v192_v16, %v192_v16  ;;  %v23323_v58 = vld [vmem:[%s29515_s1 + $0x2728] sm:$0xff]   ;;  %v23326_v61 = vld [vmem:[%s29515_s1 + $0x2770] sm:$0xff]   ;;  %v401_v8 = vpack.c.bf16 %v195_v7, %v195_v7  ;;  %v23337_v16 = vld [vmem:[%s29515_s1 + $0x2880] sm:$0xff]  }
 0x4da   :  { %v21124_v4 = vpop.f32.mrb[127].mxu1  ;;  %21424 = vmatprep.subr.bf16.mxu1 %v23296_v11  ;;  %v23328_v63 = vld [vmem:[%s29515_s1 + $0x27f0] sm:$0xff]   ;;  %v23331_v2 = vld [vmem:[%s29515_s1 + $0x2738] sm:$0xff]   ;;  %v23372_v7 = vld [vmem:[%s29515_s1 + $0x29c8] sm:$0xff]  }
 0x4db   :  { %v28029_v6 = vadd.f32 %v21122_v1, %v16108_v60  ;;  %21403 = vmatpush3.bf16.msra.mxu0 %v23295_v10  ;;  %16665 = vmatprep.mubr.bf16.mxu0 %v398_v17  ;;  %v23325_v60 = vld [vmem:[%s29515_s1 + $0x27a8] sm:$0xff]   ;;  %v23330_v1 = vld [vmem:[%s29515_s1 + $0x2778] sm:$0xff]  }
 0x4dc   :  { %21404 = vmatprep.subr.bf16.mxu0 %v23298_v13  ;;  %v196_v4 = vld [vmem:[%s29516_s0 + $0x4e8] sm:$0xff]  ;;  %v198_v10 = vld [vmem:[%s29516_s0 + $0x4f8] sm:$0xff]  ;;  %v197_v13 = vld [vmem:[%s29516_s0 + $0x4f0] sm:$0xff] }
 0x4dd   :  { %21425 = vmatpush3.bf16.msra.mxu1 %v23297_v12  ;;  %v402_v5 = vpack.c.bf16 %v196_v4, %v196_v4  ;;  %v404_v11 = vpack.c.bf16 %v198_v10, %v198_v10  ;;  %v23335_v12 = vld [vmem:[%s29515_s1 + $0x2800] sm:$0xff]   ;;  %v23338_v17 = vld [vmem:[%s29515_s1 + $0x2848] sm:$0xff]   ;;  %v23375_v10 = vld [vmem:[%s29515_s1 + $0x2910] sm:$0xff]  }
 0x4de   :  { %21426 = vmatprep.subr.bf16.mxu1 %v23300_v15  ;;  %v23336_v15 = vld [vmem:[%s29515_s1 + $0x28c0] sm:$0xff]  }
 0x4df   :  { %21405 = vmatpush3.bf16.msra.mxu0 %v23299_v14  ;;  %v403_v14 = vpack.c.bf16 %v197_v13, %v197_v13  ;;  %v23369_v4 = vld [vmem:[%s29515_s1 + $0x2980] sm:$0xff]   ;;  %v23378_v13 = vld [vmem:[%s29515_s1 + $0x2958] sm:$0xff]  }
 0x4e0   :  { %21434 = vmatprep.subr.bf16.mxu0 %v23302_v21  ;;  %v23342_v21 = vld [vmem:[%s29515_s1 + $0x2850] sm:$0xff]  }
 0x4e1   :  { %21427 = vmatpush3.bf16.msra.mxu1 %v23301_v18  ;;  %v23339_v18 = vld [vmem:[%s29515_s1 + $0x2808] sm:$0xff]  }
 0x4e2   :  { %16666 = vmatmul.mubr.bf16.vlgmr.msra.gmra.mrb[152].mxu0 %v397_v20  ;;  %21456 = vmatprep.subr.bf16.mxu1 %v23304_v27  ;;  %v23341_v20 = vld [vmem:[%s29515_s1 + $0x2888] sm:$0xff]   ;;  %v23347_v27 = vld [vmem:[%s29515_s1 + $0x2818] sm:$0xff]  }
 0x4e3   :  { %21435 = vmatpush3.bf16.msra.mxu0 %v23303_v24  ;;  %16745 = vmatprep.mubr.bf16.mxu0 %v402_v5  ;;  %v23345_v24 = vld [vmem:[%s29515_s1 + $0x2890] sm:$0xff]   ;;  %v23370_v5 = vld [vmem:[%s29515_s1 + $0x2948] sm:$0xff]  }
 0x4e4   :  { %16706 = vmatmul.mubr.bf16.vlgmr.msra.gmra.mrb[152].mxu1 %v399_v26  ;;  %21436 = vmatprep.subr.bf16.mxu0 %v23306_v29  ;;  %v23348_v29 = vld [vmem:[%s29515_s1 + $0x28d8] sm:$0xff]  }
 0x4e5   :  { %21457 = vmatpush3.bf16.msra.mxu1 %v23305_v28  ;;  %16785 = vmatprep.mubr.bf16.mxu1 %v404_v11  ;;  %v23376_v11 = vld [vmem:[%s29515_s1 + $0x29d0] sm:$0xff]  }
 0x4e6   :  { %21458 = vmatprep.subr.bf16.mxu1 %v23308_v31 }
 0x4e7   :  { %21437 = vmatpush3.bf16.msra.mxu0 %v23307_v30 }
 0x4e8   :  { %21438 = vmatprep.subr.bf16.mxu0 %v23310_v33 }
 0x4e9   :  { %21459 = vmatpush3.bf16.msra.mxu1 %v23309_v32  ;;  %v23349_v32 = vld [vmem:[%s29515_s1 + $0x2898] sm:$0xff]  }
 0x4ea   :  { %21460 = vmatprep.subr.bf16.mxu1 %v23312_v35 }
 0x4eb   :  { %21439 = vmatpush3.bf16.msra.mxu0 %v23311_v34  ;;  %v23350_v34 = vld [vmem:[%s29515_s1 + $0x2860] sm:$0xff]  }
 0x4ec   :  { %21440 = vmatprep.subr.bf16.mxu0 %v23314_v37  ;;  %v23351_v37 = vld [vmem:[%s29515_s1 + $0x2820] sm:$0xff]  }
 0x4ed   :  { %21461 = vmatpush3.bf16.msra.mxu1 %v23313_v36 }
 0x4ee   :  { %21462 = vmatprep.subr.bf16.mxu1 %v23316_v41 }
 0x4ef   :  { %21441 = vmatpush3.bf16.msra.mxu0 %v23315_v39  ;;  %v23352_v39 = vld [vmem:[%s29515_s1 + $0x28e0] sm:$0xff]  }
 0x4f0   :  { %21442 = vmatprep.subr.bf16.mxu0 %v23318_v46  ;;  %v23355_v46 = vld [vmem:[%s29515_s1 + $0x2828] sm:$0xff]  }
 0x4f1   :  { %21463 = vmatpush3.bf16.msra.mxu1 %v23317_v44  ;;  %v23354_v44 = vld [vmem:[%s29515_s1 + $0x2868] sm:$0xff]  }
 0x4f2   :  { %21464 = vmatprep.subr.bf16.mxu1 %v23320_v51  ;;  %v23360_v51 = vld [vmem:[%s29515_s1 + $0x28f0] sm:$0xff]  }
 0x4f3   :  { %21443 = vmatpush3.bf16.msra.mxu0 %v23319_v49  ;;  %v23358_v49 = vld [vmem:[%s29515_s1 + $0x2870] sm:$0xff]  }
 0x4f4   :  { %21444 = vmatprep.subr.bf16.mxu0 %v23322_v56  ;;  %v200_v56 = vld [vmem:[%s29516_s0 + $0x508] sm:$0xff] }
 0x4f5   :  { %v21142_v38 = vpop.f32.mrb[128].mxu0  ;;  %21465 = vmatpush3.bf16.msra.mxu1 %v23321_v54  ;;  %v23363_v54 = vld [vmem:[%s29515_s1 + $0x2838] sm:$0xff]  }
 0x4f6   :  { %v21143_v40 = vpop.f32.mrb[129].mxu0  ;;  %21466 = vmatprep.subr.bf16.mxu1 %v23324_v59  ;;  %v199_v59 = vld [vmem:[%s29516_s0 + $0x500] sm:$0xff] }
 0x4f7   :  { %v21144_v42 = vadd.f32 %v21143_v40, %v21142_v38  ;;  %v21145_v43 = vpop.f32.mrb[130].mxu0  ;;  %v21164_v45 = vpop.f32.mrb[128].mxu1  ;;  %21445 = vmatpush3.bf16.msra.mxu0 %v23323_v58  ;;  %v23365_v58 = vld [vmem:[%s29515_s1 + $0x28b8] sm:$0xff]  }
 0x4f8   :  { %v21146_v48 = vpop.f32.mrb[131].mxu0  ;;  %v21165_v50 = vpop.f32.mrb[129].mxu1  ;;  %21446 = vmatprep.subr.bf16.mxu0 %v23326_v61  ;;  %v23366_v61 = vld [vmem:[%s29515_s1 + $0x2940] sm:$0xff]  }
 0x4f9   :  { %v16188_v47 = vadd.f32 %v21144_v42, %v28029_v6  ;;  %v21166_v52 = vadd.f32 %v21165_v50, %v21164_v45  ;;  %v21167_v53 = vpop.f32.mrb[130].mxu1  ;;  %21467 = vmatpush3.bf16.msra.mxu1 %v23325_v60  ;;  %v23333_v6 = vld [vmem:[%s29515_s1 + $0x27b8] sm:$0xff]   ;;  %v23353_v42 = vld [vmem:[%s29515_s1 + $0x28a0] sm:$0xff]   ;;  %v23357_v48 = vld [vmem:[%s29515_s1 + $0x28a8] sm:$0xff]   ;;  %v405_v60 = vpack.c.bf16 %v199_v59, %v199_v59 }
 0x4fa   :  { %v21168_v55 = vpop.f32.mrb[131].mxu1  ;;  %21468 = vmatprep.subr.bf16.mxu1 %v23328_v63  ;;  %v23359_v50 = vld [vmem:[%s29515_s1 + $0x2830] sm:$0xff]   ;;  %v23362_v53 = vld [vmem:[%s29515_s1 + $0x2878] sm:$0xff]   ;;  %v23404_v59 = vld [vmem:[%s29515_s1 + $0x2ac8] sm:$0xff]  }
 0x4fb   :  { %v28137_v57 = vadd.f32 %v21166_v52, %v16188_v47  ;;  %21447 = vmatpush3.bf16.msra.mxu0 %v23327_v62  ;;  %v23356_v47 = vld [vmem:[%s29515_s1 + $0x28e8] sm:$0xff]   ;;  %v23361_v52 = vld [vmem:[%s29515_s1 + $0x28b0] sm:$0xff]   ;;  %v23364_v55 = vld [vmem:[%s29515_s1 + $0x28f8] sm:$0xff]  }
 0x4fc   :  { %21448 = vmatprep.subr.bf16.mxu0 %v23330_v1  ;;  %v202_v62 = vld [vmem:[%s29516_s0 + $0x518] sm:$0xff]  ;;  %v201_v1 = vld [vmem:[%s29516_s0 + $0x510] sm:$0xff] }
 0x4fd   :  { %21469 = vmatpush3.bf16.msra.mxu1 %v23329_v0  ;;  %v408_v63 = vpack.c.bf16 %v202_v62, %v202_v62  ;;  %v23367_v0 = vld [vmem:[%s29515_s1 + $0x2900] sm:$0xff]   ;;  %v23407_v62 = vld [vmem:[%s29515_s1 + $0x2a10] sm:$0xff]  }
 0x4fe   :  { %21470 = vmatprep.subr.bf16.mxu1 %v23332_v3  ;;  %v23368_v3 = vld [vmem:[%s29515_s1 + $0x29c0] sm:$0xff]  }
 0x4ff   :  { %21449 = vmatpush3.bf16.msra.mxu0 %v23331_v2  ;;  %v407_v2 = vpack.c.bf16 %v201_v1, %v201_v1  ;;  %v23410_v1 = vld [vmem:[%s29515_s1 + $0x2a58] sm:$0xff]  }
 0x500   :  { %21478 = vmatprep.subr.bf16.mxu0 %v23334_v9  ;;  %v23374_v9 = vld [vmem:[%s29515_s1 + $0x2950] sm:$0xff]  }
 0x501   :  { %21471 = vmatpush3.bf16.msra.mxu1 %v23333_v6  ;;  %v23371_v6 = vld [vmem:[%s29515_s1 + $0x2908] sm:$0xff]  }
 0x502   :  { %16746 = vmatmul.mubr.bf16.vlgmr.msra.gmra.mrb[156].mxu0 %v401_v8  ;;  %21500 = vmatprep.subr.bf16.mxu1 %v23336_v15  ;;  %v23373_v8 = vld [vmem:[%s29515_s1 + $0x2988] sm:$0xff]  }
 0x503   :  { %21479 = vmatpush3.bf16.msra.mxu0 %v23335_v12  ;;  %v23377_v12 = vld [vmem:[%s29515_s1 + $0x2990] sm:$0xff]  }
 0x504   :  { %16786 = vmatmul.mubr.bf16.vlgmr.msra.gmra.mrb[156].mxu1 %v403_v14  ;;  %21480 = vmatprep.subr.bf16.mxu0 %v23338_v17  ;;  %v23379_v14 = vld [vmem:[%s29515_s1 + $0x2918] sm:$0xff]  }
 0x505   :  { %21501 = vmatpush3.bf16.msra.mxu1 %v23337_v16  ;;  %16865 = vmatprep.mubr.bf16.mxu1 %v408_v63  ;;  %v23380_v16 = vld [vmem:[%s29515_s1 + $0x29d8] sm:$0xff]   ;;  %v23408_v63 = vld [vmem:[%s29515_s1 + $0x2ad0] sm:$0xff]  }
 0x506   :  { %21502 = vmatprep.subr.bf16.mxu1 %v23340_v19 }
 0x507   :  { %21481 = vmatpush3.bf16.msra.mxu0 %v23339_v18  ;;  %v23381_v18 = vld [vmem:[%s29515_s1 + $0x2998] sm:$0xff]  }
 0x508   :  { %21482 = vmatprep.subr.bf16.mxu0 %v23342_v21  ;;  %v23382_v21 = vld [vmem:[%s29515_s1 + $0x2960] sm:$0xff]  }
 0x509   :  { %21503 = vmatpush3.bf16.msra.mxu1 %v23341_v20 }
 0x50a   :  { %21504 = vmatprep.subr.bf16.mxu1 %v23344_v23  ;;  %v23383_v23 = vld [vmem:[%s29515_s1 + $0x2920] sm:$0xff]  }
 0x50b   :  { %21483 = vmatpush3.bf16.msra.mxu0 %v23343_v22 }
 0x50c   :  { %21484 = vmatprep.subr.bf16.mxu0 %v23346_v25 }
 0x50d   :  { %21505 = vmatpush3.bf16.msra.mxu1 %v23345_v24 }
 0x50e   :  { %21506 = vmatprep.subr.bf16.mxu1 %v23348_v29 }
 0x50f   :  { %21485 = vmatpush3.bf16.msra.mxu0 %v23347_v27 }
 0x510   :  { %21486 = vmatprep.subr.bf16.mxu0 %v23350_v34 }
 0x511   :  { %21507 = vmatpush3.bf16.msra.mxu1 %v23349_v32 }
 0x512   :  { %21508 = vmatprep.subr.bf16.mxu1 %v23352_v39  ;;  %v23392_v39 = vld [vmem:[%s29515_s1 + $0x29f0] sm:$0xff]  }
 0x513   :  { %21487 = vmatpush3.bf16.msra.mxu0 %v23351_v37  ;;  %v23390_v37 = vld [vmem:[%s29515_s1 + $0x2970] sm:$0xff]  }
 0x514   :  { %21488 = vmatprep.subr.bf16.mxu0 %v23354_v44  ;;  %v204_v44 = vld [vmem:[%s29516_s0 + $0x528] sm:$0xff] }
 0x515   :  { %v21186_v26 = vpop.f32.mrb[132].mxu0  ;;  %21509 = vmatpush3.bf16.msra.mxu1 %v23353_v42  ;;  %v23395_v42 = vld [vmem:[%s29515_s1 + $0x2938] sm:$0xff]  }
 0x516   :  { %v21187_v28 = vpop.f32.mrb[133].mxu0  ;;  %21510 = vmatprep.subr.bf16.mxu1 %v23356_v47  ;;  %v203_v47 = vld [vmem:[%s29516_s0 + $0x520] sm:$0xff] }
 0x517   :  { %v21188_v30 = vadd.f32 %v21187_v28, %v21186_v26  ;;  %v21189_v31 = vpop.f32.mrb[134].mxu0  ;;  %v21208_v33 = vpop.f32.mrb[132].mxu1  ;;  %21489 = vmatpush3.bf16.msra.mxu0 %v23355_v46  ;;  %v23384_v26 = vld [vmem:[%s29515_s1 + $0x29e0] sm:$0xff]   ;;  %v23397_v46 = vld [vmem:[%s29515_s1 + $0x29b8] sm:$0xff]  }
 0x518   :  { %v21190_v36 = vpop.f32.mrb[135].mxu0  ;;  %v21209_v38 = vpop.f32.mrb[133].mxu1  ;;  %21490 = vmatprep.subr.bf16.mxu0 %v23358_v49  ;;  %v23385_v28 = vld [vmem:[%s29515_s1 + $0x29a0] sm:$0xff]   ;;  %v23386_v31 = vld [vmem:[%s29515_s1 + $0x2968] sm:$0xff]  }
 0x519   :  { %v16268_v35 = vadd.f32 %v21188_v30, %v28137_v57  ;;  %v21210_v40 = vadd.f32 %v21209_v38, %v21208_v33  ;;  %v21211_v41 = vpop.f32.mrb[134].mxu1  ;;  %21511 = vmatpush3.bf16.msra.mxu1 %v23357_v48  ;;  %v406_v57 = vpack.c.bf16 %v200_v56, %v200_v56  ;;  %v23387_v33 = vld [vmem:[%s29515_s1 + $0x2928] sm:$0xff]   ;;  %v23391_v38 = vld [vmem:[%s29515_s1 + $0x2930] sm:$0xff]   ;;  %v409_v48 = vpack.c.bf16 %v203_v47, %v203_v47  ;;  %v23398_v49 = vld [vmem:[%s29515_s1 + $0x2a40] sm:$0xff]  }
 0x51a   :  { %v21212_v43 = vpop.f32.mrb[135].mxu1  ;;  %21512 = vmatprep.subr.bf16.mxu1 %v23360_v51  ;;  %v23389_v36 = vld [vmem:[%s29515_s1 + $0x29a8] sm:$0xff]   ;;  %v23394_v41 = vld [vmem:[%s29515_s1 + $0x2978] sm:$0xff]   ;;  %v23401_v56 = vld [vmem:[%s29515_s1 + $0x2a80] sm:$0xff]  }
 0x51b   :  { %v28248_v45 = vadd.f32 %v21210_v40, %v16268_v35  ;;  %21491 = vmatpush3.bf16.msra.mxu0 %v23359_v50  ;;  %16825 = vmatprep.mubr.bf16.mxu0 %v406_v57  ;;  %v23388_v35 = vld [vmem:[%s29515_s1 + $0x29e8] sm:$0xff]   ;;  %v23393_v40 = vld [vmem:[%s29515_s1 + $0x29b0] sm:$0xff]   ;;  %v23396_v43 = vld [vmem:[%s29515_s1 + $0x29f8] sm:$0xff]  }
 0x51c   :  { %21492 = vmatprep.subr.bf16.mxu0 %v23362_v53  ;;  %v206_v50 = vld [vmem:[%s29516_s0 + $0x538] sm:$0xff]  ;;  %v205_v53 = vld [vmem:[%s29516_s0 + $0x530] sm:$0xff]  ;;  %v23402_v57 = vld [vmem:[%s29515_s1 + $0x2a48] sm:$0xff]  }
 0x51d   :  { %21513 = vmatpush3.bf16.msra.mxu1 %v23361_v52  ;;  %v412_v51 = vpack.c.bf16 %v206_v50, %v206_v50  ;;  %v23399_v52 = vld [vmem:[%s29515_s1 + $0x2a00] sm:$0xff]   ;;  %v23436_v47 = vld [vmem:[%s29515_s1 + $0x2bc8] sm:$0xff]   ;;  %v23439_v50 = vld [vmem:[%s29515_s1 + $0x2b10] sm:$0xff]  }
 0x51e   :  { %21514 = vmatprep.subr.bf16.mxu1 %v23364_v55  ;;  %v23400_v55 = vld [vmem:[%s29515_s1 + $0x2ac0] sm:$0xff]  }
 0x51f   :  { %21493 = vmatpush3.bf16.msra.mxu0 %v23363_v54  ;;  %v411_v54 = vpack.c.bf16 %v205_v53, %v205_v53  ;;  %v23442_v53 = vld [vmem:[%s29515_s1 + $0x2b58] sm:$0xff]  }
 0x520   :  { %21522 = vmatprep.subr.bf16.mxu0 %v23366_v61  ;;  %v23406_v61 = vld [vmem:[%s29515_s1 + $0x2a50] sm:$0xff]  }
 0x521   :  { %21515 = vmatpush3.bf16.msra.mxu1 %v23365_v58  ;;  %v23403_v58 = vld [vmem:[%s29515_s1 + $0x2a08] sm:$0xff]  }
 0x522   :  { %16826 = vmatmul.mubr.bf16.vlgmr.msra.gmra.mrb[160].mxu0 %v405_v60  ;;  %21544 = vmatprep.subr.bf16.mxu1 %v23368_v3  ;;  %v23405_v60 = vld [vmem:[%s29515_s1 + $0x2a88] sm:$0xff]   ;;  %v23411_v3 = vld [vmem:[%s29515_s1 + $0x2a18] sm:$0xff]  }
 0x523   :  { %21523 = vmatpush3.bf16.msra.mxu0 %v23367_v0  ;;  %v23409_v0 = vld [vmem:[%s29515_s1 + $0x2a90] sm:$0xff]  }
 0x524   :  { %16866 = vmatmul.mubr.bf16.vlgmr.msra.gmra.mrb[160].mxu1 %v407_v2  ;;  %21524 = vmatprep.subr.bf16.mxu0 %v23370_v5  ;;  %v23412_v5 = vld [vmem:[%s29515_s1 + $0x2ad8] sm:$0xff]  }
 0x525   :  { %21545 = vmatpush3.bf16.msra.mxu1 %v23369_v4  ;;  %16945 = vmatprep.mubr.bf16.mxu1 %v412_v51  ;;  %v23440_v51 = vld [vmem:[%s29515_s1 + $0x2bd0] sm:$0xff]  }
 0x526   :  { %21546 = vmatprep.subr.bf16.mxu1 %v23372_v7 }
 0x527   :  { %21525 = vmatpush3.bf16.msra.mxu0 %v23371_v6 }
 0x528   :  { %21526 = vmatprep.subr.bf16.mxu0 %v23374_v9 }
 0x529   :  { %21547 = vmatpush3.bf16.msra.mxu1 %v23373_v8  ;;  %v23413_v8 = vld [vmem:[%s29515_s1 + $0x2a98] sm:$0xff]  }
 0x52a   :  { %21548 = vmatprep.subr.bf16.mxu1 %v23376_v11 }
 0x52b   :  { %21527 = vmatpush3.bf16.msra.mxu0 %v23375_v10  ;;  %v23414_v10 = vld [vmem:[%s29515_s1 + $0x2a60] sm:$0xff]  }
 0x52c   :  { %21528 = vmatprep.subr.bf16.mxu0 %v23378_v13  ;;  %v23415_v13 = vld [vmem:[%s29515_s1 + $0x2a20] sm:$0xff]  }
 0x52d   :  { %21549 = vmatpush3.bf16.msra.mxu1 %v23377_v12 }
 0x52e   :  { %21550 = vmatprep.subr.bf16.mxu1 %v23380_v16 }
 0x52f   :  { %21529 = vmatpush3.bf16.msra.mxu0 %v23379_v14 }
 0x530   :  { %21530 = vmatprep.subr.bf16.mxu0 %v23382_v21 }
 0x531   :  { %21551 = vmatpush3.bf16.msra.mxu1 %v23381_v18  ;;  %v23417_v18 = vld [vmem:[%s29515_s1 + $0x2aa0] sm:$0xff]  }
 0x532   :  { %21552 = vmatprep.subr.bf16.mxu1 %v23384_v26  ;;  %v23423_v26 = vld [vmem:[%s29515_s1 + $0x2a30] sm:$0xff]  }
 0x533   :  { %21531 = vmatpush3.bf16.msra.mxu0 %v23383_v23  ;;  %v23420_v23 = vld [vmem:[%s29515_s1 + $0x2ae8] sm:$0xff]  }
 0x534   :  { %21532 = vmatprep.subr.bf16.mxu0 %v23386_v31  ;;  %v23428_v31 = vld [vmem:[%s29515_s1 + $0x2af8] sm:$0xff]  }
 0x535   :  { %v21230_v15 = vpop.f32.mrb[136].mxu0  ;;  %21553 = vmatpush3.bf16.msra.mxu1 %v23385_v28  ;;  %v23425_v28 = vld [vmem:[%s29515_s1 + $0x2ab0] sm:$0xff]  }
 0x536   :  { %v21231_v17 = vpop.f32.mrb[137].mxu0  ;;  %21554 = vmatprep.subr.bf16.mxu1 %v23388_v35  ;;  %v207_v35 = vld [vmem:[%s29516_s0 + $0x540] sm:$0xff] }
 0x537   :  { %v21232_v19 = vadd.f32 %v21231_v17, %v21230_v15  ;;  %v21233_v20 = vpop.f32.mrb[138].mxu0  ;;  %v21252_v22 = vpop.f32.mrb[136].mxu1  ;;  %21533 = vmatpush3.bf16.msra.mxu0 %v23387_v33  ;;  %v23416_v15 = vld [vmem:[%s29515_s1 + $0x2ae0] sm:$0xff]  }
 0x538   :  { %v21234_v25 = vpop.f32.mrb[139].mxu0  ;;  %v21253_v27 = vpop.f32.mrb[137].mxu1  ;;  %21534 = vmatprep.subr.bf16.mxu0 %v23390_v37  ;;  %v23418_v20 = vld [vmem:[%s29515_s1 + $0x2a68] sm:$0xff]   ;;  %v23430_v37 = vld [vmem:[%s29515_s1 + $0x2b40] sm:$0xff]  }
 0x539   :  { %v16348_v24 = vadd.f32 %v21232_v19, %v28248_v45  ;;  %v21254_v29 = vadd.f32 %v21253_v27, %v21252_v22  ;;  %v21255_v30 = vpop.f32.mrb[138].mxu1  ;;  %21555 = vmatpush3.bf16.msra.mxu1 %v23389_v36  ;;  %v410_v45 = vpack.c.bf16 %v204_v44, %v204_v44  ;;  %v23419_v22 = vld [vmem:[%s29515_s1 + $0x2a28] sm:$0xff]   ;;  %v23422_v25 = vld [vmem:[%s29515_s1 + $0x2a70] sm:$0xff]   ;;  %v413_v36 = vpack.c.bf16 %v207_v35, %v207_v35  ;;  %v23433_v44 = vld [vmem:[%s29515_s1 + $0x2b80] sm:$0xff]  }
 0x53a   :  { %v21256_v32 = vpop.f32.mrb[139].mxu1  ;;  %21556 = vmatprep.subr.bf16.mxu1 %v23392_v39  ;;  %v23424_v27 = vld [vmem:[%s29515_s1 + $0x2af0] sm:$0xff]   ;;  %v23427_v30 = vld [vmem:[%s29515_s1 + $0x2a38] sm:$0xff]   ;;  %v23468_v35 = vld [vmem:[%s29515_s1 + $0x2cc8] sm:$0xff]  }
 0x53b   :  { %v28362_v34 = vadd.f32 %v21254_v29, %v16348_v24  ;;  %21535 = vmatpush3.bf16.msra.mxu0 %v23391_v38  ;;  %16905 = vmatprep.mubr.bf16.mxu0 %v410_v45  ;;  %v23421_v24 = vld [vmem:[%s29515_s1 + $0x2aa8] sm:$0xff]   ;;  %v23426_v29 = vld [vmem:[%s29515_s1 + $0x2a78] sm:$0xff]  }
 0x53c   :  { %21536 = vmatprep.subr.bf16.mxu0 %v23394_v41  ;;  %v208_v32 = vld [vmem:[%s29516_s0 + $0x548] sm:$0xff]  ;;  %v210_v38 = vld [vmem:[%s29516_s0 + $0x558] sm:$0xff]  ;;  %v209_v41 = vld [vmem:[%s29516_s0 + $0x550] sm:$0xff] }
 0x53d   :  { %21557 = vmatpush3.bf16.msra.mxu1 %v23393_v40  ;;  %v414_v33 = vpack.c.bf16 %v208_v32, %v208_v32  ;;  %v416_v39 = vpack.c.bf16 %v210_v38, %v210_v38  ;;  %v23431_v40 = vld [vmem:[%s29515_s1 + $0x2b00] sm:$0xff]   ;;  %v23434_v45 = vld [vmem:[%s29515_s1 + $0x2b48] sm:$0xff]   ;;  %v23471_v38 = vld [vmem:[%s29515_s1 + $0x2c10] sm:$0xff]  }
 0x53e   :  { %21558 = vmatprep.subr.bf16.mxu1 %v23396_v43  ;;  %v23432_v43 = vld [vmem:[%s29515_s1 + $0x2bc0] sm:$0xff]  }
 0x53f   :  { %21537 = vmatpush3.bf16.msra.mxu0 %v23395_v42  ;;  %v415_v42 = vpack.c.bf16 %v209_v41, %v209_v41  ;;  %v23465_v32 = vld [vmem:[%s29515_s1 + $0x2c80] sm:$0xff]   ;;  %v23474_v41 = vld [vmem:[%s29515_s1 + $0x2c58] sm:$0xff]  }
 0x540   :  { %21566 = vmatprep.subr.bf16.mxu0 %v23398_v49  ;;  %v23438_v49 = vld [vmem:[%s29515_s1 + $0x2b50] sm:$0xff]  }
 0x541   :  { %21559 = vmatpush3.bf16.msra.mxu1 %v23397_v46  ;;  %v23435_v46 = vld [vmem:[%s29515_s1 + $0x2b08] sm:$0xff]  }
 0x542   :  { %16906 = vmatmul.mubr.bf16.vlgmr.msra.gmra.mrb[164].mxu0 %v409_v48  ;;  %21588 = vmatprep.subr.bf16.mxu1 %v23400_v55  ;;  %v23437_v48 = vld [vmem:[%s29515_s1 + $0x2b88] sm:$0xff]   ;;  %v23443_v55 = vld [vmem:[%s29515_s1 + $0x2b18] sm:$0xff]  }
 0x543   :  { %21567 = vmatpush3.bf16.msra.mxu0 %v23399_v52  ;;  %16985 = vmatprep.mubr.bf16.mxu0 %v414_v33  ;;  %v23441_v52 = vld [vmem:[%s29515_s1 + $0x2b90] sm:$0xff]   ;;  %v23466_v33 = vld [vmem:[%s29515_s1 + $0x2c48] sm:$0xff]  }
 0x544   :  { %16946 = vmatmul.mubr.bf16.vlgmr.msra.gmra.mrb[164].mxu1 %v411_v54  ;;  %21568 = vmatprep.subr.bf16.mxu0 %v23402_v57  ;;  %v23444_v57 = vld [vmem:[%s29515_s1 + $0x2bd8] sm:$0xff]  }
 0x545   :  { %21589 = vmatpush3.bf16.msra.mxu1 %v23401_v56  ;;  %17025 = vmatprep.mubr.bf16.mxu1 %v416_v39  ;;  %v23472_v39 = vld [vmem:[%s29515_s1 + $0x2cd0] sm:$0xff]  }
 0x546   :  { %21590 = vmatprep.subr.bf16.mxu1 %v23404_v59 }
 0x547   :  { %21569 = vmatpush3.bf16.msra.mxu0 %v23403_v58 }
 0x548   :  { %21570 = vmatprep.subr.bf16.mxu0 %v23406_v61 }
 0x549   :  { %21591 = vmatpush3.bf16.msra.mxu1 %v23405_v60  ;;  %v23445_v60 = vld [vmem:[%s29515_s1 + $0x2b98] sm:$0xff]  }
 0x54a   :  { %21592 = vmatprep.subr.bf16.mxu1 %v23408_v63 }
 0x54b   :  { %21571 = vmatpush3.bf16.msra.mxu0 %v23407_v62  ;;  %v23446_v62 = vld [vmem:[%s29515_s1 + $0x2b60] sm:$0xff]  }
 0x54c   :  { %21572 = vmatprep.subr.bf16.mxu0 %v23410_v1  ;;  %v23447_v1 = vld [vmem:[%s29515_s1 + $0x2b20] sm:$0xff]  }
 0x54d   :  { %21593 = vmatpush3.bf16.msra.mxu1 %v23409_v0 }
 0x54e   :  { %21594 = vmatprep.subr.bf16.mxu1 %v23412_v5 }
 0x54f   :  { %21573 = vmatpush3.bf16.msra.mxu0 %v23411_v3  ;;  %v23448_v3 = vld [vmem:[%s29515_s1 + $0x2be0] sm:$0xff]  }
 0x550   :  { %21574 = vmatprep.subr.bf16.mxu0 %v23414_v10  ;;  %v23451_v10 = vld [vmem:[%s29515_s1 + $0x2b28] sm:$0xff]  }
 0x551   :  { %21595 = vmatpush3.bf16.msra.mxu1 %v23413_v8  ;;  %v23450_v8 = vld [vmem:[%s29515_s1 + $0x2b68] sm:$0xff]  }
 0x552   :  { %21596 = vmatprep.subr.bf16.mxu1 %v23416_v15  ;;  %v23456_v15 = vld [vmem:[%s29515_s1 + $0x2bf0] sm:$0xff]  }
 0x553   :  { %21575 = vmatpush3.bf16.msra.mxu0 %v23415_v13  ;;  %v23454_v13 = vld [vmem:[%s29515_s1 + $0x2b70] sm:$0xff]  }
 0x554   :  { %21576 = vmatprep.subr.bf16.mxu0 %v23418_v20  ;;  %v212_v20 = vld [vmem:[%s29516_s0 + $0x568] sm:$0xff] }
 0x555   :  { %v21274_v2 = vpop.f32.mrb[140].mxu0  ;;  %21597 = vmatpush3.bf16.msra.mxu1 %v23417_v18  ;;  %v23459_v18 = vld [vmem:[%s29515_s1 + $0x2b38] sm:$0xff]  }
 0x556   :  { %v21275_v4 = vpop.f32.mrb[141].mxu0  ;;  %21598 = vmatprep.subr.bf16.mxu1 %v23420_v23  ;;  %v211_v23 = vld [vmem:[%s29516_s0 + $0x560] sm:$0xff] }
 0x557   :  { %v21276_v6 = vadd.f32 %v21275_v4, %v21274_v2  ;;  %v21277_v7 = vpop.f32.mrb[142].mxu0  ;;  %v21296_v9 = vpop.f32.mrb[140].mxu1  ;;  %21577 = vmatpush3.bf16.msra.mxu0 %v23419_v22  ;;  %v23461_v22 = vld [vmem:[%s29515_s1 + $0x2bb8] sm:$0xff]  }
 0x558   :  { %v21278_v12 = vpop.f32.mrb[143].mxu0  ;;  %v21297_v14 = vpop.f32.mrb[141].mxu1  ;;  %21578 = vmatprep.subr.bf16.mxu0 %v23422_v25  ;;  %v23462_v25 = vld [vmem:[%s29515_s1 + $0x2c40] sm:$0xff]  }
 0x559   :  { %v16428_v11 = vadd.f32 %v21276_v6, %v28362_v34  ;;  %v21298_v16 = vadd.f32 %v21297_v14, %v21296_v9  ;;  %v21299_v17 = vpop.f32.mrb[142].mxu1  ;;  %21599 = vmatpush3.bf16.msra.mxu1 %v23421_v24  ;;  %v23429_v34 = vld [vmem:[%s29515_s1 + $0x2ab8] sm:$0xff]   ;;  %v23449_v6 = vld [vmem:[%s29515_s1 + $0x2ba0] sm:$0xff]   ;;  %v23453_v12 = vld [vmem:[%s29515_s1 + $0x2ba8] sm:$0xff]   ;;  %v417_v24 = vpack.c.bf16 %v211_v23, %v211_v23 }
 0x55a   :  { %v21300_v19 = vpop.f32.mrb[143].mxu1  ;;  %21600 = vmatprep.subr.bf16.mxu1 %v23424_v27  ;;  %v23455_v14 = vld [vmem:[%s29515_s1 + $0x2b30] sm:$0xff]   ;;  %v23458_v17 = vld [vmem:[%s29515_s1 + $0x2b78] sm:$0xff]   ;;  %v23500_v23 = vld [vmem:[%s29515_s1 + $0x2dc8] sm:$0xff]  }
 0x55b   :  { %v28470_v21 = vadd.f32 %v21298_v16, %v16428_v11  ;;  %21579 = vmatpush3.bf16.msra.mxu0 %v23423_v26  ;;  %v23452_v11 = vld [vmem:[%s29515_s1 + $0x2be8] sm:$0xff]   ;;  %v23457_v16 = vld [vmem:[%s29515_s1 + $0x2bb0] sm:$0xff]   ;;  %v23460_v19 = vld [vmem:[%s29515_s1 + $0x2bf8] sm:$0xff]  }
 0x55c   :  { %21580 = vmatprep.subr.bf16.mxu0 %v23426_v29  ;;  %v214_v26 = vld [vmem:[%s29516_s0 + $0x578] sm:$0xff]  ;;  %v213_v29 = vld [vmem:[%s29516_s0 + $0x570] sm:$0xff] }
 0x55d   :  { %21601 = vmatpush3.bf16.msra.mxu1 %v23425_v28  ;;  %v420_v27 = vpack.c.bf16 %v214_v26, %v214_v26  ;;  %v23463_v28 = vld [vmem:[%s29515_s1 + $0x2c00] sm:$0xff]   ;;  %v23503_v26 = vld [vmem:[%s29515_s1 + $0x2d10] sm:$0xff]  }
 0x55e   :  { %21602 = vmatprep.subr.bf16.mxu1 %v23428_v31  ;;  %v23464_v31 = vld [vmem:[%s29515_s1 + $0x2cc0] sm:$0xff]  }
 0x55f   :  { %21581 = vmatpush3.bf16.msra.mxu0 %v23427_v30  ;;  %v419_v30 = vpack.c.bf16 %v213_v29, %v213_v29  ;;  %v23506_v29 = vld [vmem:[%s29515_s1 + $0x2d58] sm:$0xff]  }
 0x560   :  { %21610 = vmatprep.subr.bf16.mxu0 %v23430_v37  ;;  %v23470_v37 = vld [vmem:[%s29515_s1 + $0x2c50] sm:$0xff]  }
 0x561   :  { %21603 = vmatpush3.bf16.msra.mxu1 %v23429_v34  ;;  %v23467_v34 = vld [vmem:[%s29515_s1 + $0x2c08] sm:$0xff]  }
 0x562   :  { %16986 = vmatmul.mubr.bf16.vlgmr.msra.gmra.mrb[168].mxu0 %v413_v36  ;;  %21632 = vmatprep.subr.bf16.mxu1 %v23432_v43  ;;  %v23469_v36 = vld [vmem:[%s29515_s1 + $0x2c88] sm:$0xff]  }
 0x563   :  { %21611 = vmatpush3.bf16.msra.mxu0 %v23431_v40  ;;  %v23473_v40 = vld [vmem:[%s29515_s1 + $0x2c90] sm:$0xff]  }
 0x564   :  { %17026 = vmatmul.mubr.bf16.vlgmr.msra.gmra.mrb[168].mxu1 %v415_v42  ;;  %21612 = vmatprep.subr.bf16.mxu0 %v23434_v45  ;;  %v23475_v42 = vld [vmem:[%s29515_s1 + $0x2c18] sm:$0xff]  }
 0x565   :  { %21633 = vmatpush3.bf16.msra.mxu1 %v23433_v44  ;;  %17105 = vmatprep.mubr.bf16.mxu1 %v420_v27  ;;  %v23476_v44 = vld [vmem:[%s29515_s1 + $0x2cd8] sm:$0xff]   ;;  %v23504_v27 = vld [vmem:[%s29515_s1 + $0x2dd0] sm:$0xff]  }
 0x566   :  { %21634 = vmatprep.subr.bf16.mxu1 %v23436_v47 }
 0x567   :  { %21613 = vmatpush3.bf16.msra.mxu0 %v23435_v46  ;;  %v23477_v46 = vld [vmem:[%s29515_s1 + $0x2c98] sm:$0xff]  }
 0x568   :  { %21614 = vmatprep.subr.bf16.mxu0 %v23438_v49  ;;  %v23478_v49 = vld [vmem:[%s29515_s1 + $0x2c60] sm:$0xff]  }
 0x569   :  { %21635 = vmatpush3.bf16.msra.mxu1 %v23437_v48 }
 0x56a   :  { %21636 = vmatprep.subr.bf16.mxu1 %v23440_v51  ;;  %v23479_v51 = vld [vmem:[%s29515_s1 + $0x2c20] sm:$0xff]  }
 0x56b   :  { %21615 = vmatpush3.bf16.msra.mxu0 %v23439_v50 }
 0x56c   :  { %21616 = vmatprep.subr.bf16.mxu0 %v23442_v53 }
 0x56d   :  { %21637 = vmatpush3.bf16.msra.mxu1 %v23441_v52 }
 0x56e   :  { %21638 = vmatprep.subr.bf16.mxu1 %v23444_v57 }
 0x56f   :  { %21617 = vmatpush3.bf16.msra.mxu0 %v23443_v55 }
 0x570   :  { %21618 = vmatprep.subr.bf16.mxu0 %v23446_v62 }
 0x571   :  { %21639 = vmatpush3.bf16.msra.mxu1 %v23445_v60 }
 0x572   :  { %21640 = vmatprep.subr.bf16.mxu1 %v23448_v3  ;;  %v23488_v3 = vld [vmem:[%s29515_s1 + $0x2cf0] sm:$0xff]  }
 0x573   :  { %21619 = vmatpush3.bf16.msra.mxu0 %v23447_v1  ;;  %v23486_v1 = vld [vmem:[%s29515_s1 + $0x2c70] sm:$0xff]  }
 0x574   :  { %21620 = vmatprep.subr.bf16.mxu0 %v23450_v8  ;;  %v216_v8 = vld [vmem:[%s29516_s0 + $0x588] sm:$0xff] }
 0x575   :  { %v21318_v54 = vpop.f32.mrb[144].mxu0  ;;  %21641 = vmatpush3.bf16.msra.mxu1 %v23449_v6  ;;  %v23491_v6 = vld [vmem:[%s29515_s1 + $0x2c38] sm:$0xff]  }
 0x576   :  { %v21319_v56 = vpop.f32.mrb[145].mxu0  ;;  %21642 = vmatprep.subr.bf16.mxu1 %v23452_v11  ;;  %v215_v11 = vld [vmem:[%s29516_s0 + $0x580] sm:$0xff] }
 0x577   :  { %v21320_v58 = vadd.f32 %v21319_v56, %v21318_v54  ;;  %v21321_v59 = vpop.f32.mrb[146].mxu0  ;;  %v21340_v61 = vpop.f32.mrb[144].mxu1  ;;  %21621 = vmatpush3.bf16.msra.mxu0 %v23451_v10  ;;  %v23480_v54 = vld [vmem:[%s29515_s1 + $0x2ce0] sm:$0xff]   ;;  %v23493_v10 = vld [vmem:[%s29515_s1 + $0x2cb8] sm:$0xff]  }
 0x578   :  { %v21322_v0 = vpop.f32.mrb[147].mxu0  ;;  %v21341_v2 = vpop.f32.mrb[145].mxu1  ;;  %21622 = vmatprep.subr.bf16.mxu0 %v23454_v13  ;;  %v23481_v56 = vld [vmem:[%s29515_s1 + $0x2ca0] sm:$0xff]   ;;  %v23482_v59 = vld [vmem:[%s29515_s1 + $0x2c68] sm:$0xff]  }
 0x579   :  { %v16508_v63 = vadd.f32 %v21320_v58, %v28470_v21  ;;  %v21342_v4 = vadd.f32 %v21341_v2, %v21340_v61  ;;  %v21343_v5 = vpop.f32.mrb[146].mxu1  ;;  %21643 = vmatpush3.bf16.msra.mxu1 %v23453_v12  ;;  %v418_v21 = vpack.c.bf16 %v212_v20, %v212_v20  ;;  %v23483_v61 = vld [vmem:[%s29515_s1 + $0x2c28] sm:$0xff]   ;;  %v23487_v2 = vld [vmem:[%s29515_s1 + $0x2c30] sm:$0xff]   ;;  %v421_v12 = vpack.c.bf16 %v215_v11, %v215_v11  ;;  %v23494_v13 = vld [vmem:[%s29515_s1 + $0x2d40] sm:$0xff]  }
 0x57a   :  { %v21344_v7 = vpop.f32.mrb[147].mxu1  ;;  %21644 = vmatprep.subr.bf16.mxu1 %v23456_v15  ;;  %v23485_v0 = vld [vmem:[%s29515_s1 + $0x2ca8] sm:$0xff]   ;;  %v23490_v5 = vld [vmem:[%s29515_s1 + $0x2c78] sm:$0xff]   ;;  %v23497_v20 = vld [vmem:[%s29515_s1 + $0x2d80] sm:$0xff]  }
 0x57b   :  { %v28581_v9 = vadd.f32 %v21342_v4, %v16508_v63  ;;  %21623 = vmatpush3.bf16.msra.mxu0 %v23455_v14  ;;  %17065 = vmatprep.mubr.bf16.mxu0 %v418_v21  ;;  %v23484_v63 = vld [vmem:[%s29515_s1 + $0x2ce8] sm:$0xff]   ;;  %v23489_v4 = vld [vmem:[%s29515_s1 + $0x2cb0] sm:$0xff]   ;;  %v23492_v7 = vld [vmem:[%s29515_s1 + $0x2cf8] sm:$0xff]  }
 0x57c   :  { %21624 = vmatprep.subr.bf16.mxu0 %v23458_v17  ;;  %v218_v14 = vld [vmem:[%s29516_s0 + $0x598] sm:$0xff]  ;;  %v217_v17 = vld [vmem:[%s29516_s0 + $0x590] sm:$0xff]  ;;  %v23498_v21 = vld [vmem:[%s29515_s1 + $0x2d48] sm:$0xff]  }
 0x57d   :  { %21645 = vmatpush3.bf16.msra.mxu1 %v23457_v16  ;;  %v424_v15 = vpack.c.bf16 %v218_v14, %v218_v14  ;;  %v23495_v16 = vld [vmem:[%s29515_s1 + $0x2d00] sm:$0xff]   ;;  %v23532_v11 = vld [vmem:[%s29515_s1 + $0x2ec8] sm:$0xff]   ;;  %v23535_v14 = vld [vmem:[%s29515_s1 + $0x2e10] sm:$0xff]  }
 0x57e   :  { %21646 = vmatprep.subr.bf16.mxu1 %v23460_v19  ;;  %v23496_v19 = vld [vmem:[%s29515_s1 + $0x2dc0] sm:$0xff]  }
 0x57f   :  { %21625 = vmatpush3.bf16.msra.mxu0 %v23459_v18  ;;  %v423_v18 = vpack.c.bf16 %v217_v17, %v217_v17  ;;  %v23538_v17 = vld [vmem:[%s29515_s1 + $0x2e58] sm:$0xff]  }
 0x580   :  { %21654 = vmatprep.subr.bf16.mxu0 %v23462_v25  ;;  %v23502_v25 = vld [vmem:[%s29515_s1 + $0x2d50] sm:$0xff]  }
 0x581   :  { %21647 = vmatpush3.bf16.msra.mxu1 %v23461_v22  ;;  %v23499_v22 = vld [vmem:[%s29515_s1 + $0x2d08] sm:$0xff]  }
 0x582   :  { %17066 = vmatmul.mubr.bf16.vlgmr.msra.gmra.mrb[172].mxu0 %v417_v24  ;;  %21676 = vmatprep.subr.bf16.mxu1 %v23464_v31  ;;  %v23501_v24 = vld [vmem:[%s29515_s1 + $0x2d88] sm:$0xff]   ;;  %v23507_v31 = vld [vmem:[%s29515_s1 + $0x2d18] sm:$0xff]  }
 0x583   :  { %21655 = vmatpush3.bf16.msra.mxu0 %v23463_v28  ;;  %v23505_v28 = vld [vmem:[%s29515_s1 + $0x2d90] sm:$0xff]  }
 0x584   :  { %17106 = vmatmul.mubr.bf16.vlgmr.msra.gmra.mrb[172].mxu1 %v419_v30  ;;  %21656 = vmatprep.subr.bf16.mxu0 %v23466_v33  ;;  %v23508_v33 = vld [vmem:[%s29515_s1 + $0x2dd8] sm:$0xff]  }
 0x585   :  { %21677 = vmatpush3.bf16.msra.mxu1 %v23465_v32  ;;  %17185 = vmatprep.mubr.bf16.mxu1 %v424_v15  ;;  %v23536_v15 = vld [vmem:[%s29515_s1 + $0x2ed0] sm:$0xff]  }
 0x586   :  { %21678 = vmatprep.subr.bf16.mxu1 %v23468_v35 }
 0x587   :  { %21657 = vmatpush3.bf16.msra.mxu0 %v23467_v34 }
 0x588   :  { %21658 = vmatprep.subr.bf16.mxu0 %v23470_v37 }
 0x589   :  { %21679 = vmatpush3.bf16.msra.mxu1 %v23469_v36  ;;  %v23509_v36 = vld [vmem:[%s29515_s1 + $0x2d98] sm:$0xff]  }
 0x58a   :  { %21680 = vmatprep.subr.bf16.mxu1 %v23472_v39 }
 0x58b   :  { %21659 = vmatpush3.bf16.msra.mxu0 %v23471_v38  ;;  %v23510_v38 = vld [vmem:[%s29515_s1 + $0x2d60] sm:$0xff]  }
 0x58c   :  { %21660 = vmatprep.subr.bf16.mxu0 %v23474_v41  ;;  %v23511_v41 = vld [vmem:[%s29515_s1 + $0x2d20] sm:$0xff]  }
 0x58d   :  { %21681 = vmatpush3.bf16.msra.mxu1 %v23473_v40 }
 0x58e   :  { %21682 = vmatprep.subr.bf16.mxu1 %v23476_v44 }
 0x58f   :  { %21661 = vmatpush3.bf16.msra.mxu0 %v23475_v42 }
 0x590   :  { %21662 = vmatprep.subr.bf16.mxu0 %v23478_v49 }
 0x591   :  { %21683 = vmatpush3.bf16.msra.mxu1 %v23477_v46  ;;  %v23513_v46 = vld [vmem:[%s29515_s1 + $0x2da0] sm:$0xff]  }
 0x592   :  { %21684 = vmatprep.subr.bf16.mxu1 %v23480_v54  ;;  %v23519_v54 = vld [vmem:[%s29515_s1 + $0x2d30] sm:$0xff]  }
 0x593   :  { %21663 = vmatpush3.bf16.msra.mxu0 %v23479_v51  ;;  %v23516_v51 = vld [vmem:[%s29515_s1 + $0x2de8] sm:$0xff]  }
 0x594   :  { %21664 = vmatprep.subr.bf16.mxu0 %v23482_v59  ;;  %v23524_v59 = vld [vmem:[%s29515_s1 + $0x2df8] sm:$0xff]  }
 0x595   :  { %v21362_v43 = vpop.f32.mrb[148].mxu0  ;;  %21685 = vmatpush3.bf16.msra.mxu1 %v23481_v56  ;;  %v23521_v56 = vld [vmem:[%s29515_s1 + $0x2db0] sm:$0xff]  }
 0x596   :  { %v21363_v45 = vpop.f32.mrb[149].mxu0  ;;  %21686 = vmatprep.subr.bf16.mxu1 %v23484_v63  ;;  %v219_v63 = vld [vmem:[%s29516_s0 + $0x5a0] sm:$0xff] }
 0x597   :  { %v21364_v47 = vadd.f32 %v21363_v45, %v21362_v43  ;;  %v21365_v48 = vpop.f32.mrb[150].mxu0  ;;  %v21384_v50 = vpop.f32.mrb[148].mxu1  ;;  %21665 = vmatpush3.bf16.msra.mxu0 %v23483_v61  ;;  %v23512_v43 = vld [vmem:[%s29515_s1 + $0x2de0] sm:$0xff]  }
 0x598   :  { %v21366_v53 = vpop.f32.mrb[151].mxu0  ;;  %v21385_v55 = vpop.f32.mrb[149].mxu1  ;;  %21666 = vmatprep.subr.bf16.mxu0 %v23486_v1  ;;  %v23514_v48 = vld [vmem:[%s29515_s1 + $0x2d68] sm:$0xff]   ;;  %v23526_v1 = vld [vmem:[%s29515_s1 + $0x2e40] sm:$0xff]  }
 0x599   :  { %v16588_v52 = vadd.f32 %v21364_v47, %v28581_v9  ;;  %v21386_v57 = vadd.f32 %v21385_v55, %v21384_v50  ;;  %v21387_v58 = vpop.f32.mrb[150].mxu1  ;;  %21687 = vmatpush3.bf16.msra.mxu1 %v23485_v0  ;;  %v422_v9 = vpack.c.bf16 %v216_v8, %v216_v8  ;;  %v23515_v50 = vld [vmem:[%s29515_s1 + $0x2d28] sm:$0xff]   ;;  %v23518_v53 = vld [vmem:[%s29515_s1 + $0x2d70] sm:$0xff]   ;;  %v425_v0 = vpack.c.bf16 %v219_v63, %v219_v63  ;;  %v23529_v8 = vld [vmem:[%s29515_s1 + $0x2e80] sm:$0xff]  }
 0x59a   :  { %v21388_v60 = vpop.f32.mrb[151].mxu1  ;;  %21688 = vmatprep.subr.bf16.mxu1 %v23488_v3  ;;  %v23520_v55 = vld [vmem:[%s29515_s1 + $0x2df0] sm:$0xff]   ;;  %v23523_v58 = vld [vmem:[%s29515_s1 + $0x2d38] sm:$0xff]   ;;  %v23564_v63 = vld [vmem:[%s29515_s1 + $0x2fc8] sm:$0xff]  }
 0x59b   :  { %v28695_v62 = vadd.f32 %v21386_v57, %v16588_v52  ;;  %21667 = vmatpush3.bf16.msra.mxu0 %v23487_v2  ;;  %17145 = vmatprep.mubr.bf16.mxu0 %v422_v9  ;;  %v23517_v52 = vld [vmem:[%s29515_s1 + $0x2da8] sm:$0xff]   ;;  %v23522_v57 = vld [vmem:[%s29515_s1 + $0x2d78] sm:$0xff]  }
 0x59c   :  { %21668 = vmatprep.subr.bf16.mxu0 %v23490_v5  ;;  %v220_v60 = vld [vmem:[%s29516_s0 + $0x5a8] sm:$0xff]  ;;  %v222_v2 = vld [vmem:[%s29516_s0 + $0x5b8] sm:$0xff]  ;;  %v221_v5 = vld [vmem:[%s29516_s0 + $0x5b0] sm:$0xff] }
 0x59d   :  { %21689 = vmatpush3.bf16.msra.mxu1 %v23489_v4  ;;  %v426_v61 = vpack.c.bf16 %v220_v60, %v220_v60  ;;  %v428_v3 = vpack.c.bf16 %v222_v2, %v222_v2  ;;  %v23527_v4 = vld [vmem:[%s29515_s1 + $0x2e00] sm:$0xff]   ;;  %v23530_v9 = vld [vmem:[%s29515_s1 + $0x2e48] sm:$0xff]   ;;  %v23567_v2 = vld [vmem:[%s29515_s1 + $0x2f10] sm:$0xff]  }
 0x59e   :  { %21690 = vmatprep.subr.bf16.mxu1 %v23492_v7  ;;  %v23528_v7 = vld [vmem:[%s29515_s1 + $0x2ec0] sm:$0xff]  }
 0x59f   :  { %21669 = vmatpush3.bf16.msra.mxu0 %v23491_v6  ;;  %v427_v6 = vpack.c.bf16 %v221_v5, %v221_v5  ;;  %v23561_v60 = vld [vmem:[%s29515_s1 + $0x2f80] sm:$0xff]   ;;  %v23570_v5 = vld [vmem:[%s29515_s1 + $0x2f58] sm:$0xff]  }
 0x5a0   :  { %21698 = vmatprep.subr.bf16.mxu0 %v23494_v13  ;;  %v23534_v13 = vld [vmem:[%s29515_s1 + $0x2e50] sm:$0xff]  }
 0x5a1   :  { %21691 = vmatpush3.bf16.msra.mxu1 %v23493_v10  ;;  %v23531_v10 = vld [vmem:[%s29515_s1 + $0x2e08] sm:$0xff]  }
 0x5a2   :  { %17146 = vmatmul.mubr.bf16.vlgmr.msra.gmra.mrb[176].mxu0 %v421_v12  ;;  %21720 = vmatprep.subr.bf16.mxu1 %v23496_v19  ;;  %v23533_v12 = vld [vmem:[%s29515_s1 + $0x2e88] sm:$0xff]   ;;  %v23539_v19 = vld [vmem:[%s29515_s1 + $0x2e18] sm:$0xff]  }
 0x5a3   :  { %21699 = vmatpush3.bf16.msra.mxu0 %v23495_v16  ;;  %17225 = vmatprep.mubr.bf16.mxu0 %v426_v61  ;;  %v23537_v16 = vld [vmem:[%s29515_s1 + $0x2e90] sm:$0xff]   ;;  %v23562_v61 = vld [vmem:[%s29515_s1 + $0x2f48] sm:$0xff]  }
 0x5a4   :  { %17186 = vmatmul.mubr.bf16.vlgmr.msra.gmra.mrb[176].mxu1 %v423_v18  ;;  %21700 = vmatprep.subr.bf16.mxu0 %v23498_v21  ;;  %v23540_v21 = vld [vmem:[%s29515_s1 + $0x2ed8] sm:$0xff]  }
 0x5a5   :  { %21721 = vmatpush3.bf16.msra.mxu1 %v23497_v20  ;;  %17265 = vmatprep.mubr.bf16.mxu1 %v428_v3  ;;  %v23568_v3 = vld [vmem:[%s29515_s1 + $0x2fd0] sm:$0xff]  }
 0x5a6   :  { %21722 = vmatprep.subr.bf16.mxu1 %v23500_v23 }
 0x5a7   :  { %21701 = vmatpush3.bf16.msra.mxu0 %v23499_v22 }
 0x5a8   :  { %21702 = vmatprep.subr.bf16.mxu0 %v23502_v25 }
 0x5a9   :  { %21723 = vmatpush3.bf16.msra.mxu1 %v23501_v24  ;;  %v23541_v24 = vld [vmem:[%s29515_s1 + $0x2e98] sm:$0xff]  }
 0x5aa   :  { %21724 = vmatprep.subr.bf16.mxu1 %v23504_v27 }
 0x5ab   :  { %21703 = vmatpush3.bf16.msra.mxu0 %v23503_v26  ;;  %v23542_v26 = vld [vmem:[%s29515_s1 + $0x2e60] sm:$0xff]  }
 0x5ac   :  { %21704 = vmatprep.subr.bf16.mxu0 %v23506_v29  ;;  %v23543_v29 = vld [vmem:[%s29515_s1 + $0x2e20] sm:$0xff]  }
 0x5ad   :  { %21725 = vmatpush3.bf16.msra.mxu1 %v23505_v28 }
 0x5ae   :  { %21726 = vmatprep.subr.bf16.mxu1 %v23508_v33 }
 0x5af   :  { %21705 = vmatpush3.bf16.msra.mxu0 %v23507_v31  ;;  %v23544_v31 = vld [vmem:[%s29515_s1 + $0x2ee0] sm:$0xff]  }
 0x5b0   :  { %21706 = vmatprep.subr.bf16.mxu0 %v23510_v38  ;;  %v23547_v38 = vld [vmem:[%s29515_s1 + $0x2e28] sm:$0xff]  }
 0x5b1   :  { %21727 = vmatpush3.bf16.msra.mxu1 %v23509_v36  ;;  %v23546_v36 = vld [vmem:[%s29515_s1 + $0x2e68] sm:$0xff]  }
 0x5b2   :  { %21728 = vmatprep.subr.bf16.mxu1 %v23512_v43  ;;  %v23552_v43 = vld [vmem:[%s29515_s1 + $0x2ef0] sm:$0xff]  }
 0x5b3   :  { %21707 = vmatpush3.bf16.msra.mxu0 %v23511_v41  ;;  %v23550_v41 = vld [vmem:[%s29515_s1 + $0x2e70] sm:$0xff]  }
 0x5b4   :  { %21708 = vmatprep.subr.bf16.mxu0 %v23514_v48  ;;  %v224_v48 = vld [vmem:[%s29516_s0 + $0x5c8] sm:$0xff] }
 0x5b5   :  { %v21406_v30 = vpop.f32.mrb[152].mxu0  ;;  %21729 = vmatpush3.bf16.msra.mxu1 %v23513_v46  ;;  %v23555_v46 = vld [vmem:[%s29515_s1 + $0x2e38] sm:$0xff]  }
 0x5b6   :  { %v21407_v32 = vpop.f32.mrb[153].mxu0  ;;  %21730 = vmatprep.subr.bf16.mxu1 %v23516_v51  ;;  %v223_v51 = vld [vmem:[%s29516_s0 + $0x5c0] sm:$0xff] }
 0x5b7   :  { %v21408_v34 = vadd.f32 %v21407_v32, %v21406_v30  ;;  %v21409_v35 = vpop.f32.mrb[154].mxu0  ;;  %v21428_v37 = vpop.f32.mrb[152].mxu1  ;;  %21709 = vmatpush3.bf16.msra.mxu0 %v23515_v50  ;;  %v23557_v50 = vld [vmem:[%s29515_s1 + $0x2eb8] sm:$0xff]  }
 0x5b8   :  { %v21410_v40 = vpop.f32.mrb[155].mxu0  ;;  %v21429_v42 = vpop.f32.mrb[153].mxu1  ;;  %21710 = vmatprep.subr.bf16.mxu0 %v23518_v53  ;;  %v23558_v53 = vld [vmem:[%s29515_s1 + $0x2f40] sm:$0xff]  }
 0x5b9   :  { %v16668_v39 = vadd.f32 %v21408_v34, %v28695_v62  ;;  %v21430_v44 = vadd.f32 %v21429_v42, %v21428_v37  ;;  %v21431_v45 = vpop.f32.mrb[154].mxu1  ;;  %21731 = vmatpush3.bf16.msra.mxu1 %v23517_v52  ;;  %v23525_v62 = vld [vmem:[%s29515_s1 + $0x2db8] sm:$0xff]   ;;  %v23545_v34 = vld [vmem:[%s29515_s1 + $0x2ea0] sm:$0xff]   ;;  %v23549_v40 = vld [vmem:[%s29515_s1 + $0x2ea8] sm:$0xff]   ;;  %v429_v52 = vpack.c.bf16 %v223_v51, %v223_v51 }
 0x5ba   :  { %v21432_v47 = vpop.f32.mrb[155].mxu1  ;;  %21732 = vmatprep.subr.bf16.mxu1 %v23520_v55  ;;  %v23551_v42 = vld [vmem:[%s29515_s1 + $0x2e30] sm:$0xff]   ;;  %v23554_v45 = vld [vmem:[%s29515_s1 + $0x2e78] sm:$0xff]   ;;  %v23596_v51 = vld [vmem:[%s29515_s1 + $0x30c8] sm:$0xff]  }
 0x5bb   :  { %v28803_v49 = vadd.f32 %v21430_v44, %v16668_v39  ;;  %21711 = vmatpush3.bf16.msra.mxu0 %v23519_v54  ;;  %v23548_v39 = vld [vmem:[%s29515_s1 + $0x2ee8] sm:$0xff]   ;;  %v23553_v44 = vld [vmem:[%s29515_s1 + $0x2eb0] sm:$0xff]   ;;  %v23556_v47 = vld [vmem:[%s29515_s1 + $0x2ef8] sm:$0xff]  }
 0x5bc   :  { %21712 = vmatprep.subr.bf16.mxu0 %v23522_v57  ;;  %v226_v54 = vld [vmem:[%s29516_s0 + $0x5d8] sm:$0xff]  ;;  %v225_v57 = vld [vmem:[%s29516_s0 + $0x5d0] sm:$0xff] }
 0x5bd   :  { %21733 = vmatpush3.bf16.msra.mxu1 %v23521_v56  ;;  %v432_v55 = vpack.c.bf16 %v226_v54, %v226_v54  ;;  %v23559_v56 = vld [vmem:[%s29515_s1 + $0x2f00] sm:$0xff]   ;;  %v23599_v54 = vld [vmem:[%s29515_s1 + $0x3010] sm:$0xff]  }
 0x5be   :  { %21734 = vmatprep.subr.bf16.mxu1 %v23524_v59  ;;  %v23560_v59 = vld [vmem:[%s29515_s1 + $0x2fc0] sm:$0xff]  }
 0x5bf   :  { %21713 = vmatpush3.bf16.msra.mxu0 %v23523_v58  ;;  %v431_v58 = vpack.c.bf16 %v225_v57, %v225_v57  ;;  %v23602_v57 = vld [vmem:[%s29515_s1 + $0x3058] sm:$0xff]  }
 0x5c0   :  { %21742 = vmatprep.subr.bf16.mxu0 %v23526_v1  ;;  %v23566_v1 = vld [vmem:[%s29515_s1 + $0x2f50] sm:$0xff]  }
 0x5c1   :  { %21735 = vmatpush3.bf16.msra.mxu1 %v23525_v62  ;;  %v23563_v62 = vld [vmem:[%s29515_s1 + $0x2f08] sm:$0xff]  }
 0x5c2   :  { %17226 = vmatmul.mubr.bf16.vlgmr.msra.gmra.mrb[180].mxu0 %v425_v0  ;;  %21764 = vmatprep.subr.bf16.mxu1 %v23528_v7  ;;  %v23565_v0 = vld [vmem:[%s29515_s1 + $0x2f88] sm:$0xff]  }
 0x5c3   :  { %21743 = vmatpush3.bf16.msra.mxu0 %v23527_v4  ;;  %v23569_v4 = vld [vmem:[%s29515_s1 + $0x2f90] sm:$0xff]  }
 0x5c4   :  { %17266 = vmatmul.mubr.bf16.vlgmr.msra.gmra.mrb[180].mxu1 %v427_v6  ;;  %21744 = vmatprep.subr.bf16.mxu0 %v23530_v9  ;;  %v23571_v6 = vld [vmem:[%s29515_s1 + $0x2f18] sm:$0xff]  }
 0x5c5   :  { %21765 = vmatpush3.bf16.msra.mxu1 %v23529_v8  ;;  %17345 = vmatprep.mubr.bf16.mxu1 %v432_v55  ;;  %v23572_v8 = vld [vmem:[%s29515_s1 + $0x2fd8] sm:$0xff]   ;;  %v23600_v55 = vld [vmem:[%s29515_s1 + $0x30d0] sm:$0xff]  }
 0x5c6   :  { %21766 = vmatprep.subr.bf16.mxu1 %v23532_v11 }
 0x5c7   :  { %21745 = vmatpush3.bf16.msra.mxu0 %v23531_v10  ;;  %v23573_v10 = vld [vmem:[%s29515_s1 + $0x2f98] sm:$0xff]  }
 0x5c8   :  { %21746 = vmatprep.subr.bf16.mxu0 %v23534_v13  ;;  %v23574_v13 = vld [vmem:[%s29515_s1 + $0x2f60] sm:$0xff]  }
 0x5c9   :  { %21767 = vmatpush3.bf16.msra.mxu1 %v23533_v12 }
 0x5ca   :  { %21768 = vmatprep.subr.bf16.mxu1 %v23536_v15  ;;  %v23575_v15 = vld [vmem:[%s29515_s1 + $0x2f20] sm:$0xff]  }
 0x5cb   :  { %21747 = vmatpush3.bf16.msra.mxu0 %v23535_v14 }
 0x5cc   :  { %21748 = vmatprep.subr.bf16.mxu0 %v23538_v17 }
 0x5cd   :  { %21769 = vmatpush3.bf16.msra.mxu1 %v23537_v16 }
 0x5ce   :  { %21770 = vmatprep.subr.bf16.mxu1 %v23540_v21 }
 0x5cf   :  { %21749 = vmatpush3.bf16.msra.mxu0 %v23539_v19 }
 0x5d0   :  { %21750 = vmatprep.subr.bf16.mxu0 %v23542_v26 }
 0x5d1   :  { %21771 = vmatpush3.bf16.msra.mxu1 %v23541_v24 }
 0x5d2   :  { %21772 = vmatprep.subr.bf16.mxu1 %v23544_v31  ;;  %v23584_v31 = vld [vmem:[%s29515_s1 + $0x2ff0] sm:$0xff]  }
 0x5d3   :  { %21751 = vmatpush3.bf16.msra.mxu0 %v23543_v29  ;;  %v23582_v29 = vld [vmem:[%s29515_s1 + $0x2f70] sm:$0xff]  }
 0x5d4   :  { %21752 = vmatprep.subr.bf16.mxu0 %v23546_v36  ;;  %v228_v36 = vld [vmem:[%s29516_s0 + $0x5e8] sm:$0xff] }
 0x5d5   :  { %v21450_v18 = vpop.f32.mrb[156].mxu0  ;;  %21773 = vmatpush3.bf16.msra.mxu1 %v23545_v34  ;;  %v23587_v34 = vld [vmem:[%s29515_s1 + $0x2f38] sm:$0xff]  }
 0x5d6   :  { %v21451_v20 = vpop.f32.mrb[157].mxu0  ;;  %21774 = vmatprep.subr.bf16.mxu1 %v23548_v39  ;;  %v227_v39 = vld [vmem:[%s29516_s0 + $0x5e0] sm:$0xff] }
 0x5d7   :  { %v21452_v22 = vadd.f32 %v21451_v20, %v21450_v18  ;;  %v21453_v23 = vpop.f32.mrb[158].mxu0  ;;  %v21472_v25 = vpop.f32.mrb[156].mxu1  ;;  %21753 = vmatpush3.bf16.msra.mxu0 %v23547_v38  ;;  %v23576_v18 = vld [vmem:[%s29515_s1 + $0x2fe0] sm:$0xff]   ;;  %v23589_v38 = vld [vmem:[%s29515_s1 + $0x2fb8] sm:$0xff]  }
 0x5d8   :  { %v21454_v28 = vpop.f32.mrb[159].mxu0  ;;  %v21473_v30 = vpop.f32.mrb[157].mxu1  ;;  %21754 = vmatprep.subr.bf16.mxu0 %v23550_v41  ;;  %v23577_v20 = vld [vmem:[%s29515_s1 + $0x2fa0] sm:$0xff]   ;;  %v23578_v23 = vld [vmem:[%s29515_s1 + $0x2f68] sm:$0xff]  }
 0x5d9   :  { %v16748_v27 = vadd.f32 %v21452_v22, %v28803_v49  ;;  %v21474_v32 = vadd.f32 %v21473_v30, %v21472_v25  ;;  %v21475_v33 = vpop.f32.mrb[158].mxu1  ;;  %21775 = vmatpush3.bf16.msra.mxu1 %v23549_v40  ;;  %v430_v49 = vpack.c.bf16 %v224_v48, %v224_v48  ;;  %v23579_v25 = vld [vmem:[%s29515_s1 + $0x2f28] sm:$0xff]   ;;  %v23583_v30 = vld [vmem:[%s29515_s1 + $0x2f30] sm:$0xff]   ;;  %v433_v40 = vpack.c.bf16 %v227_v39, %v227_v39  ;;  %v23590_v41 = vld [vmem:[%s29515_s1 + $0x3040] sm:$0xff]  }
 0x5da   :  { %v21476_v35 = vpop.f32.mrb[159].mxu1  ;;  %21776 = vmatprep.subr.bf16.mxu1 %v23552_v43  ;;  %v23581_v28 = vld [vmem:[%s29515_s1 + $0x2fa8] sm:$0xff]   ;;  %v23586_v33 = vld [vmem:[%s29515_s1 + $0x2f78] sm:$0xff]   ;;  %v23593_v48 = vld [vmem:[%s29515_s1 + $0x3080] sm:$0xff]  }
 0x5db   :  { %v28914_v37 = vadd.f32 %v21474_v32, %v16748_v27  ;;  %21755 = vmatpush3.bf16.msra.mxu0 %v23551_v42  ;;  %17305 = vmatprep.mubr.bf16.mxu0 %v430_v49  ;;  %v23580_v27 = vld [vmem:[%s29515_s1 + $0x2fe8] sm:$0xff]   ;;  %v23585_v32 = vld [vmem:[%s29515_s1 + $0x2fb0] sm:$0xff]   ;;  %v23588_v35 = vld [vmem:[%s29515_s1 + $0x2ff8] sm:$0xff]  }
 0x5dc   :  { %21756 = vmatprep.subr.bf16.mxu0 %v23554_v45  ;;  %v230_v42 = vld [vmem:[%s29516_s0 + $0x5f8] sm:$0xff]  ;;  %v229_v45 = vld [vmem:[%s29516_s0 + $0x5f0] sm:$0xff]  ;;  %v23594_v49 = vld [vmem:[%s29515_s1 + $0x3048] sm:$0xff]  }
 0x5dd   :  { %21777 = vmatpush3.bf16.msra.mxu1 %v23553_v44  ;;  %v436_v43 = vpack.c.bf16 %v230_v42, %v230_v42  ;;  %v23591_v44 = vld [vmem:[%s29515_s1 + $0x3000] sm:$0xff]   ;;  %v23628_v39 = vld [vmem:[%s29515_s1 + $0x31c8] sm:$0xff]   ;;  %v23631_v42 = vld [vmem:[%s29515_s1 + $0x3110] sm:$0xff]  }
 0x5de   :  { %21778 = vmatprep.subr.bf16.mxu1 %v23556_v47  ;;  %v23592_v47 = vld [vmem:[%s29515_s1 + $0x30c0] sm:$0xff]  }
 0x5df   :  { %21757 = vmatpush3.bf16.msra.mxu0 %v23555_v46  ;;  %v435_v46 = vpack.c.bf16 %v229_v45, %v229_v45  ;;  %v23634_v45 = vld [vmem:[%s29515_s1 + $0x3158] sm:$0xff]  }
 0x5e0   :  { %21786 = vmatprep.subr.bf16.mxu0 %v23558_v53  ;;  %v23598_v53 = vld [vmem:[%s29515_s1 + $0x3050] sm:$0xff]  }
 0x5e1   :  { %21779 = vmatpush3.bf16.msra.mxu1 %v23557_v50  ;;  %v23595_v50 = vld [vmem:[%s29515_s1 + $0x3008] sm:$0xff]  }
 0x5e2   :  { %17306 = vmatmul.mubr.bf16.vlgmr.msra.gmra.mrb[184].mxu0 %v429_v52  ;;  %21808 = vmatprep.subr.bf16.mxu1 %v23560_v59  ;;  %v23597_v52 = vld [vmem:[%s29515_s1 + $0x3088] sm:$0xff]   ;;  %v23603_v59 = vld [vmem:[%s29515_s1 + $0x3018] sm:$0xff]  }
 0x5e3   :  { %21787 = vmatpush3.bf16.msra.mxu0 %v23559_v56  ;;  %v23601_v56 = vld [vmem:[%s29515_s1 + $0x3090] sm:$0xff]  }
 0x5e4   :  { %17346 = vmatmul.mubr.bf16.vlgmr.msra.gmra.mrb[184].mxu1 %v431_v58  ;;  %21788 = vmatprep.subr.bf16.mxu0 %v23562_v61  ;;  %v23604_v61 = vld [vmem:[%s29515_s1 + $0x30d8] sm:$0xff]  }
 0x5e5   :  { %21809 = vmatpush3.bf16.msra.mxu1 %v23561_v60  ;;  %17425 = vmatprep.mubr.bf16.mxu1 %v436_v43  ;;  %v23632_v43 = vld [vmem:[%s29515_s1 + $0x31d0] sm:$0xff]  }
 0x5e6   :  { %21810 = vmatprep.subr.bf16.mxu1 %v23564_v63 }
 0x5e7   :  { %21789 = vmatpush3.bf16.msra.mxu0 %v23563_v62 }
 0x5e8   :  { %21790 = vmatprep.subr.bf16.mxu0 %v23566_v1 }
 0x5e9   :  { %21811 = vmatpush3.bf16.msra.mxu1 %v23565_v0  ;;  %v23605_v0 = vld [vmem:[%s29515_s1 + $0x3098] sm:$0xff]  }
 0x5ea   :  { %21812 = vmatprep.subr.bf16.mxu1 %v23568_v3 }
 0x5eb   :  { %21791 = vmatpush3.bf16.msra.mxu0 %v23567_v2  ;;  %v23606_v2 = vld [vmem:[%s29515_s1 + $0x3060] sm:$0xff]  }
 0x5ec   :  { %21792 = vmatprep.subr.bf16.mxu0 %v23570_v5  ;;  %v23607_v5 = vld [vmem:[%s29515_s1 + $0x3020] sm:$0xff]  }
 0x5ed   :  { %21813 = vmatpush3.bf16.msra.mxu1 %v23569_v4 }
 0x5ee   :  { %21814 = vmatprep.subr.bf16.mxu1 %v23572_v8 }
 0x5ef   :  { %21793 = vmatpush3.bf16.msra.mxu0 %v23571_v6 }
 0x5f0   :  { %21794 = vmatprep.subr.bf16.mxu0 %v23574_v13 }
 0x5f1   :  { %21815 = vmatpush3.bf16.msra.mxu1 %v23573_v10  ;;  %v23609_v10 = vld [vmem:[%s29515_s1 + $0x30a0] sm:$0xff]  }
 0x5f2   :  { %21816 = vmatprep.subr.bf16.mxu1 %v23576_v18  ;;  %v23615_v18 = vld [vmem:[%s29515_s1 + $0x3030] sm:$0xff]  }
 0x5f3   :  { %21795 = vmatpush3.bf16.msra.mxu0 %v23575_v15  ;;  %v23612_v15 = vld [vmem:[%s29515_s1 + $0x30e8] sm:$0xff]  }
 0x5f4   :  { %21796 = vmatprep.subr.bf16.mxu0 %v23578_v23  ;;  %v23620_v23 = vld [vmem:[%s29515_s1 + $0x30f8] sm:$0xff]  }
 0x5f5   :  { %v21494_v7 = vpop.f32.mrb[160].mxu0  ;;  %21817 = vmatpush3.bf16.msra.mxu1 %v23577_v20  ;;  %v23617_v20 = vld [vmem:[%s29515_s1 + $0x30b0] sm:$0xff]  }
 0x5f6   :  { %v21495_v9 = vpop.f32.mrb[161].mxu0  ;;  %21818 = vmatprep.subr.bf16.mxu1 %v23580_v27  ;;  %v231_v27 = vld [vmem:[%s29516_s0 + $0x600] sm:$0xff] }
 0x5f7   :  { %v21496_v11 = vadd.f32 %v21495_v9, %v21494_v7  ;;  %v21497_v12 = vpop.f32.mrb[162].mxu0  ;;  %v21516_v14 = vpop.f32.mrb[160].mxu1  ;;  %21797 = vmatpush3.bf16.msra.mxu0 %v23579_v25  ;;  %v23608_v7 = vld [vmem:[%s29515_s1 + $0x30e0] sm:$0xff]  }
 0x5f8   :  { %v21498_v17 = vpop.f32.mrb[163].mxu0  ;;  %v21517_v19 = vpop.f32.mrb[161].mxu1  ;;  %21798 = vmatprep.subr.bf16.mxu0 %v23582_v29  ;;  %v23610_v12 = vld [vmem:[%s29515_s1 + $0x3068] sm:$0xff]   ;;  %v23622_v29 = vld [vmem:[%s29515_s1 + $0x3140] sm:$0xff]  }
 0x5f9   :  { %v16828_v16 = vadd.f32 %v21496_v11, %v28914_v37  ;;  %v21518_v21 = vadd.f32 %v21517_v19, %v21516_v14  ;;  %v21519_v22 = vpop.f32.mrb[162].mxu1  ;;  %21819 = vmatpush3.bf16.msra.mxu1 %v23581_v28  ;;  %v434_v37 = vpack.c.bf16 %v228_v36, %v228_v36  ;;  %v23611_v14 = vld [vmem:[%s29515_s1 + $0x3028] sm:$0xff]   ;;  %v23614_v17 = vld [vmem:[%s29515_s1 + $0x3070] sm:$0xff]   ;;  %v437_v28 = vpack.c.bf16 %v231_v27, %v231_v27  ;;  %v23625_v36 = vld [vmem:[%s29515_s1 + $0x3180] sm:$0xff]  }
 0x5fa   :  { %v21520_v24 = vpop.f32.mrb[163].mxu1  ;;  %21820 = vmatprep.subr.bf16.mxu1 %v23584_v31  ;;  %v23616_v19 = vld [vmem:[%s29515_s1 + $0x30f0] sm:$0xff]   ;;  %v23619_v22 = vld [vmem:[%s29515_s1 + $0x3038] sm:$0xff]   ;;  %v23660_v27 = vld [vmem:[%s29515_s1 + $0x32c8] sm:$0xff]  }
 0x5fb   :  { %v29028_v26 = vadd.f32 %v21518_v21, %v16828_v16  ;;  %21799 = vmatpush3.bf16.msra.mxu0 %v23583_v30  ;;  %17385 = vmatprep.mubr.bf16.mxu0 %v434_v37  ;;  %v23613_v16 = vld [vmem:[%s29515_s1 + $0x30a8] sm:$0xff]   ;;  %v23618_v21 = vld [vmem:[%s29515_s1 + $0x3078] sm:$0xff]  }
 0x5fc   :  { %21800 = vmatprep.subr.bf16.mxu0 %v23586_v33  ;;  %v232_v24 = vld [vmem:[%s29516_s0 + $0x608] sm:$0xff]  ;;  %v234_v30 = vld [vmem:[%s29516_s0 + $0x618] sm:$0xff]  ;;  %v233_v33 = vld [vmem:[%s29516_s0 + $0x610] sm:$0xff] }
 0x5fd   :  { %21821 = vmatpush3.bf16.msra.mxu1 %v23585_v32  ;;  %v438_v25 = vpack.c.bf16 %v232_v24, %v232_v24  ;;  %v440_v31 = vpack.c.bf16 %v234_v30, %v234_v30  ;;  %v23623_v32 = vld [vmem:[%s29515_s1 + $0x3100] sm:$0xff]   ;;  %v23626_v37 = vld [vmem:[%s29515_s1 + $0x3148] sm:$0xff]   ;;  %v23663_v30 = vld [vmem:[%s29515_s1 + $0x3210] sm:$0xff]  }
 0x5fe   :  { %21822 = vmatprep.subr.bf16.mxu1 %v23588_v35  ;;  %v23624_v35 = vld [vmem:[%s29515_s1 + $0x31c0] sm:$0xff]  }
 0x5ff   :  { %21801 = vmatpush3.bf16.msra.mxu0 %v23587_v34  ;;  %v439_v34 = vpack.c.bf16 %v233_v33, %v233_v33  ;;  %v23657_v24 = vld [vmem:[%s29515_s1 + $0x3280] sm:$0xff]   ;;  %v23666_v33 = vld [vmem:[%s29515_s1 + $0x3258] sm:$0xff]  }
 0x600   :  { %21830 = vmatprep.subr.bf16.mxu0 %v23590_v41  ;;  %v23630_v41 = vld [vmem:[%s29515_s1 + $0x3150] sm:$0xff]  }
 0x601   :  { %21823 = vmatpush3.bf16.msra.mxu1 %v23589_v38  ;;  %v23627_v38 = vld [vmem:[%s29515_s1 + $0x3108] sm:$0xff]  }
 0x602   :  { %17386 = vmatmul.mubr.bf16.vlgmr.msra.gmra.mrb[188].mxu0 %v433_v40  ;;  %21852 = vmatprep.subr.bf16.mxu1 %v23592_v47  ;;  %v23629_v40 = vld [vmem:[%s29515_s1 + $0x3188] sm:$0xff]   ;;  %v23635_v47 = vld [vmem:[%s29515_s1 + $0x3118] sm:$0xff]  }
 0x603   :  { %21831 = vmatpush3.bf16.msra.mxu0 %v23591_v44  ;;  %17465 = vmatprep.mubr.bf16.mxu0 %v438_v25  ;;  %v23633_v44 = vld [vmem:[%s29515_s1 + $0x3190] sm:$0xff]   ;;  %v23658_v25 = vld [vmem:[%s29515_s1 + $0x3248] sm:$0xff]  }
 0x604   :  { %17426 = vmatmul.mubr.bf16.vlgmr.msra.gmra.mrb[188].mxu1 %v435_v46  ;;  %21832 = vmatprep.subr.bf16.mxu0 %v23594_v49  ;;  %v23636_v49 = vld [vmem:[%s29515_s1 + $0x31d8] sm:$0xff]  }
 0x605   :  { %21853 = vmatpush3.bf16.msra.mxu1 %v23593_v48  ;;  %17505 = vmatprep.mubr.bf16.mxu1 %v440_v31  ;;  %v23664_v31 = vld [vmem:[%s29515_s1 + $0x32d0] sm:$0xff]  }
 0x606   :  { %21854 = vmatprep.subr.bf16.mxu1 %v23596_v51 }
 0x607   :  { %21833 = vmatpush3.bf16.msra.mxu0 %v23595_v50 }
 0x608   :  { %21834 = vmatprep.subr.bf16.mxu0 %v23598_v53 }
 0x609   :  { %21855 = vmatpush3.bf16.msra.mxu1 %v23597_v52  ;;  %v23637_v52 = vld [vmem:[%s29515_s1 + $0x3198] sm:$0xff]  }
 0x60a   :  { %21856 = vmatprep.subr.bf16.mxu1 %v23600_v55 }
 0x60b   :  { %21835 = vmatpush3.bf16.msra.mxu0 %v23599_v54  ;;  %v23638_v54 = vld [vmem:[%s29515_s1 + $0x3160] sm:$0xff]  }
 0x60c   :  { %21836 = vmatprep.subr.bf16.mxu0 %v23602_v57  ;;  %v23639_v57 = vld [vmem:[%s29515_s1 + $0x3120] sm:$0xff]  }
 0x60d   :  { %21857 = vmatpush3.bf16.msra.mxu1 %v23601_v56 }
 0x60e   :  { %21858 = vmatprep.subr.bf16.mxu1 %v23604_v61 }
 0x60f   :  { %21837 = vmatpush3.bf16.msra.mxu0 %v23603_v59  ;;  %v23640_v59 = vld [vmem:[%s29515_s1 + $0x31e0] sm:$0xff]  }
 0x610   :  { %21838 = vmatprep.subr.bf16.mxu0 %v23606_v2  ;;  %v23643_v2 = vld [vmem:[%s29515_s1 + $0x3128] sm:$0xff]  }
 0x611   :  { %21859 = vmatpush3.bf16.msra.mxu1 %v23605_v0  ;;  %v23642_v0 = vld [vmem:[%s29515_s1 + $0x3168] sm:$0xff]  }
 0x612   :  { %21860 = vmatprep.subr.bf16.mxu1 %v23608_v7  ;;  %v23648_v7 = vld [vmem:[%s29515_s1 + $0x31f0] sm:$0xff]  }
 0x613   :  { %21839 = vmatpush3.bf16.msra.mxu0 %v23607_v5  ;;  %v23646_v5 = vld [vmem:[%s29515_s1 + $0x3170] sm:$0xff]  }
 0x614   :  { %21840 = vmatprep.subr.bf16.mxu0 %v23610_v12  ;;  %v236_v12 = vld [vmem:[%s29516_s0 + $0x628] sm:$0xff] }
 0x615   :  { %v21538_v58 = vpop.f32.mrb[164].mxu0  ;;  %21861 = vmatpush3.bf16.msra.mxu1 %v23609_v10  ;;  %v23651_v10 = vld [vmem:[%s29515_s1 + $0x3138] sm:$0xff]  }
 0x616   :  { %v21539_v60 = vpop.f32.mrb[165].mxu0  ;;  %21862 = vmatprep.subr.bf16.mxu1 %v23612_v15  ;;  %v235_v15 = vld [vmem:[%s29516_s0 + $0x620] sm:$0xff] }
 0x617   :  { %v21540_v62 = vadd.f32 %v21539_v60, %v21538_v58  ;;  %v21541_v63 = vpop.f32.mrb[166].mxu0  ;;  %v21560_v1 = vpop.f32.mrb[164].mxu1  ;;  %21841 = vmatpush3.bf16.msra.mxu0 %v23611_v14  ;;  %v23653_v14 = vld [vmem:[%s29515_s1 + $0x31b8] sm:$0xff]  }
 0x618   :  { %v21542_v4 = vpop.f32.mrb[167].mxu0  ;;  %v21561_v6 = vpop.f32.mrb[165].mxu1  ;;  %21842 = vmatprep.subr.bf16.mxu0 %v23614_v17  ;;  %v23654_v17 = vld [vmem:[%s29515_s1 + $0x3240] sm:$0xff]  }
 0x619   :  { %v16908_v3 = vadd.f32 %v21540_v62, %v29028_v26  ;;  %v21562_v8 = vadd.f32 %v21561_v6, %v21560_v1  ;;  %v21563_v9 = vpop.f32.mrb[166].mxu1  ;;  %21863 = vmatpush3.bf16.msra.mxu1 %v23613_v16  ;;  %v23621_v26 = vld [vmem:[%s29515_s1 + $0x30b8] sm:$0xff]   ;;  %v23641_v62 = vld [vmem:[%s29515_s1 + $0x31a0] sm:$0xff]   ;;  %v23645_v4 = vld [vmem:[%s29515_s1 + $0x31a8] sm:$0xff]   ;;  %v441_v16 = vpack.c.bf16 %v235_v15, %v235_v15 }
 0x61a   :  { %v21564_v11 = vpop.f32.mrb[167].mxu1  ;;  %21864 = vmatprep.subr.bf16.mxu1 %v23616_v19  ;;  %v23647_v6 = vld [vmem:[%s29515_s1 + $0x3130] sm:$0xff]   ;;  %v23650_v9 = vld [vmem:[%s29515_s1 + $0x3178] sm:$0xff]  }
 0x61b   :  { %v29136_v13 = vadd.f32 %v21562_v8, %v16908_v3  ;;  %21843 = vmatpush3.bf16.msra.mxu0 %v23615_v18  ;;  %v23644_v3 = vld [vmem:[%s29515_s1 + $0x31e8] sm:$0xff]   ;;  %v23649_v8 = vld [vmem:[%s29515_s1 + $0x31b0] sm:$0xff]   ;;  %v23652_v11 = vld [vmem:[%s29515_s1 + $0x31f8] sm:$0xff]  }
 0x61c   :  { %21844 = vmatprep.subr.bf16.mxu0 %v23618_v21  ;;  %v238_v18 = vld [vmem:[%s29516_s0 + $0x638] sm:$0xff]  ;;  %v237_v21 = vld [vmem:[%s29516_s0 + $0x630] sm:$0xff] }
 0x61d   :  { %21865 = vmatpush3.bf16.msra.mxu1 %v23617_v20  ;;  %v444_v19 = vpack.c.bf16 %v238_v18, %v238_v18  ;;  %v23655_v20 = vld [vmem:[%s29515_s1 + $0x3200] sm:$0xff]   ;;  %v23689_v15 = vld [vmem:[%s29515_s1 + $0x3318] sm:$0xff]  }
 0x61e   :  { %21866 = vmatprep.subr.bf16.mxu1 %v23620_v23  ;;  %v23656_v23 = vld [vmem:[%s29515_s1 + $0x32c0] sm:$0xff]  }
 0x61f   :  { %21845 = vmatpush3.bf16.msra.mxu0 %v23619_v22  ;;  %v443_v22 = vpack.c.bf16 %v237_v21, %v237_v21  ;;  %v23690_v18 = vld [vmem:[%s29515_s1 + $0x3320] sm:$0xff]  }
 0x620   :  { %21874 = vmatprep.subr.bf16.mxu0 %v23622_v29  ;;  %v23662_v29 = vld [vmem:[%s29515_s1 + $0x3250] sm:$0xff]  }
 0x621   :  { %21867 = vmatpush3.bf16.msra.mxu1 %v23621_v26  ;;  %v23659_v26 = vld [vmem:[%s29515_s1 + $0x3208] sm:$0xff]  }
 0x622   :  { %17466 = vmatmul.mubr.bf16.vlgmr.msra.gmra.mrb[192].mxu0 %v437_v28  ;;  %21896 = vmatprep.subr.bf16.mxu1 %v23624_v35  ;;  %v23661_v28 = vld [vmem:[%s29515_s1 + $0x3288] sm:$0xff]  }
 0x623   :  { %21875 = vmatpush3.bf16.msra.mxu0 %v23623_v32  ;;  %v23665_v32 = vld [vmem:[%s29515_s1 + $0x3290] sm:$0xff]  }
 0x624   :  { %17506 = vmatmul.mubr.bf16.vlgmr.msra.gmra.mrb[192].mxu1 %v439_v34  ;;  %21876 = vmatprep.subr.bf16.mxu0 %v23626_v37  ;;  %v23667_v34 = vld [vmem:[%s29515_s1 + $0x3218] sm:$0xff]  }
 0x625   :  { %21897 = vmatpush3.bf16.msra.mxu1 %v23625_v36  ;;  %17585 = vmatprep.mubr.bf16.mxu1 %v444_v19  ;;  %v23668_v36 = vld [vmem:[%s29515_s1 + $0x32d8] sm:$0xff]  }
 0x626   :  { %21898 = vmatprep.subr.bf16.mxu1 %v23628_v39 }
 0x627   :  { %21877 = vmatpush3.bf16.msra.mxu0 %v23627_v38  ;;  %v23669_v38 = vld [vmem:[%s29515_s1 + $0x3298] sm:$0xff]  }
 0x628   :  { %21878 = vmatprep.subr.bf16.mxu0 %v23630_v41  ;;  %v23670_v41 = vld [vmem:[%s29515_s1 + $0x3260] sm:$0xff]  }
 0x629   :  { %21899 = vmatpush3.bf16.msra.mxu1 %v23629_v40 }
 0x62a   :  { %21900 = vmatprep.subr.bf16.mxu1 %v23632_v43  ;;  %v23671_v43 = vld [vmem:[%s29515_s1 + $0x3220] sm:$0xff]  }
 0x62b   :  { %21879 = vmatpush3.bf16.msra.mxu0 %v23631_v42 }
 0x62c   :  { %21880 = vmatprep.subr.bf16.mxu0 %v23634_v45 }
 0x62d   :  { %21901 = vmatpush3.bf16.msra.mxu1 %v23633_v44 }
 0x62e   :  { %21902 = vmatprep.subr.bf16.mxu1 %v23636_v49 }
 0x62f   :  { %21881 = vmatpush3.bf16.msra.mxu0 %v23635_v47 }
 0x630   :  { %21882 = vmatprep.subr.bf16.mxu0 %v23638_v54 }
 0x631   :  { %21903 = vmatpush3.bf16.msra.mxu1 %v23637_v52 }
 0x632   :  { %21904 = vmatprep.subr.bf16.mxu1 %v23640_v59  ;;  %v23680_v59 = vld [vmem:[%s29515_s1 + $0x32f0] sm:$0xff]  }
 0x633   :  { %21883 = vmatpush3.bf16.msra.mxu0 %v23639_v57  ;;  %v23678_v57 = vld [vmem:[%s29515_s1 + $0x3270] sm:$0xff]  }
 0x634   :  { %21884 = vmatprep.subr.bf16.mxu0 %v23642_v0  ;;  %v240_v0 = vld [vmem:[%s29516_s0 + $0x648] sm:$0xff] }
 0x635   :  { %v21582_v46 = vpop.f32.mrb[168].mxu0  ;;  %21905 = vmatpush3.bf16.msra.mxu1 %v23641_v62  ;;  %v23683_v62 = vld [vmem:[%s29515_s1 + $0x3238] sm:$0xff]  }
 0x636   :  { %v21583_v48 = vpop.f32.mrb[169].mxu0  ;;  %21906 = vmatprep.subr.bf16.mxu1 %v23644_v3  ;;  %v239_v3 = vld [vmem:[%s29516_s0 + $0x640] sm:$0xff] }
 0x637   :  { %v21584_v50 = vadd.f32 %v21583_v48, %v21582_v46  ;;  %v21585_v51 = vpop.f32.mrb[170].mxu0  ;;  %v21604_v53 = vpop.f32.mrb[168].mxu1  ;;  %21885 = vmatpush3.bf16.msra.mxu0 %v23643_v2  ;;  %v23672_v46 = vld [vmem:[%s29515_s1 + $0x32e0] sm:$0xff]   ;;  %v23685_v2 = vld [vmem:[%s29515_s1 + $0x32b8] sm:$0xff]  }
 0x638   :  { %v21586_v56 = vpop.f32.mrb[171].mxu0  ;;  %v21605_v58 = vpop.f32.mrb[169].mxu1  ;;  %21886 = vmatprep.subr.bf16.mxu0 %v23646_v5  ;;  %v23673_v48 = vld [vmem:[%s29515_s1 + $0x32a0] sm:$0xff]   ;;  %v23674_v51 = vld [vmem:[%s29515_s1 + $0x3268] sm:$0xff]   ;;  %v242_v5 = vld [vmem:[%s29516_s0 + $0x658] sm:$0xff] }
 0x639   :  { %v16988_v55 = vadd.f32 %v21584_v50, %v29136_v13  ;;  %v21606_v60 = vadd.f32 %v21605_v58, %v21604_v53  ;;  %v21607_v61 = vpop.f32.mrb[170].mxu1  ;;  %21907 = vmatpush3.bf16.msra.mxu1 %v23645_v4  ;;  %v442_v13 = vpack.c.bf16 %v236_v12, %v236_v12  ;;  %v23675_v53 = vld [vmem:[%s29515_s1 + $0x3228] sm:$0xff]   ;;  %v23679_v58 = vld [vmem:[%s29515_s1 + $0x3230] sm:$0xff]   ;;  %v23699_v4 = vmov 0  }
 0x63a   :  { %v21608_v63 = vpop.f32.mrb[171].mxu1  ;;  %21908 = vmatprep.subr.bf16.mxu1 %v23648_v7  ;;  %v23677_v56 = vld [vmem:[%s29515_s1 + $0x32a8] sm:$0xff]   ;;  %v23682_v61 = vld [vmem:[%s29515_s1 + $0x3278] sm:$0xff]   ;;  %v448_v7 = vpack.c.bf16 %v242_v5, %v242_v5  ;;  %v23688_v12 = vld [vmem:[%s29515_s1 + $0x3310] sm:$0xff]  }
 0x63b   :  { %v29247_v1 = vadd.f32 %v21606_v60, %v16988_v55  ;;  %21887 = vmatpush3.bf16.msra.mxu0 %v23647_v6  ;;  %17545 = vmatprep.mubr.bf16.mxu0 %v442_v13  ;;  %v23676_v55 = vld [vmem:[%s29515_s1 + $0x32e8] sm:$0xff]   ;;  %v23681_v60 = vld [vmem:[%s29515_s1 + $0x32b0] sm:$0xff]   ;;  %v23684_v63 = vld [vmem:[%s29515_s1 + $0x32f8] sm:$0xff]   ;;  %v445_v6 = vpack.c.bf16 %v239_v3, %v239_v3 }
 0x63c   :  { %21888 = vmatprep.subr.bf16.mxu0 %v23650_v9  ;;  %v241_v9 = vld [vmem:[%s29516_s0 + $0x650] sm:$0xff]  ;;  %v244_v13 = vld [vmem:[%s29516_s0 + $0x668] sm:$0xff]  ;;  %v17718_v3 = vld [vmem:[%s29518_s3 + $0x20] sm:$0xff] }
 0x63d   :  { %21909 = vmatpush3.bf16.msra.mxu1 %v23649_v8  ;;  %v23686_v8 = vld [vmem:[%s29515_s1 + $0x3300] sm:$0xff]  }
 0x63e   :  { %21910 = vmatprep.subr.bf16.mxu1 %v23652_v11  ;;  %v23687_v11 = vld [vmem:[%s29515_s1 + $0x3308] sm:$0xff]  }
 0x63f   :  { %21889 = vmatpush3.bf16.msra.mxu0 %v23651_v10  ;;  %v447_v10 = vpack.c.bf16 %v241_v9, %v241_v9 }
 0x640   :  { %21918 = vmatprep.subr.bf16.mxu0 %v23654_v17 }
 0x641   :  { %21911 = vmatpush3.bf16.msra.mxu1 %v23653_v14  ;;  %v450_v14 = vpack.c.bf16 %v244_v13, %v244_v13 }
 0x642   :  { %17546 = vmatmul.mubr.bf16.vlgmr.msra.gmra.mrb[196].mxu0 %v441_v16  ;;  %21940 = vmatprep.subr.bf16.mxu1 %v23656_v23 }
 0x643   :  { %21919 = vmatpush3.bf16.msra.mxu0 %v23655_v20 }
 0x644   :  { %17586 = vmatmul.mubr.bf16.vlgmr.msra.gmra.mrb[196].mxu1 %v443_v22  ;;  %21920 = vmatprep.subr.bf16.mxu0 %v23658_v25 }
 0x645   :  { %21941 = vmatpush3.bf16.msra.mxu1 %v23657_v24  ;;  %17665 = vmatprep.mubr.bf16.mxu1 %v448_v7 }
 0x646   :  { %21942 = vmatprep.subr.bf16.mxu1 %v23660_v27  ;;  %v23691_v27 = vld [vmem:[%s29515_s1 + $0x3328] sm:$0xff]  }
 0x647   :  { %21921 = vmatpush3.bf16.msra.mxu0 %v23659_v26 }
 0x648   :  { %21922 = vmatprep.subr.bf16.mxu0 %v23662_v29 }
 0x649   :  { %21943 = vmatpush3.bf16.msra.mxu1 %v23661_v28 }
 0x64a   :  { %21944 = vmatprep.subr.bf16.mxu1 %v23664_v31  ;;  %v23693_v31 = vld [vmem:[%s29515_s1 + $0x3338] sm:$0xff]  }
 0x64b   :  { %21923 = vmatpush3.bf16.msra.mxu0 %v23663_v30  ;;  %v23692_v30 = vld [vmem:[%s29515_s1 + $0x3330] sm:$0xff]  }
 0x64c   :  { %21924 = vmatprep.subr.bf16.mxu0 %v23666_v33  ;;  %v243_v33 = vld [vmem:[%s29516_s0 + $0x660] sm:$0xff] }
 0x64d   :  { %21945 = vmatpush3.bf16.msra.mxu1 %v23665_v32  ;;  %v23694_v32 = vld [vmem:[%s29515_s1 + $0x3340] sm:$0x1f]  }
 0x64e   :  { %21946 = vmatprep.subr.bf16.mxu1 %v23668_v36 }
 0x64f   :  { %21925 = vmatpush3.bf16.msra.mxu0 %v23667_v34  ;;  %v13591_v34 = vsel %vm13589_vm1, %v23694_v32, 0 }
 0x650   :  { %21926 = vmatprep.subr.bf16.mxu0 %v23670_v41 }
 0x651   :  { %21947 = vmatpush3.bf16.msra.mxu1 %v23669_v38 }
 0x652   :  { %21948 = vmatprep.subr.bf16.mxu1 %v23672_v46 }
 0x653   :  { %21927 = vmatpush3.bf16.msra.mxu0 %v23671_v43 }
 0x654   :  { %21928 = vmatprep.subr.bf16.mxu0 %v23674_v51 }
 0x655   :  { %v21626_v35 = vpop.f32.mrb[172].mxu0  ;;  %21949 = vmatpush3.bf16.msra.mxu1 %v23673_v48 }
 0x656   :  { %v21627_v37 = vpop.f32.mrb[173].mxu0  ;;  %21950 = vmatprep.subr.bf16.mxu1 %v23676_v55 }
 0x657   :  { %v21628_v39 = vadd.f32 %v21627_v37, %v21626_v35  ;;  %v21629_v40 = vpop.f32.mrb[174].mxu0  ;;  %v21648_v42 = vpop.f32.mrb[172].mxu1  ;;  %21929 = vmatpush3.bf16.msra.mxu0 %v23675_v53  ;;  %v449_v35 = vpack.c.bf16 %v243_v33, %v243_v33 }
 0x658   :  { %v21630_v45 = vpop.f32.mrb[175].mxu0  ;;  %v21649_v47 = vpop.f32.mrb[173].mxu1  ;;  %21930 = vmatprep.subr.bf16.mxu0 %v23678_v57 }
 0x659   :  { %v17068_v44 = vadd.f32 %v21628_v39, %v29247_v1  ;;  %v21650_v49 = vadd.f32 %v21649_v47, %v21648_v42  ;;  %v21651_v50 = vpop.f32.mrb[174].mxu1  ;;  %21951 = vmatpush3.bf16.msra.mxu1 %v23677_v56  ;;  %v446_v1 = vpack.c.bf16 %v240_v0, %v240_v0 }
 0x65a   :  { %v21652_v52 = vpop.f32.mrb[175].mxu1  ;;  %21952 = vmatprep.subr.bf16.mxu1 %v23680_v59 }
 0x65b   :  { %v17108_v54 = vadd.f32 %v21650_v49, %v17068_v44  ;;  %21931 = vmatpush3.bf16.msra.mxu0 %v23679_v58  ;;  %17625 = vmatprep.mubr.bf16.mxu0 %v446_v1  ;;  %v17717_v1 = vld [vmem:[%s29518_s3 + $0x18] sm:$0xff] }
 0x65c   :  { %21932 = vmatprep.subr.bf16.mxu0 %v23682_v61  ;;  %v17714_v61 = vld [vmem:[%s29518_s3] sm:$0xff] }
 0x65d   :  { %21953 = vmatpush3.bf16.msra.mxu1 %v23681_v60  ;;  %v23700_v60 = vmov 0.0|0.0  }
 0x65e   :  { %21954 = vmatprep.subr.bf16.mxu1 %v23684_v63  ;;  %v17716_v63 = vld [vmem:[%s29518_s3 + $0x10] sm:$0xff] }
 0x65f   :  { %21933 = vmatpush3.bf16.msra.mxu0 %v23683_v62  ;;  %v17715_v62 = vld [vmem:[%s29518_s3 + $0x8] sm:$0xff] }
 0x660   :  { %17673 = vmatprep.subr.bf16.mxu0 %v23699_v4  ;;  %v22027_v0 = vpack.c.bf16 %v17715_v62, %v17714_v61 }
 0x661   :  { %21955 = vmatpush3.bf16.msra.mxu1 %v23685_v2  ;;  %v22030_v2 = vpack.c.bf16 %v17717_v1, %v17716_v63 }
 0x662   :  { %17626 = vmatmul.mubr.bf16.vlgmr.msra.gmra.mrb[200].mxu0 %v445_v6  ;;  %22026 = vmatprep.subr.bf16.mxu1 %v23700_v60 }
 0x663   :  { %17674 = vmatpush1.bf16.msra.mxu0 %v23686_v8  ;;  %19709 = vmatprep.mubr.msk.bf16.mxu0 %vm13585_vm0, %v450_v14 }
 0x664   :  { %17666 = vmatmul.mubr.bf16.vlgmr.msra.gmra.mrb[200].mxu1 %v447_v10  ;;  %17675 = vmatprep.subr.bf16.mxu0 %v23699_v4 }
 0x665   :  { %22028 = vmatpush3.bf16.msra.mxu1 %v22027_v0 }
 0x666   :  { %22029 = vmatprep.subr.bf16.mxu1 %v23700_v60 }
 0x667   :  { %17676 = vmatpush1.bf16.msra.mxu0 %v23687_v11 }
 0x668   :  { %17677 = vmatprep.subr.bf16.mxu0 %v23699_v4 }
 0x669   :  { %22031 = vmatpush3.bf16.msra.mxu1 %v22030_v2 }
 0x66a   :  { %22032 = vmatprep.subr.bf16.mxu1 %v23700_v60 }
 0x66b   :  { %17678 = vmatpush1.bf16.msra.mxu0 %v23688_v12 }
 0x66c   :  { %17679 = vmatprep.subr.bf16.mxu0 %v23699_v4 }
 0x66f   :  { %17680 = vmatpush1.bf16.msra.mxu0 %v23689_v15 }
 0x670   :  { %17681 = vmatprep.subr.bf16.mxu0 %v23699_v4 }
 0x673   :  { %17682 = vmatpush1.bf16.msra.mxu0 %v23690_v18  ;;  %v17720_v18 = vld [vmem:[%s29518_s3 + $0x30] sm:$0xff] }
 0x674   :  { %17683 = vmatprep.subr.bf16.mxu0 %v23699_v4 }
 0x675   :  { %v21670_v16 = vpop.f32.mrb[176].mxu0 }
 0x676   :  { %v21671_v17 = vpop.f32.mrb[177].mxu0 }
 0x677   :  { %v21672_v19 = vadd.f32 %v21671_v17, %v21670_v16  ;;  %v21673_v20 = vpop.f32.mrb[178].mxu0  ;;  %v21692_v21 = vpop.f32.mrb[176].mxu1  ;;  %17684 = vmatpush1.bf16.msra.mxu0 %v23691_v27 }
 0x678   :  { %v21674_v22 = vpop.f32.mrb[179].mxu0  ;;  %v21693_v24 = vpop.f32.mrb[177].mxu1  ;;  %17685 = vmatprep.subr.bf16.mxu0 %v23699_v4 }
 0x679   :  { %v17148_v23 = vadd.f32 %v21672_v19, %v17108_v54  ;;  %v21694_v25 = vadd.f32 %v21693_v24, %v21692_v21  ;;  %v21695_v26 = vpop.f32.mrb[178].mxu1  ;;  %v17721_v19 = vld [vmem:[%s29518_s3 + $0x38] sm:$0xff]  ;;  %v23702_v21 = vmov 0.0  }
 0x67a   :  { %v21696_v28 = vpop.f32.mrb[179].mxu1  ;;  %v22036_v20 = vpack.c.bf16 %v17721_v19, %v17720_v18  ;;  %21998 = vmatprep.mubr.msk.f32.mxu1 %vm23701_vm2, %v23702_v21 }
 0x67b   :  { %v17188_v29 = vadd.f32 %v21694_v25, %v17148_v23  ;;  %17686 = vmatpush1.bf16.msra.mxu0 %v23692_v30 }
 0x67c   :  { %17687 = vmatprep.subr.bf16.mxu0 %v23699_v4 }
 0x67f   :  { %17688 = vmatpush1.bf16.msra.mxu0 %v23693_v31 }
 0x680   :  { %17689 = vmatprep.subr.bf16.mxu0 %v23699_v4  ;;  %v17719_v4 = vld [vmem:[%s29518_s3 + $0x28] sm:$0xff] }
 0x681   :  { %v22033_v5 = vpack.c.bf16 %v17719_v4, %v17718_v3  ;;  %v17806_v4 = vld [vmem:[%s29519_s5 + $0x10] sm:$0xff] }
 0x683   :  { %17690 = vmatpush1.bf16.msra.mxu0 %v13591_v34  ;;  %22034 = vmatpush3.bf16.msra.mxu1 %v22033_v5  ;;  %v17807_v5 = vld [vmem:[%s29519_s5 + $0x18] sm:$0xff] }
 0x684   :  { %22035 = vmatprep.subr.bf16.mxu1 %v23700_v60 }
 0x686   :  { %17706 = vmatmul.mubr.bf16.vlgmr.msra.gmra.mrb[204].mxu0 %v449_v35 }
 0x687   :  { %22037 = vmatpush3.bf16.msra.mxu1 %v22036_v20  ;;  %v17974_v20 = vld [vmem:[%s29523_s9] sm:$0xff] }
 0x688   :  { %22038 = vmatprep.subr.bf16.mxu1 %v23700_v60 }
 0x695   :  { %v21714_v36 = vpop.f32.mrb[180].mxu0 }
 0x696   :  { %v21715_v37 = vpop.f32.mrb[181].mxu0 }
 0x697   :  { %v21716_v38 = vadd.f32 %v21715_v37, %v21714_v36  ;;  %v21717_v39 = vpop.f32.mrb[182].mxu0  ;;  %v21736_v40 = vpop.f32.mrb[180].mxu1 }
 0x698   :  { %v21718_v41 = vpop.f32.mrb[183].mxu0  ;;  %v21737_v43 = vpop.f32.mrb[181].mxu1 }
 0x699   :  { %v17228_v42 = vadd.f32 %v21716_v38, %v17188_v29  ;;  %v21738_v44 = vadd.f32 %v21737_v43, %v21736_v40  ;;  %v21739_v45 = vpop.f32.mrb[182].mxu1 }
 0x69a   :  { %v21740_v46 = vpop.f32.mrb[183].mxu1 }
 0x69b   :  { %v17268_v47 = vadd.f32 %v21738_v44, %v17228_v42 }
 0x6b5   :  { %v21758_v48 = vpop.f32.mrb[184].mxu0 }
 0x6b6   :  { %v21759_v49 = vpop.f32.mrb[185].mxu0 }
 0x6b7   :  { %v21760_v50 = vadd.f32 %v21759_v49, %v21758_v48  ;;  %v21761_v51 = vpop.f32.mrb[186].mxu0  ;;  %v21780_v52 = vpop.f32.mrb[184].mxu1 }
 0x6b8   :  { %v21762_v53 = vpop.f32.mrb[187].mxu0  ;;  %v21781_v54 = vpop.f32.mrb[185].mxu1 }
 0x6b9   :  { %v17308_v55 = vadd.f32 %v21760_v50, %v17268_v47  ;;  %v21782_v56 = vadd.f32 %v21781_v54, %v21780_v52  ;;  %v21783_v57 = vpop.f32.mrb[186].mxu1 }
 0x6ba   :  { %v21784_v58 = vpop.f32.mrb[187].mxu1 }
 0x6bb   :  { %v17348_v59 = vadd.f32 %v21782_v56, %v17308_v55  ;;  %v17804_v58 = vld [vmem:[%s29519_s5] sm:$0xff] }
 0x6d5   :  { %v21802_v6 = vpop.f32.mrb[188].mxu0 }
 0x6d6   :  { %v21803_v7 = vpop.f32.mrb[189].mxu0 }
 0x6d7   :  { %v21804_v8 = vadd.f32 %v21803_v7, %v21802_v6  ;;  %v21805_v9 = vpop.f32.mrb[190].mxu0  ;;  %v21824_v10 = vpop.f32.mrb[188].mxu1  ;;  %v22042_v6 = vpack.c.bf16 %v17807_v5, %v17806_v4  ;;  %v19710_v7 = vld [vmem:[%s29520_s4] ss:$0 sm:$0xff] }
 0x6d8   :  { %v21806_v11 = vpop.f32.mrb[191].mxu0  ;;  %v21825_v13 = vpop.f32.mrb[189].mxu1 }
 0x6d9   :  { %v17388_v12 = vadd.f32 %v21804_v8, %v17348_v59  ;;  %v21826_v14 = vadd.f32 %v21825_v13, %v21824_v10  ;;  %v21827_v15 = vpop.f32.mrb[190].mxu1  ;;  %v17805_v59 = vld [vmem:[%s29519_s5 + $0x8] sm:$0xff] }
 0x6da   :  { %v21828_v16 = vpop.f32.mrb[191].mxu1  ;;  %v22039_v1 = vpack.c.bf16 %v17805_v59, %v17804_v58  ;;  %v17891_v13 = vld [vmem:[%s29521_s7 + $0x8] sm:$0xff]  ;;  %v19712_v15 = vld [vmem:[%s29522_s6] ss:$0 sm:$0xff] }
 0x6db   :  { %v17428_v17 = vadd.f32 %v21826_v14, %v17388_v12  ;;  %v17890_v12 = vld [vmem:[%s29521_s7] sm:$0xff] }
 0x6dc   :  { %v22045_v14 = vpack.c.bf16 %v17891_v13, %v17890_v12 }
 0x6f5   :  { %v21846_v22 = vpop.f32.mrb[192].mxu0 }
 0x6f6   :  { %v21847_v23 = vpop.f32.mrb[193].mxu0 }
 0x6f7   :  { %v21848_v24 = vadd.f32 %v21847_v23, %v21846_v22  ;;  %v21849_v25 = vpop.f32.mrb[194].mxu0  ;;  %v21868_v26 = vpop.f32.mrb[192].mxu1  ;;  %v19714_v23 = vld [vmem:[%s29524_s8] ss:$0 sm:$0xff] }
 0x6f8   :  { %v21850_v27 = vpop.f32.mrb[195].mxu0  ;;  %v21869_v29 = vpop.f32.mrb[193].mxu1 }
 0x6f9   :  { %v17468_v28 = vadd.f32 %v21848_v24, %v17428_v17  ;;  %v21870_v30 = vadd.f32 %v21869_v29, %v21868_v26  ;;  %v21871_v31 = vpop.f32.mrb[194].mxu1 }
 0x6fa   :  { %v21872_v32 = vpop.f32.mrb[195].mxu1 }
 0x6fb   :  { %v17508_v33 = vadd.f32 %v21870_v30, %v17468_v28 }
 0x715   :  { %v21890_v34 = vpop.f32.mrb[196].mxu0 }
 0x716   :  { %v21891_v35 = vpop.f32.mrb[197].mxu0 }
 0x717   :  { %v21892_v36 = vadd.f32 %v21891_v35, %v21890_v34  ;;  %v21893_v37 = vpop.f32.mrb[198].mxu0  ;;  %v21912_v38 = vpop.f32.mrb[196].mxu1 }
 0x718   :  { %v21894_v39 = vpop.f32.mrb[199].mxu0  ;;  %v21913_v40 = vpop.f32.mrb[197].mxu1 }
 0x719   :  { %v17548_v41 = vadd.f32 %v21892_v36, %v17508_v33  ;;  %v21914_v42 = vadd.f32 %v21913_v40, %v21912_v38  ;;  %v21915_v43 = vpop.f32.mrb[198].mxu1 }
 0x71a   :  { %v21916_v44 = vpop.f32.mrb[199].mxu1 }
 0x71b   :  { %v17588_v45 = vadd.f32 %v21914_v42, %v17548_v41 }
 0x735   :  { %v21934_v46 = vpop.f32.mrb[200].mxu0 }
 0x736   :  { %v21935_v47 = vpop.f32.mrb[201].mxu0 }
 0x737   :  { %v21936_v48 = vadd.f32 %v21935_v47, %v21934_v46  ;;  %v21937_v49 = vpop.f32.mrb[202].mxu0  ;;  %v21956_v50 = vpop.f32.mrb[200].mxu1 }
 0x738   :  { %v21938_v51 = vpop.f32.mrb[203].mxu0  ;;  %v21957_v52 = vpop.f32.mrb[201].mxu1 }
 0x739   :  { %v17628_v53 = vadd.f32 %v21936_v48, %v17588_v45  ;;  %v21958_v54 = vadd.f32 %v21957_v52, %v21956_v50  ;;  %v21959_v55 = vpop.f32.mrb[202].mxu1 }
 0x73a   :  { %v21960_v56 = vpop.f32.mrb[203].mxu1 }
 0x73b   :  { %v17668_v57 = vadd.f32 %v21958_v54, %v17628_v53 }
 0x759   :  { %v17707_v61 = vpop.f32.mrb[204].mxu0 }
 0x75a   :  { %v17708_v62 = vadd.f32 %v17707_v61, %v17668_v57  ;;  %v17709_v63 = vpop.f32.mrb[205].mxu0 }
 0x75b   :  { %v17710_v0 = vpop.f32.mrb[206].mxu0 }
 0x75c   :  { %v17713_v2 = vmax.f32 %v17708_v62, 0.0  ;;  %v17711_v3 = vpop.f32.mrb[207].mxu0 }
 0x75e   :  { %21999 = vmatmul.mubr.msk.f32.vlgmr.msra.gmra.mrb[204].mxu1 %vm17729_vm3, %v17713_v2 }
 0x75f   :  { %22040 = vmatpush3.bf16.msra.mxu1 %v22039_v1  ;;  %22009 = vmatprep.mubr.msk.f32.mxu1 %vm23701_vm2, %v23702_v21 }
 0x760   :  { %22041 = vmatprep.subr.bf16.mxu1 %v23700_v60 }
 0x763   :  { %22043 = vmatpush3.bf16.msra.mxu1 %v22042_v6 }
 0x764   :  { %22044 = vmatprep.subr.bf16.mxu1 %v23700_v60 }
 0x831   :  { %v17799_v8 = vpop.f32.mrb[204].mxu1 }
 0x832   :  { %v17800_v9 = vadd.f32 %v19710_v7, %v17799_v8  ;;  %v22000_v10 = vpop.f32.mrb[205].mxu1 }
 0x834   :  { %v17803_v11 = vmax.f32 %v17800_v9, 0.0 }
 0x836   :  { %22010 = vmatmul.mubr.msk.f32.vlgmr.msra.gmra.mrb[206].mxu1 %vm17815_vm4, %v17803_v11 }
 0x837   :  { %22016 = vmatprep.mubr.msk.f32.mxu1 %vm23701_vm2, %v23702_v21  ;;  %22046 = vmatpush3.bf16.msra.mxu1 %v22045_v14 }
 0x838   :  { %22047 = vmatprep.subr.bf16.mxu1 %v23700_v60  ;;  %v17975_v60 = vld [vmem:[%s29523_s9 + $0x8] sm:$0xff] }
 0x839   :  { %v22048_v22 = vpack.c.bf16 %v17975_v60, %v17974_v20 }
 0x909   :  { %v17885_v16 = vpop.f32.mrb[206].mxu1 }
 0x90a   :  { %v17886_v17 = vadd.f32 %v19712_v15, %v17885_v16  ;;  %v22011_v18 = vpop.f32.mrb[207].mxu1 }
 0x90c   :  { %v17889_v19 = vmax.f32 %v17886_v17, 0.0 }
 0x90e   :  { %22017 = vmatmul.mubr.msk.f32.vlgmr.msra.gmra.mrb[208].mxu1 %vm17899_vm5, %v17889_v19 }
 0x90f   :  { %22023 = vmatprep.mubr.msk.f32.mxu1 %vm23701_vm2, %v23702_v21  ;;  %22049 = vmatpush3.bf16.msra.mxu1 %v22048_v22  ;;  %v19716_v21 = vld [vmem:[%s29525_s10] ss:$0 sm:$0xff] }
 0x9e1   :  { %v17969_v24 = vpop.f32.mrb[208].mxu1 }
 0x9e2   :  { %v17970_v25 = vadd.f32 %v19714_v23, %v17969_v24  ;;  %v22018_v26 = vpop.f32.mrb[209].mxu1 }
 0x9e4   :  { %v17973_v27 = vmax.f32 %v17970_v25, 0.0 }
 0x9e6   :  { %22024 = vmatmul.mubr.msk.f32.vlgmr.msra.gmra.mrb[210].mxu1 %vm17899_vm5, %v17973_v27 }
 0xab9   :  { %v18052_v28 = vpop.f32.mrb[210].mxu1 }
 0xaba   :  { %v18053_v29 = vadd.f32 %v19716_v21, %v18052_v28  ;;  %v22025_v30 = vpop.f32.mrb[211].mxu1 }
 0xabc   :  { %v18056_v31 = vsub.f32 0.0, %v18053_v29 }
 0xabe   :  { %v18057_v32 = vmul.f32 1.442695, %v18056_v31 }
 0xac0   :  { %23695 = vpow2.f32 %v18057_v32 }
 0xaca   :  { %v23696_v33 = vpop.eup %23695 }
 0xacb   :  { %v18059_v34 = vadd.f32 1.0, %v23696_v33 }
 0xacd   :  { %23697 = vrcp.f32 %v18059_v34 }
 0xad7   :  { %v23698_v35 = vpop.eup %23697 }
 0xad8   :  { %18062 = vst.msk [vmem:[%s29526_s11] sm:$0xff] %vm18061_vm6, %v23698_v35 }

</bundles_post_ra>
